<compile_context>
chip_gen: v7x
topology: tpu7x:2x2x1
jax: 0.10.0
libtpu: 0.0.40
codegen_flags: <defaults>
</compile_context>

<pallas_src>
import jax
import jax.numpy as jnp
from jax.experimental import pallas as pl
from jax.experimental.pallas import tpu as pltpu


def _ctrgc_kernel(x_ref, w_ref, b_ref, w4b_ref, ab_ref, o_ref):
    """One grid step: NB batch items.

    x_ref   : (NB, Cin, T*V)   channels-first input block (compute dtype)
    w_ref   : (Cin, Cout+2R)   fused [w3 | w1 | w2] 1x1-conv weight
    b_ref   : (1,  Cout+2R)    fused bias (f32)
    w4b_ref : (V*R, V*Cout)    block-diagonal conv4 weight (alpha folded in)
    ab_ref  : (V,  V*Cout)     A[u,v] broadcast over Cout + alpha*b4 tiled over U (f32)
    o_ref   : (NB, T, V*Cout)  lane-dense channels-last output (f32)
    """
    NB, T, VC = o_ref.shape
    V = ab_ref.shape[0]
    Cout = VC // V
    R = w4b_ref.shape[0] // V
    Cin, TV = x_ref.shape[1], x_ref.shape[2]

    # NCHW -> channels-last inside VMEM (XLU transpose of the minor-most dims);
    # avoids a separate XLA transpose pass over x in HBM.
    x = x_ref[...]
    xt = jnp.transpose(x, (0, 2, 1)).reshape(NB * TV, Cin)          # (NB*T*V, Cin)

    # conv3 | conv1 | conv2 fused into one full-resolution MXU matmul.
    y = jnp.dot(xt, w_ref[...], preferred_element_type=jnp.float32) + b_ref[...]
    y = y.reshape(NB, T, V, Cout + 2 * R)

    x3 = y[..., :Cout]                                              # (NB, T, V, Cout)
    y12 = jnp.mean(y[..., Cout:], axis=1)                           # (NB, V, 2R) T-mean
    x1m = y12[..., :R]                                              # (NB, U, R)
    x2m = y12[..., R:]                                              # (NB, V, R)

    # Lane-dense relational branch: d[n, v, u*R + r] = tanh(x1m[n,u,r] - x2m[n,v,r]).
    # tanh (EUP) and the subtract run at V*R lanes (=128 for V=16, R=8) instead of R.
    x1row = x1m.reshape(NB, 1, V * R)                               # lanes: u*R + r
    x2til = jnp.tile(x2m, (1, 1, V))                                # (NB, V, V*R)
    d = jnp.tanh(x1row - x2til)                                     # (NB, V, V*R) f32

    # conv4 as ONE block-diagonal MXU matmul (K = V*R) instead of a K=R matmul +
    # relayouts; output is already in the (NB, V, U*Cout) layout the epilogue needs.
    # alpha folded into w4b/ab by the wrapper; + A[u,v] + alpha*b4 in one lane-dense add.
    z = jnp.dot(d.reshape(NB * V, V * R).astype(w4b_ref.dtype), w4b_ref[...],
                preferred_element_type=jnp.float32)                 # (NB*V, V*Cout)
    adj = z.reshape(NB, V, VC) + ab_ref[...][None, :, :]            # (NB, V, U*Cout)

    # out[n, t, u*Cout + c] = sum_v x3[n,t,v,c] * adj[n,v,u*Cout+c]
    # Accumulate straight into the lane-dense VMEM output block: full 512-lane VPU
    # FMAs, bounded live ranges per iteration (read-modify-write of the block, no
    # long SSA chains / vreg spills), static slices (no dynamic-slice relayouts).
    # The lane-tile of x3v rides otherwise-idle XLU slots.
    def term(v):
        x3v = jnp.tile(x3[:, :, v, :], (1, 1, V))                   # (NB, T, V*Cout)
        return x3v * adj[:, v, :][:, None, :]

    o_ref[...] = term(0)
    for v in range(1, V):
        o_ref[...] += term(v)


def _tpu_budget():
    """Returns (scoped-VMEM budget in bytes, whether the chip has 2 TensorCores)."""
    vmem = 64 << 20
    try:
        info = pltpu.get_tpu_info()
        vmem = int(getattr(info, "vmem_capacity_bytes", vmem))
    except Exception:
        pass
    kind = ""
    try:
        kind = jax.devices()[0].device_kind.lower()
    except Exception:
        pass
    two_cores = "v7" in kind
    # Leave ~half of physical VMEM as headroom: ~32 MiB on v7x (64 MiB/TC),
    # ~64 MiB on v5e/v6e (128 MiB).
    return max(8 << 20, min(vmem // 2, 64 << 20)), two_cores


def _per_step_vmem(nb, T, V, Cin, Cout, R, in_bytes):
    TV, VC, K2, VR = T * V, V * Cout, Cout + 2 * R, V * R
    blocks = 2 * nb * Cin * TV * in_bytes + 2 * nb * T * VC * 4      # double-buffered I/O
    interm = (nb * TV * Cin * in_bytes + nb * TV * K2 * 4            # xt, y
              + nb * V * VR * 4 + nb * V * VC * 4                    # d, adj
              + 2 * nb * T * VC * 4)                                 # epilogue temporaries
    weights = 2 * (Cin * K2 + VR * VC) * in_bytes + 2 * (K2 + V * VC) * 4
    return blocks + interm + weights


def _pick_nb(N, T, V, Cin, Cout, R, in_bytes, budget, two_cores):
    """Largest batch block NB that fits `budget`.  Single-TC chips (v5e/v6e) prefer a
    1-step grid (grid steps are a serial loop); v7x keeps >=2 (ideally even) steps so
    both TensorCores get work under dimension_semantics=('parallel',)."""
    min_steps = 2 if two_cores else 1
    divs = [d for d in range(1, N + 1) if N % d == 0]
    fit = [d for d in divs if _per_step_vmem(d, T, V, Cin, Cout, R, in_bytes) <= budget]
    if not fit:
        fit = [1]
    cands = [d for d in fit if N // d >= min_steps] or fit
    if two_cores:
        even = [d for d in cands if (N // d) % 2 == 0]
        if even:
            return max(even)
    return max(cands)


def ctrgc_forward(x_nchw, params, A=None, alpha=1.0, *, nb=None,
                  compute_dtype=jnp.bfloat16, nchw_output=True):
    """CTRGC forward.  x_nchw: (N, Cin, T, V) float32, like the PyTorch module.

    Returns (N, Cout, T, V) if nchw_output else channels-last (N, T, V, Cout).
    compute_dtype=bf16 feeds the MXU at native rate with f32 accumulation.
    """
    N, Cin, T, V = x_nchw.shape
    w1, b1, w2, b2, w3, b3, w4, b4 = params
    R = w1.shape[1]
    Cout = w3.shape[1]
    if A is None:
        A = jnp.zeros((V, V), jnp.float32)

    cdt = jnp.dtype(compute_dtype)
    in_bytes = cdt.itemsize

    # Fused 1x1-conv weight [conv3 | conv1 | conv2] -> one MXU matmul; the extra 2R
    # output columns are free as long as Cout+2R fits within one MXU N-tile.
    w_fused = jnp.concatenate([w3, w1, w2], axis=1).astype(cdt)          # (Cin, Cout+2R)
    b_fused = jnp.concatenate([b3, b1, b2], axis=1).astype(jnp.float32)  # (1, Cout+2R)

    # conv4 as a block-diagonal (V*R, V*Cout) weight with alpha folded in.
    w4blk = jnp.kron(jnp.eye(V, dtype=jnp.float32),
                     (w4 * alpha).astype(jnp.float32)).astype(cdt)       # (V*R, V*Cout)

    # A (+ alpha*b4) pre-broadcast to the lane-dense (V, U*Cout) layout of adj.
    ab = (jnp.repeat(A.astype(jnp.float32).T, Cout, axis=1)
          + jnp.tile((b4 * alpha).reshape(1, Cout).astype(jnp.float32), (1, V)))

    # NCHW stays NCHW in HBM (free reshape); the channels-last transpose happens on
    # the XLU inside the kernel.  Only wrapper-side cost is the optional bf16 cast.
    # TODO(synk): have the producing layer emit bf16 directly to drop this cast pass.
    x = x_nchw.reshape(N, Cin, T * V).astype(cdt)

    budget, two_cores = _tpu_budget()
    NB = nb if nb is not None else _pick_nb(N, T, V, Cin, Cout, R, in_bytes,
                                            budget, two_cores)
    assert N % NB == 0, (N, NB)
    vmem_limit = int(min(max(2 * _per_step_vmem(NB, T, V, Cin, Cout, R, in_bytes),
                             8 << 20), budget))

    out = pl.pallas_call(
        _ctrgc_kernel,
        out_shape=jax.ShapeDtypeStruct((N, T, V * Cout), jnp.float32),
        grid=(N // NB,),
        in_specs=[
            pl.BlockSpec((NB, Cin, T * V), lambda n: (n, 0, 0)),
            pl.BlockSpec(w_fused.shape, lambda n: (0, 0)),
            pl.BlockSpec(b_fused.shape, lambda n: (0, 0)),
            pl.BlockSpec(w4blk.shape, lambda n: (0, 0)),
            pl.BlockSpec(ab.shape, lambda n: (0, 0)),
        ],
        out_specs=pl.BlockSpec((NB, T, V * Cout), lambda n: (n, 0, 0)),
        compiler_params=pltpu.CompilerParams(
            dimension_semantics=("parallel",),
            vmem_limit_bytes=vmem_limit,
        ),
    )(x, w_fused, b_fused, w4blk, ab)

    out = out.reshape(N, T, V, Cout)
    if nchw_output:
        # TODO(synk): keep the surrounding model channels-last end-to-end to drop this
        # transpose (it costs one extra HBM read+write of the output).
        out = jnp.transpose(out, (0, 3, 1, 2))                           # (N, Cout, T, U)
    return out


def init_params(key, in_channels, out_channels, rel_reduction=8):
    """Deterministic synthetic init matching the module (kaiming fan_out, bias=0)."""
    rel_channels = 8 if in_channels in (3, 9) else in_channels // rel_reduction
    ks = jax.random.split(key, 4)

    def kaiming(k, cin, cout):
        # torch conv weight (cout, cin, 1, 1); kaiming_normal_ fan_out -> std sqrt(2/cout)
        w = jax.random.normal(k, (cout, cin), jnp.float32) * jnp.sqrt(2.0 / cout)
        return jnp.transpose(w)                      # stored (cin, cout)

    w1 = kaiming(ks[0], in_channels, rel_channels)
    w2 = kaiming(ks[1], in_channels, rel_channels)
    w3 = kaiming(ks[2], in_channels, out_channels)
    w4 = kaiming(ks[3], rel_channels, out_channels)
    zeros = lambda c: jnp.zeros((1, c), jnp.float32)
    return (w1, zeros(rel_channels), w2, zeros(rel_channels),
            w3, zeros(out_channels), w4, zeros(out_channels))


def ctrgc_ref(x, params, A, alpha=1.0):
    """Pure-JAX reference (mirrors the PyTorch forward exactly, f32-highest matmuls)."""
    w1, b1, w2, b2, w3, b3, w4, b4 = params
    hp = jax.lax.Precision.HIGHEST

    def conv1x1(x, w, b):       # x: (N, Cin, T, V), w: (Cin, Cout)
        return jnp.einsum('nctv,co->notv', x, w, precision=hp) + b.reshape(1, -1, 1, 1)

    x1 = conv1x1(x, w1, b1).mean(axis=-2)                              # (N, R, V)
    x2 = conv1x1(x, w2, b2).mean(axis=-2)                              # (N, R, V)
    x3 = conv1x1(x, w3, b3)                                            # (N, Cout, T, V)
    d = jnp.tanh(x1[..., :, None] - x2[..., None, :])                  # (N, R, V, V)
    adj = (jnp.einsum('nruv,ro->nouv', d, w4, precision=hp)
           + b4.reshape(1, -1, 1, 1)) * alpha + A[None, None]
    return jnp.einsum('ncuv,nctv->nctu', adj, x3, precision=hp)


if __name__ == "__main__":
    key = jax.random.PRNGKey(0)
    N, Cin, Cout, T, V = 4, 64, 32, 8, 16          # R = Cin//8 = 8, so V*R = 128 lanes
    kx, ka, kp = jax.random.split(key, 3)

    x = jax.random.normal(kx, (N, Cin, T, V), jnp.float32)
    A = 0.1 * jax.random.normal(ka, (V, V), jnp.float32)
    params = init_params(kp, Cin, Cout)
    alpha = 0.5

    ref = ctrgc_ref(x, params, A, alpha=alpha)

    # f32 compute path: tight check.
    out_f32 = jax.block_until_ready(
        ctrgc_forward(x, params, A, alpha=alpha, compute_dtype=jnp.float32))
    assert out_f32.shape == (N, Cout, T, V), out_f32.shape
    assert jnp.allclose(out_f32, ref, atol=2e-3, rtol=2e-3), \
        float(jnp.max(jnp.abs(out_f32 - ref)))

    # bf16 MXU path (default): scale-aware check.
    out_bf16 = jax.block_until_ready(ctrgc_forward(x, params, A, alpha=alpha))
    scale = float(jnp.max(jnp.abs(ref)))
    err = float(jnp.max(jnp.abs(out_bf16 - ref)))
    assert err <= 0.1 * scale, (err, scale)

    print("KERNEL_OK")
</pallas_src>

<mosaic_0001>
module attributes {stable_mosaic.version = 11 : i64} {
  func.func @_ctrgc_kernel(%arg0: i32, %arg1: memref<4x64x128xf32, #tpu.memory_space<vmem>>, %arg2: memref<64x48xf32, #tpu.memory_space<vmem>>, %arg3: memref<1x48xf32, #tpu.memory_space<vmem>>, %arg4: memref<128x512xf32, #tpu.memory_space<vmem>>, %arg5: memref<16x512xf32, #tpu.memory_space<vmem>>, %arg6: memref<4x8x512xf32, #tpu.memory_space<vmem>>) attributes {dimension_semantics = [#tpu.dimension_semantics<parallel>], iteration_bounds = array<i64: 1>, scalar_prefetch = 0 : i64, scratch_operands = 0 : i64, tpu.core_type = #tpu.core_type<tc>, window_params = [{transform_indices = @transform_0, window_bounds = array<i64: 4, 64, 128>}, {pipeline_mode = #tpu.pipeline_mode<synchronous>, transform_indices = @transform_1, window_bounds = array<i64: 64, 48>}, {pipeline_mode = #tpu.pipeline_mode<synchronous>, transform_indices = @transform_2, window_bounds = array<i64: 1, 48>}, {pipeline_mode = #tpu.pipeline_mode<synchronous>, transform_indices = @transform_3, window_bounds = array<i64: 128, 512>}, {pipeline_mode = #tpu.pipeline_mode<synchronous>, transform_indices = @transform_4, window_bounds = array<i64: 16, 512>}, {transform_indices = @transform_5, window_bounds = array<i64: 4, 8, 512>}]} {
    %c0 = arith.constant 0 : index
    %c0_0 = arith.constant 0 : index
    %c0_1 = arith.constant 0 : index
    %0 = vector.load %arg1[%c0, %c0_0, %c0_1] : memref<4x64x128xf32, #tpu.memory_space<vmem>>, vector<4x64x128xf32>
    %1 = tpu.transpose %0, [0, 2, 1] : vector<4x64x128xf32> -> vector<4x128x64xf32>
    %2 = vector.shape_cast %1 : vector<4x128x64xf32> to vector<512x64xf32>
    %c0_2 = arith.constant 0 : index
    %c0_3 = arith.constant 0 : index
    %3 = vector.load %arg2[%c0_2, %c0_3] : memref<64x48xf32, #tpu.memory_space<vmem>>, vector<64x48xf32>
    %cst = arith.constant dense<0.000000e+00> : vector<512x48xf32>
    %4 = tpu.matmul %2, %3, %cst {dimension_numbers = #tpu.dot_dimension_numbers<[1], [0], [0], [1], [0, 0, 1, 1], [], []>} : vector<512x64xf32>, vector<64x48xf32>, vector<512x48xf32> -> vector<512x48xf32>
    %c0_4 = arith.constant 0 : index
    %c0_5 = arith.constant 0 : index
    %5 = vector.load %arg3[%c0_4, %c0_5] : memref<1x48xf32, #tpu.memory_space<vmem>>, vector<1x48xf32>
    %6 = vector.broadcast %5 : vector<1x48xf32> to vector<512x48xf32>
    %7 = arith.addf %4, %6 : vector<512x48xf32>
    %8 = vector.shape_cast %7 : vector<512x48xf32> to vector<4x8x16x48xf32>
    %9 = vector.extract_strided_slice %8 {offsets = [0, 0, 0, 0], sizes = [4, 8, 16, 32], strides = [1, 1, 1, 1]} : vector<4x8x16x48xf32> to vector<4x8x16x32xf32>
    %10 = vector.extract_strided_slice %8 {offsets = [0, 0, 0, 32], sizes = [4, 8, 16, 16], strides = [1, 1, 1, 1]} : vector<4x8x16x48xf32> to vector<4x8x16x16xf32>
    %cst_6 = arith.constant dense<0.000000e+00> : vector<4x16x16xf32>
    %11 = vector.multi_reduction <add>, %10, %cst_6 [1] : vector<4x8x16x16xf32> to vector<4x16x16xf32>
    %cst_7 = arith.constant 8.000000e+00 : f32
    %12 = vector.broadcast %cst_7 : f32 to vector<4x16x16xf32>
    %13 = arith.divf %11, %12 : vector<4x16x16xf32>
    %14 = vector.extract_strided_slice %13 {offsets = [0, 0, 0], sizes = [4, 16, 8], strides = [1, 1, 1]} : vector<4x16x16xf32> to vector<4x16x8xf32>
    %15 = vector.extract_strided_slice %13 {offsets = [0, 0, 8], sizes = [4, 16, 8], strides = [1, 1, 1]} : vector<4x16x16xf32> to vector<4x16x8xf32>
    %16 = vector.shape_cast %14 : vector<4x16x8xf32> to vector<4x1x128xf32>
    %17 = tpu.concatenate %15, %15, %15, %15, %15, %15, %15, %15, %15, %15, %15, %15, %15, %15, %15, %15 in 2 : vector<4x16x8xf32>, vector<4x16x8xf32>, vector<4x16x8xf32>, vector<4x16x8xf32>, vector<4x16x8xf32>, vector<4x16x8xf32>, vector<4x16x8xf32>, vector<4x16x8xf32>, vector<4x16x8xf32>, vector<4x16x8xf32>, vector<4x16x8xf32>, vector<4x16x8xf32>, vector<4x16x8xf32>, vector<4x16x8xf32>, vector<4x16x8xf32>, vector<4x16x8xf32> -> vector<4x16x128xf32>
    %18 = vector.broadcast %16 : vector<4x1x128xf32> to vector<4x16x128xf32>
    %19 = arith.subf %18, %17 : vector<4x16x128xf32>
    %20 = math.tanh %19 : vector<4x16x128xf32>
    %21 = vector.shape_cast %20 : vector<4x16x128xf32> to vector<64x128xf32>
    %c0_8 = arith.constant 0 : index
    %c0_9 = arith.constant 0 : index
    %22 = vector.load %arg4[%c0_8, %c0_9] : memref<128x512xf32, #tpu.memory_space<vmem>>, vector<128x512xf32>
    %cst_10 = arith.constant dense<0.000000e+00> : vector<64x512xf32>
    %23 = tpu.matmul %21, %22, %cst_10 {dimension_numbers = #tpu.dot_dimension_numbers<[1], [0], [0], [1], [0, 0, 1, 1], [], []>} : vector<64x128xf32>, vector<128x512xf32>, vector<64x512xf32> -> vector<64x512xf32>
    %24 = vector.shape_cast %23 : vector<64x512xf32> to vector<4x16x512xf32>
    %c0_11 = arith.constant 0 : index
    %c0_12 = arith.constant 0 : index
    %25 = vector.load %arg5[%c0_11, %c0_12] : memref<16x512xf32, #tpu.memory_space<vmem>>, vector<16x512xf32>
    %26 = vector.shape_cast %25 : vector<16x512xf32> to vector<1x16x512xf32>
    %27 = vector.broadcast %26 : vector<1x16x512xf32> to vector<4x16x512xf32>
    %28 = arith.addf %24, %27 : vector<4x16x512xf32>
    %29 = vector.extract_strided_slice %9 {offsets = [0, 0, 0, 0], sizes = [4, 8, 1, 32], strides = [1, 1, 1, 1]} : vector<4x8x16x32xf32> to vector<4x8x1x32xf32>
    %30 = vector.shape_cast %29 : vector<4x8x1x32xf32> to vector<4x8x32xf32>
    %31 = tpu.concatenate %30, %30, %30, %30, %30, %30, %30, %30, %30, %30, %30, %30, %30, %30, %30, %30 in 2 : vector<4x8x32xf32>, vector<4x8x32xf32>, vector<4x8x32xf32>, vector<4x8x32xf32>, vector<4x8x32xf32>, vector<4x8x32xf32>, vector<4x8x32xf32>, vector<4x8x32xf32>, vector<4x8x32xf32>, vector<4x8x32xf32>, vector<4x8x32xf32>, vector<4x8x32xf32>, vector<4x8x32xf32>, vector<4x8x32xf32>, vector<4x8x32xf32>, vector<4x8x32xf32> -> vector<4x8x512xf32>
    %32 = vector.extract_strided_slice %28 {offsets = [0, 0, 0], sizes = [4, 1, 512], strides = [1, 1, 1]} : vector<4x16x512xf32> to vector<4x1x512xf32>
    %33 = vector.shape_cast %32 : vector<4x1x512xf32> to vector<4x512xf32>
    %34 = vector.shape_cast %33 : vector<4x512xf32> to vector<4x1x512xf32>
    %35 = vector.broadcast %34 : vector<4x1x512xf32> to vector<4x8x512xf32>
    %36 = arith.mulf %31, %35 : vector<4x8x512xf32>
    %c0_13 = arith.constant 0 : index
    %c0_14 = arith.constant 0 : index
    %c0_15 = arith.constant 0 : index
    %37 = vector.load %arg6[%c0_13, %c0_14, %c0_15] : memref<4x8x512xf32, #tpu.memory_space<vmem>>, vector<4x8x512xf32>
    tpu.vector_store %arg6[%c0_13, %c0_14, %c0_15], %36 {strides = array<i32>} : memref<4x8x512xf32, #tpu.memory_space<vmem>>, vector<4x8x512xf32>,
    %c0_16 = arith.constant 0 : index
    %c0_17 = arith.constant 0 : index
    %c0_18 = arith.constant 0 : index
    %38 = vector.load %arg6[%c0_16, %c0_17, %c0_18] : memref<4x8x512xf32, #tpu.memory_space<vmem>>, vector<4x8x512xf32>
    %39 = vector.extract_strided_slice %9 {offsets = [0, 0, 1, 0], sizes = [4, 8, 1, 32], strides = [1, 1, 1, 1]} : vector<4x8x16x32xf32> to vector<4x8x1x32xf32>
    %40 = vector.shape_cast %39 : vector<4x8x1x32xf32> to vector<4x8x32xf32>
    %41 = tpu.concatenate %40, %40, %40, %40, %40, %40, %40, %40, %40, %40, %40, %40, %40, %40, %40, %40 in 2 : vector<4x8x32xf32>, vector<4x8x32xf32>, vector<4x8x32xf32>, vector<4x8x32xf32>, vector<4x8x32xf32>, vector<4x8x32xf32>, vector<4x8x32xf32>, vector<4x8x32xf32>, vector<4x8x32xf32>, vector<4x8x32xf32>, vector<4x8x32xf32>, vector<4x8x32xf32>, vector<4x8x32xf32>, vector<4x8x32xf32>, vector<4x8x32xf32>, vector<4x8x32xf32> -> vector<4x8x512xf32>
    %42 = vector.extract_strided_slice %28 {offsets = [0, 1, 0], sizes = [4, 1, 512], strides = [1, 1, 1]} : vector<4x16x512xf32> to vector<4x1x512xf32>
    %43 = vector.shape_cast %42 : vector<4x1x512xf32> to vector<4x512xf32>
    %44 = vector.shape_cast %43 : vector<4x512xf32> to vector<4x1x512xf32>
    %45 = vector.broadcast %44 : vector<4x1x512xf32> to vector<4x8x512xf32>
    %46 = arith.mulf %41, %45 : vector<4x8x512xf32>
    %47 = arith.addf %38, %46 : vector<4x8x512xf32>
    %c0_19 = arith.constant 0 : index
    %c0_20 = arith.constant 0 : index
    %c0_21 = arith.constant 0 : index
    %48 = vector.load %arg6[%c0_19, %c0_20, %c0_21] : memref<4x8x512xf32, #tpu.memory_space<vmem>>, vector<4x8x512xf32>
    tpu.vector_store %arg6[%c0_19, %c0_20, %c0_21], %47 {strides = array<i32>} : memref<4x8x512xf32, #tpu.memory_space<vmem>>, vector<4x8x512xf32>,
    %c0_22 = arith.constant 0 : index
    %c0_23 = arith.constant 0 : index
    %c0_24 = arith.constant 0 : index
    %49 = vector.load %arg6[%c0_22, %c0_23, %c0_24] : memref<4x8x512xf32, #tpu.memory_space<vmem>>, vector<4x8x512xf32>
    %50 = vector.extract_strided_slice %9 {offsets = [0, 0, 2, 0], sizes = [4, 8, 1, 32], strides = [1, 1, 1, 1]} : vector<4x8x16x32xf32> to vector<4x8x1x32xf32>
    %51 = vector.shape_cast %50 : vector<4x8x1x32xf32> to vector<4x8x32xf32>
    %52 = tpu.concatenate %51, %51, %51, %51, %51, %51, %51, %51, %51, %51, %51, %51, %51, %51, %51, %51 in 2 : vector<4x8x32xf32>, vector<4x8x32xf32>, vector<4x8x32xf32>, vector<4x8x32xf32>, vector<4x8x32xf32>, vector<4x8x32xf32>, vector<4x8x32xf32>, vector<4x8x32xf32>, vector<4x8x32xf32>, vector<4x8x32xf32>, vector<4x8x32xf32>, vector<4x8x32xf32>, vector<4x8x32xf32>, vector<4x8x32xf32>, vector<4x8x32xf32>, vector<4x8x32xf32> -> vector<4x8x512xf32>
    %53 = vector.extract_strided_slice %28 {offsets = [0, 2, 0], sizes = [4, 1, 512], strides = [1, 1, 1]} : vector<4x16x512xf32> to vector<4x1x512xf32>
    %54 = vector.shape_cast %53 : vector<4x1x512xf32> to vector<4x512xf32>
    %55 = vector.shape_cast %54 : vector<4x512xf32> to vector<4x1x512xf32>
    %56 = vector.broadcast %55 : vector<4x1x512xf32> to vector<4x8x512xf32>
    %57 = arith.mulf %52, %56 : vector<4x8x512xf32>
    %58 = arith.addf %49, %57 : vector<4x8x512xf32>
    %c0_25 = arith.constant 0 : index
    %c0_26 = arith.constant 0 : index
    %c0_27 = arith.constant 0 : index
    %59 = vector.load %arg6[%c0_25, %c0_26, %c0_27] : memref<4x8x512xf32, #tpu.memory_space<vmem>>, vector<4x8x512xf32>
    tpu.vector_store %arg6[%c0_25, %c0_26, %c0_27], %58 {strides = array<i32>} : memref<4x8x512xf32, #tpu.memory_space<vmem>>, vector<4x8x512xf32>,
    %c0_28 = arith.constant 0 : index
    %c0_29 = arith.constant 0 : index
    %c0_30 = arith.constant 0 : index
    %60 = vector.load %arg6[%c0_28, %c0_29, %c0_30] : memref<4x8x512xf32, #tpu.memory_space<vmem>>, vector<4x8x512xf32>
    %61 = vector.extract_strided_slice %9 {offsets = [0, 0, 3, 0], sizes = [4, 8, 1, 32], strides = [1, 1, 1, 1]} : vector<4x8x16x32xf32> to vector<4x8x1x32xf32>
    %62 = vector.shape_cast %61 : vector<4x8x1x32xf32> to vector<4x8x32xf32>
    %63 = tpu.concatenate %62, %62, %62, %62, %62, %62, %62, %62, %62, %62, %62, %62, %62, %62, %62, %62 in 2 : vector<4x8x32xf32>, vector<4x8x32xf32>, vector<4x8x32xf32>, vector<4x8x32xf32>, vector<4x8x32xf32>, vector<4x8x32xf32>, vector<4x8x32xf32>, vector<4x8x32xf32>, vector<4x8x32xf32>, vector<4x8x32xf32>, vector<4x8x32xf32>, vector<4x8x32xf32>, vector<4x8x32xf32>, vector<4x8x32xf32>, vector<4x8x32xf32>, vector<4x8x32xf32> -> vector<4x8x512xf32>
    %64 = vector.extract_strided_slice %28 {offsets = [0, 3, 0], sizes = [4, 1, 512], strides = [1, 1, 1]} : vector<4x16x512xf32> to vector<4x1x512xf32>
    %65 = vector.shape_cast %64 : vector<4x1x512xf32> to vector<4x512xf32>
    %66 = vector.shape_cast %65 : vector<4x512xf32> to vector<4x1x512xf32>
    %67 = vector.broadcast %66 : vector<4x1x512xf32> to vector<4x8x512xf32>
    %68 = arith.mulf %63, %67 : vector<4x8x512xf32>
    %69 = arith.addf %60, %68 : vector<4x8x512xf32>
    %c0_31 = arith.constant 0 : index
    %c0_32 = arith.constant 0 : index
    %c0_33 = arith.constant 0 : index
    %70 = vector.load %arg6[%c0_31, %c0_32, %c0_33] : memref<4x8x512xf32, #tpu.memory_space<vmem>>, vector<4x8x512xf32>
    tpu.vector_store %arg6[%c0_31, %c0_32, %c0_33], %69 {strides = array<i32>} : memref<4x8x512xf32, #tpu.memory_space<vmem>>, vector<4x8x512xf32>,
    %c0_34 = arith.constant 0 : index
    %c0_35 = arith.constant 0 : index
    %c0_36 = arith.constant 0 : index
    %71 = vector.load %arg6[%c0_34, %c0_35, %c0_36] : memref<4x8x512xf32, #tpu.memory_space<vmem>>, vector<4x8x512xf32>
    %72 = vector.extract_strided_slice %9 {offsets = [0, 0, 4, 0], sizes = [4, 8, 1, 32], strides = [1, 1, 1, 1]} : vector<4x8x16x32xf32> to vector<4x8x1x32xf32>
    %73 = vector.shape_cast %72 : vector<4x8x1x32xf32> to vector<4x8x32xf32>
    %74 = tpu.concatenate %73, %73, %73, %73, %73, %73, %73, %73, %73, %73, %73, %73, %73, %73, %73, %73 in 2 : vector<4x8x32xf32>, vector<4x8x32xf32>, vector<4x8x32xf32>, vector<4x8x32xf32>, vector<4x8x32xf32>, vector<4x8x32xf32>, vector<4x8x32xf32>, vector<4x8x32xf32>, vector<4x8x32xf32>, vector<4x8x32xf32>, vector<4x8x32xf32>, vector<4x8x32xf32>, vector<4x8x32xf32>, vector<4x8x32xf32>, vector<4x8x32xf32>, vector<4x8x32xf32> -> vector<4x8x512xf32>
    %75 = vector.extract_strided_slice %28 {offsets = [0, 4, 0], sizes = [4, 1, 512], strides = [1, 1, 1]} : vector<4x16x512xf32> to vector<4x1x512xf32>
    %76 = vector.shape_cast %75 : vector<4x1x512xf32> to vector<4x512xf32>
    %77 = vector.shape_cast %76 : vector<4x512xf32> to vector<4x1x512xf32>
    %78 = vector.broadcast %77 : vector<4x1x512xf32> to vector<4x8x512xf32>
    %79 = arith.mulf %74, %78 : vector<4x8x512xf32>
    %80 = arith.addf %71, %79 : vector<4x8x512xf32>
    %c0_37 = arith.constant 0 : index
    %c0_38 = arith.constant 0 : index
    %c0_39 = arith.constant 0 : index
    %81 = vector.load %arg6[%c0_37, %c0_38, %c0_39] : memref<4x8x512xf32, #tpu.memory_space<vmem>>, vector<4x8x512xf32>
    tpu.vector_store %arg6[%c0_37, %c0_38, %c0_39], %80 {strides = array<i32>} : memref<4x8x512xf32, #tpu.memory_space<vmem>>, vector<4x8x512xf32>,
    %c0_40 = arith.constant 0 : index
    %c0_41 = arith.constant 0 : index
    %c0_42 = arith.constant 0 : index
    %82 = vector.load %arg6[%c0_40, %c0_41, %c0_42] : memref<4x8x512xf32, #tpu.memory_space<vmem>>, vector<4x8x512xf32>
    %83 = vector.extract_strided_slice %9 {offsets = [0, 0, 5, 0], sizes = [4, 8, 1, 32], strides = [1, 1, 1, 1]} : vector<4x8x16x32xf32> to vector<4x8x1x32xf32>
    %84 = vector.shape_cast %83 : vector<4x8x1x32xf32> to vector<4x8x32xf32>
    %85 = tpu.concatenate %84, %84, %84, %84, %84, %84, %84, %84, %84, %84, %84, %84, %84, %84, %84, %84 in 2 : vector<4x8x32xf32>, vector<4x8x32xf32>, vector<4x8x32xf32>, vector<4x8x32xf32>, vector<4x8x32xf32>, vector<4x8x32xf32>, vector<4x8x32xf32>, vector<4x8x32xf32>, vector<4x8x32xf32>, vector<4x8x32xf32>, vector<4x8x32xf32>, vector<4x8x32xf32>, vector<4x8x32xf32>, vector<4x8x32xf32>, vector<4x8x32xf32>, vector<4x8x32xf32> -> vector<4x8x512xf32>
    %86 = vector.extract_strided_slice %28 {offsets = [0, 5, 0], sizes = [4, 1, 512], strides = [1, 1, 1]} : vector<4x16x512xf32> to vector<4x1x512xf32>
    %87 = vector.shape_cast %86 : vector<4x1x512xf32> to vector<4x512xf32>
    %88 = vector.shape_cast %87 : vector<4x512xf32> to vector<4x1x512xf32>
    %89 = vector.broadcast %88 : vector<4x1x512xf32> to vector<4x8x512xf32>
    %90 = arith.mulf %85, %89 : vector<4x8x512xf32>
    %91 = arith.addf %82, %90 : vector<4x8x512xf32>
    %c0_43 = arith.constant 0 : index
    %c0_44 = arith.constant 0 : index
    %c0_45 = arith.constant 0 : index
    %92 = vector.load %arg6[%c0_43, %c0_44, %c0_45] : memref<4x8x512xf32, #tpu.memory_space<vmem>>, vector<4x8x512xf32>
    tpu.vector_store %arg6[%c0_43, %c0_44, %c0_45], %91 {strides = array<i32>} : memref<4x8x512xf32, #tpu.memory_space<vmem>>, vector<4x8x512xf32>,
    %c0_46 = arith.constant 0 : index
    %c0_47 = arith.constant 0 : index
    %c0_48 = arith.constant 0 : index
    %93 = vector.load %arg6[%c0_46, %c0_47, %c0_48] : memref<4x8x512xf32, #tpu.memory_space<vmem>>, vector<4x8x512xf32>
    %94 = vector.extract_strided_slice %9 {offsets = [0, 0, 6, 0], sizes = [4, 8, 1, 32], strides = [1, 1, 1, 1]} : vector<4x8x16x32xf32> to vector<4x8x1x32xf32>
    %95 = vector.shape_cast %94 : vector<4x8x1x32xf32> to vector<4x8x32xf32>
    %96 = tpu.concatenate %95, %95, %95, %95, %95, %95, %95, %95, %95, %95, %95, %95, %95, %95, %95, %95 in 2 : vector<4x8x32xf32>, vector<4x8x32xf32>, vector<4x8x32xf32>, vector<4x8x32xf32>, vector<4x8x32xf32>, vector<4x8x32xf32>, vector<4x8x32xf32>, vector<4x8x32xf32>, vector<4x8x32xf32>, vector<4x8x32xf32>, vector<4x8x32xf32>, vector<4x8x32xf32>, vector<4x8x32xf32>, vector<4x8x32xf32>, vector<4x8x32xf32>, vector<4x8x32xf32> -> vector<4x8x512xf32>
    %97 = vector.extract_strided_slice %28 {offsets = [0, 6, 0], sizes = [4, 1, 512], strides = [1, 1, 1]} : vector<4x16x512xf32> to vector<4x1x512xf32>
    %98 = vector.shape_cast %97 : vector<4x1x512xf32> to vector<4x512xf32>
    %99 = vector.shape_cast %98 : vector<4x512xf32> to vector<4x1x512xf32>
    %100 = vector.broadcast %99 : vector<4x1x512xf32> to vector<4x8x512xf32>
    %101 = arith.mulf %96, %100 : vector<4x8x512xf32>
    %102 = arith.addf %93, %101 : vector<4x8x512xf32>
    %c0_49 = arith.constant 0 : index
    %c0_50 = arith.constant 0 : index
    %c0_51 = arith.constant 0 : index
    %103 = vector.load %arg6[%c0_49, %c0_50, %c0_51] : memref<4x8x512xf32, #tpu.memory_space<vmem>>, vector<4x8x512xf32>
    tpu.vector_store %arg6[%c0_49, %c0_50, %c0_51], %102 {strides = array<i32>} : memref<4x8x512xf32, #tpu.memory_space<vmem>>, vector<4x8x512xf32>,
    %c0_52 = arith.constant 0 : index
    %c0_53 = arith.constant 0 : index
    %c0_54 = arith.constant 0 : index
    %104 = vector.load %arg6[%c0_52, %c0_53, %c0_54] : memref<4x8x512xf32, #tpu.memory_space<vmem>>, vector<4x8x512xf32>
    %105 = vector.extract_strided_slice %9 {offsets = [0, 0, 7, 0], sizes = [4, 8, 1, 32], strides = [1, 1, 1, 1]} : vector<4x8x16x32xf32> to vector<4x8x1x32xf32>
    %106 = vector.shape_cast %105 : vector<4x8x1x32xf32> to vector<4x8x32xf32>
    %107 = tpu.concatenate %106, %106, %106, %106, %106, %106, %106, %106, %106, %106, %106, %106, %106, %106, %106, %106 in 2 : vector<4x8x32xf32>, vector<4x8x32xf32>, vector<4x8x32xf32>, vector<4x8x32xf32>, vector<4x8x32xf32>, vector<4x8x32xf32>, vector<4x8x32xf32>, vector<4x8x32xf32>, vector<4x8x32xf32>, vector<4x8x32xf32>, vector<4x8x32xf32>, vector<4x8x32xf32>, vector<4x8x32xf32>, vector<4x8x32xf32>, vector<4x8x32xf32>, vector<4x8x32xf32> -> vector<4x8x512xf32>
    %108 = vector.extract_strided_slice %28 {offsets = [0, 7, 0], sizes = [4, 1, 512], strides = [1, 1, 1]} : vector<4x16x512xf32> to vector<4x1x512xf32>
    %109 = vector.shape_cast %108 : vector<4x1x512xf32> to vector<4x512xf32>
    %110 = vector.shape_cast %109 : vector<4x512xf32> to vector<4x1x512xf32>
    %111 = vector.broadcast %110 : vector<4x1x512xf32> to vector<4x8x512xf32>
    %112 = arith.mulf %107, %111 : vector<4x8x512xf32>
    %113 = arith.addf %104, %112 : vector<4x8x512xf32>
    %c0_55 = arith.constant 0 : index
    %c0_56 = arith.constant 0 : index
    %c0_57 = arith.constant 0 : index
    %114 = vector.load %arg6[%c0_55, %c0_56, %c0_57] : memref<4x8x512xf32, #tpu.memory_space<vmem>>, vector<4x8x512xf32>
    tpu.vector_store %arg6[%c0_55, %c0_56, %c0_57], %113 {strides = array<i32>} : memref<4x8x512xf32, #tpu.memory_space<vmem>>, vector<4x8x512xf32>,
    %c0_58 = arith.constant 0 : index
    %c0_59 = arith.constant 0 : index
    %c0_60 = arith.constant 0 : index
    %115 = vector.load %arg6[%c0_58, %c0_59, %c0_60] : memref<4x8x512xf32, #tpu.memory_space<vmem>>, vector<4x8x512xf32>
    %116 = vector.extract_strided_slice %9 {offsets = [0, 0, 8, 0], sizes = [4, 8, 1, 32], strides = [1, 1, 1, 1]} : vector<4x8x16x32xf32> to vector<4x8x1x32xf32>
    %117 = vector.shape_cast %116 : vector<4x8x1x32xf32> to vector<4x8x32xf32>
    %118 = tpu.concatenate %117, %117, %117, %117, %117, %117, %117, %117, %117, %117, %117, %117, %117, %117, %117, %117 in 2 : vector<4x8x32xf32>, vector<4x8x32xf32>, vector<4x8x32xf32>, vector<4x8x32xf32>, vector<4x8x32xf32>, vector<4x8x32xf32>, vector<4x8x32xf32>, vector<4x8x32xf32>, vector<4x8x32xf32>, vector<4x8x32xf32>, vector<4x8x32xf32>, vector<4x8x32xf32>, vector<4x8x32xf32>, vector<4x8x32xf32>, vector<4x8x32xf32>, vector<4x8x32xf32> -> vector<4x8x512xf32>
    %119 = vector.extract_strided_slice %28 {offsets = [0, 8, 0], sizes = [4, 1, 512], strides = [1, 1, 1]} : vector<4x16x512xf32> to vector<4x1x512xf32>
    %120 = vector.shape_cast %119 : vector<4x1x512xf32> to vector<4x512xf32>
    %121 = vector.shape_cast %120 : vector<4x512xf32> to vector<4x1x512xf32>
    %122 = vector.broadcast %121 : vector<4x1x512xf32> to vector<4x8x512xf32>
    %123 = arith.mulf %118, %122 : vector<4x8x512xf32>
    %124 = arith.addf %115, %123 : vector<4x8x512xf32>
    %c0_61 = arith.constant 0 : index
    %c0_62 = arith.constant 0 : index
    %c0_63 = arith.constant 0 : index
    %125 = vector.load %arg6[%c0_61, %c0_62, %c0_63] : memref<4x8x512xf32, #tpu.memory_space<vmem>>, vector<4x8x512xf32>
    tpu.vector_store %arg6[%c0_61, %c0_62, %c0_63], %124 {strides = array<i32>} : memref<4x8x512xf32, #tpu.memory_space<vmem>>, vector<4x8x512xf32>,
    %c0_64 = arith.constant 0 : index
    %c0_65 = arith.constant 0 : index
    %c0_66 = arith.constant 0 : index
    %126 = vector.load %arg6[%c0_64, %c0_65, %c0_66] : memref<4x8x512xf32, #tpu.memory_space<vmem>>, vector<4x8x512xf32>
    %127 = vector.extract_strided_slice %9 {offsets = [0, 0, 9, 0], sizes = [4, 8, 1, 32], strides = [1, 1, 1, 1]} : vector<4x8x16x32xf32> to vector<4x8x1x32xf32>
    %128 = vector.shape_cast %127 : vector<4x8x1x32xf32> to vector<4x8x32xf32>
    %129 = tpu.concatenate %128, %128, %128, %128, %128, %128, %128, %128, %128, %128, %128, %128, %128, %128, %128, %128 in 2 : vector<4x8x32xf32>, vector<4x8x32xf32>, vector<4x8x32xf32>, vector<4x8x32xf32>, vector<4x8x32xf32>, vector<4x8x32xf32>, vector<4x8x32xf32>, vector<4x8x32xf32>, vector<4x8x32xf32>, vector<4x8x32xf32>, vector<4x8x32xf32>, vector<4x8x32xf32>, vector<4x8x32xf32>, vector<4x8x32xf32>, vector<4x8x32xf32>, vector<4x8x32xf32> -> vector<4x8x512xf32>
    %130 = vector.extract_strided_slice %28 {offsets = [0, 9, 0], sizes = [4, 1, 512], strides = [1, 1, 1]} : vector<4x16x512xf32> to vector<4x1x512xf32>
    %131 = vector.shape_cast %130 : vector<4x1x512xf32> to vector<4x512xf32>
    %132 = vector.shape_cast %131 : vector<4x512xf32> to vector<4x1x512xf32>
    %133 = vector.broadcast %132 : vector<4x1x512xf32> to vector<4x8x512xf32>
    %134 = arith.mulf %129, %133 : vector<4x8x512xf32>
    %135 = arith.addf %126, %134 : vector<4x8x512xf32>
    %c0_67 = arith.constant 0 : index
    %c0_68 = arith.constant 0 : index
    %c0_69 = arith.constant 0 : index
    %136 = vector.load %arg6[%c0_67, %c0_68, %c0_69] : memref<4x8x512xf32, #tpu.memory_space<vmem>>, vector<4x8x512xf32>
    tpu.vector_store %arg6[%c0_67, %c0_68, %c0_69], %135 {strides = array<i32>} : memref<4x8x512xf32, #tpu.memory_space<vmem>>, vector<4x8x512xf32>,
    %c0_70 = arith.constant 0 : index
    %c0_71 = arith.constant 0 : index
    %c0_72 = arith.constant 0 : index
    %137 = vector.load %arg6[%c0_70, %c0_71, %c0_72] : memref<4x8x512xf32, #tpu.memory_space<vmem>>, vector<4x8x512xf32>
    %138 = vector.extract_strided_slice %9 {offsets = [0, 0, 10, 0], sizes = [4, 8, 1, 32], strides = [1, 1, 1, 1]} : vector<4x8x16x32xf32> to vector<4x8x1x32xf32>
    %139 = vector.shape_cast %138 : vector<4x8x1x32xf32> to vector<4x8x32xf32>
    %140 = tpu.concatenate %139, %139, %139, %139, %139, %139, %139, %139, %139, %139, %139, %139, %139, %139, %139, %139 in 2 : vector<4x8x32xf32>, vector<4x8x32xf32>, vector<4x8x32xf32>, vector<4x8x32xf32>, vector<4x8x32xf32>, vector<4x8x32xf32>, vector<4x8x32xf32>, vector<4x8x32xf32>, vector<4x8x32xf32>, vector<4x8x32xf32>, vector<4x8x32xf32>, vector<4x8x32xf32>, vector<4x8x32xf32>, vector<4x8x32xf32>, vector<4x8x32xf32>, vector<4x8x32xf32> -> vector<4x8x512xf32>
    %141 = vector.extract_strided_slice %28 {offsets = [0, 10, 0], sizes = [4, 1, 512], strides = [1, 1, 1]} : vector<4x16x512xf32> to vector<4x1x512xf32>
    %142 = vector.shape_cast %141 : vector<4x1x512xf32> to vector<4x512xf32>
    %143 = vector.shape_cast %142 : vector<4x512xf32> to vector<4x1x512xf32>
    %144 = vector.broadcast %143 : vector<4x1x512xf32> to vector<4x8x512xf32>
    %145 = arith.mulf %140, %144 : vector<4x8x512xf32>
    %146 = arith.addf %137, %145 : vector<4x8x512xf32>
    %c0_73 = arith.constant 0 : index
    %c0_74 = arith.constant 0 : index
    %c0_75 = arith.constant 0 : index
    %147 = vector.load %arg6[%c0_73, %c0_74, %c0_75] : memref<4x8x512xf32, #tpu.memory_space<vmem>>, vector<4x8x512xf32>
    tpu.vector_store %arg6[%c0_73, %c0_74, %c0_75], %146 {strides = array<i32>} : memref<4x8x512xf32, #tpu.memory_space<vmem>>, vector<4x8x512xf32>,
    %c0_76 = arith.constant 0 : index
    %c0_77 = arith.constant 0 : index
    %c0_78 = arith.constant 0 : index
    %148 = vector.load %arg6[%c0_76, %c0_77, %c0_78] : memref<4x8x512xf32, #tpu.memory_space<vmem>>, vector<4x8x512xf32>
    %149 = vector.extract_strided_slice %9 {offsets = [0, 0, 11, 0], sizes = [4, 8, 1, 32], strides = [1, 1, 1, 1]} : vector<4x8x16x32xf32> to vector<4x8x1x32xf32>
    %150 = vector.shape_cast %149 : vector<4x8x1x32xf32> to vector<4x8x32xf32>
    %151 = tpu.concatenate %150, %150, %150, %150, %150, %150, %150, %150, %150, %150, %150, %150, %150, %150, %150, %150 in 2 : vector<4x8x32xf32>, vector<4x8x32xf32>, vector<4x8x32xf32>, vector<4x8x32xf32>, vector<4x8x32xf32>, vector<4x8x32xf32>, vector<4x8x32xf32>, vector<4x8x32xf32>, vector<4x8x32xf32>, vector<4x8x32xf32>, vector<4x8x32xf32>, vector<4x8x32xf32>, vector<4x8x32xf32>, vector<4x8x32xf32>, vector<4x8x32xf32>, vector<4x8x32xf32> -> vector<4x8x512xf32>
    %152 = vector.extract_strided_slice %28 {offsets = [0, 11, 0], sizes = [4, 1, 512], strides = [1, 1, 1]} : vector<4x16x512xf32> to vector<4x1x512xf32>
    %153 = vector.shape_cast %152 : vector<4x1x512xf32> to vector<4x512xf32>
    %154 = vector.shape_cast %153 : vector<4x512xf32> to vector<4x1x512xf32>
    %155 = vector.broadcast %154 : vector<4x1x512xf32> to vector<4x8x512xf32>
    %156 = arith.mulf %151, %155 : vector<4x8x512xf32>
    %157 = arith.addf %148, %156 : vector<4x8x512xf32>
    %c0_79 = arith.constant 0 : index
    %c0_80 = arith.constant 0 : index
    %c0_81 = arith.constant 0 : index
    %158 = vector.load %arg6[%c0_79, %c0_80, %c0_81] : memref<4x8x512xf32, #tpu.memory_space<vmem>>, vector<4x8x512xf32>
    tpu.vector_store %arg6[%c0_79, %c0_80, %c0_81], %157 {strides = array<i32>} : memref<4x8x512xf32, #tpu.memory_space<vmem>>, vector<4x8x512xf32>,
    %c0_82 = arith.constant 0 : index
    %c0_83 = arith.constant 0 : index
    %c0_84 = arith.constant 0 : index
    %159 = vector.load %arg6[%c0_82, %c0_83, %c0_84] : memref<4x8x512xf32, #tpu.memory_space<vmem>>, vector<4x8x512xf32>
    %160 = vector.extract_strided_slice %9 {offsets = [0, 0, 12, 0], sizes = [4, 8, 1, 32], strides = [1, 1, 1, 1]} : vector<4x8x16x32xf32> to vector<4x8x1x32xf32>
    %161 = vector.shape_cast %160 : vector<4x8x1x32xf32> to vector<4x8x32xf32>
    %162 = tpu.concatenate %161, %161, %161, %161, %161, %161, %161, %161, %161, %161, %161, %161, %161, %161, %161, %161 in 2 : vector<4x8x32xf32>, vector<4x8x32xf32>, vector<4x8x32xf32>, vector<4x8x32xf32>, vector<4x8x32xf32>, vector<4x8x32xf32>, vector<4x8x32xf32>, vector<4x8x32xf32>, vector<4x8x32xf32>, vector<4x8x32xf32>, vector<4x8x32xf32>, vector<4x8x32xf32>, vector<4x8x32xf32>, vector<4x8x32xf32>, vector<4x8x32xf32>, vector<4x8x32xf32> -> vector<4x8x512xf32>
    %163 = vector.extract_strided_slice %28 {offsets = [0, 12, 0], sizes = [4, 1, 512], strides = [1, 1, 1]} : vector<4x16x512xf32> to vector<4x1x512xf32>
    %164 = vector.shape_cast %163 : vector<4x1x512xf32> to vector<4x512xf32>
    %165 = vector.shape_cast %164 : vector<4x512xf32> to vector<4x1x512xf32>
    %166 = vector.broadcast %165 : vector<4x1x512xf32> to vector<4x8x512xf32>
    %167 = arith.mulf %162, %166 : vector<4x8x512xf32>
    %168 = arith.addf %159, %167 : vector<4x8x512xf32>
    %c0_85 = arith.constant 0 : index
    %c0_86 = arith.constant 0 : index
    %c0_87 = arith.constant 0 : index
    %169 = vector.load %arg6[%c0_85, %c0_86, %c0_87] : memref<4x8x512xf32, #tpu.memory_space<vmem>>, vector<4x8x512xf32>
    tpu.vector_store %arg6[%c0_85, %c0_86, %c0_87], %168 {strides = array<i32>} : memref<4x8x512xf32, #tpu.memory_space<vmem>>, vector<4x8x512xf32>,
    %c0_88 = arith.constant 0 : index
    %c0_89 = arith.constant 0 : index
    %c0_90 = arith.constant 0 : index
    %170 = vector.load %arg6[%c0_88, %c0_89, %c0_90] : memref<4x8x512xf32, #tpu.memory_space<vmem>>, vector<4x8x512xf32>
    %171 = vector.extract_strided_slice %9 {offsets = [0, 0, 13, 0], sizes = [4, 8, 1, 32], strides = [1, 1, 1, 1]} : vector<4x8x16x32xf32> to vector<4x8x1x32xf32>
    %172 = vector.shape_cast %171 : vector<4x8x1x32xf32> to vector<4x8x32xf32>
    %173 = tpu.concatenate %172, %172, %172, %172, %172, %172, %172, %172, %172, %172, %172, %172, %172, %172, %172, %172 in 2 : vector<4x8x32xf32>, vector<4x8x32xf32>, vector<4x8x32xf32>, vector<4x8x32xf32>, vector<4x8x32xf32>, vector<4x8x32xf32>, vector<4x8x32xf32>, vector<4x8x32xf32>, vector<4x8x32xf32>, vector<4x8x32xf32>, vector<4x8x32xf32>, vector<4x8x32xf32>, vector<4x8x32xf32>, vector<4x8x32xf32>, vector<4x8x32xf32>, vector<4x8x32xf32> -> vector<4x8x512xf32>
    %174 = vector.extract_strided_slice %28 {offsets = [0, 13, 0], sizes = [4, 1, 512], strides = [1, 1, 1]} : vector<4x16x512xf32> to vector<4x1x512xf32>
    %175 = vector.shape_cast %174 : vector<4x1x512xf32> to vector<4x512xf32>
    %176 = vector.shape_cast %175 : vector<4x512xf32> to vector<4x1x512xf32>
    %177 = vector.broadcast %176 : vector<4x1x512xf32> to vector<4x8x512xf32>
    %178 = arith.mulf %173, %177 : vector<4x8x512xf32>
    %179 = arith.addf %170, %178 : vector<4x8x512xf32>
    %c0_91 = arith.constant 0 : index
    %c0_92 = arith.constant 0 : index
    %c0_93 = arith.constant 0 : index
    %180 = vector.load %arg6[%c0_91, %c0_92, %c0_93] : memref<4x8x512xf32, #tpu.memory_space<vmem>>, vector<4x8x512xf32>
    tpu.vector_store %arg6[%c0_91, %c0_92, %c0_93], %179 {strides = array<i32>} : memref<4x8x512xf32, #tpu.memory_space<vmem>>, vector<4x8x512xf32>,
    %c0_94 = arith.constant 0 : index
    %c0_95 = arith.constant 0 : index
    %c0_96 = arith.constant 0 : index
    %181 = vector.load %arg6[%c0_94, %c0_95, %c0_96] : memref<4x8x512xf32, #tpu.memory_space<vmem>>, vector<4x8x512xf32>
    %182 = vector.extract_strided_slice %9 {offsets = [0, 0, 14, 0], sizes = [4, 8, 1, 32], strides = [1, 1, 1, 1]} : vector<4x8x16x32xf32> to vector<4x8x1x32xf32>
    %183 = vector.shape_cast %182 : vector<4x8x1x32xf32> to vector<4x8x32xf32>
    %184 = tpu.concatenate %183, %183, %183, %183, %183, %183, %183, %183, %183, %183, %183, %183, %183, %183, %183, %183 in 2 : vector<4x8x32xf32>, vector<4x8x32xf32>, vector<4x8x32xf32>, vector<4x8x32xf32>, vector<4x8x32xf32>, vector<4x8x32xf32>, vector<4x8x32xf32>, vector<4x8x32xf32>, vector<4x8x32xf32>, vector<4x8x32xf32>, vector<4x8x32xf32>, vector<4x8x32xf32>, vector<4x8x32xf32>, vector<4x8x32xf32>, vector<4x8x32xf32>, vector<4x8x32xf32> -> vector<4x8x512xf32>
    %185 = vector.extract_strided_slice %28 {offsets = [0, 14, 0], sizes = [4, 1, 512], strides = [1, 1, 1]} : vector<4x16x512xf32> to vector<4x1x512xf32>
    %186 = vector.shape_cast %185 : vector<4x1x512xf32> to vector<4x512xf32>
    %187 = vector.shape_cast %186 : vector<4x512xf32> to vector<4x1x512xf32>
    %188 = vector.broadcast %187 : vector<4x1x512xf32> to vector<4x8x512xf32>
    %189 = arith.mulf %184, %188 : vector<4x8x512xf32>
    %190 = arith.addf %181, %189 : vector<4x8x512xf32>
    %c0_97 = arith.constant 0 : index
    %c0_98 = arith.constant 0 : index
    %c0_99 = arith.constant 0 : index
    %191 = vector.load %arg6[%c0_97, %c0_98, %c0_99] : memref<4x8x512xf32, #tpu.memory_space<vmem>>, vector<4x8x512xf32>
    tpu.vector_store %arg6[%c0_97, %c0_98, %c0_99], %190 {strides = array<i32>} : memref<4x8x512xf32, #tpu.memory_space<vmem>>, vector<4x8x512xf32>,
    %c0_100 = arith.constant 0 : index
    %c0_101 = arith.constant 0 : index
    %c0_102 = arith.constant 0 : index
    %192 = vector.load %arg6[%c0_100, %c0_101, %c0_102] : memref<4x8x512xf32, #tpu.memory_space<vmem>>, vector<4x8x512xf32>
    %193 = vector.extract_strided_slice %9 {offsets = [0, 0, 15, 0], sizes = [4, 8, 1, 32], strides = [1, 1, 1, 1]} : vector<4x8x16x32xf32> to vector<4x8x1x32xf32>
    %194 = vector.shape_cast %193 : vector<4x8x1x32xf32> to vector<4x8x32xf32>
    %195 = tpu.concatenate %194, %194, %194, %194, %194, %194, %194, %194, %194, %194, %194, %194, %194, %194, %194, %194 in 2 : vector<4x8x32xf32>, vector<4x8x32xf32>, vector<4x8x32xf32>, vector<4x8x32xf32>, vector<4x8x32xf32>, vector<4x8x32xf32>, vector<4x8x32xf32>, vector<4x8x32xf32>, vector<4x8x32xf32>, vector<4x8x32xf32>, vector<4x8x32xf32>, vector<4x8x32xf32>, vector<4x8x32xf32>, vector<4x8x32xf32>, vector<4x8x32xf32>, vector<4x8x32xf32> -> vector<4x8x512xf32>
    %196 = vector.extract_strided_slice %28 {offsets = [0, 15, 0], sizes = [4, 1, 512], strides = [1, 1, 1]} : vector<4x16x512xf32> to vector<4x1x512xf32>
    %197 = vector.shape_cast %196 : vector<4x1x512xf32> to vector<4x512xf32>
    %198 = vector.shape_cast %197 : vector<4x512xf32> to vector<4x1x512xf32>
    %199 = vector.broadcast %198 : vector<4x1x512xf32> to vector<4x8x512xf32>
    %200 = arith.mulf %195, %199 : vector<4x8x512xf32>
    %201 = arith.addf %192, %200 : vector<4x8x512xf32>
    %c0_103 = arith.constant 0 : index
    %c0_104 = arith.constant 0 : index
    %c0_105 = arith.constant 0 : index
    %202 = vector.load %arg6[%c0_103, %c0_104, %c0_105] : memref<4x8x512xf32, #tpu.memory_space<vmem>>, vector<4x8x512xf32>
    tpu.vector_store %arg6[%c0_103, %c0_104, %c0_105], %201 {strides = array<i32>} : memref<4x8x512xf32, #tpu.memory_space<vmem>>, vector<4x8x512xf32>,
    return
  }
  func.func @transform_0(%arg0: i32) -> (i32, i32, i32) {
    %c0_i32 = arith.constant 0 : i32
    %c0_i32_0 = arith.constant 0 : i32
    %c0_i32_1 = arith.constant 0 : i32
    return %arg0, %c0_i32, %c0_i32_0 : i32, i32, i32
  }
  func.func @transform_1(%arg0: i32) -> (i32, i32) {
    %c0_i32 = arith.constant 0 : i32
    %c0_i32_0 = arith.constant 0 : i32
    %c0_i32_1 = arith.constant 0 : i32
    return %c0_i32, %c0_i32_0 : i32, i32
  }
  func.func @transform_2(%arg0: i32) -> (i32, i32) {
    %c0_i32 = arith.constant 0 : i32
    %c0_i32_0 = arith.constant 0 : i32
    %c0_i32_1 = arith.constant 0 : i32
    return %c0_i32, %c0_i32_0 : i32, i32
  }
  func.func @transform_3(%arg0: i32) -> (i32, i32) {
    %c0_i32 = arith.constant 0 : i32
    %c0_i32_0 = arith.constant 0 : i32
    %c0_i32_1 = arith.constant 0 : i32
    return %c0_i32, %c0_i32_0 : i32, i32
  }
  func.func @transform_4(%arg0: i32) -> (i32, i32) {
    %c0_i32 = arith.constant 0 : i32
    %c0_i32_0 = arith.constant 0 : i32
    %c0_i32_1 = arith.constant 0 : i32
    return %c0_i32, %c0_i32_0 : i32, i32
  }
  func.func @transform_5(%arg0: i32) -> (i32, i32, i32) {
    %c0_i32 = arith.constant 0 : i32
    %c0_i32_0 = arith.constant 0 : i32
    %c0_i32_1 = arith.constant 0 : i32
    return %arg0, %c0_i32, %c0_i32_0 : i32, i32, i32
  }
}

</mosaic_0001>

<bundles_post_ra>
// kernel: tpu_custom_call.1
= control target key start
LH: loop header
LB: loop body
LE: loop exit
PB: predicated region body
PF: predicated region fallthrough
CT: control target
= control target key end

     0   :  { %10 = vsyncpa [#allocation3], 0  ;;  %s16158_s0 = inlined_call_operand.hbm [shape: f32[4,64,128], index: 0, kind: input, shape index: {}]   ;;  %s16159_s1 = inlined_call_operand.vmem [shape: f32[64,48], index: 1, kind: input, shape index: {}]   ;;  %s16160_s2 = inlined_call_operand.vmem [shape: f32[1,48], index: 2, kind: input, shape index: {}]   ;;  %s16161_s3 = inlined_call_operand.hbm [shape: f32[128,512], index: 3, kind: input, shape index: {}]   ;;  %s16162_s4 = inlined_call_operand.vmem [shape: f32[16,512], index: 4, kind: input, shape index: {}]   ;;  %s16163_s5 = inlined_call_operand.hbm [shape: f32[4,8,512], index: 5, kind: output, shape index: {}]  }
   0x1   :  { %11 = vsyncpa [#allocation6], 0 }
   0x2   :  { %12 = vsyncpa [#allocation4], 0  ;;  %s8624_s18 = smov [#allocation2]   ;;  %s8552_s22 = scalar_lea.hbm %s16158_s0, 4096 }
   0x3   :  { %s18_s19 = sshll.u32 %s8624_s18, 4  ;;  %p8553_p0 = scmp.ne.s32.totalorder %s16158_s0, %s8552_s22  ;;  %s19_s19 = int_to_ptr.vmem [resolvable:$true] %s18_s19 }
   0x4   :  { %p8556_p1 = scmp.lt.u32.totalorder %s8552_s22, %s16158_s0 }
   0x6   :  { %p8558_p2 = pnand %p8556_p1, %p8553_p0 }
   0x8   :  { %8561 = shalt.err (!%p8558_p2)
}
   0x9   :  { %s8562_s27 = scalar_lea.vmem %s19_s19, 4096  ;;  %p8567_p4 = scmp.lt.s32.totalorder %s19_s19, %s19_s19 }
   0xa   :  { %p8563_p3 = scmp.ne.s32.totalorder %s19_s19, %s8562_s27  ;;  %p8568_p5 = scmp.lt.s32.totalorder %s8562_s27, %s8562_s27 }
   0xc   :  { %p8569_p6 = por %p8568_p5, %p8567_p4 }
   0xe   :  { %p8570_p7 = pnand %p8569_p6, %p8563_p3 }
  0x10   :  { %8573 = shalt.err (!%p8570_p7)
}
  0x11   :  { %s8625_s28 = smov 128   ;;  %s8626_s29 = smov 8  }
  0x12   :  { %24 = dma.hbm_to_vmem [thread:$0]  %s16158_s0, 4096, %s19_s19, [#allocation3], %s8625_s28, %s8625_s28, %s8626_s29  }
  0x13   :  { %s8627_s7 = smov [#allocation5]   ;;  %s8574_s11 = scalar_lea.hbm %s16161_s3, 8192 }
  0x14   :  { %s34_s8 = sshll.u32 %s8627_s7, 4  ;;  %p8575_p8 = scmp.ne.s32.totalorder %s16161_s3, %s8574_s11  ;;  %s35_s8 = int_to_ptr.vmem [resolvable:$true] %s34_s8 }
  0x15   :  { %p8578_p9 = scmp.lt.u32.totalorder %s8574_s11, %s16161_s3 }
  0x17   :  { %p8580_p10 = pnand %p8578_p9, %p8575_p8 }
  0x19   :  { %8583 = shalt.err (!%p8580_p10)
}
  0x1a   :  { %s8584_s16 = scalar_lea.vmem %s35_s8, 8192  ;;  %p8589_p12 = scmp.lt.s32.totalorder %s35_s8, %s35_s8 }
  0x1b   :  { %p8585_p11 = scmp.ne.s32.totalorder %s35_s8, %s8584_s16  ;;  %p8590_p13 = scmp.lt.s32.totalorder %s8584_s16, %s8584_s16 }
  0x1d   :  { %p8591_p0 = por %p8590_p13, %p8589_p12 }
  0x1f   :  { %p8592_p1 = pnand %p8591_p0, %p8585_p11 }
  0x21   :  { %8595 = shalt.err (!%p8592_p1)
}
  0x22   :  { %s8628_s0 = smov 512   ;;  %s8629_s17 = smov 32  }
  0x23   :  { %40 = dma.hbm_to_vmem [thread:$0]  %s16161_s3, 8192, %s35_s8, [#allocation6], %s8628_s0, %s8628_s0, %s8629_s17  }
  0x24   :  { %8618 = dma.done.wait [#allocation3], 4096  }
  0x25   :  { %8619 = vsyncadd [#allocation3], 4294963200 }
  0x26   :  { %8620 = dma.done.wait [#allocation6], 8192  }
  0x27   :  { %8621 = vsyncadd [#allocation6], 4294959104  ;;  %v57_v0 = vld [vmem:[#allocation2 + $0x40] sm:$0xff]  ;;  %v58_v2 = vld [vmem:[#allocation2 + $0x48] sm:$0xff]  ;;  %vm16250_vm0 = vcmask 523264   ;;  %vm802_vm1 = vcmask 392448  }
  0x28   :  { %v49_v1 = vld [vmem:[#allocation2] sm:$0xff]  ;;  %113 = vxpose.xlu1.b32.start [1/8] (short) %v57_v0, 128  ;;  %v50_v3 = vld [vmem:[#allocation2 + $0x8] sm:$0xff]  ;;  %v59_v4 = vld [vmem:[#allocation2 + $0x50] sm:$0xff]  ;;  %vm16265_vm2 = vcmask 1042434   ;;  %vm16266_vm3 = vcmask 1041409   ;;  %vm16249_vm4 = vcmask 1043459  }
  0x29   :  { %81 = vxpose.xlu0.b32.start [1/8] (short) %v49_v1, 128  ;;  %v51_v5 = vld [vmem:[#allocation2 + $0x10] sm:$0xff]  ;;  %v60_v6 = vld [vmem:[#allocation2 + $0x58] sm:$0xff]  ;;  %v209_v8 = vld [vmem:[%s16159_s1] sm:$0xff]  ;;  %vm16248_vm5 = vcmask 1044484   ;;  %vm16246_vm6 = vcmask 1045509   ;;  %vm16244_vm7 = vcmask 1046534  }
  0x2a   :  { %v52_v7 = vld [vmem:[#allocation2 + $0x18] sm:$0xff]  ;;  %v210_v9 = vld [vmem:[%s16159_s1 + $0x8] sm:$0xff]  ;;  %v61_v11 = vld [vmem:[#allocation2 + $0x60] sm:$0xff]  ;;  %vm16247_vm8 = vcmask 1047559   ;;  %s8632_s12 = smov 96   ;;  %s8633_s13 = smov 88  }
  0x2b   :  { %v8425_v10 = vpack.c.bf16 %v210_v9, %v209_v8  ;;  %v53_v12 = vld [vmem:[#allocation2 + $0x20] sm:$0xff]  ;;  %v211_v13 = vld [vmem:[%s16159_s1 + $0x10] sm:$0xff]  ;;  %v212_v14 = vld [vmem:[%s16159_s1 + $0x18] sm:$0xff]  ;;  %s8634_s14 = smov 104   ;;  %s8635_s15 = smov 112   ;;  %vm1596_vm9 = vcmask 64512  }
  0x2c   :  { %114 = vxpose.xlu1.b32.cont [2/8] (short) %v58_v2, 128  ;;  %v8429_v15 = vpack.c.bf16 %v212_v14, %v211_v13  ;;  %v62_v16 = vld [vmem:[#allocation2 + $0x68] sm:$0xff]  ;;  %v213_v18 = vld [vmem:[%s16159_s1 + $0x20] sm:$0xff]  ;;  %v63_v21 = vld [vmem:[#allocation2 + $0x70] sm:$0xff]  ;;  %s8636_s16 = smov 120   ;;  %s8637_s18 = smov 16   ;;  %vm1601_vm10 = vcmask 130048  }
  0x2d   :  { %82 = vxpose.xlu0.b32.cont [2/8] (short) %v50_v3, 128  ;;  %8426 = vmatprep.subr.bf16.mxu0 %v8425_v10  ;;  %v54_v17 = vld [vmem:[#allocation2 + $0x28] sm:$0xff]  ;;  %v55_v22 = vld [vmem:[#allocation2 + $0x30] sm:$0xff]  ;;  %v216_v24 = vld [vmem:[%s16159_s1 + $0x38] sm:$0xff]  ;;  %s8638_s19 = smov 24   ;;  %s8639_s20 = smov 40   ;;  %vm1606_vm11 = vcmask 195584  }
  0x2e   :  { %8505 = vmatprep.subr.bf16.mxu1 %v8425_v10  ;;  %8428 = vmatpush3.bf16.msra.mxu0 %v8425_v10  ;;  %v214_v19 = vld [vmem:[%s16159_s1 + $0x28] sm:$0xff]  ;;  %v215_v23 = vld [vmem:[%s16159_s1 + $0x30] sm:$0xff]  ;;  %v64_v26 = vld [vmem:[#allocation2 + $0x78] sm:$0xff]  ;;  %s8640_s3 = smov 48   ;;  %s8641_s21 = smov 56   ;;  %vm1611_vm12 = vcmask 261120  }
  0x2f   :  { %8509 = vmatpush3.bf16.msra.mxu1 %v8425_v10  ;;  %8430 = vmatprep.subr.bf16.mxu0 %v8429_v15  ;;  %v8433_v20 = vpack.c.bf16 %v214_v19, %v213_v18  ;;  %v8437_v25 = vpack.c.bf16 %v216_v24, %v215_v23  ;;  %v56_v27 = vld [vmem:[#allocation2 + $0x38] sm:$0xff]  ;;  %v73_v28 = vld [vmem:[#allocation2 + $0xc0] sm:$0xff]  ;;  %v74_v29 = vld [vmem:[#allocation2 + $0xc8] sm:$0xff]  ;;  %s8642_s22 = smov 72   ;;  %s8643_s23 = smov 80   ;;  %vm1616_vm13 = vcmask 326656  }
  0x30   :  { %115 = vxpose.xlu1.b32.cont [3/8] (short) %v59_v4, 128  ;;  %8506 = vmatprep.subr.bf16.mxu1 %v8429_v15  ;;  %v75_v30 = vld [vmem:[#allocation2 + $0xd0] sm:$0xff]  ;;  %v76_v31 = vld [vmem:[#allocation2 + $0xd8] sm:$0xff]  ;;  %v77_v32 = vld [vmem:[#allocation2 + $0xe0] sm:$0xff]  ;;  %vm1621_vm14 = vcmask 392192   ;;  %vm1626_vm15 = vcmask 457728  }
  0x31   :  { %83 = vxpose.xlu0.b32.cont [3/8] (short) %v51_v5, 128  ;;  %v65_v33 = vld [vmem:[#allocation2 + $0x80] sm:$0xff]  ;;  %v78_v34 = vld [vmem:[#allocation2 + $0xe8] sm:$0xff]  ;;  %v79_v36 = vld [vmem:[#allocation2 + $0xf0] sm:$0xff] }
  0x32   :  { %8432 = vmatpush3.bf16.msra.mxu0 %v8429_v15  ;;  %v66_v35 = vld [vmem:[#allocation2 + $0x88] sm:$0xff]  ;;  %v67_v37 = vld [vmem:[#allocation2 + $0x90] sm:$0xff]  ;;  %v80_v38 = vld [vmem:[#allocation2 + $0xf8] sm:$0xff] }
  0x33   :  { %8510 = vmatpush3.bf16.msra.mxu1 %v8429_v15  ;;  %8434 = vmatprep.subr.bf16.mxu0 %v8433_v20  ;;  %v68_v39 = vld [vmem:[#allocation2 + $0x98] sm:$0xff]  ;;  %v69_v40 = vld [vmem:[#allocation2 + $0xa0] sm:$0xff]  ;;  %v70_v41 = vld [vmem:[#allocation2 + $0xa8] sm:$0xff] }
  0x34   :  { %116 = vxpose.xlu1.b32.cont [4/8] (short) %v60_v6, 128  ;;  %8507 = vmatprep.subr.bf16.mxu1 %v8433_v20  ;;  %v71_v42 = vld [vmem:[#allocation2 + $0xb0] sm:$0xff]  ;;  %v72_v43 = vld [vmem:[#allocation2 + $0xb8] sm:$0xff] }
  0x35   :  { %84 = vxpose.xlu0.b32.cont [4/8] (short) %v52_v7, 128 }
  0x36   :  { %8436 = vmatpush3.bf16.msra.mxu0 %v8433_v20 }
  0x37   :  { %8511 = vmatpush3.bf16.msra.mxu1 %v8433_v20  ;;  %8438 = vmatprep.subr.bf16.mxu0 %v8437_v25 }
  0x38   :  { %117 = vxpose.xlu1.b32.cont [5/8] (short) %v61_v11, 128  ;;  %8508 = vmatprep.subr.bf16.mxu1 %v8437_v25 }
  0x39   :  { %85 = vxpose.xlu0.b32.cont [5/8] (short) %v53_v12, 128 }
  0x3a   :  { %8440 = vmatpush3.bf16.msra.mxu0 %v8437_v25 }
  0x3b   :  { %8512 = vmatpush3.bf16.msra.mxu1 %v8437_v25 }
  0x3c   :  { %118 = vxpose.xlu1.b32.cont [6/8] (short) %v62_v16, 128 }
  0x3d   :  { %86 = vxpose.xlu0.b32.cont [6/8] (short) %v54_v17, 128 }
  0x40   :  { %119 = vxpose.xlu1.b32.cont [7/8] (short) %v63_v21, 128 }
  0x41   :  { %87 = vxpose.xlu0.b32.cont [7/8] (short) %v55_v22, 128 }
  0x44   :  { %120 = vxpose.xlu1.b32.end [8/8] (short) %v64_v26, 128 }
  0x45   :  { %88 = vxpose.xlu0.b32.end [8/8] (short) %v56_v27, 128 }
  0x65   :  { %177 = vxpose.xlu1.b32.start [1/8] (short) %v73_v28, 128 }
  0x66   :  { %145 = vxpose.xlu0.b32.start [1/8] (short) %v65_v33, 128 }
  0x69   :  { %178 = vxpose.xlu1.b32.cont [2/8] (short) %v74_v29, 128 }
  0x6a   :  { %146 = vxpose.xlu0.b32.cont [2/8] (short) %v66_v35, 128 }
  0x6d   :  { %179 = vxpose.xlu1.b32.cont [3/8] (short) %v75_v30, 128 }
  0x6e   :  { %147 = vxpose.xlu0.b32.cont [3/8] (short) %v67_v37, 128 }
  0x71   :  { %180 = vxpose.xlu1.b32.cont [4/8] (short) %v76_v31, 128 }
  0x72   :  { %148 = vxpose.xlu0.b32.cont [4/8] (short) %v68_v39, 128 }
  0x75   :  { %181 = vxpose.xlu1.b32.cont [5/8] (short) %v77_v32, 128 }
  0x76   :  { %149 = vxpose.xlu0.b32.cont [5/8] (short) %v69_v40, 128 }
  0x79   :  { %182 = vxpose.xlu1.b32.cont [6/8] (short) %v78_v34, 128 }
  0x7a   :  { %150 = vxpose.xlu0.b32.cont [6/8] (short) %v70_v41, 128 }
  0x7d   :  { %183 = vxpose.xlu1.b32.cont [7/8] (short) %v79_v36, 128 }
  0x7e   :  { %151 = vxpose.xlu0.b32.cont [7/8] (short) %v71_v42, 128 }
  0x81   :  { %184 = vxpose.xlu1.b32.end [8/8] (short) %v80_v38, 128 }
  0x82   :  { %152 = vxpose.xlu0.b32.end [8/8] (short) %v72_v43, 128 }
  0xa8   :  { %v129_v44 = vpop.trf.xlu1 }
  0xa9   :  { %v97_v45 = vpop.trf.xlu0 }
  0xaa   :  { %8329 = vmatprep.mubr.msk.f32.mxu0 %vm16250_vm0, %v97_v45 }
  0xac   :  { %v130_v46 = vpop.trf.xlu1 }
  0xad   :  { %v98_v47 = vpop.trf.xlu0 }
  0xae   :  { %8330 = vmatmul.mubr.msk.f32.vlgmr.msra.gmra.mrb[0].mxu0 %vm16250_vm0, %v98_v47 }
  0xb0   :  { %v131_v48 = vpop.trf.xlu1 }
  0xb1   :  { %v99_v49 = vpop.trf.xlu0 }
  0xb2   :  { %8332 = vmatprep.mubr.msk.f32.mxu0 %vm16250_vm0, %v99_v49 }
  0xb4   :  { %v132_v50 = vpop.trf.xlu1 }
  0xb5   :  { %v100_v51 = vpop.trf.xlu0 }
  0xb6   :  { %8333 = vmatmul.mubr.msk.f32.gmra.mrb[2].mxu0 %vm16250_vm0, %v100_v51 }
  0xb8   :  { %v133_v52 = vpop.trf.xlu1 }
  0xb9   :  { %v101_v53 = vpop.trf.xlu0 }
  0xba   :  { %8335 = vmatprep.mubr.msk.f32.mxu0 %vm16250_vm0, %v101_v53 }
  0xbc   :  { %v134_v54 = vpop.trf.xlu1 }
  0xbd   :  { %v102_v55 = vpop.trf.xlu0 }
  0xbe   :  { %8336 = vmatmul.mubr.msk.f32.gmra.mrb[4].mxu0 %vm16250_vm0, %v102_v55 }
  0xc0   :  { %v135_v56 = vpop.trf.xlu1 }
  0xc1   :  { %v103_v57 = vpop.trf.xlu0 }
  0xc2   :  { %8338 = vmatprep.mubr.msk.f32.mxu0 %vm16250_vm0, %v103_v57 }
  0xc4   :  { %v136_v58 = vpop.trf.xlu1 }
  0xc5   :  { %v104_v59 = vpop.trf.xlu0 }
  0xc6   :  { %8339 = vmatmul.mubr.msk.f32.gmra.mrb[6].mxu0 %vm16250_vm0, %v104_v59 }
  0xc8   :  { %v137_v60 = vpop.trf.xlu1 }
  0xc9   :  { %v105_v61 = vpop.trf.xlu0 }
  0xca   :  { %8341 = vmatprep.mubr.msk.f32.mxu0 %vm16250_vm0, %v105_v61 }
  0xcc   :  { %v138_v62 = vpop.trf.xlu1 }
  0xcd   :  { %v106_v63 = vpop.trf.xlu0 }
  0xce   :  { %8342 = vmatmul.mubr.msk.f32.gmra.mrb[8].mxu0 %vm16250_vm0, %v106_v63 }
  0xd0   :  { %v139_v0 = vpop.trf.xlu1 }
  0xd1   :  { %v107_v1 = vpop.trf.xlu0 }
  0xd2   :  { %8344 = vmatprep.mubr.msk.f32.mxu0 %vm16250_vm0, %v107_v1 }
  0xd4   :  { %v140_v2 = vpop.trf.xlu1 }
  0xd5   :  { %v108_v3 = vpop.trf.xlu0 }
  0xd6   :  { %8345 = vmatmul.mubr.msk.f32.gmra.mrb[10].mxu0 %vm16250_vm0, %v108_v3 }
  0xd8   :  { %v141_v4 = vpop.trf.xlu1 }
  0xd9   :  { %v109_v5 = vpop.trf.xlu0 }
  0xda   :  { %8347 = vmatprep.mubr.msk.f32.mxu0 %vm16250_vm0, %v109_v5 }
  0xdc   :  { %v142_v6 = vpop.trf.xlu1 }
  0xdd   :  { %v110_v7 = vpop.trf.xlu0 }
  0xde   :  { %8348 = vmatmul.mubr.msk.f32.gmra.mrb[12].mxu0 %vm16250_vm0, %v110_v7 }
  0xe0   :  { %v143_v8 = vpop.trf.xlu1 }
  0xe1   :  { %v111_v9 = vpop.trf.xlu0 }
  0xe2   :  { %8350 = vmatprep.mubr.msk.f32.mxu0 %vm16250_vm0, %v111_v9 }
  0xe4   :  { %v144_v10 = vpop.trf.xlu1 }
  0xe5   :  { %v112_v11 = vpop.trf.xlu0 }
  0xe6   :  { %8351 = vmatmul.mubr.msk.f32.gmra.mrb[14].mxu0 %vm16250_vm0, %v112_v11 }
  0xe7   :  { %8353 = vmatprep.mubr.msk.f32.mxu0 %vm16250_vm0, %v129_v44 }
  0xe8   :  { %v193_v12 = vpop.trf.xlu1 }
  0xe9   :  { %8401 = vmatprep.mubr.msk.f32.mxu1 %vm16250_vm0, %v193_v12  ;;  %v161_v15 = vpop.trf.xlu0 }
  0xea   :  { %8354 = vmatmul.mubr.msk.f32.gmra.mrb[16].mxu0 %vm16250_vm0, %v130_v46  ;;  %v8796_v46 = vld [vmem:[%s16160_s2] ss:$0 sm:$0xff]  ;;  %s8631_s2 = smov 64  }
  0xeb   :  { %8356 = vmatprep.mubr.msk.f32.mxu0 %vm16250_vm0, %v131_v48 }
  0xec   :  { %v194_v13 = vpop.trf.xlu1 }
  0xed   :  { %8402 = vmatmul.mubr.msk.f32.vlgmr.msra.gmra.mrb[0].mxu1 %vm16250_vm0, %v194_v13  ;;  %v162_v17 = vpop.trf.xlu0 }
  0xee   :  { %8357 = vmatmul.mubr.msk.f32.gmra.mrb[18].mxu0 %vm16250_vm0, %v132_v50 }
  0xef   :  { %8359 = vmatprep.mubr.msk.f32.mxu0 %vm16250_vm0, %v133_v52 }
  0xf0   :  { %v195_v14 = vpop.trf.xlu1 }
  0xf1   :  { %8404 = vmatprep.mubr.msk.f32.mxu1 %vm16250_vm0, %v195_v14  ;;  %v163_v19 = vpop.trf.xlu0 }
  0xf2   :  { %8360 = vmatmul.mubr.msk.f32.gmra.mrb[20].mxu0 %vm16250_vm0, %v134_v54 }
  0xf3   :  { %8362 = vmatprep.mubr.msk.f32.mxu0 %vm16250_vm0, %v135_v56 }
  0xf4   :  { %v196_v16 = vpop.trf.xlu1 }
  0xf5   :  { %8405 = vmatmul.mubr.msk.f32.gmra.mrb[2].mxu1 %vm16250_vm0, %v196_v16  ;;  %v164_v21 = vpop.trf.xlu0 }
  0xf6   :  { %8363 = vmatmul.mubr.msk.f32.gmra.mrb[22].mxu0 %vm16250_vm0, %v136_v58 }
  0xf7   :  { %8365 = vmatprep.mubr.msk.f32.mxu0 %vm16250_vm0, %v137_v60 }
  0xf8   :  { %v197_v18 = vpop.trf.xlu1 }
  0xf9   :  { %8407 = vmatprep.mubr.msk.f32.mxu1 %vm16250_vm0, %v197_v18  ;;  %v165_v23 = vpop.trf.xlu0 }
  0xfa   :  { %8366 = vmatmul.mubr.msk.f32.gmra.mrb[24].mxu0 %vm16250_vm0, %v138_v62 }
  0xfb   :  { %8368 = vmatprep.mubr.msk.f32.mxu0 %vm16250_vm0, %v139_v0 }
  0xfc   :  { %v198_v20 = vpop.trf.xlu1 }
  0xfd   :  { %8408 = vmatmul.mubr.msk.f32.gmra.mrb[4].mxu1 %vm16250_vm0, %v198_v20  ;;  %v166_v25 = vpop.trf.xlu0 }
  0xfe   :  { %8369 = vmatmul.mubr.msk.f32.gmra.mrb[26].mxu0 %vm16250_vm0, %v140_v2 }
  0xff   :  { %8371 = vmatprep.mubr.msk.f32.mxu0 %vm16250_vm0, %v141_v4 }
 0x100   :  { %v199_v22 = vpop.trf.xlu1 }
 0x101   :  { %8410 = vmatprep.mubr.msk.f32.mxu1 %vm16250_vm0, %v199_v22  ;;  %v167_v27 = vpop.trf.xlu0 }
 0x102   :  { %8372 = vmatmul.mubr.msk.f32.gmra.mrb[28].mxu0 %vm16250_vm0, %v142_v6 }
 0x103   :  { %8374 = vmatprep.mubr.msk.f32.mxu0 %vm16250_vm0, %v143_v8 }
 0x104   :  { %v200_v24 = vpop.trf.xlu1 }
 0x105   :  { %8411 = vmatmul.mubr.msk.f32.gmra.mrb[6].mxu1 %vm16250_vm0, %v200_v24  ;;  %v168_v29 = vpop.trf.xlu0 }
 0x106   :  { %8375 = vmatmul.mubr.msk.f32.gmra.mrb[30].mxu0 %vm16250_vm0, %v144_v10 }
 0x107   :  { %8377 = vmatprep.mubr.msk.f32.mxu0 %vm16250_vm0, %v161_v15 }
 0x108   :  { %v201_v26 = vpop.trf.xlu1 }
 0x109   :  { %8413 = vmatprep.mubr.msk.f32.mxu1 %vm16250_vm0, %v201_v26  ;;  %v169_v31 = vpop.trf.xlu0 }
 0x10a   :  { %8378 = vmatmul.mubr.msk.f32.gmra.mrb[32].mxu0 %vm16250_vm0, %v162_v17 }
 0x10b   :  { %8380 = vmatprep.mubr.msk.f32.mxu0 %vm16250_vm0, %v163_v19 }
 0x10c   :  { %v202_v28 = vpop.trf.xlu1 }
 0x10d   :  { %8414 = vmatmul.mubr.msk.f32.gmra.mrb[8].mxu1 %vm16250_vm0, %v202_v28  ;;  %v170_v33 = vpop.trf.xlu0 }
 0x10e   :  { %8381 = vmatmul.mubr.msk.f32.gmra.mrb[34].mxu0 %vm16250_vm0, %v164_v21 }
 0x10f   :  { %8383 = vmatprep.mubr.msk.f32.mxu0 %vm16250_vm0, %v165_v23 }
 0x110   :  { %v203_v30 = vpop.trf.xlu1 }
 0x111   :  { %8416 = vmatprep.mubr.msk.f32.mxu1 %vm16250_vm0, %v203_v30  ;;  %v171_v35 = vpop.trf.xlu0 }
 0x112   :  { %8384 = vmatmul.mubr.msk.f32.gmra.mrb[36].mxu0 %vm16250_vm0, %v166_v25 }
 0x113   :  { %8386 = vmatprep.mubr.msk.f32.mxu0 %vm16250_vm0, %v167_v27 }
 0x114   :  { %v204_v32 = vpop.trf.xlu1 }
 0x115   :  { %8417 = vmatmul.mubr.msk.f32.gmra.mrb[10].mxu1 %vm16250_vm0, %v204_v32  ;;  %v172_v37 = vpop.trf.xlu0 }
 0x116   :  { %8387 = vmatmul.mubr.msk.f32.gmra.mrb[38].mxu0 %vm16250_vm0, %v168_v29 }
 0x117   :  { %8389 = vmatprep.mubr.msk.f32.mxu0 %vm16250_vm0, %v169_v31 }
 0x118   :  { %v205_v34 = vpop.trf.xlu1 }
 0x119   :  { %8419 = vmatprep.mubr.msk.f32.mxu1 %vm16250_vm0, %v205_v34  ;;  %v173_v39 = vpop.trf.xlu0 }
 0x11a   :  { %8390 = vmatmul.mubr.msk.f32.gmra.mrb[40].mxu0 %vm16250_vm0, %v170_v33 }
 0x11b   :  { %8392 = vmatprep.mubr.msk.f32.mxu0 %vm16250_vm0, %v171_v35 }
 0x11c   :  { %v206_v36 = vpop.trf.xlu1 }
 0x11d   :  { %8420 = vmatmul.mubr.msk.f32.gmra.mrb[12].mxu1 %vm16250_vm0, %v206_v36  ;;  %v174_v41 = vpop.trf.xlu0 }
 0x11e   :  { %8393 = vmatmul.mubr.msk.f32.gmra.mrb[42].mxu0 %vm16250_vm0, %v172_v37 }
 0x11f   :  { %8395 = vmatprep.mubr.msk.f32.mxu0 %vm16250_vm0, %v173_v39 }
 0x120   :  { %v207_v38 = vpop.trf.xlu1 }
 0x121   :  { %8422 = vmatprep.mubr.msk.f32.mxu1 %vm16250_vm0, %v207_v38  ;;  %v175_v42 = vpop.trf.xlu0 }
 0x122   :  { %8396 = vmatmul.mubr.msk.f32.gmra.mrb[44].mxu0 %vm16250_vm0, %v174_v41 }
 0x123   :  { %8398 = vmatprep.mubr.msk.f32.mxu0 %vm16250_vm0, %v175_v42 }
 0x124   :  { %v208_v40 = vpop.trf.xlu1 }
 0x125   :  { %8423 = vmatmul.mubr.msk.f32.gmra.mrb[14].mxu1 %vm16250_vm0, %v208_v40  ;;  %v176_v43 = vpop.trf.xlu0 }
 0x126   :  { %8399 = vmatmul.mubr.msk.f32.gmra.mrb[46].mxu0 %vm16250_vm0, %v176_v43 }
 0x181   :  { %v8331_v44 = vpop.f32.mrb[0].mxu0 }
 0x182   :  { %v483_v45 = vpop.f32.mrb[1].mxu0  ;;  %v8799_v48 = vadd.f32 %v8331_v44, %v8796_v46 }
 0x183   :  { %v8806_v52 = vadd.f32 %v8796_v46, %v483_v45 }
 0x184   :  { %16625 = vst [vmem:[#allocation11_spill] sm:$0xff] %v8799_v48  ;;  %v818_v53 = vsel %vm802_vm1, %v8799_v48, 0.0 }
 0x185   :  { %16627 = vst [vmem:[#allocation13_spill] sm:$0xff] %v8806_v52  ;;  %v803_v55 = vsel %vm802_vm1, %v8806_v52, 0.0 }
 0x189   :  { %v8334_v47 = vpop.f32.mrb[2].mxu0 }
 0x18a   :  { %v493_v49 = vpop.f32.mrb[3].mxu0  ;;  %v8803_v51 = vadd.f32 %v8334_v47, %v8796_v46 }
 0x18b   :  { %v494_v50 = vadd.f32 %v8796_v46, %v493_v49 }
 0x18c   :  { %16626 = vst [vmem:[#allocation12_spill] sm:$0xff] %v8803_v51  ;;  %v819_v54 = vsel %vm802_vm1, %v8803_v51, 0.0 }
 0x18d   :  { %v804_v56 = vsel %vm802_vm1, %v494_v50, 0.0  ;;  %v8815_v57 = vrot.slane %v494_v50, 7  ;;  %v820_v58 = vadd.f32 %v819_v54, %v818_v53 }
 0x18e   :  { %v805_v60 = vadd.f32 %v804_v56, %v803_v55 }
 0x18f   :  { %16628 = vst [vmem:[#allocation14_spill] sm:$0xff] %v8815_v57  ;;  %v2747_v0 = vsel %vm16265_vm2, %v8815_v57, %v8806_v52  ;;  %v2522_v1 = vsel %vm16266_vm3, %v8815_v57, %v8806_v52  ;;  %v3116_v3 = vsel %vm16249_vm4, %v8815_v57, %v8806_v52  ;;  %v3485_v4 = vsel %vm16248_vm5, %v8815_v57, %v8806_v52 }
 0x190   :  { %v3854_v5 = vsel %vm16246_vm6, %v8815_v57, %v8806_v52  ;;  %v4223_v9 = vsel %vm16244_vm7, %v8815_v57, %v8806_v52 }
 0x191   :  { %v8337_v59 = vpop.f32.mrb[4].mxu0 }
 0x192   :  { %v8818_v61 = vadd.f32 %v8337_v59, %v8796_v46  ;;  %v503_v62 = vpop.f32.mrb[5].mxu0 }
 0x193   :  { %v504_v63 = vadd.f32 %v8796_v46, %v503_v62 }
 0x194   :  { %16629 = vst [vmem:[#allocation15_spill] sm:$0xff] %v8818_v61  ;;  %v821_v2 = vsel %vm802_vm1, %v8818_v61, 0.0 }
 0x195   :  { %v822_v6 = vadd.f32 %v821_v2, %v820_v58  ;;  %v806_v7 = vsel %vm802_vm1, %v504_v63, 0.0  ;;  %v2523_v8 = vrot.slane %v504_v63, 6 }
 0x196   :  { %v807_v10 = vadd.f32 %v806_v7, %v805_v60 }
 0x197   :  { %v2748_v11 = vsel %vm16249_vm4, %v2523_v8, %v2747_v0  ;;  %v2525_v12 = vsel %vm16265_vm2, %v2523_v8, %v2522_v1  ;;  %v3117_v13 = vsel %vm16248_vm5, %v2523_v8, %v3116_v3  ;;  %v3486_v14 = vsel %vm16246_vm6, %v2523_v8, %v3485_v4 }
 0x198   :  { %v3855_v15 = vsel %vm16244_vm7, %v2523_v8, %v3854_v5  ;;  %v8848_v16 = vsel %vm16247_vm8, %v2523_v8, %v4223_v9  ;;  %v4961_v17 = vsel %vm16266_vm3, %v2523_v8, %v8815_v57 }
 0x199   :  { %16630 = vst [vmem:[#allocation16_spill] sm:$0xff] %v8848_v16  ;;  %v8340_v18 = vpop.f32.mrb[6].mxu0 }
 0x19a   :  { %v8853_v19 = vadd.f32 %v8340_v18, %v8796_v46  ;;  %v513_v20 = vpop.f32.mrb[7].mxu0 }
 0x19b   :  { %v514_v21 = vadd.f32 %v8796_v46, %v513_v20 }
 0x19c   :  { %16631 = vst [vmem:[#allocation17_spill] sm:$0xff] %v8853_v19  ;;  %v823_v22 = vsel %vm802_vm1, %v8853_v19, 0.0 }
 0x19d   :  { %v824_v23 = vadd.f32 %v823_v22, %v822_v6  ;;  %v808_v24 = vsel %vm802_vm1, %v514_v21, 0.0  ;;  %v2526_v25 = vrot.slane %v514_v21, 5 }
 0x19e   :  { %v809_v26 = vadd.f32 %v808_v24, %v807_v10 }
 0x19f   :  { %v2749_v27 = vsel %vm16248_vm5, %v2526_v25, %v2748_v11  ;;  %v2528_v28 = vsel %vm16249_vm4, %v2526_v25, %v2525_v12  ;;  %v3118_v29 = vsel %vm16246_vm6, %v2526_v25, %v3117_v13  ;;  %v3487_v30 = vsel %vm16244_vm7, %v2526_v25, %v3486_v14 }
 0x1a0   :  { %v8864_v31 = vsel %vm16247_vm8, %v2526_v25, %v3855_v15  ;;  %v4593_v32 = vsel %vm16266_vm3, %v2526_v25, %v2523_v8  ;;  %v4962_v33 = vsel %vm16265_vm2, %v2526_v25, %v4961_v17 }
 0x1a1   :  { %16632 = vst [vmem:[#allocation18_spill] sm:$0xff] %v8864_v31  ;;  %v8343_v34 = vpop.f32.mrb[8].mxu0 }
 0x1a2   :  { %v8869_v35 = vadd.f32 %v8343_v34, %v8796_v46  ;;  %v523_v36 = vpop.f32.mrb[9].mxu0 }
 0x1a3   :  { %v524_v37 = vadd.f32 %v8796_v46, %v523_v36 }
 0x1a4   :  { %16633 = vst [vmem:[#allocation19_spill] sm:$0xff] %v8869_v35  ;;  %v825_v38 = vsel %vm802_vm1, %v8869_v35, 0.0 }
 0x1a5   :  { %v826_v39 = vadd.f32 %v825_v38, %v824_v23  ;;  %v810_v40 = vsel %vm802_vm1, %v524_v37, 0.0  ;;  %v2529_v41 = vrot.slane %v524_v37, 4 }
 0x1a6   :  { %v811_v42 = vadd.f32 %v810_v40, %v809_v26  ;;  %v16164_v40 = vmov 0.0  }
 0x1a7   :  { %v2750_v43 = vsel %vm16246_vm6, %v2529_v41, %v2749_v27  ;;  %v2531_v44 = vsel %vm16248_vm5, %v2529_v41, %v2528_v28  ;;  %v3119_v45 = vsel %vm16244_vm7, %v2529_v41, %v3118_v29  ;;  %v8879_v47 = vsel %vm16247_vm8, %v2529_v41, %v3487_v30  ;;  %2286 = vmatprep.mubr.f32.mxu1 %v16164_v40 }
 0x1a8   :  { %16634 = vst [vmem:[#allocation20_spill] sm:$0xff] %v8879_v47  ;;  %v4225_v49 = vsel %vm16266_vm3, %v2529_v41, %v2526_v25  ;;  %v4594_v50 = vsel %vm16265_vm2, %v2529_v41, %v4593_v32  ;;  %v4963_v53 = vsel %vm16249_vm4, %v2529_v41, %v4962_v33 }
 0x1a9   :  { %v8346_v54 = vpop.f32.mrb[10].mxu0 }
 0x1aa   :  { %v8885_v55 = vadd.f32 %v8346_v54, %v8796_v46  ;;  %v533_v56 = vpop.f32.mrb[11].mxu0 }
 0x1ab   :  { %v534_v58 = vadd.f32 %v8796_v46, %v533_v56 }
 0x1ac   :  { %16635 = vst [vmem:[#allocation21_spill] sm:$0xff] %v8885_v55  ;;  %v827_v59 = vsel %vm802_vm1, %v8885_v55, 0.0 }
 0x1ad   :  { %v828_v60 = vadd.f32 %v827_v59, %v826_v39  ;;  %v812_v62 = vsel %vm802_vm1, %v534_v58, 0.0  ;;  %v2532_v63 = vrot.slane %v534_v58, 3 }
 0x1ae   :  { %v813_v0 = vadd.f32 %v812_v62, %v811_v42 }
 0x1af   :  { %v2751_v1 = vsel %vm16244_vm7, %v2532_v63, %v2750_v43  ;;  %v2534_v2 = vsel %vm16246_vm6, %v2532_v63, %v2531_v44  ;;  %v8894_v3 = vsel %vm16247_vm8, %v2532_v63, %v3119_v45  ;;  %v3857_v4 = vsel %vm16266_vm3, %v2532_v63, %v2529_v41 }
 0x1b0   :  { %16636 = vst [vmem:[#allocation22_spill] sm:$0xff] %v8894_v3  ;;  %v4226_v5 = vsel %vm16265_vm2, %v2532_v63, %v4225_v49  ;;  %v4595_v6 = vsel %vm16249_vm4, %v2532_v63, %v4594_v50  ;;  %v4964_v7 = vsel %vm16248_vm5, %v2532_v63, %v4963_v53 }
 0x1b1   :  { %v8349_v8 = vpop.f32.mrb[12].mxu0 }
 0x1b2   :  { %v8901_v9 = vadd.f32 %v8349_v8, %v8796_v46  ;;  %v543_v10 = vpop.f32.mrb[13].mxu0 }
 0x1b3   :  { %v544_v11 = vadd.f32 %v8796_v46, %v543_v10 }
 0x1b4   :  { %16637 = vst [vmem:[#allocation23_spill] sm:$0xff] %v8901_v9  ;;  %v829_v12 = vsel %vm802_vm1, %v8901_v9, 0.0 }
 0x1b5   :  { %v830_v13 = vadd.f32 %v829_v12, %v828_v60  ;;  %v814_v14 = vsel %vm802_vm1, %v544_v11, 0.0  ;;  %v8907_v15 = vrot.slane %v544_v11, 2 }
 0x1b6   :  { %v815_v17 = vadd.f32 %v814_v14, %v813_v0 }
 0x1b7   :  { %v8911_v18 = vsel %vm16247_vm8, %v8907_v15, %v2751_v1  ;;  %v2537_v20 = vsel %vm16244_vm7, %v8907_v15, %v2534_v2  ;;  %v8917_v21 = vsel %vm16266_vm3, %v8907_v15, %v2532_v63  ;;  %v8921_v22 = vsel %vm16265_vm2, %v8907_v15, %v3857_v4 }
 0x1b8   :  { %16638 = vst [vmem:[#allocation24_spill] sm:$0xff] %v8911_v18  ;;  %16639 = vst [vmem:[#allocation25_spill] sm:$0xff] %v8917_v21  ;;  %2779 = vrot.lane.b32.xlu1 %v8911_v18, %s8629_s17  ;;  %v8927_v23 = vsel %vm16249_vm4, %v8907_v15, %v4226_v5  ;;  %v8931_v24 = vsel %vm16248_vm5, %v8907_v15, %v4595_v6  ;;  %v8935_v25 = vsel %vm16246_vm6, %v8907_v15, %v4964_v7 }
 0x1b9   :  { %16640 = vst [vmem:[#allocation26_spill] sm:$0xff] %v8921_v22  ;;  %16641 = vst [vmem:[#allocation27_spill] sm:$0xff] %v8927_v23  ;;  %v8352_v26 = vpop.f32.mrb[14].mxu0 }
 0x1ba   :  { %16642 = vst [vmem:[#allocation28_spill] sm:$0xff] %v8931_v24  ;;  %16643 = vst [vmem:[#allocation29_spill] sm:$0xff] %v8935_v25  ;;  %v8938_v27 = vadd.f32 %v8352_v26, %v8796_v46  ;;  %v553_v28 = vpop.f32.mrb[15].mxu0 }
 0x1bb   :  { %v554_v29 = vadd.f32 %v8796_v46, %v553_v28 }
 0x1bc   :  { %16644 = vst [vmem:[#allocation30_spill] sm:$0xff] %v8938_v27  ;;  %v831_v30 = vsel %vm802_vm1, %v8938_v27, 0.0 }
 0x1bd   :  { %v832_v32 = vadd.f32 %v831_v30, %v830_v13  ;;  %v816_v33 = vsel %vm802_vm1, %v554_v29, 0.0  ;;  %v8944_v34 = vrot.slane %v554_v29, 1  ;;  %v8355_v36 = vpop.f32.mrb[16].mxu0 }
 0x1be   :  { %v8946_v37 = vadd.f32 %v816_v33, %v815_v17  ;;  %v563_v38 = vpop.f32.mrb[17].mxu0  ;;  %v8958_v43 = vadd.f32 %v8355_v36, %v8796_v46 }
 0x1bf   :  { %2781 = vrot.lane.b32.xlu0 %v8944_v34, %s8629_s17  ;;  %v8952_v39 = vsel %vm16247_vm8, %v8944_v34, %v2537_v20  ;;  %v8964_v50 = vadd.f32 %v8796_v46, %v563_v38  ;;  %v8979_v0 = vmul.f32 0.125, %v832_v32 }
 0x1c0   :  { %16645 = vst [vmem:[#allocation31_spill] sm:$0xff] %v8952_v39  ;;  %2587 = vrot.lane.b32.xlu1 %v8952_v39, %s8629_s17  ;;  %v8403_v42 = vpop.f32.mrb[0].mxu1  ;;  %16646 = vst [vmem:[#allocation32_spill] sm:$0xff] %v8958_v43  ;;  %v848_v60 = vsel %vm802_vm1, %v8958_v43, 0.0 }
 0x1c1   :  { %v8358_v41 = vpop.f32.mrb[18].mxu0  ;;  %v723_v49 = vpop.f32.mrb[1].mxu1  ;;  %16648 = vst [vmem:[#allocation34_spill] sm:$0xff] %v8964_v50  ;;  %v833_v2 = vsel %vm802_vm1, %v8964_v50, 0.0  ;;  %v8985_v5 = vadd.f32 %v8403_v42, %v8796_v46 }
 0x1c2   :  { %v8961_v44 = vadd.f32 %v8358_v41, %v8796_v46  ;;  %v573_v45 = vpop.f32.mrb[19].mxu0  ;;  %v8988_v7 = vadd.f32 %v8796_v46, %v723_v49 }
 0x1c3   :  { %v574_v53 = vadd.f32 %v8796_v46, %v573_v45  ;;  %16651 = vst [vmem:[#allocation37_spill] sm:$0xff] %v8985_v5  ;;  %v908_v45 = vsel %vm802_vm1, %v8985_v5, 0.0 }
 0x1c4   :  { %16647 = vst [vmem:[#allocation33_spill] sm:$0xff] %v8961_v44  ;;  %v849_v54 = vsel %vm802_vm1, %v8961_v44, 0.0  ;;  %2599 = vrot.lane.b32.xlu1 %v8952_v39, %s8631_s2  ;;  %16652 = vst [vmem:[#allocation38_spill] sm:$0xff] %v8988_v7 }
 0x1c5   :  { %v834_v56 = vsel %vm802_vm1, %v574_v53, 0.0  ;;  %v8972_v58 = vrot.slane %v574_v53, 7  ;;  %v8361_v59 = vpop.f32.mrb[20].mxu0  ;;  %v850_v1 = vadd.f32 %v849_v54, %v848_v60 }
 0x1c6   :  { %v8977_v62 = vadd.f32 %v8361_v59, %v8796_v46  ;;  %v583_v63 = vpop.f32.mrb[21].mxu0  ;;  %v835_v6 = vadd.f32 %v834_v56, %v833_v2 }
 0x1c7   :  { %16649 = vst [vmem:[#allocation35_spill] sm:$0xff] %v8972_v58  ;;  %v584_v4 = vadd.f32 %v8796_v46, %v583_v63  ;;  %v2753_v17 = vsel %vm16265_vm2, %v8972_v58, %v8964_v50  ;;  %v2542_v32 = vsel %vm16266_vm3, %v8972_v58, %v8964_v50  ;;  %v893_v63 = vsel %vm802_vm1, %v8988_v7, 0.0 }
 0x1c8   :  { %16650 = vst [vmem:[#allocation36_spill] sm:$0xff] %v8977_v62  ;;  %v851_v8 = vsel %vm802_vm1, %v8977_v62, 0.0  ;;  %2611 = vrot.lane.b32.xlu1 %v8952_v39, %s8632_s12  ;;  %v8406_v14 = vpop.f32.mrb[2].mxu1 }
 0x1c9   :  { %v852_v10 = vadd.f32 %v851_v8, %v850_v1  ;;  %v836_v11 = vsel %vm802_vm1, %v584_v4, 0.0  ;;  %v8995_v12 = vrot.slane %v584_v4, 6  ;;  %v8364_v13 = vpop.f32.mrb[22].mxu0  ;;  %v9004_v28 = vadd.f32 %v8406_v14, %v8796_v46  ;;  %v733_v30 = vpop.f32.mrb[3].mxu1 }
 0x1ca   :  { %v837_v20 = vadd.f32 %v836_v11, %v835_v6  ;;  %v9001_v26 = vadd.f32 %v8364_v13, %v8796_v46  ;;  %v593_v29 = vpop.f32.mrb[23].mxu0  ;;  %v734_v36 = vadd.f32 %v8796_v46, %v733_v30  ;;  %v3122_v11 = vsel %vm16249_vm4, %v8972_v58, %v8964_v50 }
 0x1cb   :  { %16654 = vst [vmem:[#allocation40_spill] sm:$0xff] %v9004_v28  ;;  %v594_v33 = vadd.f32 %v8796_v46, %v593_v29  ;;  %v2754_v38 = vsel %vm16249_vm4, %v8995_v12, %v2753_v17  ;;  %v2544_v41 = vsel %vm16265_vm2, %v8995_v12, %v2542_v32  ;;  %v909_v53 = vsel %vm802_vm1, %v9004_v28, 0.0 }
 0x1cc   :  { %16653 = vst [vmem:[#allocation39_spill] sm:$0xff] %v9001_v26  ;;  %v853_v42 = vsel %vm802_vm1, %v9001_v26, 0.0  ;;  %942 = vrot.lane.b32.xlu1 %v8979_v0, %s8632_s12  ;;  %v894_v1 = vsel %vm802_vm1, %v734_v36, 0.0  ;;  %v910_v13 = vadd.f32 %v909_v53, %v908_v45  ;;  %v9040_v17 = vrot.slane %v734_v36, 7 }
 0x1cd   :  { %v854_v49 = vadd.f32 %v853_v42, %v852_v10  ;;  %v838_v54 = vsel %vm802_vm1, %v594_v33, 0.0  ;;  %v9024_v56 = vrot.slane %v594_v33, 5  ;;  %v8367_v59 = vpop.f32.mrb[24].mxu0  ;;  %v895_v14 = vadd.f32 %v894_v1, %v893_v63 }
 0x1ce   :  { %v839_v60 = vadd.f32 %v838_v54, %v837_v20  ;;  %v9030_v2 = vadd.f32 %v8367_v59, %v8796_v46  ;;  %v603_v4 = vpop.f32.mrb[25].mxu0  ;;  %16656 = vst [vmem:[#allocation42_spill] sm:$0xff] %v9040_v17 }
 0x1cf   :  { %v604_v6 = vadd.f32 %v8796_v46, %v603_v4  ;;  %v2755_v8 = vsel %vm16248_vm5, %v9024_v56, %v2754_v38  ;;  %v2546_v10 = vsel %vm16249_vm4, %v9024_v56, %v2544_v41  ;;  %v3123_v41 = vsel %vm16248_vm5, %v8995_v12, %v3122_v11 }
 0x1d0   :  { %16655 = vst [vmem:[#allocation41_spill] sm:$0xff] %v9030_v2  ;;  %v855_v20 = vsel %vm802_vm1, %v9030_v2, 0.0  ;;  %v8409_v38 = vpop.f32.mrb[4].mxu1  ;;  %v2570_v11 = vsel %vm16266_vm3, %v9040_v17, %v8988_v7  ;;  %v4599_v44 = vsel %vm16266_vm3, %v9024_v56, %v8995_v12 }
 0x1d1   :  { %v856_v29 = vadd.f32 %v855_v20, %v854_v49  ;;  %v840_v30 = vsel %vm802_vm1, %v604_v6, 0.0  ;;  %v9045_v32 = vrot.slane %v604_v6, 4  ;;  %v8370_v33 = vpop.f32.mrb[26].mxu0  ;;  %v9053_v36 = vadd.f32 %v8409_v38, %v8796_v46  ;;  %v743_v53 = vpop.f32.mrb[5].mxu1 }
 0x1d2   :  { %v841_v42 = vadd.f32 %v840_v30, %v839_v60  ;;  %v9050_v54 = vadd.f32 %v8370_v33, %v8796_v46  ;;  %v613_v45 = vpop.f32.mrb[27].mxu0  ;;  %v3124_v49 = vsel %vm16246_vm6, %v9024_v56, %v3123_v41  ;;  %v744_v63 = vadd.f32 %v8796_v46, %v743_v53 }
 0x1d3   :  { %16658 = vst [vmem:[#allocation44_spill] sm:$0xff] %v9053_v36  ;;  %v614_v59 = vadd.f32 %v8796_v46, %v613_v45  ;;  %v2756_v1 = vsel %vm16246_vm6, %v9045_v32, %v2755_v8  ;;  %v2548_v60 = vsel %vm16248_vm5, %v9045_v32, %v2546_v10  ;;  %v911_v6 = vsel %vm802_vm1, %v9053_v36, 0.0 }
 0x1d4   :  { %16657 = vst [vmem:[#allocation43_spill] sm:$0xff] %v9050_v54  ;;  %v857_v4 = vsel %vm802_vm1, %v9050_v54, 0.0  ;;  %v2765_v20 = vsel %vm16265_vm2, %v9040_v17, %v8988_v7  ;;  %v912_v33 = vadd.f32 %v911_v6, %v910_v13  ;;  %v896_v45 = vsel %vm802_vm1, %v744_v63, 0.0 }
 0x1d5   :  { %v858_v30 = vadd.f32 %v857_v4, %v856_v29  ;;  %v842_v8 = vsel %vm802_vm1, %v614_v59, 0.0  ;;  %v9074_v38 = vrot.slane %v614_v59, 3  ;;  %v8373_v10 = vpop.f32.mrb[28].mxu0  ;;  %v9077_v53 = vrot.slane %v744_v63, 6 }
 0x1d6   :  { %v843_v41 = vadd.f32 %v842_v8, %v841_v42  ;;  %v9080_v40 = vadd.f32 %v8373_v10, %v8796_v46  ;;  %v623_v39 = vpop.f32.mrb[29].mxu0  ;;  %v897_v5 = vadd.f32 %v896_v45, %v895_v14 }
 0x1d7   :  { %v624_v25 = vadd.f32 %v8796_v46, %v623_v39  ;;  %v2757_v13 = vsel %vm16244_vm7, %v9074_v38, %v2756_v1  ;;  %v2550_v29 = vsel %vm16246_vm6, %v9074_v38, %v2548_v60  ;;  %v2572_v59 = vsel %vm16265_vm2, %v9077_v53, %v2570_v11 }
 0x1d8   :  { %16659 = vst [vmem:[#allocation45_spill] sm:$0xff] %v9080_v40  ;;  %v859_v42 = vsel %vm802_vm1, %v9080_v40, 0.0  ;;  %v2766_v63 = vsel %vm16249_vm4, %v9077_v53, %v2765_v20  ;;  %v8412_v8 = vpop.f32.mrb[6].mxu1  ;;  %v3125_v1 = vsel %vm16244_vm7, %v9045_v32, %v3124_v49 }
 0x1d9   :  { %v860_v4 = vadd.f32 %v859_v42, %v858_v30  ;;  %v844_v14 = vsel %vm802_vm1, %v624_v25, 0.0  ;;  %v9094_v6 = vrot.slane %v624_v25, 2  ;;  %v8376_v39 = vpop.f32.mrb[30].mxu0  ;;  %v9102_v45 = vadd.f32 %v8412_v8, %v8796_v46  ;;  %v753_v43 = vpop.f32.mrb[7].mxu1 }
 0x1da   :  { %v845_v60 = vadd.f32 %v844_v14, %v843_v41  ;;  %v9099_v10 = vadd.f32 %v8376_v39, %v8796_v46  ;;  %v633_v11 = vpop.f32.mrb[31].mxu0  ;;  %v9106_v20 = vsel %vm16247_vm8, %v9074_v38, %v3125_v1  ;;  %v754_v30 = vadd.f32 %v8796_v46, %v753_v43 }
 0x1db   :  { %16661 = vst [vmem:[#allocation47_spill] sm:$0xff] %v9102_v45  ;;  %16662 = vst [vmem:[#allocation48_spill] sm:$0xff] %v9106_v20  ;;  %v9109_v25 = vadd.f32 %v8796_v46, %v633_v11  ;;  %v9114_v49 = vsel %vm16247_vm8, %v9094_v6, %v2757_v13  ;;  %v9118_v41 = vsel %vm16244_vm7, %v9094_v6, %v2550_v29  ;;  %v913_v14 = vsel %vm802_vm1, %v9102_v45, 0.0 }
 0x1dc   :  { %16660 = vst [vmem:[#allocation46_spill] sm:$0xff] %v9099_v10  ;;  %16663 = vst [vmem:[#allocation49_spill] sm:$0xff] %v9114_v49  ;;  %v861_v42 = vsel %vm802_vm1, %v9099_v10, 0.0  ;;  %v914_v8 = vadd.f32 %v913_v14, %v912_v33  ;;  %v898_v13 = vsel %vm802_vm1, %v754_v30, 0.0  ;;  %v9131_v11 = vrot.slane %v754_v30, 5 }
 0x1dd   :  { %v9124_v39 = vadd.f32 %v861_v42, %v860_v4  ;;  %v846_v43 = vsel %vm802_vm1, %v9109_v25, 0.0  ;;  %v899_v29 = vadd.f32 %v898_v13, %v897_v5  ;;  %v3134_v10 = vsel %vm16249_vm4, %v9040_v17, %v8988_v7 }
 0x1de   :  { %v9128_v1 = vadd.f32 %v846_v43, %v845_v60  ;;  %v2574_v45 = vsel %vm16249_vm4, %v9131_v11, %v2572_v59  ;;  %v2767_v33 = vsel %vm16248_vm5, %v9131_v11, %v2766_v63  ;;  %v3135_v4 = vsel %vm16248_vm5, %v9077_v53, %v3134_v10 }
 0x1df   :  { %v3491_v60 = vsel %vm16248_vm5, %v8972_v58, %v8964_v50  ;;  %v3136_v5 = vsel %vm16246_vm6, %v9131_v11, %v3135_v4  ;;  %v9152_v59 = vsel %vm16266_vm3, %v9094_v6, %v9074_v38  ;;  %v3503_v63 = vsel %vm16248_vm5, %v9040_v17, %v8988_v7 }
 0x1e0   :  { %v8415_v30 = vpop.f32.mrb[8].mxu1  ;;  %v3492_v42 = vsel %vm16246_vm6, %v8995_v12, %v3491_v60  ;;  %16664 = vst [vmem:[#allocation50_spill] sm:$0xff] %v9152_v59  ;;  %v3504_v13 = vsel %vm16246_vm6, %v9077_v53, %v3503_v63  ;;  %v3860_v4 = vsel %vm16246_vm6, %v8972_v58, %v8964_v50  ;;  %v4611_v55 = vsel %vm16266_vm3, %v9131_v11, %v9077_v53 }
 0x1e1   :  { %v9158_v10 = vadd.f32 %v8415_v30, %v8796_v46  ;;  %v763_v14 = vpop.f32.mrb[9].mxu1  ;;  %v3493_v43 = vsel %vm16244_vm7, %v9024_v56, %v3492_v42  ;;  %v3505_v30 = vsel %vm16244_vm7, %v9131_v11, %v3504_v13  ;;  %v3861_v36 = vsel %vm16244_vm7, %v8995_v12, %v3860_v4 }
 0x1e2   :  { %v764_v60 = vadd.f32 %v8796_v46, %v763_v14  ;;  %v9170_v40 = vsel %vm16247_vm8, %v9045_v32, %v3493_v43  ;;  %v9180_v63 = vsel %vm16247_vm8, %v9024_v56, %v3861_v36  ;;  %v3863_v14 = vsel %vm16266_vm3, %v9074_v38, %v9045_v32 }
 0x1e3   :  { %16665 = vst [vmem:[#allocation51_spill] sm:$0xff] %v9158_v10  ;;  %16666 = vst [vmem:[#allocation52_spill] sm:$0xff] %v9170_v40  ;;  %v915_v42 = vsel %vm802_vm1, %v9158_v10, 0.0  ;;  %v9188_v13 = vsel %vm16265_vm2, %v9094_v6, %v3863_v14  ;;  %v3872_v10 = vsel %vm16246_vm6, %v9040_v17, %v8988_v7  ;;  %v4229_v36 = vsel %vm16244_vm7, %v8972_v58, %v8964_v50 }
 0x1e4   :  { %16667 = vst [vmem:[#allocation53_spill] sm:$0xff] %v9180_v63  ;;  %v916_v54 = vadd.f32 %v915_v42, %v914_v8  ;;  %v900_v43 = vsel %vm802_vm1, %v764_v60, 0.0  ;;  %v2575_v2 = vrot.slane %v764_v60, 4  ;;  %16668 = vst [vmem:[#allocation54_spill] sm:$0xff] %v9188_v13  ;;  %v9206_v14 = vsel %vm16247_vm8, %v8995_v12, %v4229_v36 }
 0x1e5   :  { %v901_v4 = vadd.f32 %v900_v43, %v899_v29  ;;  %v3873_v29 = vsel %vm16244_vm7, %v9077_v53, %v3872_v10  ;;  %16670 = vst [vmem:[#allocation56_spill] sm:$0xff] %v9206_v14  ;;  %v4231_v43 = vsel %vm16266_vm3, %v9045_v32, %v9024_v56 }
 0x1e6   :  { %v2576_v28 = vsel %vm16248_vm5, %v2575_v2, %v2574_v45  ;;  %v2768_v8 = vsel %vm16246_vm6, %v2575_v2, %v2767_v33  ;;  %v3137_v42 = vsel %vm16244_vm7, %v2575_v2, %v3136_v5  ;;  %v9200_v60 = vsel %vm16247_vm8, %v2575_v2, %v3505_v30 }
 0x1e7   :  { %16669 = vst [vmem:[#allocation55_spill] sm:$0xff] %v9200_v60  ;;  %v9213_v45 = vsel %vm16247_vm8, %v9131_v11, %v3873_v29  ;;  %v4232_v33 = vsel %vm16265_vm2, %v9074_v38, %v4231_v43  ;;  %v4241_v5 = vsel %vm16244_vm7, %v9040_v17, %v8988_v7  ;;  %v4243_v10 = vsel %vm16266_vm3, %v2575_v2, %v9131_v11 }
 0x1e8   :  { %v8418_v26 = vpop.f32.mrb[10].mxu1  ;;  %16671 = vst [vmem:[#allocation57_spill] sm:$0xff] %v9213_v45  ;;  %v9227_v62 = vsel %vm16249_vm4, %v9094_v6, %v4232_v33  ;;  %v9231_v29 = vsel %vm16247_vm8, %v9077_v53, %v4241_v5 }
 0x1e9   :  { %v9223_v30 = vadd.f32 %v8418_v26, %v8796_v46  ;;  %v773_v36 = vpop.f32.mrb[11].mxu1  ;;  %16673 = vst [vmem:[#allocation59_spill] sm:$0xff] %v9227_v62  ;;  %16674 = vst [vmem:[#allocation60_spill] sm:$0xff] %v9231_v29  ;;  %v4600_v26 = vsel %vm16265_vm2, %v9045_v32, %v4599_v44 }
 0x1ea   :  { %v774_v43 = vadd.f32 %v8796_v46, %v773_v36  ;;  %v4601_v5 = vsel %vm16249_vm4, %v9074_v38, %v4600_v26  ;;  %v4967_v26 = vsel %vm16266_vm3, %v8995_v12, %v8972_v58 }
 0x1eb   :  { %16672 = vst [vmem:[#allocation58_spill] sm:$0xff] %v9223_v30  ;;  %v917_v27 = vsel %vm802_vm1, %v9223_v30, 0.0  ;;  %v9246_v36 = vsel %vm16248_vm5, %v9094_v6, %v4601_v5 }
 0x1ec   :  { %v918_v7 = vadd.f32 %v917_v27, %v916_v54  ;;  %v902_v33 = vsel %vm802_vm1, %v774_v43, 0.0  ;;  %v2577_v9 = vrot.slane %v774_v43, 3  ;;  %16675 = vst [vmem:[#allocation61_spill] sm:$0xff] %v9246_v36 }
 0x1ed   :  { %v903_v24 = vadd.f32 %v902_v33, %v901_v4  ;;  %v4612_v4 = vsel %vm16265_vm2, %v2575_v2, %v4611_v55 }
 0x1ee   :  { %v2578_v30 = vsel %vm16246_vm6, %v2577_v9, %v2576_v28  ;;  %v2769_v44 = vsel %vm16244_vm7, %v2577_v9, %v2768_v8  ;;  %v9254_v27 = vsel %vm16247_vm8, %v2577_v9, %v3137_v42  ;;  %v3875_v54 = vsel %vm16266_vm3, %v2577_v9, %v2575_v2 }
 0x1ef   :  { %16676 = vst [vmem:[#allocation62_spill] sm:$0xff] %v9254_v27  ;;  %v4244_v43 = vsel %vm16265_vm2, %v2577_v9, %v4243_v10  ;;  %v4613_v5 = vsel %vm16249_vm4, %v2577_v9, %v4612_v4  ;;  %v4968_v28 = vsel %vm16265_vm2, %v9024_v56, %v4967_v26  ;;  %v4979_v8 = vsel %vm16266_vm3, %v9077_v53, %v9040_v17 }
 0x1f0   :  { %v8421_v33 = vpop.f32.mrb[12].mxu1  ;;  %v4969_v55 = vsel %vm16249_vm4, %v9045_v32, %v4968_v28  ;;  %v4980_v12 = vsel %vm16265_vm2, %v9131_v11, %v4979_v8 }
 0x1f1   :  { %v9269_v42 = vadd.f32 %v8421_v33, %v8796_v46  ;;  %v783_v10 = vpop.f32.mrb[13].mxu1  ;;  %v4970_v4 = vsel %vm16248_vm5, %v9074_v38, %v4969_v55  ;;  %v4981_v56 = vsel %vm16249_vm4, %v2575_v2, %v4980_v12 }
 0x1f2   :  { %v784_v36 = vadd.f32 %v8796_v46, %v783_v10  ;;  %v9283_v26 = vsel %vm16246_vm6, %v9094_v6, %v4970_v4  ;;  %v4982_v33 = vsel %vm16248_vm5, %v2577_v9, %v4981_v56  ;;  %v8379_v10 = vpop.f32.mrb[32].mxu0 }
 0x1f3   :  { %16677 = vst [vmem:[#allocation63_spill] sm:$0xff] %v9269_v42  ;;  %v919_v53 = vsel %vm802_vm1, %v9269_v42, 0.0  ;;  %16678 = vst [vmem:[#allocation64_spill] sm:$0xff] %v9283_v26 }
 0x1f4   :  { %v920_v32 = vadd.f32 %v919_v53, %v918_v7  ;;  %v904_v28 = vsel %vm802_vm1, %v784_v36, 0.0  ;;  %v9287_v11 = vrot.slane %v784_v36, 2  ;;  %v9304_v36 = vadd.f32 %v8379_v10, %v8796_v46 }
 0x1f5   :  { %v905_v8 = vadd.f32 %v904_v28, %v903_v24  ;;  %v643_v24 = vpop.f32.mrb[33].mxu0 }
 0x1f6   :  { %16679 = vst [vmem:[#allocation65_spill] sm:$0xff] %v9287_v11  ;;  %v2580_v38 = vsel %vm16244_vm7, %v9287_v11, %v2578_v30  ;;  %v9293_v2 = vsel %vm16247_vm8, %v9287_v11, %v2769_v44  ;;  %v9297_v55 = vsel %vm16266_vm3, %v9287_v11, %v2577_v9  ;;  %v9301_v7 = vsel %vm16265_vm2, %v9287_v11, %v3875_v54  ;;  %v8382_v4 = vpop.f32.mrb[34].mxu0 }
 0x1f7   :  { %16680 = vst [vmem:[#allocation66_spill] sm:$0xff] %v9293_v2  ;;  %16681 = vst [vmem:[#allocation67_spill] sm:$0xff] %v9297_v55  ;;  %v9308_v30 = vsel %vm16249_vm4, %v9287_v11, %v4244_v43  ;;  %v9312_v44 = vsel %vm16248_vm5, %v9287_v11, %v4613_v5  ;;  %v9316_v9 = vsel %vm16246_vm6, %v9287_v11, %v4982_v33  ;;  %v878_v5 = vsel %vm802_vm1, %v9304_v36, 0.0  ;;  %v653_v28 = vpop.f32.mrb[35].mxu0 }
 0x1f8   :  { %16682 = vst [vmem:[#allocation68_spill] sm:$0xff] %v9301_v7  ;;  %16683 = vst [vmem:[#allocation69_spill] sm:$0xff] %v9304_v36  ;;  %v8424_v12 = vpop.f32.mrb[14].mxu1  ;;  %v9319_v54 = vadd.f32 %v8796_v46, %v643_v24  ;;  %v9325_v43 = vadd.f32 %v8382_v4, %v8796_v46  ;;  %v8385_v33 = vpop.f32.mrb[36].mxu0 }
 0x1f9   :  { %16684 = vst [vmem:[#allocation70_spill] sm:$0xff] %v9308_v30  ;;  %16685 = vst [vmem:[#allocation71_spill] sm:$0xff] %v9312_v44  ;;  %v9322_v56 = vadd.f32 %v8424_v12, %v8796_v46  ;;  %v793_v53 = vpop.f32.mrb[15].mxu1  ;;  %v654_v12 = vadd.f32 %v8796_v46, %v653_v28  ;;  %v663_v4 = vpop.f32.mrb[37].mxu0 }
 0x1fa   :  { %16686 = vst [vmem:[#allocation72_spill] sm:$0xff] %v9316_v9  ;;  %16687 = vst [vmem:[#allocation73_spill] sm:$0xff] %v9319_v54  ;;  %v794_v10 = vadd.f32 %v8796_v46, %v793_v53  ;;  %v879_v24 = vsel %vm802_vm1, %v9325_v43, 0.0  ;;  %v863_v26 = vsel %vm802_vm1, %v9319_v54, 0.0  ;;  %v8388_v53 = vpop.f32.mrb[38].mxu0 }
 0x1fb   :  { %16688 = vst [vmem:[#allocation74_spill] sm:$0xff] %v9322_v56  ;;  %16689 = vst [vmem:[#allocation75_spill] sm:$0xff] %v9325_v43  ;;  %v921_v9 = vsel %vm802_vm1, %v9322_v56, 0.0  ;;  %v880_v17 = vadd.f32 %v879_v24, %v878_v5  ;;  %v864_v50 = vsel %vm802_vm1, %v654_v12, 0.0  ;;  %v9342_v56 = vadd.f32 %v8385_v33, %v8796_v46  ;;  %v673_v43 = vpop.f32.mrb[39].mxu0 }
 0x1fc   :  { %v922_v42 = vadd.f32 %v921_v9, %v920_v32  ;;  %v906_v44 = vsel %vm802_vm1, %v794_v10, 0.0  ;;  %v9338_v36 = vrot.slane %v794_v10, 1  ;;  %v865_v35 = vadd.f32 %v864_v50, %v863_v26  ;;  %v8391_v9 = vpop.f32.mrb[40].mxu0 }
 0x1fd   :  { %v907_v58 = vadd.f32 %v906_v44, %v905_v8  ;;  %16691 = vst [vmem:[#allocation77_spill] sm:$0xff] %v9342_v56  ;;  %v664_v32 = vadd.f32 %v8796_v46, %v663_v4  ;;  %v881_v8 = vsel %vm802_vm1, %v9342_v56, 0.0  ;;  %v683_v44 = vpop.f32.mrb[41].mxu0  ;;  %v9357_v33 = vadd.f32 %v8388_v53, %v8796_v46 }
 0x1fe   :  { %16690 = vst [vmem:[#allocation76_spill] sm:$0xff] %v9338_v36  ;;  %v9346_v28 = vsel %vm16247_vm8, %v9338_v36, %v2580_v38  ;;  %v882_v5 = vadd.f32 %v881_v8, %v880_v17  ;;  %v8394_v38 = vpop.f32.mrb[42].mxu0  ;;  %v9363_v26 = vadd.f32 %v8391_v9, %v8796_v46  ;;  %v9366_v4 = vmul.f32 0.125, %v8946_v37 }
 0x1ff   :  { %16692 = vst [vmem:[#allocation78_spill] sm:$0xff] %v9346_v28  ;;  %v9349_v57 = vmul.f32 0.125, %v907_v58  ;;  %2593 = vrot.lane.b32.xlu0 %v9346_v28, %s8629_s17  ;;  %v866_v10 = vsel %vm802_vm1, %v664_v32, 0.0  ;;  %16694 = vst [vmem:[#allocation80_spill] sm:$0xff] %v9357_v33  ;;  %v674_v58 = vadd.f32 %v8796_v46, %v673_v43  ;;  %v693_v24 = vpop.f32.mrb[43].mxu0  ;;  %v883_v17 = vsel %vm802_vm1, %v9357_v33, 0.0 }
 0x200   :  { %v867_v50 = vadd.f32 %v866_v10, %v865_v35  ;;  %16695 = vst [vmem:[#allocation81_spill] sm:$0xff] %v9363_v26  ;;  %v684_v53 = vadd.f32 %v8796_v46, %v683_v44  ;;  %v9372_v8 = vadd.f32 %v8394_v38, %v8796_v46  ;;  %v8397_v56 = vpop.f32.mrb[44].mxu0  ;;  %v884_v35 = vadd.f32 %v883_v17, %v882_v5 }
 0x201   :  { %16693 = vst [vmem:[#allocation79_spill] sm:$0xff] %v9349_v57  ;;  %952 = vrot.lane.b32.xlu1 %v9349_v57, %s8632_s12  ;;  %v868_v43 = vsel %vm802_vm1, %v674_v58, 0.0  ;;  %v885_v9 = vsel %vm802_vm1, %v9363_v26, 0.0  ;;  %v694_v37 = vadd.f32 %v8796_v46, %v693_v24  ;;  %v703_v10 = vpop.f32.mrb[45].mxu0  ;;  %v9386_v48 = vrot.slane %v654_v12, 7 }
 0x202   :  { %16696 = vst [vmem:[#allocation82_spill] sm:$0xff] %v9372_v8  ;;  %v869_v52 = vadd.f32 %v868_v43, %v867_v50  ;;  %v870_v33 = vsel %vm802_vm1, %v684_v53, 0.0  ;;  %v8400_v44 = vpop.f32.mrb[46].mxu0  ;;  %v886_v38 = vadd.f32 %v885_v9, %v884_v35  ;;  %v887_v5 = vsel %vm802_vm1, %v9372_v8, 0.0 }
 0x203   :  { %2605 = vrot.lane.b32.xlu0 %v9346_v28, %s8631_s2  ;;  %v872_v17 = vsel %vm802_vm1, %v694_v37, 0.0  ;;  %v713_v19 = vpop.f32.mrb[47].mxu0  ;;  %16697 = vst [vmem:[#allocation83_spill] sm:$0xff] %v9386_v48  ;;  %v9389_v24 = vadd.f32 %v8397_v56, %v8796_v46  ;;  %v704_v50 = vadd.f32 %v8796_v46, %v703_v10  ;;  %v9392_v43 = vmul.f32 0.125, %v922_v42 }
 0x204   :  { %v871_v26 = vadd.f32 %v870_v33, %v869_v52  ;;  %v9396_v35 = vrot.slane %v664_v32, 6  ;;  %v888_v9 = vadd.f32 %v887_v5, %v886_v38  ;;  %v9399_v8 = vadd.f32 %v8400_v44, %v8796_v46 }
 0x205   :  { %1670 = vrot.lane.b32.xlu1 %v9366_v4, %s8633_s13  ;;  %16698 = vst [vmem:[#allocation84_spill] sm:$0xff] %v9389_v24  ;;  %16699 = vst [vmem:[#allocation85_spill] sm:$0xff] %v9392_v43  ;;  %v889_v52 = vsel %vm802_vm1, %v9389_v24, 0.0  ;;  %v874_v56 = vsel %vm802_vm1, %v704_v50, 0.0  ;;  %v9405_v12 = vadd.f32 %v8796_v46, %v713_v19  ;;  %v9409_v42 = vrot.slane %v674_v58, 5 }
 0x206   :  { %16700 = vst [vmem:[#allocation86_spill] sm:$0xff] %v9399_v8  ;;  %v873_v61 = vadd.f32 %v872_v17, %v871_v26  ;;  %v9411_v32 = vrot.slane %v684_v53, 4  ;;  %v890_v33 = vadd.f32 %v889_v52, %v888_v9  ;;  %v891_v10 = vsel %vm802_vm1, %v9399_v8, 0.0 }
 0x207   :  { %2617 = vrot.lane.b32.xlu0 %v9346_v28, %s8632_s12  ;;  %v9415_v26 = vrot.slane %v694_v37, 3  ;;  %v9417_v38 = vrot.slane %v704_v50, 2  ;;  %v876_v46 = vsel %vm802_vm1, %v9405_v12, 0.0  ;;  %v2556_v58 = vsel %vm16266_vm3, %v9386_v48, %v9319_v54 }
 0x208   :  { %v875_v44 = vadd.f32 %v874_v56, %v873_v61  ;;  %v9423_v19 = vadd.f32 %v891_v10, %v890_v33  ;;  %v2759_v53 = vsel %vm16265_vm2, %v9386_v48, %v9319_v54  ;;  %v3128_v61 = vsel %vm16249_vm4, %v9386_v48, %v9319_v54 }
 0x209   :  { %1682 = vrot.lane.b32.xlu1 %v9349_v57, %s8633_s13  ;;  %v2558_v5 = vsel %vm16265_vm2, %v9396_v35, %v2556_v58  ;;  %v2760_v17 = vsel %vm16249_vm4, %v9396_v35, %v2759_v53  ;;  %v3129_v50 = vsel %vm16248_vm5, %v9396_v35, %v3128_v61  ;;  %vm1635_vm1 = vcmask 588800  }
 0x20a   :  { %v9434_v37 = vadd.f32 %v876_v46, %v875_v44  ;;  %v2560_v9 = vsel %vm16249_vm4, %v9409_v42, %v2558_v5  ;;  %v2761_v52 = vsel %vm16248_vm5, %v9409_v42, %v2760_v17  ;;  %v3130_v56 = vsel %vm16246_vm6, %v9409_v42, %v3129_v50 }
 0x20b   :  { %954 = vrot.lane.b32.xlu0 %v9392_v43, %s8632_s12  ;;  %v2562_v33 = vsel %vm16248_vm5, %v9411_v32, %v2560_v9  ;;  %v2762_v10 = vsel %vm16246_vm6, %v9411_v32, %v2761_v52  ;;  %v3131_v44 = vsel %vm16244_vm7, %v9411_v32, %v3130_v56  ;;  %v3497_v17 = vsel %vm16248_vm5, %v9386_v48, %v9319_v54 }
 0x20c   :  { %v2564_v46 = vsel %vm16246_vm6, %v9415_v26, %v2562_v33  ;;  %v2763_v58 = vsel %vm16244_vm7, %v9415_v26, %v2762_v10  ;;  %v9464_v53 = vsel %vm16247_vm8, %v9415_v26, %v3131_v44  ;;  %v3498_v50 = vsel %vm16246_vm6, %v9396_v35, %v3497_v17 }
 0x20d   :  { %1694 = vrot.lane.b32.xlu1 %v9366_v4, %s8634_s14  ;;  %16701 = vst [vmem:[#allocation87_spill] sm:$0xff] %v9464_v53  ;;  %v9468_v61 = vsel %vm16244_vm7, %v9417_v38, %v2564_v46  ;;  %v9472_v5 = vsel %vm16247_vm8, %v9417_v38, %v2763_v58  ;;  %v3499_v9 = vsel %vm16244_vm7, %v9409_v42, %v3498_v50 }
 0x20e   :  { %16702 = vst [vmem:[#allocation88_spill] sm:$0xff] %v9472_v5  ;;  %v3866_v52 = vsel %vm16246_vm6, %v9386_v48, %v9319_v54  ;;  %v9498_v56 = vsel %vm16247_vm8, %v9411_v32, %v3499_v9  ;;  %v4235_v44 = vsel %vm16244_vm7, %v9386_v48, %v9319_v54  ;;  %v4973_v58 = vsel %vm16266_vm3, %v9396_v35, %v9386_v48 }
 0x20f   :  { %1672 = vrot.lane.b32.xlu0 %v8979_v0, %s8633_s13  ;;  %16703 = vst [vmem:[#allocation89_spill] sm:$0xff] %v9498_v56  ;;  %v3867_v33 = vsel %vm16244_vm7, %v9396_v35, %v3866_v52  ;;  %v9519_v46 = vsel %vm16247_vm8, %v9396_v35, %v4235_v44  ;;  %v4974_v17 = vsel %vm16265_vm2, %v9409_v42, %v4973_v58  ;;  %v8645_v56 = vmov 1934713408  }
 0x210   :  { %v9506_v10 = vsel %vm16247_vm8, %v9409_v42, %v3867_v33  ;;  %16705 = vst [vmem:[#allocation91_spill] sm:$0xff] %v9519_v46  ;;  %v4975_v50 = vsel %vm16249_vm4, %v9411_v32, %v4974_v17  ;;  %v4605_v33 = vsel %vm16266_vm3, %v9409_v42, %v9396_v35  ;;  %v4237_v35 = vsel %vm16266_vm3, %v9411_v32, %v9409_v42 }
 0x211   :  { %1706 = vrot.lane.b32.xlu1 %v9349_v57, %s8634_s14  ;;  %16704 = vst [vmem:[#allocation90_spill] sm:$0xff] %v9506_v10  ;;  %v4976_v9 = vsel %vm16248_vm5, %v9415_v26, %v4975_v50  ;;  %v4606_v44 = vsel %vm16265_vm2, %v9411_v32, %v4605_v33  ;;  %v3869_v50 = vsel %vm16266_vm3, %v9415_v26, %v9411_v32  ;;  %v981_v21 = vunpack.c.l.s4 %v8645_v56 }
 0x212   :  { %v9550_v52 = vsel %vm16246_vm6, %v9417_v38, %v4976_v9  ;;  %v4607_v58 = vsel %vm16249_vm4, %v9415_v26, %v4606_v44  ;;  %v4238_v9 = vsel %vm16265_vm2, %v9415_v26, %v4237_v35  ;;  %v9581_v33 = vsel %vm16265_vm2, %v9417_v38, %v3869_v50 }
 0x213   :  { %1684 = vrot.lane.b32.xlu0 %v9392_v43, %s8633_s13  ;;  %16706 = vst [vmem:[#allocation92_spill] sm:$0xff] %v9550_v52  ;;  %v9567_v17 = vsel %vm16248_vm5, %v9417_v38, %v4607_v58  ;;  %16708 = vst [vmem:[#allocation94_spill] sm:$0xff] %v9581_v33  ;;  %v9585_v44 = vsel %vm16249_vm4, %v9417_v38, %v4238_v9  ;;  %v9596_v42 = vsel %vm16266_vm3, %v9417_v38, %v9415_v26  ;;  %vm1640_vm7 = vcmask 654336  }
 0x214   :  { %16707 = vst [vmem:[#allocation93_spill] sm:$0xff] %v9567_v17  ;;  %16709 = vst [vmem:[#allocation95_spill] sm:$0xff] %v9585_v44  ;;  %v982_v47 = vunpack.c.0.s8 %v981_v21  ;;  %vm1645_vm6 = vcmask 719872   ;;  %vm1655_vm5 = vcmask 850944   ;;  %vm1660_vm4 = vcmask 916480  }
 0x215   :  { %1718 = vrot.lane.b32.xlu1 %v9366_v4, %s8635_s15  ;;  %16710 = vst [vmem:[#allocation96_spill] sm:$0xff] %v9596_v42 }
 0x217   :  { %1696 = vrot.lane.b32.xlu0 %v8979_v0, %s8634_s14 }
 0x219   :  { %1730 = vrot.lane.b32.xlu1 %v9349_v57, %s8635_s15 }
 0x21b   :  { %1708 = vrot.lane.b32.xlu0 %v9392_v43, %s8634_s14 }
 0x21d   :  { %1742 = vrot.lane.b32.xlu1 %v9366_v4, %s8636_s16 }
 0x21f   :  { %1720 = vrot.lane.b32.xlu0 %v8979_v0, %s8635_s15 }
 0x221   :  { %1754 = vrot.lane.b32.xlu1 %v9349_v57, %s8636_s16 }
 0x223   :  { %1732 = vrot.lane.b32.xlu0 %v9392_v43, %s8635_s15 }
 0x225   :  { %1766 = vrot.lane.b32.xlu1 %v9366_v4, %s8626_s29 }
 0x227   :  { %1744 = vrot.lane.b32.xlu0 %v8979_v0, %s8636_s16 }
 0x229   :  { %1778 = vrot.lane.b32.xlu1 %v9349_v57, %s8626_s29 }
 0x22a   :  { %v9618_v32 = vpop.permute.xlu1 %2779 }
 0x22b   :  { %1756 = vrot.lane.b32.xlu0 %v9392_v43, %s8636_s16  ;;  %16711 = vst [vmem:[#allocation97_spill] sm:$0xff] %v9618_v32  ;;  %v9689_v32 = vrot.slane %v9109_v25, 1 }
 0x22d   :  { %1790 = vrot.lane.b32.xlu1 %v9366_v4, %s8637_s18 }
 0x22f   :  { %1768 = vrot.lane.b32.xlu0 %v8979_v0, %s8626_s29 }
 0x231   :  { %1802 = vrot.lane.b32.xlu1 %v9349_v57, %s8637_s18  ;;  %v9646_v50 = vpop.permute.xlu0 %2781 }
 0x232   :  { %v9624_v26 = vpop.permute.xlu1 %2587  ;;  %16715 = vst [vmem:[#allocation101_spill] sm:$0xff] %v9646_v50 }
 0x233   :  { %1780 = vrot.lane.b32.xlu0 %v9392_v43, %s8626_s29  ;;  %16712 = vst [vmem:[#allocation98_spill] sm:$0xff] %v9624_v26  ;;  %v9678_v26 = vmul.f32 0.125, %v9128_v1 }
 0x235   :  { %1814 = vrot.lane.b32.xlu1 %v9366_v4, %s8638_s19  ;;  %16721 = vst [vmem:[#allocation107_spill] sm:$0xff] %v9678_v26 }
 0x236   :  { %v9632_v58 = vpop.permute.xlu1 %2599 }
 0x237   :  { %1792 = vrot.lane.b32.xlu0 %v8979_v0, %s8637_s18  ;;  %16713 = vst [vmem:[#allocation99_spill] sm:$0xff] %v9632_v58  ;;  %v9667_v58 = vmul.f32 0.125, %v9124_v39 }
 0x239   :  { %1826 = vrot.lane.b32.xlu1 %v9349_v57, %s8638_s19  ;;  %16719 = vst [vmem:[#allocation105_spill] sm:$0xff] %v9667_v58 }
 0x23a   :  { %v9640_v35 = vpop.permute.xlu1 %2611 }
 0x23b   :  { %1804 = vrot.lane.b32.xlu0 %v9392_v43, %s8637_s18  ;;  %16714 = vst [vmem:[#allocation100_spill] sm:$0xff] %v9640_v35 }
 0x23d   :  { %1838 = vrot.lane.b32.xlu1 %v9366_v4, %s8629_s17 }
 0x23e   :  { %v9650_v9 = vpop.permute.xlu1 %942 }
 0x23f   :  { %1816 = vrot.lane.b32.xlu0 %v8979_v0, %s8638_s19 }
 0x241   :  { %1850 = vrot.lane.b32.xlu1 %v9349_v57, %s8629_s17 }
 0x243   :  { %1828 = vrot.lane.b32.xlu0 %v9392_v43, %s8638_s19 }
 0x245   :  { %1862 = vrot.lane.b32.xlu1 %v9366_v4, %s8639_s20 }
 0x247   :  { %1840 = vrot.lane.b32.xlu0 %v8979_v0, %s8629_s17 }
 0x249   :  { %1874 = vrot.lane.b32.xlu1 %v9349_v57, %s8639_s20 }
 0x24b   :  { %1852 = vrot.lane.b32.xlu0 %v9392_v43, %s8629_s17 }
 0x24d   :  { %1886 = vrot.lane.b32.xlu1 %v9366_v4, %s8640_s3 }
 0x24f   :  { %1864 = vrot.lane.b32.xlu0 %v8979_v0, %s8639_s20 }
 0x251   :  { %1898 = vrot.lane.b32.xlu1 %v9349_v57, %s8640_s3 }
 0x253   :  { %1876 = vrot.lane.b32.xlu0 %v9392_v43, %s8639_s20 }
 0x255   :  { %1910 = vrot.lane.b32.xlu1 %v9366_v4, %s8641_s21 }
 0x257   :  { %1888 = vrot.lane.b32.xlu0 %v8979_v0, %s8640_s3 }
 0x259   :  { %1922 = vrot.lane.b32.xlu1 %v9349_v57, %s8641_s21 }
 0x25b   :  { %1900 = vrot.lane.b32.xlu0 %v9392_v43, %s8640_s3 }
 0x25d   :  { %1934 = vrot.lane.b32.xlu1 %v9366_v4, %s8631_s2 }
 0x25f   :  { %1912 = vrot.lane.b32.xlu0 %v8979_v0, %s8641_s21 }
 0x261   :  { %1946 = vrot.lane.b32.xlu1 %v9349_v57, %s8631_s2 }
 0x263   :  { %1924 = vrot.lane.b32.xlu0 %v9392_v43, %s8641_s21 }
 0x265   :  { %1958 = vrot.lane.b32.xlu1 %v9366_v4, %s8642_s22 }
 0x267   :  { %1936 = vrot.lane.b32.xlu0 %v8979_v0, %s8631_s2 }
 0x269   :  { %1970 = vrot.lane.b32.xlu1 %v9349_v57, %s8642_s22 }
 0x26b   :  { %1948 = vrot.lane.b32.xlu0 %v9392_v43, %s8631_s2 }
 0x26d   :  { %1982 = vrot.lane.b32.xlu1 %v9366_v4, %s8643_s23 }
 0x26f   :  { %1960 = vrot.lane.b32.xlu0 %v8979_v0, %s8642_s22 }
 0x271   :  { %1994 = vrot.lane.b32.xlu1 %v9349_v57, %s8643_s23  ;;  %v9656_v28 = vpop.permute.xlu0 %2593 }
 0x272   :  { %16716 = vst [vmem:[#allocation102_spill] sm:$0xff] %v9656_v28 }
 0x273   :  { %1972 = vrot.lane.b32.xlu0 %v9392_v43, %s8642_s22  ;;  %v9660_v35 = vpop.permute.xlu1 %952 }
 0x274   :  { %16717 = vst [vmem:[#allocation103_spill] sm:$0xff] %v9660_v35 }
 0x275   :  { %2783 = vrot.lane.b32.xlu1 %v9114_v49, %s8629_s17  ;;  %v9664_v52 = vpop.permute.xlu0 %2605 }
 0x276   :  { %16718 = vst [vmem:[#allocation104_spill] sm:$0xff] %v9664_v52 }
 0x277   :  { %1984 = vrot.lane.b32.xlu0 %v8979_v0, %s8643_s23  ;;  %v9671_v50 = vpop.permute.xlu1 %1670 }
 0x279   :  { %946 = vrot.lane.b32.xlu1 %v9667_v58, %s8632_s12  ;;  %v9675_v28 = vpop.permute.xlu0 %2617 }
 0x27a   :  { %16720 = vst [vmem:[#allocation106_spill] sm:$0xff] %v9675_v28  ;;  %v9702_v28 = vsel %vm16247_vm8, %v9689_v32, %v9118_v41 }
 0x27b   :  { %1996 = vrot.lane.b32.xlu0 %v9392_v43, %s8643_s23  ;;  %v9682_v52 = vpop.permute.xlu1 %1682  ;;  %16724 = vst [vmem:[#allocation110_spill] sm:$0xff] %v9702_v28 }
 0x27c   :  { %16722 = vst [vmem:[#allocation108_spill] sm:$0xff] %v9682_v52 }
 0x27d   :  { %944 = vrot.lane.b32.xlu1 %v9678_v26, %s8632_s12  ;;  %v9686_v39 = vpop.permute.xlu0 %954 }
 0x27e   :  { %16723 = vst [vmem:[#allocation109_spill] sm:$0xff] %v9686_v39 }
 0x27f   :  { %v9691_v8 = vpop.permute.xlu1 %1694  ;;  %940 = vrot.lane.b32.xlu0 %v9366_v4, %s8632_s12 }
 0x281   :  { %1674 = vrot.lane.b32.xlu1 %v9678_v26, %s8633_s13  ;;  %v9697_v1 = vpop.permute.xlu0 %1672 }
 0x283   :  { %v9704_v24 = vpop.permute.xlu1 %1706  ;;  %2589 = vrot.lane.b32.xlu0 %v9702_v28, %s8629_s17 }
 0x284   :  { %16725 = vst [vmem:[#allocation111_spill] sm:$0xff] %v9704_v24 }
 0x285   :  { %1698 = vrot.lane.b32.xlu1 %v9678_v26, %s8634_s14  ;;  %v9710_v25 = vpop.permute.xlu0 %1684 }
 0x286   :  { %16726 = vst [vmem:[#allocation112_spill] sm:$0xff] %v9710_v25 }
 0x287   :  { %v9712_v17 = vpop.permute.xlu1 %1718  ;;  %2601 = vrot.lane.b32.xlu0 %v9702_v28, %s8631_s2 }
 0x289   :  { %1722 = vrot.lane.b32.xlu1 %v9678_v26, %s8635_s15  ;;  %v9718_v41 = vpop.permute.xlu0 %1696 }
 0x28b   :  { %v9720_v48 = vpop.permute.xlu1 %1730  ;;  %2613 = vrot.lane.b32.xlu0 %v9702_v28, %s8632_s12 }
 0x28c   :  { %16727 = vst [vmem:[#allocation113_spill] sm:$0xff] %v9720_v48 }
 0x28d   :  { %1746 = vrot.lane.b32.xlu1 %v9678_v26, %s8636_s16  ;;  %v9726_v54 = vpop.permute.xlu0 %1708 }
 0x28e   :  { %16728 = vst [vmem:[#allocation114_spill] sm:$0xff] %v9726_v54 }
 0x28f   :  { %v9728_v51 = vpop.permute.xlu1 %1742  ;;  %1676 = vrot.lane.b32.xlu0 %v9667_v58, %s8633_s13 }
 0x291   :  { %1770 = vrot.lane.b32.xlu1 %v9678_v26, %s8626_s29  ;;  %v9734_v30 = vpop.permute.xlu0 %1720 }
 0x293   :  { %v9736_v44 = vpop.permute.xlu1 %1754  ;;  %1700 = vrot.lane.b32.xlu0 %v9667_v58, %s8634_s14 }
 0x294   :  { %16729 = vst [vmem:[#allocation115_spill] sm:$0xff] %v9736_v44 }
 0x295   :  { %1794 = vrot.lane.b32.xlu1 %v9678_v26, %s8637_s18  ;;  %v9742_v28 = vpop.permute.xlu0 %1732 }
 0x296   :  { %16730 = vst [vmem:[#allocation116_spill] sm:$0xff] %v9742_v28 }
 0x297   :  { %v9744_v29 = vpop.permute.xlu1 %1766  ;;  %1724 = vrot.lane.b32.xlu0 %v9667_v58, %s8635_s15 }
 0x299   :  { %1818 = vrot.lane.b32.xlu1 %v9678_v26, %s8638_s19  ;;  %v9750_v62 = vpop.permute.xlu0 %1744 }
 0x29b   :  { %v9752_v46 = vpop.permute.xlu1 %1778  ;;  %1748 = vrot.lane.b32.xlu0 %v9667_v58, %s8636_s16 }
 0x29c   :  { %16731 = vst [vmem:[#allocation117_spill] sm:$0xff] %v9752_v46 }
 0x29d   :  { %1842 = vrot.lane.b32.xlu1 %v9678_v26, %s8629_s17  ;;  %v9758_v23 = vpop.permute.xlu0 %1756 }
 0x29e   :  { %16732 = vst [vmem:[#allocation118_spill] sm:$0xff] %v9758_v23 }
 0x29f   :  { %v9760_v14 = vpop.permute.xlu1 %1790  ;;  %1772 = vrot.lane.b32.xlu0 %v9667_v58, %s8626_s29 }
 0x2a1   :  { %1866 = vrot.lane.b32.xlu1 %v9678_v26, %s8639_s20  ;;  %v9766_v16 = vpop.permute.xlu0 %1768 }
 0x2a3   :  { %v9768_v7 = vpop.permute.xlu1 %1802  ;;  %1796 = vrot.lane.b32.xlu0 %v9667_v58, %s8637_s18 }
 0x2a4   :  { %16733 = vst [vmem:[#allocation119_spill] sm:$0xff] %v9768_v7 }
 0x2a5   :  { %1890 = vrot.lane.b32.xlu1 %v9678_v26, %s8640_s3  ;;  %v9774_v45 = vpop.permute.xlu0 %1780 }
 0x2a6   :  { %16734 = vst [vmem:[#allocation120_spill] sm:$0xff] %v9774_v45 }
 0x2a7   :  { %v9776_v10 = vpop.permute.xlu1 %1814  ;;  %1820 = vrot.lane.b32.xlu0 %v9667_v58, %s8638_s19 }
 0x2a9   :  { %1914 = vrot.lane.b32.xlu1 %v9678_v26, %s8641_s21  ;;  %v9782_v43 = vpop.permute.xlu0 %1792 }
 0x2aa   :  { %16735 = vst [vmem:[#allocation121_spill] sm:$0xff] %v9782_v43  ;;  %v2170_v43 = vld [vmem:[#allocation5 + $0x60] sm:$0xff] }
 0x2ab   :  { %v9784_v23 = vpop.permute.xlu1 %1826  ;;  %1844 = vrot.lane.b32.xlu0 %v9667_v58, %s8629_s17 }
 0x2ac   :  { %16736 = vst [vmem:[#allocation122_spill] sm:$0xff] %v9784_v23  ;;  %v9805_v23 = vrot.slane %v9405_v12, 1 }
 0x2ad   :  { %1938 = vrot.lane.b32.xlu1 %v9678_v26, %s8631_s2  ;;  %v9790_v7 = vpop.permute.xlu0 %1804 }
 0x2ae   :  { %16737 = vst [vmem:[#allocation123_spill] sm:$0xff] %v9790_v7 }
 0x2af   :  { %v9792_v45 = vpop.permute.xlu1 %1838  ;;  %1868 = vrot.lane.b32.xlu0 %v9667_v58, %s8639_s20 }
 0x2b1   :  { %1962 = vrot.lane.b32.xlu1 %v9678_v26, %s8642_s22  ;;  %v9798_v63 = vpop.permute.xlu0 %1816 }
 0x2b2   :  { %16738 = vst [vmem:[#allocation124_spill] sm:$0xff] %v9798_v63 }
 0x2b3   :  { %v9800_v46 = vpop.permute.xlu1 %1850  ;;  %1892 = vrot.lane.b32.xlu0 %v9667_v58, %s8640_s3 }
 0x2b4   :  { %16739 = vst [vmem:[#allocation125_spill] sm:$0xff] %v9800_v46  ;;  %v9818_v46 = vsel %vm16247_vm8, %v9805_v23, %v9468_v61  ;;  %vm1650_vm8 = vcmask 785408  }
 0x2b5   :  { %1986 = vrot.lane.b32.xlu1 %v9678_v26, %s8643_s23  ;;  %v9809_v7 = vpop.permute.xlu0 %1828  ;;  %16741 = vst [vmem:[#allocation127_spill] sm:$0xff] %v9818_v46  ;;  %v968_v26 = vlaneseq }
 0x2b6   :  { %16740 = vst [vmem:[#allocation126_spill] sm:$0xff] %v9809_v7 }
 0x2b7   :  { %v9811_v57 = vpop.permute.xlu1 %1862  ;;  %1916 = vrot.lane.b32.xlu0 %v9667_v58, %s8641_s21  ;;  %v9942_v59 = vshrl.u32 %v968_v26, 7 }
 0x2b9   :  { %2591 = vrot.lane.b32.xlu1 %v9818_v46, %s8629_s17  ;;  %v9822_v12 = vpop.permute.xlu0 %1840  ;;  %16769 = vst [vmem:[#allocation155_spill] sm:$0xff] %v9942_v59 }
 0x2ba   :  { %16742 = vst [vmem:[#allocation128_spill] sm:$0xff] %v9822_v12 }
 0x2bb   :  { %v9824_v28 = vpop.permute.xlu1 %1874  ;;  %1940 = vrot.lane.b32.xlu0 %v9667_v58, %s8631_s2 }
 0x2bc   :  { %16743 = vst [vmem:[#allocation129_spill] sm:$0xff] %v9824_v28  ;;  %v9841_v28 = vmul.f32 0.125, %v9434_v37 }
 0x2bd   :  { %2603 = vrot.lane.b32.xlu1 %v9818_v46, %s8631_s2  ;;  %v9830_v7 = vpop.permute.xlu0 %1852 }
 0x2be   :  { %16744 = vst [vmem:[#allocation130_spill] sm:$0xff] %v9830_v7  ;;  %16746 = vst [vmem:[#allocation132_spill] sm:$0xff] %v9841_v28  ;;  %v9848_v7 = vmul.f32 0.125, %v9423_v19 }
 0x2bf   :  { %v9832_v54 = vpop.permute.xlu1 %1886  ;;  %1964 = vrot.lane.b32.xlu0 %v9667_v58, %s8642_s22 }
 0x2c0   :  { %16748 = vst [vmem:[#allocation134_spill] sm:$0xff] %v9848_v7 }
 0x2c1   :  { %2615 = vrot.lane.b32.xlu1 %v9818_v46, %s8632_s12  ;;  %v9838_v61 = vpop.permute.xlu0 %1864 }
 0x2c2   :  { %16745 = vst [vmem:[#allocation131_spill] sm:$0xff] %v9838_v61 }
 0x2c3   :  { %v9843_v25 = vpop.permute.xlu1 %1898  ;;  %1988 = vrot.lane.b32.xlu0 %v9667_v58, %s8643_s23 }
 0x2c4   :  { %16747 = vst [vmem:[#allocation133_spill] sm:$0xff] %v9843_v25 }
 0x2c5   :  { %948 = vrot.lane.b32.xlu1 %v9841_v28, %s8632_s12  ;;  %v9852_v31 = vpop.permute.xlu0 %1876 }
 0x2c6   :  { %16749 = vst [vmem:[#allocation135_spill] sm:$0xff] %v9852_v31 }
 0x2c7   :  { %v9854_v44 = vpop.permute.xlu1 %1910  ;;  %950 = vrot.lane.b32.xlu0 %v9848_v7, %s8632_s12 }
 0x2c9   :  { %1678 = vrot.lane.b32.xlu1 %v9841_v28, %s8633_s13  ;;  %v9860_v37 = vpop.permute.xlu0 %1888 }
 0x2ca   :  { %16750 = vst [vmem:[#allocation136_spill] sm:$0xff] %v9860_v37 }
 0x2cb   :  { %v9862_v46 = vpop.permute.xlu1 %1922  ;;  %1680 = vrot.lane.b32.xlu0 %v9848_v7, %s8633_s13 }
 0x2cc   :  { %16751 = vst [vmem:[#allocation137_spill] sm:$0xff] %v9862_v46 }
 0x2cd   :  { %1702 = vrot.lane.b32.xlu1 %v9841_v28, %s8634_s14  ;;  %v9868_v19 = vpop.permute.xlu0 %1900 }
 0x2ce   :  { %16752 = vst [vmem:[#allocation138_spill] sm:$0xff] %v9868_v19 }
 0x2cf   :  { %v9870_v31 = vpop.permute.xlu1 %1934  ;;  %1704 = vrot.lane.b32.xlu0 %v9848_v7, %s8634_s14 }
 0x2d0   :  { %16753 = vst [vmem:[#allocation139_spill] sm:$0xff] %v9870_v31 }
 0x2d1   :  { %1726 = vrot.lane.b32.xlu1 %v9841_v28, %s8635_s15  ;;  %v9876_v25 = vpop.permute.xlu0 %1912 }
 0x2d2   :  { %16754 = vst [vmem:[#allocation140_spill] sm:$0xff] %v9876_v25 }
 0x2d3   :  { %v9878_v33 = vpop.permute.xlu1 %1946  ;;  %1728 = vrot.lane.b32.xlu0 %v9848_v7, %s8635_s15 }
 0x2d4   :  { %16755 = vst [vmem:[#allocation141_spill] sm:$0xff] %v9878_v33 }
 0x2d5   :  { %1750 = vrot.lane.b32.xlu1 %v9841_v28, %s8636_s16  ;;  %v9884_v46 = vpop.permute.xlu0 %1924 }
 0x2d6   :  { %16756 = vst [vmem:[#allocation142_spill] sm:$0xff] %v9884_v46 }
 0x2d7   :  { %v9886_v19 = vpop.permute.xlu1 %1958  ;;  %1752 = vrot.lane.b32.xlu0 %v9848_v7, %s8636_s16 }
 0x2d8   :  { %16757 = vst [vmem:[#allocation143_spill] sm:$0xff] %v9886_v19 }
 0x2d9   :  { %1774 = vrot.lane.b32.xlu1 %v9841_v28, %s8626_s29  ;;  %v9892_v48 = vpop.permute.xlu0 %1936 }
 0x2da   :  { %16758 = vst [vmem:[#allocation144_spill] sm:$0xff] %v9892_v48 }
 0x2db   :  { %v9894_v13 = vpop.permute.xlu1 %1970  ;;  %1776 = vrot.lane.b32.xlu0 %v9848_v7, %s8626_s29 }
 0x2dc   :  { %16759 = vst [vmem:[#allocation145_spill] sm:$0xff] %v9894_v13 }
 0x2dd   :  { %1798 = vrot.lane.b32.xlu1 %v9841_v28, %s8637_s18  ;;  %v9900_v33 = vpop.permute.xlu0 %1948 }
 0x2de   :  { %16760 = vst [vmem:[#allocation146_spill] sm:$0xff] %v9900_v33 }
 0x2df   :  { %v9902_v46 = vpop.permute.xlu1 %1982  ;;  %1800 = vrot.lane.b32.xlu0 %v9848_v7, %s8637_s18 }
 0x2e0   :  { %16761 = vst [vmem:[#allocation147_spill] sm:$0xff] %v9902_v46 }
 0x2e1   :  { %1822 = vrot.lane.b32.xlu1 %v9841_v28, %s8638_s19  ;;  %v9908_v24 = vpop.permute.xlu0 %1960 }
 0x2e2   :  { %16762 = vst [vmem:[#allocation148_spill] sm:$0xff] %v9908_v24 }
 0x2e3   :  { %v9910_v22 = vpop.permute.xlu1 %1994  ;;  %1824 = vrot.lane.b32.xlu0 %v9848_v7, %s8638_s19 }
 0x2e4   :  { %16763 = vst [vmem:[#allocation149_spill] sm:$0xff] %v9910_v22 }
 0x2e5   :  { %1846 = vrot.lane.b32.xlu1 %v9841_v28, %s8629_s17  ;;  %v9916_v13 = vpop.permute.xlu0 %1972 }
 0x2e6   :  { %16764 = vst [vmem:[#allocation150_spill] sm:$0xff] %v9916_v13  ;;  %v8644_v13 = vmov 1983009808  }
 0x2e7   :  { %v9918_v33 = vpop.permute.xlu1 %2783  ;;  %1848 = vrot.lane.b32.xlu0 %v9848_v7, %s8629_s17 }
 0x2e8   :  { %16765 = vst [vmem:[#allocation151_spill] sm:$0xff] %v9918_v33  ;;  %v966_v33 = vunpack.c.l.s4 %v8644_v13 }
 0x2e9   :  { %1870 = vrot.lane.b32.xlu1 %v9841_v28, %s8639_s20  ;;  %v9924_v52 = vpop.permute.xlu0 %1984 }
 0x2ea   :  { %16766 = vst [vmem:[#allocation152_spill] sm:$0xff] %v9924_v52  ;;  %v967_v60 = vunpack.c.0.s8 %v966_v33  ;;  %v9964_v33 = vsub.s32 %v982_v47, %v9942_v59 }
 0x2eb   :  { %v9926_v58 = vpop.permute.xlu1 %946  ;;  %1872 = vrot.lane.b32.xlu0 %v9848_v7, %s8639_s20 }
 0x2ec   :  { %16767 = vst [vmem:[#allocation153_spill] sm:$0xff] %v9926_v58 }
 0x2ed   :  { %1894 = vrot.lane.b32.xlu1 %v9841_v28, %s8640_s3  ;;  %v9932_v22 = vpop.permute.xlu0 %1996 }
 0x2ee   :  { %16768 = vst [vmem:[#allocation154_spill] sm:$0xff] %v9932_v22  ;;  %v9953_v22 = vsub.s32 %v967_v60, %v9942_v59 }
 0x2ef   :  { %v9934_v55 = vpop.permute.xlu1 %944  ;;  %1896 = vrot.lane.b32.xlu0 %v9848_v7, %s8640_s3 }
 0x2f0   :  { %v1020_v26 = vrot.slane %v9650_v9, %v9953_v22  ;;  %v1314_v21 = vrot.slane %v9686_v39, %v9953_v22 }
 0x2f1   :  { %1918 = vrot.lane.b32.xlu1 %v9841_v28, %s8641_s21  ;;  %v9940_v42 = vpop.permute.xlu0 %940 }
 0x2f2   :  { %v1035_v47 = vrot.slane %v1020_v26, %v9964_v33 }
 0x2f3   :  { %v9944_v40 = vpop.permute.xlu1 %1674  ;;  %1920 = vrot.lane.b32.xlu0 %v9848_v7, %s8641_s21 }
 0x2f4   :  { %16770 = vst [vmem:[#allocation156_spill] sm:$0xff] %v9944_v40  ;;  %v16778_v40 = vmov 0.0  }
 0x2f5   :  { %1942 = vrot.lane.b32.xlu1 %v9841_v28, %s8631_s2  ;;  %v9950_v13 = vpop.permute.xlu0 %2589  ;;  %v1013_v24 = vcombine.high %v9650_v9, %v16778_v40 }
 0x2f6   :  { %16771 = vst [vmem:[#allocation157_spill] sm:$0xff] %v9950_v13 }
 0x2f7   :  { %v9955_v52 = vpop.permute.xlu1 %1698  ;;  %1944 = vrot.lane.b32.xlu0 %v9848_v7, %s8631_s2  ;;  %v1027_v25 = vrot.slane %v1013_v24, %v9953_v22 }
 0x2f8   :  { %16772 = vst [vmem:[#allocation158_spill] sm:$0xff] %v9955_v52  ;;  %v1329_v52 = vrot.slane %v1314_v21, %v9964_v33 }
 0x2f9   :  { %1966 = vrot.lane.b32.xlu1 %v9841_v28, %s8642_s22  ;;  %v9961_v56 = vpop.permute.xlu0 %2601 }
 0x2fa   :  { %16773 = vst [vmem:[#allocation159_spill] sm:$0xff] %v9961_v56  ;;  %v1352_v48 = vcombine.high %v1329_v52, %v16778_v40 }
 0x2fb   :  { %v9968_v13 = vpop.permute.xlu1 %1722  ;;  %1968 = vrot.lane.b32.xlu0 %v9848_v7, %s8642_s22 }
 0x2fc   :  { %16774 = vst [vmem:[#allocation160_spill] sm:$0xff] %v9968_v13 }
 0x2fd   :  { %1990 = vrot.lane.b32.xlu1 %v9841_v28, %s8643_s23  ;;  %v9976_v60 = vpop.permute.xlu0 %2613  ;;  %v1028_v28 = vcombine.high %v1020_v26, %v16778_v40  ;;  %v971_v26 = vrot.slane %v9940_v42, %v9953_v22 }
 0x2fe   :  { %16775 = vst [vmem:[#allocation161_spill] sm:$0xff] %v9976_v60  ;;  %v1058_v60 = vcombine.high %v1035_v47, %v16778_v40 }
 0x2ff   :  { %v9978_v56 = vpop.permute.xlu1 %1746  ;;  %1992 = vrot.lane.b32.xlu0 %v9848_v7, %s8643_s23  ;;  %v1307_v7 = vcombine.high %v9686_v39, %v16778_v40 }
 0x300   :  { %16776 = vst [vmem:[#allocation162_spill] sm:$0xff] %v9978_v56  ;;  %v1322_v56 = vcombine.high %v1314_v21, %v16778_v40  ;;  %v1265_v21 = vrot.slane %v9660_v35, %v9953_v22 }
 0x301   :  { %1472 = vrot.lane.b32.xlu1 %v1035_v47, %s8631_s2  ;;  %v9984_v13 = vpop.permute.xlu0 %1676  ;;  %v1042_v47 = vrot.slane %v1028_v28, %v9964_v33 }
 0x302   :  { %16777 = vst [vmem:[#allocation163_spill] sm:$0xff] %v9984_v13  ;;  %v1336_v24 = vrot.slane %v1322_v56, %v9964_v33  ;;  %v964_v56 = vcombine.high %v9940_v42, %v16778_v40  ;;  %v1273_v19 = vcombine.high %v1265_v21, %v16778_v40 }
 0x303   :  { %v9990_v46 = vpop.permute.xlu1 %1770  ;;  %1478 = vrot.lane.b32.xlu0 %v1329_v52, %s8631_s2 }
 0x304   :  { %16779 = vst [vmem:[#allocation164_spill] sm:$0xff] %v9990_v46  ;;  %v978_v12 = vrot.slane %v964_v56, %v9953_v22 }
 0x305   :  { %1488 = vrot.lane.b32.xlu1 %v1058_v60, %s8642_s22  ;;  %v9998_v13 = vpop.permute.xlu0 %1700  ;;  %v1321_v60 = vrot.slane %v1307_v7, %v9953_v22 }
 0x306   :  { %16780 = vst [vmem:[#allocation165_spill] sm:$0xff] %v9998_v13  ;;  %v10027_v13 = vrot.slane %v1265_v21, %v9964_v33  ;;  %v1287_v21 = vrot.slane %v1273_v19, %v9964_v33  ;;  %v1059_v19 = vcombine.high %v1042_v47, %v16778_v40 }
 0x307   :  { %v10004_v46 = vpop.permute.xlu1 %1794  ;;  %1494 = vrot.lane.b32.xlu0 %v1352_v48, %s8642_s22  ;;  %v10020_v48 = vrot.slane %v971_v26, %v9964_v33  ;;  %v1344_v7 = vrot.slane %v1321_v60, %v9964_v33 }
 0x308   :  { %16781 = vst [vmem:[#allocation166_spill] sm:$0xff] %v10004_v46  ;;  %v1050_v46 = vrot.slane %v1027_v25, %v9964_v33  ;;  %16785 = vst [vmem:[#allocation170_spill] sm:$0xff] %v10027_v13  ;;  %v1303_v11 = vcombine.high %v10027_v13, %v16778_v40 }
 0x309   :  { %1504 = vrot.lane.b32.xlu1 %v1042_v47, %s8643_s23  ;;  %v10012_v39 = vpop.permute.xlu0 %1724  ;;  %v1009_v37 = vcombine.high %v10020_v48, %v16778_v40  ;;  %v1354_v47 = vcombine.high %v1344_v7, %v16778_v40 }
 0x30a   :  { %16782 = vst [vmem:[#allocation167_spill] sm:$0xff] %v10012_v39 }
 0x30b   :  { %v10015_v52 = vpop.permute.xlu1 %1818  ;;  %1510 = vrot.lane.b32.xlu0 %v1336_v24, %s8643_s23 }
 0x30c   :  { %16783 = vst [vmem:[#allocation168_spill] sm:$0xff] %v10015_v52  ;;  %v979_v52 = vcombine.high %v971_v26, %v16778_v40 }
 0x30d   :  { %1536 = vrot.lane.b32.xlu1 %v1050_v46, %s8632_s12  ;;  %v10023_v28 = vpop.permute.xlu0 %1748 }
 0x30e   :  { %16784 = vst [vmem:[#allocation169_spill] sm:$0xff] %v10023_v28  ;;  %v1258_v28 = vcombine.high %v9660_v35, %v16778_v40 }
 0x30f   :  { %v10032_v39 = vpop.permute.xlu1 %1842  ;;  %1542 = vrot.lane.b32.xlu0 %v1344_v7, %s8632_s12 }
 0x310   :  { %16786 = vst [vmem:[#allocation171_spill] sm:$0xff] %v10032_v39  ;;  %v993_v39 = vrot.slane %v979_v52, %v9964_v33 }
 0x311   :  { %1360 = vrot.lane.b32.xlu1 %v1009_v37, %s8626_s29  ;;  %v10041_v61 = vpop.permute.xlu0 %1772  ;;  %v1272_v37 = vrot.slane %v1258_v28, %v9953_v22 }
 0x312   :  { %16787 = vst [vmem:[#allocation172_spill] sm:$0xff] %v10041_v61 }
 0x313   :  { %v10045_v26 = vpop.permute.xlu1 %1866  ;;  %1366 = vrot.lane.b32.xlu0 %v1303_v11, %s8626_s29  ;;  %v1295_v52 = vrot.slane %v1272_v37, %v9964_v33 }
 0x314   :  { %16788 = vst [vmem:[#allocation173_spill] sm:$0xff] %v10045_v26  ;;  %v1001_v26 = vrot.slane %v978_v12, %v9964_v33 }
 0x315   :  { %1376 = vrot.lane.b32.xlu1 %v993_v39, %s8637_s18  ;;  %v10051_v35 = vpop.permute.xlu0 %1796 }
 0x316   :  { %16789 = vst [vmem:[#allocation174_spill] sm:$0xff] %v10051_v35  ;;  %v1043_v35 = vcombine.high %v1027_v25, %v16778_v40 }
 0x317   :  { %v10055_v61 = vpop.permute.xlu1 %1890  ;;  %1382 = vrot.lane.b32.xlu0 %v1287_v21, %s8637_s18 }
 0x318   :  { %16790 = vst [vmem:[#allocation175_spill] sm:$0xff] %v10055_v61  ;;  %v1353_v61 = vcombine.high %v1336_v24, %v16778_v40  ;;  %v1057_v24 = vrot.slane %v1043_v35, %v9964_v33  ;;  %v2167_v35 = vld [vmem:[#allocation5 + $0x48] sm:$0xff] }
 0x319   :  { %1408 = vrot.lane.b32.xlu1 %v1001_v26, %s8629_s17  ;;  %v10060_v11 = vpop.permute.xlu0 %1820 }
 0x31a   :  { %16791 = vst [vmem:[#allocation176_spill] sm:$0xff] %v10060_v11  ;;  %v1060_v11 = vcombine.high %v1050_v46, %v16778_v40 }
 0x31b   :  { %v10063_v56 = vpop.permute.xlu1 %1914  ;;  %1414 = vrot.lane.b32.xlu0 %v1295_v52, %s8629_s17 }
 0x31c   :  { %16792 = vst [vmem:[#allocation177_spill] sm:$0xff] %v10063_v56 }
 0x31d   :  { %1520 = vrot.lane.b32.xlu1 %v1059_v19, %s8633_s13  ;;  %v10068_v28 = vpop.permute.xlu0 %1844  ;;  %v1337_v19 = vcombine.high %v1321_v60, %v16778_v40  ;;  %v1010_v60 = vcombine.high %v993_v39, %v16778_v40 }
 0x31e   :  { %16793 = vst [vmem:[#allocation178_spill] sm:$0xff] %v10068_v28  ;;  %v2158_v28 = vld [vmem:[#allocation5] sm:$0xff] }
 0x31f   :  { %v10071_v13 = vpop.permute.xlu1 %1938  ;;  %1526 = vrot.lane.b32.xlu0 %v1353_v61, %s8633_s13  ;;  %v2163_v61 = vld [vmem:[#allocation5 + $0x28] sm:$0xff]  ;;  %v1351_v25 = vrot.slane %v1337_v19, %v9964_v33  ;;  %v1011_v19 = vcombine.high %v1001_v26, %v16778_v40 }
 0x320   :  { %16794 = vst [vmem:[#allocation179_spill] sm:$0xff] %v10071_v13  ;;  %v2159_v13 = vld [vmem:[#allocation5 + $0x8] sm:$0xff] }
 0x321   :  { %1552 = vrot.lane.b32.xlu1 %v1060_v11, %s8634_s14  ;;  %v10077_v56 = vpop.permute.xlu0 %1868  ;;  %v8441_v11 = vpack.c.bf16 %v2163_v61, %v2159_v13  ;;  %v1304_v13 = vcombine.high %v1287_v21, %v16778_v40  ;;  %v1288_v61 = vcombine.high %v1272_v37, %v16778_v40  ;;  %v2179_v26 = vld [vmem:[#allocation5 + $0xa8] sm:$0xff] }
 0x322   :  { %16795 = vst [vmem:[#allocation180_spill] sm:$0xff] %v10077_v56  ;;  %v2162_v56 = vld [vmem:[#allocation5 + $0x20] sm:$0xff] }
 0x323   :  { %v10081_v63 = vpop.permute.xlu1 %1962  ;;  %1558 = vrot.lane.b32.xlu0 %v1354_v47, %s8634_s14  ;;  %v8443_v7 = vpack.c.bf16 %v2162_v56, %v2158_v28  ;;  %8442 = vmatprep.subr.bf16.mxu1 %v8441_v11  ;;  %v2171_v47 = vld [vmem:[#allocation5 + $0x68] sm:$0xff]  ;;  %v994_v28 = vcombine.high %v978_v12, %v16778_v40  ;;  %v1305_v11 = vcombine.high %v1295_v52, %v16778_v40  ;;  %v2174_v52 = vld [vmem:[#allocation5 + $0x80] sm:$0xff] }
 0x324   :  { %16796 = vst [vmem:[#allocation181_spill] sm:$0xff] %v10081_v63  ;;  %v2166_v63 = vld [vmem:[#allocation5 + $0x40] sm:$0xff]  ;;  %v8445_v31 = vpack.c.bf16 %v2171_v47, %v2167_v35  ;;  %v2175_v12 = vld [vmem:[#allocation5 + $0x88] sm:$0xff]  ;;  %v1061_v47 = vcombine.high %v1057_v24, %v16778_v40 }
 0x325   :  { %1568 = vrot.lane.b32.xlu1 %v1057_v24, %s8635_s15  ;;  %v10086_v46 = vpop.permute.xlu0 %1892  ;;  %8444 = vmatpush1.bf16.msra.mxu1 %v8443_v7  ;;  %v8447_v56 = vpack.c.bf16 %v2170_v43, %v2166_v63  ;;  %v1302_v43 = vrot.slane %v1288_v61, %v9964_v33  ;;  %v8449_v37 = vpack.c.bf16 %v2179_v26, %v2175_v12 }
 0x326   :  { %16797 = vst [vmem:[#allocation182_spill] sm:$0xff] %v10086_v46  ;;  %8446 = vmatprep.subr.bf16.mxu1 %v8445_v31  ;;  %v1008_v31 = vrot.slane %v994_v28, %v9964_v33  ;;  %v1355_v28 = vcombine.high %v1351_v25, %v16778_v40 }
 0x327   :  { %v10089_v59 = vpop.permute.xlu1 %1986  ;;  %1574 = vrot.lane.b32.xlu0 %v1351_v25, %s8635_s15  ;;  %v1306_v12 = vcombine.high %v1302_v43, %v16778_v40 }
 0x328   :  { %16798 = vst [vmem:[#allocation183_spill] sm:$0xff] %v10089_v59  ;;  %v1012_v61 = vcombine.high %v1008_v31, %v16778_v40 }
 0x329   :  { %1392 = vrot.lane.b32.xlu1 %v1010_v60, %s8638_s19  ;;  %v10094_v46 = vpop.permute.xlu0 %1916  ;;  %8448 = vmatpush1.bf16.msra.mxu1 %v8447_v56  ;;  %v2178_v60 = vld [vmem:[#allocation5 + $0xa0] sm:$0xff] }
 0x32a   :  { %16799 = vst [vmem:[#allocation184_spill] sm:$0xff] %v10094_v46  ;;  %8450 = vmatprep.subr.bf16.mxu1 %v8449_v37  ;;  %v2183_v37 = vld [vmem:[#allocation5 + $0xc8] sm:$0xff]  ;;  %v2202_v46 = vld [vmem:[#allocation5 + $0x160] sm:$0xff] }
 0x32b   :  { %v10099_v39 = vpop.permute.xlu1 %2591  ;;  %1398 = vrot.lane.b32.xlu0 %v1304_v13, %s8638_s19  ;;  %v8451_v13 = vpack.c.bf16 %v2178_v60, %v2174_v52  ;;  %v2187_v52 = vld [vmem:[#allocation5 + $0xe8] sm:$0xff]  ;;  %v2182_v60 = vld [vmem:[#allocation5 + $0xc0] sm:$0xff] }
 0x32c   :  { %16800 = vst [vmem:[#allocation185_spill] sm:$0xff] %v10099_v39 }
 0x32d   :  { %1424 = vrot.lane.b32.xlu1 %v1011_v19, %s8639_s20  ;;  %v10105_v7 = vpop.permute.xlu0 %1940  ;;  %8452 = vmatpush1.bf16.msra.mxu1 %v8451_v13  ;;  %v2191_v13 = vld [vmem:[#allocation5 + $0x108] sm:$0xff] }
 0x32e   :  { %16801 = vst [vmem:[#allocation186_spill] sm:$0xff] %v10105_v7  ;;  %v2203_v7 = vld [vmem:[#allocation5 + $0x168] sm:$0xff] }
 0x32f   :  { %v10107_v21 = vpop.permute.xlu1 %2603  ;;  %1430 = vrot.lane.b32.xlu0 %v1305_v11, %s8639_s20  ;;  %v1118_v11 = vrot.slane %v9926_v58, %v9953_v22 }
 0x330   :  { %16802 = vst [vmem:[#allocation187_spill] sm:$0xff] %v10107_v21  ;;  %v2194_v21 = vld [vmem:[#allocation5 + $0x120] sm:$0xff] }
 0x331   :  { %1440 = vrot.lane.b32.xlu1 %v1008_v31, %s8640_s3  ;;  %v10112_v63 = vpop.permute.xlu0 %1964  ;;  %v1133_v31 = vrot.slane %v1118_v11, %v9964_v33  ;;  %v1126_v39 = vcombine.high %v1118_v11, %v16778_v40 }
 0x332   :  { %16803 = vst [vmem:[#allocation188_spill] sm:$0xff] %v10112_v63 }
 0x333   :  { %v10115_v35 = vpop.permute.xlu1 %2615  ;;  %1446 = vrot.lane.b32.xlu0 %v1302_v43, %s8640_s3  ;;  %v1111_v43 = vcombine.high %v9926_v58, %v16778_v40 }
 0x334   :  { %16804 = vst [vmem:[#allocation189_spill] sm:$0xff] %v10115_v35  ;;  %v2190_v35 = vld [vmem:[#allocation5 + $0x100] sm:$0xff] }
 0x335   :  { %1584 = vrot.lane.b32.xlu1 %v1061_v47, %s8636_s16  ;;  %v10120_v56 = vpop.permute.xlu0 %1988  ;;  %v2186_v47 = vld [vmem:[#allocation5 + $0xe0] sm:$0xff]  ;;  %v10156_v58 = vrot.slane %v1111_v43, %v9953_v22  ;;  %v2215_v43 = vld [vmem:[#allocation5 + $0x1c8] sm:$0xff] }
 0x336   :  { %16805 = vst [vmem:[#allocation190_spill] sm:$0xff] %v10120_v56  ;;  %v8455_v56 = vpack.c.bf16 %v2186_v47, %v2182_v60  ;;  %v1140_v47 = vrot.slane %v1126_v39, %v9964_v33 }
 0x337   :  { %v10123_v19 = vpop.permute.xlu1 %948  ;;  %1590 = vrot.lane.b32.xlu0 %v1355_v28, %s8636_s16  ;;  %v2195_v28 = vld [vmem:[#allocation5 + $0x128] sm:$0xff]  ;;  %v1148_v39 = vrot.slane %v10156_v58, %v9964_v33 }
 0x338   :  { %v8457_v63 = vpack.c.bf16 %v2195_v28, %v2191_v13  ;;  %v2210_v13 = vld [vmem:[#allocation5 + $0x1a0] sm:$0xff] }
 0x339   :  { %1456 = vrot.lane.b32.xlu1 %v1012_v61, %s8641_s21  ;;  %v10130_v24 = vpop.permute.xlu0 %950 }
 0x33b   :  { %v10133_v26 = vpop.permute.xlu1 %1678  ;;  %1462 = vrot.lane.b32.xlu0 %v1306_v12, %s8641_s21  ;;  %v8453_v12 = vpack.c.bf16 %v2187_v52, %v2183_v37  ;;  %v8459_v37 = vpack.c.bf16 %v2194_v21, %v2190_v35  ;;  %v2198_v52 = vld [vmem:[#allocation5 + $0x140] sm:$0xff] }
 0x33c   :  { %16806 = vst [vmem:[#allocation191_spill] sm:$0xff] %v10133_v26  ;;  %v1156_v26 = vcombine.high %v1133_v31, %v16778_v40  ;;  %v2206_v35 = vld [vmem:[#allocation5 + $0x180] sm:$0xff] }
 0x33d   :  { %2787 = vrot.lane.b32.xlu1 %v9472_v5, %s8629_s17  ;;  %v10138_v25 = vpop.permute.xlu0 %1680  ;;  %8454 = vmatprep.subr.bf16.mxu1 %v8453_v12  ;;  %v2219_v12 = vld [vmem:[#allocation5 + $0x1e8] sm:$0xff] }
 0x33e   :  { %16807 = vst [vmem:[#allocation192_spill] sm:$0xff] %v10138_v25  ;;  %8456 = vmatpush1.bf16.msra.mxu1 %v8455_v56  ;;  %v2211_v56 = vld [vmem:[#allocation5 + $0x1a8] sm:$0xff] }
 0x33f   :  { %v10141_v61 = vpop.permute.xlu1 %1702  ;;  %1474 = vrot.lane.b32.xlu0 %v1133_v31, %s8631_s2  ;;  %8458 = vmatprep.subr.bf16.mxu1 %v8457_v63  ;;  %v1069_v31 = vrot.slane %v9934_v55, %v9953_v22 }
 0x340   :  { %16808 = vst [vmem:[#allocation193_spill] sm:$0xff] %v10141_v61  ;;  %v2199_v61 = vld [vmem:[#allocation5 + $0x148] sm:$0xff] }
 0x341   :  { %2791 = vrot.lane.b32.xlu1 %v9293_v2, %s8629_s17  ;;  %v10149_v25 = vpop.permute.xlu0 %1704  ;;  %v8461_v11 = vpack.c.bf16 %v2203_v7, %v2199_v61  ;;  %v8463_v7 = vpack.c.bf16 %v2202_v46, %v2198_v52  ;;  %v10175_v61 = vrot.slane %v1069_v31, %v9964_v33  ;;  %v8467_v46 = vpack.c.bf16 %v2210_v13, %v2206_v35  ;;  %v2218_v52 = vld [vmem:[#allocation5 + $0x1e0] sm:$0xff] }
 0x342   :  { %8460 = vmatpush1.bf16.msra.mxu1 %v8459_v37  ;;  %v8469_v37 = vpack.c.bf16 %v2219_v12, %v2215_v43  ;;  %v1216_v13 = vrot.slane %v10130_v24, %v9953_v22 }
 0x343   :  { %v10152_v59 = vpop.permute.xlu1 %1726  ;;  %1490 = vrot.lane.b32.xlu0 %v1156_v26, %s8642_s22  ;;  %v2207_v26 = vld [vmem:[#allocation5 + $0x188] sm:$0xff]  ;;  %8462 = vmatprep.subr.bf16.mxu1 %v8461_v11  ;;  %v2214_v11 = vld [vmem:[#allocation5 + $0x1c0] sm:$0xff] }
 0x344   :  { %v8465_v63 = vpack.c.bf16 %v2211_v56, %v2207_v26  ;;  %v1062_v26 = vcombine.high %v9934_v55, %v16778_v40  ;;  %v1077_v56 = vcombine.high %v1069_v31, %v16778_v40 }
 0x345   :  { %2803 = vrot.lane.b32.xlu1 %v8911_v18, %s8631_s2  ;;  %v10162_v60 = vpop.permute.xlu0 %1728 }
 0x346   :  { %16809 = vst [vmem:[#allocation194_spill] sm:$0xff] %v10162_v60  ;;  %8464 = vmatpush1.bf16.msra.mxu1 %v8463_v7  ;;  %v8471_v7 = vpack.c.bf16 %v2218_v52, %v2214_v11  ;;  %v1091_v31 = vrot.slane %v1077_v56, %v9964_v33  ;;  %v1076_v35 = vrot.slane %v1062_v26, %v9953_v22 }
 0x347   :  { %v10165_v21 = vpop.permute.xlu1 %1750  ;;  %1506 = vrot.lane.b32.xlu0 %v1140_v47, %s8643_s23  ;;  %8466 = vmatprep.subr.bf16.mxu1 %v8465_v63  ;;  %v1157_v52 = vcombine.high %v1140_v47, %v16778_v40  ;;  %v1209_v26 = vcombine.high %v10130_v24, %v16778_v40  ;;  %v1224_v56 = vcombine.high %v1216_v13, %v16778_v40 }
 0x348   :  { %16810 = vst [vmem:[#allocation195_spill] sm:$0xff] %v10165_v21  ;;  %v1099_v12 = vrot.slane %v1076_v35, %v9964_v33  ;;  %v1141_v47 = vcombine.high %v10156_v58, %v16778_v40 }
 0x349   :  { %2807 = vrot.lane.b32.xlu1 %v9114_v49, %s8631_s2  ;;  %v10170_v28 = vpop.permute.xlu0 %1752 }
 0x34a   :  { %16811 = vst [vmem:[#allocation196_spill] sm:$0xff] %v10170_v28  ;;  %8468 = vmatpush1.bf16.msra.mxu1 %v8467_v46 }
 0x34b   :  { %v10177_v60 = vpop.permute.xlu1 %1774  ;;  %1538 = vrot.lane.b32.xlu0 %v1148_v39, %s8632_s12  ;;  %8470 = vmatprep.subr.bf16.mxu1 %v8469_v37  ;;  %v1231_v37 = vrot.slane %v1216_v13, %v9964_v33  ;;  %v1223_v13 = vrot.slane %v1209_v26, %v9953_v22 }
 0x34c   :  { %16812 = vst [vmem:[#allocation197_spill] sm:$0xff] %v10177_v60  ;;  %v1107_v60 = vcombine.high %v10175_v61, %v16778_v40 }
 0x34d   :  { %2811 = vrot.lane.b32.xlu1 %v9472_v5, %s8631_s2  ;;  %v10185_v28 = vpop.permute.xlu0 %1776  ;;  %v1246_v58 = vrot.slane %v1223_v13, %v9964_v33 }
 0x34e   :  { %16813 = vst [vmem:[#allocation198_spill] sm:$0xff] %v10185_v28  ;;  %8472 = vmatpush1.bf16.msra.mxu1 %v8471_v7 }
 0x34f   :  { %v10189_v21 = vpop.permute.xlu1 %1798  ;;  %1362 = vrot.lane.b32.xlu0 %v1107_v60, %s8626_s29 }
 0x350   :  { %16814 = vst [vmem:[#allocation199_spill] sm:$0xff] %v10189_v21 }
 0x351   :  { %2815 = vrot.lane.b32.xlu1 %v9293_v2, %s8631_s2  ;;  %v10194_v63 = vpop.permute.xlu0 %1800 }
 0x352   :  { %16815 = vst [vmem:[#allocation200_spill] sm:$0xff] %v10194_v63 }
 0x353   :  { %v10200_v43 = vpop.permute.xlu1 %1822  ;;  %1378 = vrot.lane.b32.xlu0 %v1091_v31, %s8637_s18 }
 0x354   :  { %16816 = vst [vmem:[#allocation201_spill] sm:$0xff] %v10200_v43 }
 0x355   :  { %2827 = vrot.lane.b32.xlu1 %v8911_v18, %s8632_s12  ;;  %v10205_v60 = vpop.permute.xlu0 %1824  ;;  %v1254_v18 = vcombine.high %v1231_v37, %v16778_v40 }
 0x356   :  { %16817 = vst [vmem:[#allocation202_spill] sm:$0xff] %v10205_v60 }
 0x357   :  { %v10208_v46 = vpop.permute.xlu1 %1846  ;;  %1410 = vrot.lane.b32.xlu0 %v1099_v12, %s8629_s17 }
 0x358   :  { %16818 = vst [vmem:[#allocation203_spill] sm:$0xff] %v10208_v46  ;;  %v1158_v46 = vcombine.high %v1148_v39, %v16778_v40  ;;  %v1155_v39 = vrot.slane %v1141_v47, %v9964_v33 }
 0x359   :  { %1476 = vrot.lane.b32.xlu1 %v1231_v37, %s8631_s2  ;;  %v10213_v11 = vpop.permute.xlu0 %1848  ;;  %v1238_v37 = vrot.slane %v1224_v56, %v9964_v33  ;;  %v1108_v56 = vcombine.high %v1091_v31, %v16778_v40 }
 0x35a   :  { %16819 = vst [vmem:[#allocation204_spill] sm:$0xff] %v10213_v11  ;;  %v1167_v11 = vrot.slane %v10123_v19, %v9953_v22 }
 0x35b   :  { %v10219_v7 = vpop.permute.xlu1 %1870  ;;  %1522 = vrot.lane.b32.xlu0 %v1157_v52, %s8633_s13 }
 0x35c   :  { %16820 = vst [vmem:[#allocation205_spill] sm:$0xff] %v10219_v7  ;;  %v10245_v26 = vrot.slane %v1167_v11, %v9964_v33  ;;  %v1175_v47 = vcombine.high %v1167_v11, %v16778_v40  ;;  %v1109_v7 = vcombine.high %v1099_v12, %v16778_v40 }
 0x35d   :  { %1492 = vrot.lane.b32.xlu1 %v1254_v18, %s8642_s22  ;;  %v10224_v60 = vpop.permute.xlu0 %1872 }
 0x35e   :  { %16821 = vst [vmem:[#allocation206_spill] sm:$0xff] %v10224_v60  ;;  %v1189_v11 = vrot.slane %v1175_v47, %v9964_v33 }
 0x35f   :  { %v10232_v63 = vpop.permute.xlu1 %1894  ;;  %1554 = vrot.lane.b32.xlu0 %v1158_v46, %s8634_s14 }
 0x360   :  { %16822 = vst [vmem:[#allocation207_spill] sm:$0xff] %v10232_v63  ;;  %v1092_v63 = vcombine.high %v1076_v35, %v16778_v40 }
 0x361   :  { %1508 = vrot.lane.b32.xlu1 %v1238_v37, %s8643_s23  ;;  %v10237_v18 = vpop.permute.xlu0 %1896 }
 0x362   :  { %16823 = vst [vmem:[#allocation208_spill] sm:$0xff] %v10237_v18  ;;  %v1160_v18 = vcombine.high %v10123_v19, %v16778_v40  ;;  %v1106_v35 = vrot.slane %v1092_v63, %v9964_v33 }
 0x363   :  { %v10240_v52 = vpop.permute.xlu1 %1918  ;;  %1570 = vrot.lane.b32.xlu0 %v1155_v39, %s8635_s15 }
 0x364   :  { %16824 = vst [vmem:[#allocation209_spill] sm:$0xff] %v10240_v52  ;;  %v1205_v52 = vcombine.high %v10245_v26, %v16778_v40 }
 0x365   :  { %1540 = vrot.lane.b32.xlu1 %v1246_v58, %s8632_s12  ;;  %v10248_v46 = vpop.permute.xlu0 %1920 }
 0x366   :  { %16825 = vst [vmem:[#allocation210_spill] sm:$0xff] %v10248_v46 }
 0x367   :  { %v10254_v60 = vpop.permute.xlu1 %1942  ;;  %1394 = vrot.lane.b32.xlu0 %v1108_v56, %s8638_s19 }
 0x368   :  { %16826 = vst [vmem:[#allocation211_spill] sm:$0xff] %v10254_v60  ;;  %v1174_v60 = vrot.slane %v1160_v18, %v9953_v22  ;;  %v1255_v22 = vcombine.high %v1238_v37, %v16778_v40  ;;  %v1110_v18 = vcombine.high %v1106_v35, %v16778_v40 }
 0x369   :  { %1364 = vrot.lane.b32.xlu1 %v1205_v52, %s8626_s29  ;;  %v10262_v46 = vpop.permute.xlu0 %1944 }
 0x36a   :  { %16827 = vst [vmem:[#allocation212_spill] sm:$0xff] %v10262_v46  ;;  %v1197_v12 = vrot.slane %v1174_v60, %v9964_v33 }
 0x36b   :  { %v10264_v31 = vpop.permute.xlu1 %1966  ;;  %1426 = vrot.lane.b32.xlu0 %v1109_v7, %s8639_s20  ;;  %v1159_v7 = vcombine.high %v1155_v39, %v16778_v40  ;;  %v1239_v39 = vcombine.high %v1223_v13, %v16778_v40  ;;  %v1206_v13 = vcombine.high %v1189_v11, %v16778_v40 }
 0x36c   :  { %16828 = vst [vmem:[#allocation213_spill] sm:$0xff] %v10264_v31 }
 0x36d   :  { %1380 = vrot.lane.b32.xlu1 %v1189_v11, %s8637_s18  ;;  %v10270_v56 = vpop.permute.xlu0 %1968  ;;  %v1253_v37 = vrot.slane %v1239_v39, %v9964_v33 }
 0x36e   :  { %16829 = vst [vmem:[#allocation214_spill] sm:$0xff] %v10270_v56 }
 0x36f   :  { %v10273_v43 = vpop.permute.xlu1 %1990  ;;  %1442 = vrot.lane.b32.xlu0 %v1106_v35, %s8640_s3 }
 0x370   :  { %16830 = vst [vmem:[#allocation215_spill] sm:$0xff] %v10273_v43 }
 0x371   :  { %1412 = vrot.lane.b32.xlu1 %v1197_v12, %s8629_s17  ;;  %v10278_v52 = vpop.permute.xlu0 %1992 }
 0x372   :  { %16831 = vst [vmem:[#allocation216_spill] sm:$0xff] %v10278_v52  ;;  %v1256_v52 = vcombine.high %v1246_v58, %v16778_v40 }
 0x373   :  { %v10281_v47 = vpop.permute.xlu1 %1472  ;;  %1586 = vrot.lane.b32.xlu0 %v1159_v7, %s8636_s16 }
 0x375   :  { %1524 = vrot.lane.b32.xlu1 %v1255_v22, %s8633_s13  ;;  %v10286_v63 = vpop.permute.xlu0 %1478 }
 0x377   :  { %v10289_v56 = vpop.permute.xlu1 %1488  ;;  %1458 = vrot.lane.b32.xlu0 %v1110_v18, %s8641_s21  ;;  %v1207_v18 = vcombine.high %v1197_v12, %v16778_v40  ;;  %v1257_v12 = vcombine.high %v1253_v37, %v16778_v40 }
 0x379   :  { %1556 = vrot.lane.b32.xlu1 %v1256_v52, %s8634_s14  ;;  %v10295_v43 = vpop.permute.xlu0 %1494  ;;  %v1190_v52 = vcombine.high %v1174_v60, %v16778_v40 }
 0x37b   :  { %v10297_v7 = vpop.permute.xlu1 %1504  ;;  %2785 = vrot.lane.b32.xlu0 %v9689_v32, %s8629_s17  ;;  %v1204_v11 = vrot.slane %v1190_v52, %v9964_v33 }
 0x37d   :  { %1572 = vrot.lane.b32.xlu1 %v1253_v37, %s8635_s15  ;;  %v10303_v35 = vpop.permute.xlu0 %1510  ;;  %v1208_v21 = vcombine.high %v1204_v11, %v16778_v40 }
 0x37f   :  { %v10305_v22 = vpop.permute.xlu1 %1536  ;;  %2789 = vrot.lane.b32.xlu0 %v9805_v23, %s8629_s17 }
 0x381   :  { %1396 = vrot.lane.b32.xlu1 %v1206_v13, %s8638_s19  ;;  %v10311_v58 = vpop.permute.xlu0 %1542 }
 0x382   :  { %16832 = vst [vmem:[#allocation217_spill] sm:$0xff] %v10311_v58 }
 0x383   :  { %v1361_v39 = vpop.permute.xlu1 %1360  ;;  %2793 = vrot.lane.b32.xlu0 %v9338_v36, %s8629_s17 }
 0x385   :  { %1428 = vrot.lane.b32.xlu1 %v1207_v18, %s8639_s20  ;;  %v10318_v46 = vpop.permute.xlu0 %1366  ;;  %v2006_v18 = vsel %vm1596_vm9, %v9671_v50, %v9940_v42  ;;  %v2161_v50 = vld [vmem:[#allocation5 + $0x18] sm:$0xff] }
 0x386   :  { %v2014_v33 = vsel %vm1601_vm10, %v2006_v18, %v9691_v8 }
 0x387   :  { %v1377_v31 = vpop.permute.xlu1 %1376  ;;  %2805 = vrot.lane.b32.xlu0 %v8944_v34, %s8631_s2  ;;  %v2022_v42 = vsel %vm1606_vm11, %v2014_v33, %v9712_v17 }
 0x389   :  { %1444 = vrot.lane.b32.xlu1 %v1204_v11, %s8640_s3  ;;  %v10324_v13 = vpop.permute.xlu0 %1382  ;;  %v2030_v11 = vsel %vm1611_vm12, %v2022_v42, %v9728_v51 }
 0x38a   :  { %v2038_v18 = vsel %vm1616_vm13, %v2030_v11, %v9366_v4 }
 0x38b   :  { %v1409_v60 = vpop.permute.xlu1 %1408  ;;  %2809 = vrot.lane.b32.xlu0 %v9689_v32, %s8631_s2  ;;  %v2046_v51 = vsel %vm1621_vm14, %v2038_v18, %v9744_v29  ;;  %v1597_v18 = vsel %vm1596_vm9, %v10020_v48, %v1361_v39  ;;  %v2007_v48 = vsel %vm1596_vm9, %v9697_v1, %v9650_v9  ;;  %v10424_v9 = vsel %vm16266_vm3, %v9689_v32, %v9094_v6 }
 0x38c   :  { %v2054_v4 = vsel %vm1626_vm15, %v2046_v51, %v9760_v14  ;;  %v1602_v51 = vsel %vm1601_vm10, %v1597_v18, %v1377_v31  ;;  %v2015_v31 = vsel %vm1601_vm10, %v2007_v48, %v9718_v41  ;;  %16835 = vst [vmem:[#allocation220_spill] sm:$0xff] %v10424_v9  ;;  %v10447_v18 = vsel %vm16266_vm3, %v9805_v23, %v9417_v38  ;;  %v16840_v48 = vld [vmem:[#allocation155_spill] sm:$0xff] }
 0x38d   :  { %1588 = vrot.lane.b32.xlu1 %v1257_v12, %s8636_s16  ;;  %v10333_v28 = vpop.permute.xlu0 %1414  ;;  %v2165_v12 = vld [vmem:[#allocation5 + $0x38] sm:$0xff]  ;;  %v2062_v29 = vsel %vm16250_vm0, %v2054_v4, %v9776_v10  ;;  %16836 = vst [vmem:[#allocation221_spill] sm:$0xff] %v10447_v18 }
 0x38e   :  { %v8473_v8 = vpack.c.bf16 %v2165_v12, %v2161_v50  ;;  %v2070_v14 = vsel %vm1635_vm1, %v2062_v29, %v9792_v45 }
 0x38f   :  { %v10337_v52 = vpop.permute.xlu1 %1520  ;;  %2813 = vrot.lane.b32.xlu0 %v9805_v23, %s8631_s2  ;;  %v2078_v45 = vsel %vm1640_vm7, %v2070_v14, %v9811_v57  ;;  %v2023_v57 = vsel %vm1606_vm11, %v2015_v31, %v9734_v30  ;;  %v16842_v31 = vld [vmem:[#allocation124_spill] sm:$0xff] }
 0x390   :  { %8474 = vmatprep.subr.bf16.mxu1 %v8473_v8  ;;  %v2031_v1 = vsel %vm1611_vm12, %v2023_v57, %v9750_v62 }
 0x391   :  { %1460 = vrot.lane.b32.xlu1 %v1208_v21, %s8641_s21  ;;  %v10343_v37 = vpop.permute.xlu0 %1526  ;;  %v2039_v62 = vsel %vm1616_vm13, %v2031_v1, %v8979_v0  ;;  %v16838_v0 = vld [vmem:[#allocation121_spill] sm:$0xff] }
 0x392   :  { %v16844_v1 = vld [vmem:[#allocation65_spill] sm:$0xff] }
 0x393   :  { %v10347_v58 = vpop.permute.xlu1 %1552  ;;  %2817 = vrot.lane.b32.xlu0 %v9338_v36, %s8631_s2 }
 0x395   :  { %2831 = vrot.lane.b32.xlu1 %v9114_v49, %s8632_s12  ;;  %v10355_v21 = vpop.permute.xlu0 %1558 }
 0x397   :  { %v10357_v17 = vpop.permute.xlu1 %1568  ;;  %2829 = vrot.lane.b32.xlu0 %v8944_v34, %s8632_s12 }
 0x399   :  { %2835 = vrot.lane.b32.xlu1 %v9472_v5, %s8632_s12  ;;  %v10365_v33 = vpop.permute.xlu0 %1574 }
 0x39b   :  { %v1393_v42 = vpop.permute.xlu1 %1392  ;;  %2833 = vrot.lane.b32.xlu0 %v9689_v32, %s8632_s12 }
 0x39c   :  { %v1607_v4 = vsel %vm1606_vm11, %v1602_v51, %v1393_v42  ;;  %v2086_v42 = vsel %vm1645_vm6, %v2078_v45, %v9832_v54 }
 0x39d   :  { %2839 = vrot.lane.b32.xlu1 %v9293_v2, %s8632_s12  ;;  %v10373_v50 = vpop.permute.xlu0 %1398  ;;  %v10400_v2 = vsel %vm16266_vm3, %v8944_v34, %v8907_v15  ;;  %v1612_v39 = vsel %vm1611_vm12, %v1607_v4, %v1409_v60  ;;  %v2094_v54 = vsel %vm1650_vm8, %v2086_v42, %v9854_v44  ;;  %v2047_v44 = vsel %vm1621_vm14, %v2039_v62, %v9766_v16  ;;  %v16839_v4 = vld [vmem:[#allocation139_spill] sm:$0xff]  ;;  %v16843_v42 = vld [vmem:[#allocation128_spill] sm:$0xff] }
 0x39e   :  { %16833 = vst [vmem:[#allocation218_spill] sm:$0xff] %v10400_v2  ;;  %v2102_v45 = vsel %vm1655_vm5, %v2094_v54, %v16839_v4  ;;  %v10464_v16 = vsub.s32 0, %v16840_v48  ;;  %v16870_v48 = vld [vmem:[#allocation96_spill] sm:$0xff] }
 0x39f   :  { %v1425_v12 = vpop.permute.xlu1 %1424  ;;  %2837 = vrot.lane.b32.xlu0 %v9805_v23, %s8632_s12 }
 0x3a0   :  { %v1617_v14 = vsel %vm1616_vm13, %v1612_v39, %v1425_v12  ;;  %16841 = vst [vmem:[#allocation121_spill] sm:$0xff] %v10464_v16 }
 0x3a1   :  { %3148 = vrot.lane.b32.xlu1 %v8894_v3, %s8629_s17  ;;  %v10383_v8 = vpop.permute.xlu0 %1430 }
 0x3a3   :  { %v1441_v11 = vpop.permute.xlu1 %1440  ;;  %2841 = vrot.lane.b32.xlu0 %v9338_v36, %s8632_s12 }
 0x3a4   :  { %v1622_v41 = vsel %vm1621_vm14, %v1617_v14, %v1441_v11 }
 0x3a5   :  { %3152 = vrot.lane.b32.xlu1 %v9106_v20, %s8629_s17  ;;  %v10394_v10 = vpop.permute.xlu0 %1446 }
 0x3a7   :  { %v1585_v29 = vpop.permute.xlu1 %1584  ;;  %3150 = vrot.lane.b32.xlu0 %v10400_v2, %s8629_s17 }
 0x3a9   :  { %3156 = vrot.lane.b32.xlu1 %v9464_v53, %s8629_s17  ;;  %v10414_v15 = vpop.permute.xlu0 %1590 }
 0x3aa   :  { %16834 = vst [vmem:[#allocation219_spill] sm:$0xff] %v10414_v15 }
 0x3ab   :  { %v1457_v60 = vpop.permute.xlu1 %1456  ;;  %3154 = vrot.lane.b32.xlu0 %v10424_v9, %s8629_s17 }
 0x3ac   :  { %v1627_v30 = vsel %vm1626_vm15, %v1622_v41, %v1457_v60  ;;  %v10481_v41 = vsel %vm16266_vm3, %v9338_v36, %v16844_v1  ;;  %v16846_v60 = vld [vmem:[#allocation131_spill] sm:$0xff] }
 0x3ad   :  { %v1631_v12 = vsel %vm16250_vm0, %v1627_v30, %v10281_v47  ;;  %3160 = vrot.lane.b32.xlu1 %v9254_v27, %s8629_s17  ;;  %v10438_v6 = vpop.permute.xlu0 %1462  ;;  %16845 = vst [vmem:[#allocation139_spill] sm:$0xff] %v10481_v41  ;;  %v16847_v30 = vld [vmem:[#allocation143_spill] sm:$0xff] }
 0x3ae   :  { %v1636_v11 = vsel %vm1635_vm1, %v1631_v12, %v10289_v56  ;;  %v2055_v56 = vsel %vm1626_vm15, %v2047_v44, %v16838_v0  ;;  %v2110_v54 = vsel %vm1660_vm4, %v2102_v45, %v16847_v30 }
 0x3af   :  { %v1641_v47 = vsel %vm1640_vm7, %v1636_v11, %v10297_v7  ;;  %v10453_v51 = vpop.permute.xlu1 %2787  ;;  %3158 = vrot.lane.b32.xlu0 %v10447_v18, %s8629_s17  ;;  %v2063_v7 = vsel %vm16250_vm0, %v2055_v56, %v16842_v31  ;;  %vm1665_vm0 = vcmask 982016  }
 0x3b0   :  { %16837 = vst [vmem:[#allocation222_spill] sm:$0xff] %v10453_v51  ;;  %v1646_v38 = vsel %vm1645_vm6, %v1641_v47, %v10337_v52  ;;  %v2071_v14 = vsel %vm1635_vm1, %v2063_v7, %v16843_v42  ;;  %v16850_v47 = vld [vmem:[#allocation140_spill] sm:$0xff]  ;;  %v16867_v51 = vld [vmem:[#allocation50_spill] sm:$0xff] }
 0x3b1   :  { %v1651_v39 = vsel %vm1650_vm8, %v1646_v38, %v10305_v22  ;;  %3172 = vrot.lane.b32.xlu1 %v8894_v3, %s8631_s2  ;;  %v10472_v57 = vpop.permute.xlu0 %1474  ;;  %v2079_v22 = vsel %vm1640_vm7, %v2071_v14, %v16846_v60  ;;  %v16852_v38 = vld [vmem:[#allocation147_spill] sm:$0xff]  ;;  %v16853_v7 = vld [vmem:[#allocation148_spill] sm:$0xff] }
 0x3b2   :  { %v1656_v52 = vsel %vm1655_vm5, %v1651_v39, %v10347_v58  ;;  %v16849_v58 = vld [vmem:[#allocation136_spill] sm:$0xff]  ;;  %v2118_v31 = vsel %vm1665_vm0, %v2110_v54, %v16852_v38  ;;  %v2168_v38 = vld [vmem:[#allocation5 + $0x50] sm:$0xff] }
 0x3b3   :  { %v1661_v12 = vsel %vm1660_vm4, %v1656_v52, %v10357_v17  ;;  %v10489_v62 = vpop.permute.xlu1 %2791  ;;  %3162 = vrot.lane.b32.xlu0 %v10481_v41, %s8629_s17  ;;  %v2087_v11 = vsel %vm1645_vm6, %v2079_v22, %v16849_v58  ;;  %v16851_v17 = vld [vmem:[#allocation144_spill] sm:$0xff]  ;;  %v2164_v58 = vld [vmem:[#allocation5 + $0x30] sm:$0xff] }
 0x3b4   :  { %16848 = vst [vmem:[#allocation124_spill] sm:$0xff] %v10489_v62  ;;  %v1666_v44 = vsel %vm1665_vm0, %v1661_v12, %v1585_v29  ;;  %v2095_v0 = vsel %vm1650_vm8, %v2087_v11, %v16850_v47  ;;  %v16855_v14 = vld [vmem:[#allocation152_spill] sm:$0xff]  ;;  %v2160_v12 = vld [vmem:[#allocation5 + $0x10] sm:$0xff]  ;;  %v2169_v11 = vld [vmem:[#allocation5 + $0x58] sm:$0xff] }
 0x3b5   :  { %v2129_v56 = vrot.slane %v1666_v44, %v10464_v16  ;;  %3176 = vrot.lane.b32.xlu1 %v9106_v20, %s8631_s2  ;;  %v10501_v4 = vpop.permute.xlu0 %1490  ;;  %v2103_v45 = vsel %vm1655_vm5, %v2095_v0, %v16851_v17  ;;  %v2173_v44 = vld [vmem:[#allocation5 + $0x78] sm:$0xff]  ;;  %v8475_v0 = vpack.c.bf16 %v2164_v58, %v2160_v12  ;;  %v2176_v58 = vld [vmem:[#allocation5 + $0x90] sm:$0xff] }
 0x3b6   :  { %v2111_v39 = vsel %vm1660_vm4, %v2103_v45, %v16853_v7  ;;  %v8477_v45 = vpack.c.bf16 %v2173_v44, %v2169_v11  ;;  %v2177_v7 = vld [vmem:[#allocation5 + $0x98] sm:$0xff]  ;;  %v2180_v11 = vld [vmem:[#allocation5 + $0xb0] sm:$0xff] }
 0x3b7   :  { %v2142_v29 = vsub.f32 %v2129_v56, %v2118_v31  ;;  %v10509_v42 = vpop.permute.xlu1 %2803  ;;  %3174 = vrot.lane.b32.xlu0 %v10400_v2, %s8631_s2  ;;  %v2119_v52 = vsel %vm1665_vm0, %v2111_v39, %v16855_v14  ;;  %v2172_v31 = vld [vmem:[#allocation5 + $0x70] sm:$0xff]  ;;  %v2181_v39 = vld [vmem:[#allocation5 + $0xb8] sm:$0xff] }
 0x3b8   :  { %16854 = vst [vmem:[#allocation128_spill] sm:$0xff] %v10509_v42  ;;  %v2143_v1 = vsub.f32 %v2129_v56, %v2119_v52  ;;  %v8479_v14 = vpack.c.bf16 %v2172_v31, %v2168_v38  ;;  %v8481_v12 = vpack.c.bf16 %v2181_v39, %v2177_v7  ;;  %v2185_v44 = vld [vmem:[#allocation5 + $0xd8] sm:$0xff]  ;;  %v8483_v38 = vpack.c.bf16 %v2180_v11, %v2176_v58  ;;  %v2184_v7 = vld [vmem:[#allocation5 + $0xd0] sm:$0xff] }
 0x3b9   :  { %8536 = vtanh.f32 %v2142_v29  ;;  %3180 = vrot.lane.b32.xlu1 %v9464_v53, %s8631_s2  ;;  %v10517_v60 = vpop.permute.xlu0 %1506  ;;  %v2188_v39 = vld [vmem:[#allocation5 + $0xf0] sm:$0xff]  ;;  %v2201_v11 = vld [vmem:[#allocation5 + $0x158] sm:$0xff] }
 0x3ba   :  { %8538 = vtanh.f32 %v2143_v1  ;;  %v2221_v42 = vld [vmem:[#allocation5 + $0x1f8] sm:$0xff]  ;;  %v16866_v62 = vld [vmem:[#allocation89_spill] sm:$0xff] }
 0x3bb   :  { %v10519_v22 = vpop.permute.xlu1 %2807  ;;  %3178 = vrot.lane.b32.xlu0 %v10424_v9, %s8631_s2 }
 0x3bc   :  { %16856 = vst [vmem:[#allocation65_spill] sm:$0xff] %v10519_v22  ;;  %v16864_v22 = vld [vmem:[#allocation25_spill] sm:$0xff] }
 0x3bd   :  { %3184 = vrot.lane.b32.xlu1 %v9254_v27, %s8631_s2  ;;  %v10525_v30 = vpop.permute.xlu0 %1538 }
 0x3bf   :  { %v10527_v54 = vpop.permute.xlu1 %2811  ;;  %3182 = vrot.lane.b32.xlu0 %v10447_v18, %s8631_s2 }
 0x3c0   :  { %16857 = vst [vmem:[#allocation131_spill] sm:$0xff] %v10527_v54 }
 0x3c1   :  { %3196 = vrot.lane.b32.xlu1 %v8894_v3, %s8632_s12  ;;  %v10533_v47 = vpop.permute.xlu0 %1362  ;;  %v2197_v3 = vld [vmem:[#allocation5 + $0x138] sm:$0xff] }
 0x3c3   :  { %v10535_v56 = vpop.eup %8536  ;;  %v10537_v17 = vpop.permute.xlu1 %2815  ;;  %3186 = vrot.lane.b32.xlu0 %v10481_v41, %s8631_s2 }
 0x3c4   :  { %16858 = vst [vmem:[#allocation143_spill] sm:$0xff] %v10535_v56  ;;  %16859 = vst [vmem:[#allocation136_spill] sm:$0xff] %v10537_v17  ;;  %2287 = vmatmul.mubr.f32.vlgmr.msra.gmra.mrb[16].mxu1 %v10535_v56  ;;  %v10547_v52 = vpop.eup %8538 }
 0x3c5   :  { %3200 = vrot.lane.b32.xlu1 %v9106_v20, %s8632_s12  ;;  %v10544_v29 = vpop.permute.xlu0 %1378  ;;  %2292 = vmatprep.mubr.f32.mxu1 %v16778_v40  ;;  %16860 = vst [vmem:[#allocation140_spill] sm:$0xff] %v10547_v52  ;;  %v2189_v20 = vld [vmem:[#allocation5 + $0xf8] sm:$0xff] }
 0x3c6   :  { %8476 = vmatpush1.bf16.msra.mxu1 %v8475_v0 }
 0x3c7   :  { %v10549_v1 = vpop.permute.xlu1 %2827  ;;  %3198 = vrot.lane.b32.xlu0 %v10400_v2, %s8632_s12  ;;  %8478 = vmatprep.subr.bf16.mxu1 %v8477_v45  ;;  %v8485_v45 = vpack.c.bf16 %v2189_v20, %v2185_v44  ;;  %v2193_v2 = vld [vmem:[#allocation5 + $0x118] sm:$0xff]  ;;  %v2196_v20 = vld [vmem:[#allocation5 + $0x130] sm:$0xff] }
 0x3c8   :  { %16861 = vst [vmem:[#allocation144_spill] sm:$0xff] %v10549_v1  ;;  %2293 = vmatmul.mubr.f32.gmra.mrb[18].mxu1 %v10547_v52  ;;  %v8487_v1 = vpack.c.bf16 %v2188_v39, %v2184_v7  ;;  %v8489_v58 = vpack.c.bf16 %v2197_v3, %v2193_v2  ;;  %v2205_v44 = vld [vmem:[#allocation5 + $0x178] sm:$0xff]  ;;  %v2204_v3 = vld [vmem:[#allocation5 + $0x170] sm:$0xff]  ;;  %v16878_v52 = vld [vmem:[#allocation163_spill] sm:$0xff] }
 0x3c9   :  { %3204 = vrot.lane.b32.xlu1 %v9464_v53, %s8632_s12  ;;  %v10556_v0 = vpop.permute.xlu0 %1410  ;;  %2298 = vmatprep.mubr.f32.mxu1 %v16778_v40  ;;  %v8493_v7 = vpack.c.bf16 %v2205_v44, %v2201_v11  ;;  %v2209_v2 = vld [vmem:[#allocation5 + $0x198] sm:$0xff]  ;;  %v2208_v11 = vld [vmem:[#allocation5 + $0x190] sm:$0xff] }
 0x3ca   :  { %8480 = vmatpush1.bf16.msra.mxu1 %v8479_v14  ;;  %v2213_v39 = vld [vmem:[#allocation5 + $0x1b8] sm:$0xff]  ;;  %v2212_v44 = vld [vmem:[#allocation5 + $0x1b0] sm:$0xff] }
 0x3cb   :  { %v10559_v31 = vpop.permute.xlu1 %1476  ;;  %3202 = vrot.lane.b32.xlu0 %v10424_v9, %s8632_s12  ;;  %8482 = vmatprep.subr.bf16.mxu1 %v8481_v12  ;;  %v2192_v12 = vld [vmem:[#allocation5 + $0x110] sm:$0xff]  ;;  %v16862_v9 = vld [vmem:[#allocation20_spill] sm:$0xff] }
 0x3cd   :  { %3208 = vrot.lane.b32.xlu1 %v9254_v27, %s8632_s12  ;;  %v10565_v53 = vpop.permute.xlu0 %1522  ;;  %v8491_v27 = vpack.c.bf16 %v2196_v20, %v2192_v12 }
 0x3ce   :  { %8484 = vmatpush1.bf16.msra.mxu1 %v8483_v38 }
 0x3cf   :  { %v10567_v14 = vpop.permute.xlu1 %1492  ;;  %3206 = vrot.lane.b32.xlu0 %v10447_v18, %s8632_s12  ;;  %8486 = vmatprep.subr.bf16.mxu1 %v8485_v45  ;;  %v2200_v45 = vld [vmem:[#allocation5 + $0x150] sm:$0xff]  ;;  %v16863_v18 = vld [vmem:[#allocation52_spill] sm:$0xff] }
 0x3d0   :  { %v8495_v12 = vpack.c.bf16 %v2204_v3, %v2200_v45  ;;  %v2216_v3 = vld [vmem:[#allocation5 + $0x1d0] sm:$0xff] }
 0x3d1   :  { %3517 = vrot.lane.b32.xlu1 %v16862_v9, %s8629_s17  ;;  %v10573_v17 = vpop.permute.xlu0 %1554 }
 0x3d2   :  { %8488 = vmatpush1.bf16.msra.mxu1 %v8487_v1  ;;  %v10586_v1 = vsel %vm16265_vm2, %v8944_v34, %v16864_v22  ;;  %v8499_v22 = vpack.c.bf16 %v2212_v44, %v2208_v11 }
 0x3d3   :  { %v10575_v38 = vpop.permute.xlu1 %1508  ;;  %3210 = vrot.lane.b32.xlu0 %v10481_v41, %s8632_s12  ;;  %8490 = vmatprep.subr.bf16.mxu1 %v8489_v58  ;;  %16865 = vst [vmem:[#allocation147_spill] sm:$0xff] %v10586_v1  ;;  %v8497_v58 = vpack.c.bf16 %v2213_v39, %v2209_v2  ;;  %v2217_v41 = vld [vmem:[#allocation5 + $0x1d8] sm:$0xff]  ;;  %v2220_v2 = vld [vmem:[#allocation5 + $0x1f0] sm:$0xff]  ;;  %v16869_v39 = vld [vmem:[#allocation55_spill] sm:$0xff] }
 0x3d5   :  { %3521 = vrot.lane.b32.xlu1 %v16863_v18, %s8629_s17  ;;  %v10581_v54 = vpop.permute.xlu0 %1570 }
 0x3d6   :  { %8492 = vmatpush1.bf16.msra.mxu1 %v8491_v27  ;;  %v10597_v27 = vsel %vm16265_vm2, %v9689_v32, %v16867_v51  ;;  %v10608_v51 = vsel %vm16265_vm2, %v9805_v23, %v16870_v48 }
 0x3d7   :  { %v10588_v20 = vpop.permute.xlu1 %1540  ;;  %3519 = vrot.lane.b32.xlu0 %v10586_v1, %s8629_s17  ;;  %8494 = vmatprep.subr.bf16.mxu1 %v8493_v7  ;;  %16868 = vst [vmem:[#allocation148_spill] sm:$0xff] %v10597_v27  ;;  %v8501_v7 = vpack.c.bf16 %v2221_v42, %v2217_v41  ;;  %16871 = vst [vmem:[#allocation152_spill] sm:$0xff] %v10608_v51  ;;  %v1598_v42 = vsel %vm1596_vm9, %v10175_v61, %v10533_v47  ;;  %v16875_v47 = vld [vmem:[#allocation158_spill] sm:$0xff] }
 0x3d8   :  { %v1603_v44 = vsel %vm1601_vm10, %v1598_v42, %v10544_v29  ;;  %v16877_v42 = vld [vmem:[#allocation153_spill] sm:$0xff] }
 0x3d9   :  { %3525 = vrot.lane.b32.xlu1 %v16866_v62, %s8629_s17  ;;  %v1395_v5 = vpop.permute.xlu0 %1394  ;;  %v2009_v56 = vsel %vm1596_vm9, %v16878_v52, %v16877_v42  ;;  %v16882_v52 = vld [vmem:[#allocation169_spill] sm:$0xff]  ;;  %v16884_v42 = vld [vmem:[#allocation164_spill] sm:$0xff] }
 0x3da   :  { %8496 = vmatpush1.bf16.msra.mxu1 %v8495_v12  ;;  %v8503_v12 = vpack.c.bf16 %v2220_v2, %v2216_v3  ;;  %v1608_v61 = vsel %vm1606_vm11, %v1603_v44, %v1395_v5 }
 0x3db   :  { %v10599_v45 = vpop.permute.xlu1 %1364  ;;  %3523 = vrot.lane.b32.xlu0 %v10597_v27, %s8629_s17  ;;  %8498 = vmatprep.subr.bf16.mxu1 %v8497_v58  ;;  %v16872_v58 = vld [vmem:[#allocation67_spill] sm:$0xff]  ;;  %v1613_v44 = vsel %vm1611_vm12, %v1608_v61, %v10556_v0 }
 0x3dc   :  { %v10622_v48 = vsel %vm16265_vm2, %v9338_v36, %v16872_v58  ;;  %v16876_v58 = vld [vmem:[#allocation160_spill] sm:$0xff]  ;;  %v16879_v36 = vld [vmem:[#allocation162_spill] sm:$0xff]  ;;  %v16883_v0 = vld [vmem:[#allocation107_spill] sm:$0xff]  ;;  %vm16885_vm2 = vcmask 523264  }
 0x3dd   :  { %3529 = vrot.lane.b32.xlu1 %v16869_v39, %s8629_s17  ;;  %v1427_v49 = vpop.permute.xlu0 %1426  ;;  %16873 = vst [vmem:[#allocation25_spill] sm:$0xff] %v10622_v48  ;;  %vm16889_vm3 = vmmov %vm16885_vm2 }
 0x3de   :  { %8500 = vmatpush1.bf16.msra.mxu1 %v8499_v22 }
 0x3df   :  { %v10610_v11 = vpop.permute.xlu1 %1380  ;;  %3527 = vrot.lane.b32.xlu0 %v10608_v51, %s8629_s17  ;;  %8502 = vmatprep.subr.bf16.mxu1 %v8501_v7  ;;  %v16874_v7 = vld [vmem:[#allocation156_spill] sm:$0xff] }
 0x3e0   :  { %v2008_v3 = vsel %vm1596_vm9, %v16874_v7, %v9934_v55  ;;  %v16880_v55 = vld [vmem:[#allocation165_spill] sm:$0xff] }
 0x3e1   :  { %3541 = vrot.lane.b32.xlu1 %v16862_v9, %s8631_s2  ;;  %v1443_v41 = vpop.permute.xlu0 %1442  ;;  %v2016_v2 = vsel %vm1601_vm10, %v2008_v3, %v16875_v47  ;;  %v2017_v5 = vsel %vm1601_vm10, %v2009_v56, %v16880_v55  ;;  %v16881_v3 = vld [vmem:[#allocation167_spill] sm:$0xff] }
 0x3e2   :  { %8504 = vmatpush1.bf16.msra.mxu1 %v8503_v12  ;;  %v2024_v29 = vsel %vm1606_vm11, %v2016_v2, %v16876_v58  ;;  %v2025_v47 = vsel %vm1606_vm11, %v2017_v5, %v16881_v3  ;;  %v1618_v2 = vsel %vm1616_vm13, %v1613_v44, %v1427_v49  ;;  %v16887_v3 = vld [vmem:[#allocation105_spill] sm:$0xff] }
 0x3e3   :  { %v10626_v22 = vpop.permute.xlu1 %1412  ;;  %3531 = vrot.lane.b32.xlu0 %v10622_v48, %s8629_s17  ;;  %v2032_v15 = vsel %vm1611_vm12, %v2024_v29, %v16879_v36  ;;  %v2033_v58 = vsel %vm1611_vm12, %v2025_v47, %v16882_v52  ;;  %v1623_v36 = vsel %vm1621_vm14, %v1618_v2, %v1443_v41  ;;  %v16886_v41 = vld [vmem:[#allocation166_spill] sm:$0xff]  ;;  %v16888_v2 = vld [vmem:[#allocation168_spill] sm:$0xff] }
 0x3e4   :  { %v2040_v61 = vsel %vm1616_vm13, %v2032_v15, %v16883_v0  ;;  %v2041_v47 = vsel %vm1616_vm13, %v2033_v58, %v16887_v3 }
 0x3e5   :  { %3545 = vrot.lane.b32.xlu1 %v16863_v18, %s8631_s2  ;;  %v1587_v12 = vpop.permute.xlu0 %1586  ;;  %v2048_v55 = vsel %vm1621_vm14, %v2040_v61, %v16884_v42  ;;  %v16891_v61 = vld [vmem:[#allocation171_spill] sm:$0xff]  ;;  %v16893_v42 = vld [vmem:[#allocation170_spill] sm:$0xff] }
 0x3e6   :  { %v2056_v44 = vsel %vm1626_vm15, %v2048_v55, %v16886_v41  ;;  %v1600_v55 = vsel %vm1596_vm9, %v16893_v42, %v10318_v46  ;;  %v16894_v41 = vld [vmem:[#allocation173_spill] sm:$0xff]  ;;  %v16896_v46 = vld [vmem:[#allocation175_spill] sm:$0xff] }
 0x3e7   :  { %v10649_v7 = vpop.permute.xlu1 %1524  ;;  %3543 = vrot.lane.b32.xlu0 %v10586_v1, %s8631_s2  ;;  %v2064_v52 = vsel %vm16889_vm3, %v2056_v44, %v16888_v2  ;;  %v16895_v44 = vld [vmem:[#allocation176_spill] sm:$0xff]  ;;  %v16900_v42 = vld [vmem:[#allocation179_spill] sm:$0xff]  ;;  %vm16909_vm3 = vmmov %vm16885_vm2 }
 0x3e8   :  { %v2072_v58 = vsel %vm1635_vm1, %v2064_v52, %v16891_v61  ;;  %v16897_v52 = vld [vmem:[#allocation178_spill] sm:$0xff]  ;;  %v16899_v61 = vld [vmem:[#allocation180_spill] sm:$0xff] }
 0x3e9   :  { %3549 = vrot.lane.b32.xlu1 %v16866_v62, %s8631_s2  ;;  %v1459_v56 = vpop.permute.xlu0 %1458 }
 0x3ea   :  { %v1628_v29 = vsel %vm1626_vm15, %v1623_v36, %v1459_v56  ;;  %v16890_v36 = vld [vmem:[#allocation172_spill] sm:$0xff] }
 0x3eb   :  { %v1632_v49 = vsel %vm16885_vm2, %v1628_v29, %v10472_v57  ;;  %v10668_v5 = vpop.permute.xlu1 %1556  ;;  %3547 = vrot.lane.b32.xlu0 %v10597_v27, %s8631_s2  ;;  %v2049_v57 = vsel %vm1621_vm14, %v2041_v47, %v16890_v36  ;;  %v16892_v29 = vld [vmem:[#allocation174_spill] sm:$0xff]  ;;  %v1605_v47 = vsel %vm1601_vm10, %v1600_v55, %v10324_v13 }
 0x3ec   :  { %v1637_v15 = vsel %vm1635_vm1, %v1632_v49, %v10501_v4  ;;  %v2057_v4 = vsel %vm1626_vm15, %v2049_v57, %v16892_v29  ;;  %v1610_v57 = vsel %vm1606_vm11, %v1605_v47, %v10373_v50  ;;  %v16901_v55 = vld [vmem:[#allocation182_spill] sm:$0xff] }
 0x3ed   :  { %v1642_v56 = vsel %vm1640_vm7, %v1637_v15, %v10517_v60  ;;  %3553 = vrot.lane.b32.xlu1 %v16869_v39, %s8631_s2  ;;  %v10686_v0 = vpop.permute.xlu0 %2785  ;;  %v2080_v60 = vsel %vm1640_vm7, %v2072_v58, %v16894_v41  ;;  %v2065_v3 = vsel %vm16885_vm2, %v2057_v4, %v16895_v44  ;;  %v16902_v41 = vld [vmem:[#allocation181_spill] sm:$0xff]  ;;  %v16903_v44 = vld [vmem:[#allocation184_spill] sm:$0xff]  ;;  %vm16916_vm2 = vcmask 1043459  }
 0x3ee   :  { %v1647_v49 = vsel %vm1645_vm6, %v1642_v56, %v10565_v53  ;;  %v2088_v53 = vsel %vm1645_vm6, %v2080_v60, %v16896_v46  ;;  %v2073_v36 = vsel %vm1635_vm1, %v2065_v3, %v16897_v52  ;;  %v16898_v56 = vld [vmem:[#allocation177_spill] sm:$0xff]  ;;  %v16904_v46 = vld [vmem:[#allocation183_spill] sm:$0xff]  ;;  %v16905_v52 = vld [vmem:[#allocation186_spill] sm:$0xff] }
 0x3ef   :  { %v1652_v15 = vsel %vm1650_vm8, %v1647_v49, %v10525_v30  ;;  %v10705_v2 = vpop.permute.xlu1 %1572  ;;  %3551 = vrot.lane.b32.xlu0 %v10608_v51, %s8631_s2  ;;  %v2096_v30 = vsel %vm1650_vm8, %v2088_v53, %v16898_v56  ;;  %v2081_v58 = vsel %vm1640_vm7, %v2073_v36, %v16899_v61  ;;  %v16908_v61 = vld [vmem:[#allocation190_spill] sm:$0xff] }
 0x3f0   :  { %v1657_v13 = vsel %vm1655_vm5, %v1652_v15, %v10573_v17  ;;  %v2104_v50 = vsel %vm1655_vm5, %v2096_v30, %v16900_v42  ;;  %v2089_v17 = vsel %vm1645_vm6, %v2081_v58, %v16901_v55 }
 0x3f1   :  { %v1662_v29 = vsel %vm1660_vm4, %v1657_v13, %v10581_v54  ;;  %3565 = vrot.lane.b32.xlu1 %v16862_v9, %s8632_s12  ;;  %v10725_v4 = vpop.permute.xlu0 %2789  ;;  %v2112_v60 = vsel %vm1660_vm4, %v2104_v50, %v16902_v41  ;;  %v2097_v3 = vsel %vm1650_vm8, %v2089_v17, %v16903_v44  ;;  %v1615_v54 = vsel %vm1611_vm12, %v1610_v57, %v10333_v28  ;;  %v16906_v13 = vld [vmem:[#allocation188_spill] sm:$0xff]  ;;  %v16912_v41 = vld [vmem:[#allocation103_spill] sm:$0xff] }
 0x3f2   :  { %v1667_v49 = vsel %vm1665_vm0, %v1662_v29, %v1587_v12  ;;  %v2120_v53 = vsel %vm1665_vm0, %v2112_v60, %v16904_v46  ;;  %v2105_v12 = vsel %vm1655_vm5, %v2097_v3, %v16905_v52  ;;  %v1620_v36 = vsel %vm1616_vm13, %v1615_v54, %v10383_v8  ;;  %v16913_v60 = vld [vmem:[#allocation108_spill] sm:$0xff]  ;;  %v16914_v3 = vld [vmem:[#allocation191_spill] sm:$0xff]  ;;  %v16919_v46 = vld [vmem:[#allocation193_spill] sm:$0xff] }
 0x3f3   :  { %v2133_v47 = vrot.slane %v1667_v49, %v10464_v16  ;;  %v1397_v15 = vpop.permute.xlu1 %1396  ;;  %3555 = vrot.lane.b32.xlu0 %v10622_v48, %s8631_s2  ;;  %v2113_v56 = vsel %vm1660_vm4, %v2105_v12, %v16906_v13  ;;  %v1625_v28 = vsel %vm1621_vm14, %v1620_v36, %v10394_v10  ;;  %v1599_v17 = vsel %vm1596_vm9, %v10245_v26, %v10599_v45  ;;  %v16918_v45 = vld [vmem:[#allocation111_spill] sm:$0xff]  ;;  %v16923_v36 = vld [vmem:[#allocation113_spill] sm:$0xff] }
 0x3f4   :  { %v2121_v58 = vsel %vm1665_vm0, %v2113_v56, %v16908_v61  ;;  %v1630_v29 = vsel %vm1626_vm15, %v1625_v28, %v10438_v6  ;;  %v2012_v44 = vsel %vm1596_vm9, %v16913_v60, %v16912_v41  ;;  %v16924_v56 = vld [vmem:[#allocation192_spill] sm:$0xff]  ;;  %v16931_v41 = vld [vmem:[#allocation109_spill] sm:$0xff] }
 0x3f5   :  { %v2144_v57 = vsub.f32 %v2133_v47, %v2120_v53  ;;  %3569 = vrot.lane.b32.xlu1 %v16863_v18, %s8632_s12  ;;  %v10753_v30 = vpop.permute.xlu0 %2793  ;;  %v2145_v42 = vsub.f32 %v2133_v47, %v2121_v58  ;;  %v1634_v10 = vsel %vm16909_vm3, %v1630_v29, %v10286_v63  ;;  %v1604_v63 = vsel %vm1601_vm10, %v1599_v17, %v10610_v11  ;;  %v16915_v47 = vld [vmem:[#allocation26_spill] sm:$0xff]  ;;  %vm16921_vm3 = vmmov %vm16916_vm2  ;;  %v16927_v29 = vld [vmem:[#allocation115_spill] sm:$0xff] }
 0x3f6   :  { %16907 = vst [vmem:[#allocation50_spill] sm:$0xff] %v10753_v30  ;;  %v1639_v6 = vsel %vm1635_vm1, %v1634_v10, %v10295_v43  ;;  %v2010_v43 = vsel %vm1596_vm9, %v16914_v3, %v10123_v19  ;;  %v1609_v54 = vsel %vm1606_vm11, %v1604_v63, %v1397_v15  ;;  %v10790_v26 = vsel %vm16916_vm2, %v8944_v34, %v16915_v47  ;;  %v16920_v19 = vld [vmem:[#allocation54_spill] sm:$0xff]  ;;  %v16932_v60 = vld [vmem:[#allocation112_spill] sm:$0xff]  ;;  %v17077_v18 = vld [vmem:[#allocation35_spill] sm:$0xff] }
 0x3f7   :  { %8540 = vtanh.f32 %v2144_v57  ;;  %v1429_v8 = vpop.permute.xlu1 %1428  ;;  %3567 = vrot.lane.b32.xlu0 %v10586_v1, %s8632_s12  ;;  %16917 = vst [vmem:[#allocation156_spill] sm:$0xff] %v10790_v26  ;;  %v2020_v11 = vsel %vm1601_vm10, %v2012_v44, %v16918_v45  ;;  %v2018_v53 = vsel %vm1601_vm10, %v2010_v43, %v16919_v46  ;;  %v1644_v52 = vsel %vm1640_vm7, %v1639_v6, %v10303_v35  ;;  %v16925_v57 = vld [vmem:[#allocation94_spill] sm:$0xff]  ;;  %v16928_v6 = vld [vmem:[#allocation195_spill] sm:$0xff]  ;;  %v16935_v45 = vld [vmem:[#allocation196_spill] sm:$0xff] }
 0x3f8   :  { %8542 = vtanh.f32 %v2145_v42  ;;  %v10805_v15 = vsel %vm16921_vm3, %v9689_v32, %v16920_v19  ;;  %v2028_v13 = vsel %vm1606_vm11, %v2020_v11, %v16923_v36  ;;  %v2011_v28 = vsel %vm1596_vm9, %v16924_v56, %v10130_v24  ;;  %v16933_v3 = vld [vmem:[#allocation194_spill] sm:$0xff]  ;;  %v16936_v19 = vld [vmem:[#allocation116_spill] sm:$0xff] }
 0x3f9   :  { %3573 = vrot.lane.b32.xlu1 %v16866_v62, %s8632_s12  ;;  %v10765_v50 = vpop.permute.xlu0 %2805  ;;  %16922 = vst [vmem:[#allocation158_spill] sm:$0xff] %v10805_v15  ;;  %v2026_v35 = vsel %vm1606_vm11, %v2018_v53, %v10152_v59  ;;  %v10817_v61 = vsel %vm16916_vm2, %v9805_v23, %v16925_v57  ;;  %v2036_v42 = vsel %vm1611_vm12, %v2028_v13, %v16927_v29  ;;  %v16929_v59 = vld [vmem:[#allocation18_spill] sm:$0xff]  ;;  %v16938_v36 = vld [vmem:[#allocation132_spill] sm:$0xff]  ;;  %v16940_v57 = vld [vmem:[#allocation197_spill] sm:$0xff]  ;;  %vm17068_vm3 = vcmask 1047559  }
 0x3fa   :  { %16910 = vst [vmem:[#allocation96_spill] sm:$0xff] %v10765_v50  ;;  %16926 = vst [vmem:[#allocation160_spill] sm:$0xff] %v10817_v61  ;;  %v2019_v10 = vsel %vm1601_vm10, %v2011_v28, %v10149_v25  ;;  %v2034_v17 = vsel %vm1611_vm12, %v2026_v35, %v16928_v6  ;;  %v1614_v24 = vsel %vm1611_vm12, %v1609_v54, %v10626_v22  ;;  %v16934_v22 = vld [vmem:[#allocation114_spill] sm:$0xff] }
 0x3fb   :  { %v1445_v55 = vpop.permute.xlu1 %1444  ;;  %3571 = vrot.lane.b32.xlu0 %v10597_v27, %s8632_s12  ;;  %v2013_v44 = vsel %vm1596_vm9, %v16932_v60, %v16931_v41  ;;  %v2027_v43 = vsel %vm1606_vm11, %v2019_v10, %v16933_v3  ;;  %v1649_v25 = vsel %vm1645_vm6, %v1644_v52, %v10343_v37  ;;  %v1619_v47 = vsel %vm1616_vm13, %v1614_v24, %v1429_v8  ;;  %v16937_v8 = vld [vmem:[#allocation79_spill] sm:$0xff]  ;;  %v16941_v10 = vld [vmem:[#allocation217_spill] sm:$0xff]  ;;  %v16945_v41 = vld [vmem:[#allocation118_spill] sm:$0xff] }
 0x3fc   :  { %v2021_v54 = vsel %vm1601_vm10, %v2013_v44, %v16934_v22  ;;  %v2035_v11 = vsel %vm1611_vm12, %v2027_v43, %v16935_v45  ;;  %v1624_v46 = vsel %vm1621_vm14, %v1619_v47, %v1445_v55  ;;  %v2044_v52 = vsel %vm1616_vm13, %v2036_v42, %v16937_v8  ;;  %v16939_v55 = vld [vmem:[#allocation117_spill] sm:$0xff]  ;;  %v16946_v44 = vld [vmem:[#allocation134_spill] sm:$0xff]  ;;  %v16947_v43 = vld [vmem:[#allocation199_spill] sm:$0xff] }
 0x3fd   :  { %3577 = vrot.lane.b32.xlu1 %v16869_v39, %s8632_s12  ;;  %v10778_v49 = vpop.permute.xlu0 %2809  ;;  %v2029_v37 = vsel %vm1606_vm11, %v2021_v54, %v16936_v19  ;;  %v2042_v13 = vsel %vm1616_vm13, %v2034_v17, %v16938_v36  ;;  %v2052_v35 = vsel %vm1621_vm14, %v2044_v52, %v16939_v55  ;;  %v1654_v6 = vsel %vm1650_vm8, %v1649_v25, %v16941_v10  ;;  %v16943_v42 = vld [vmem:[#allocation53_spill] sm:$0xff]  ;;  %v16953_v19 = vld [vmem:[#allocation203_spill] sm:$0xff]  ;;  %v16958_v10 = vld [vmem:[#allocation90_spill] sm:$0xff] }
 0x3fe   :  { %16911 = vst [vmem:[#allocation67_spill] sm:$0xff] %v10778_v49  ;;  %v2050_v29 = vsel %vm1621_vm14, %v2042_v13, %v16940_v57  ;;  %vm16942_vm9 = vcmask 523264   ;;  %v2037_v60 = vsel %vm1611_vm12, %v2029_v37, %v16945_v41  ;;  %v2043_v3 = vsel %vm1616_vm13, %v2035_v11, %v16946_v44  ;;  %v16949_v54 = vld [vmem:[#allocation201_spill] sm:$0xff]  ;;  %v16952_v11 = vld [vmem:[#allocation200_spill] sm:$0xff]  ;;  %v16955_v13 = vld [vmem:[#allocation202_spill] sm:$0xff] }
 0x3ff   :  { %v10798_v12 = vpop.permute.xlu1 %1588  ;;  %3575 = vrot.lane.b32.xlu0 %v10608_v51, %s8632_s12  ;;  %v2058_v47 = vsel %vm1626_vm15, %v2050_v29, %v16947_v43  ;;  %vm16950_vm10 = vmmov %vm16942_vm9  ;;  %v1659_v8 = vsel %vm1655_vm5, %v1654_v6, %v10355_v21  ;;  %v16957_v55 = vld [vmem:[#allocation205_spill] sm:$0xff]  ;;  %v16960_v21 = vld [vmem:[#allocation119_spill] sm:$0xff] }
 0x400   :  { %v2066_v45 = vsel %vm16950_vm10, %v2058_v47, %v16949_v54  ;;  %vm16956_vm11 = vmmov %vm16942_vm9  ;;  %v16961_v6 = vld [vmem:[#allocation204_spill] sm:$0xff]  ;;  %v16963_v43 = vld [vmem:[#allocation206_spill] sm:$0xff] }
 0x401   :  { %v10819_v58 = vpop.eup %8540  ;;  %3886 = vrot.lane.b32.xlu1 %v16929_v59, %s8629_s17  ;;  %v10831_v63 = vpop.permute.xlu0 %2813  ;;  %v2074_v37 = vsel %vm1635_vm1, %v2066_v45, %v16953_v19  ;;  %v16964_v47 = vld [vmem:[#allocation209_spill] sm:$0xff]  ;;  %v16966_v54 = vld [vmem:[#allocation120_spill] sm:$0xff]  ;;  %v16969_v19 = vld [vmem:[#allocation122_spill] sm:$0xff] }
 0x402   :  { %16930 = vst [vmem:[#allocation153_spill] sm:$0xff] %v10831_v63  ;;  %2299 = vmatmul.mubr.f32.gmra.mrb[20].mxu1 %v10819_v58  ;;  %v10857_v28 = vpop.eup %8542  ;;  %v2082_v57 = vsel %vm1640_vm7, %v2074_v37, %v16957_v55  ;;  %v16967_v45 = vld [vmem:[#allocation208_spill] sm:$0xff]  ;;  %v16971_v37 = vld [vmem:[#allocation210_spill] sm:$0xff]  ;;  %v16975_v55 = vld [vmem:[#allocation125_spill] sm:$0xff] }
 0x403   :  { %v1461_v53 = vpop.permute.xlu1 %1460  ;;  %3579 = vrot.lane.b32.xlu0 %v10622_v48, %s8632_s12  ;;  %2304 = vmatprep.mubr.f32.mxu1 %v16778_v40  ;;  %vm17072_vm10 = vmmov %vm16916_vm2  ;;  %v17178_v63 = vld [vmem:[#allocation72_spill] sm:$0xff] }
 0x404   :  { %v1629_v56 = vsel %vm1626_vm15, %v1624_v46, %v1461_v53 }
 0x405   :  { %v1633_v24 = vsel %vm16942_vm9, %v1629_v56, %v10559_v31  ;;  %3890 = vrot.lane.b32.xlu1 %v16943_v42, %s8629_s17  ;;  %v10869_v17 = vpop.permute.xlu0 %2817  ;;  %v16948_v31 = vld [vmem:[#allocation198_spill] sm:$0xff] }
 0x406   :  { %16944 = vst [vmem:[#allocation163_spill] sm:$0xff] %v10869_v17  ;;  %v1638_v25 = vsel %vm1635_vm1, %v1633_v24, %v10567_v14  ;;  %2305 = vmatmul.mubr.f32.gmra.mrb[22].mxu1 %v10857_v28  ;;  %v2051_v22 = vsel %vm1621_vm14, %v2043_v3, %v16948_v31  ;;  %v1664_v31 = vsel %vm1660_vm4, %v1659_v8, %v10365_v33 }
 0x407   :  { %v1643_v46 = vsel %vm1640_vm7, %v1638_v25, %v10575_v38  ;;  %v10886_v53 = vpop.permute.xlu1 %2831  ;;  %3888 = vrot.lane.b32.xlu0 %v10790_v26, %s8629_s17  ;;  %2310 = vmatprep.mubr.f32.mxu1 %v16778_v40  ;;  %v2059_v14 = vsel %vm1626_vm15, %v2051_v22, %v16952_v11  ;;  %v16954_v38 = vld [vmem:[#allocation85_spill] sm:$0xff]  ;;  %v16968_v11 = vld [vmem:[#allocation211_spill] sm:$0xff] }
 0x408   :  { %16951 = vst [vmem:[#allocation162_spill] sm:$0xff] %v10886_v53  ;;  %v1648_v52 = vsel %vm1645_vm6, %v1643_v46, %v10649_v7  ;;  %v2045_v36 = vsel %vm1616_vm13, %v2037_v60, %v16954_v38  ;;  %v2067_v56 = vsel %vm16956_vm11, %v2059_v14, %v16955_v13  ;;  %v2060_v7 = vsel %vm1626_vm15, %v2052_v35, %v16960_v21  ;;  %v16962_v60 = vld [vmem:[#allocation207_spill] sm:$0xff]  ;;  %vm16970_vm13 = vmmov %vm16942_vm9  ;;  %v16973_v13 = vld [vmem:[#allocation57_spill] sm:$0xff] }
 0x409   :  { %v1653_v29 = vsel %vm1650_vm8, %v1648_v52, %v10588_v20  ;;  %3894 = vrot.lane.b32.xlu1 %v16958_v10, %s8629_s17  ;;  %v10909_v24 = vpop.permute.xlu0 %2829  ;;  %v2075_v41 = vsel %vm1635_vm1, %v2067_v56, %v16961_v6  ;;  %v2090_v44 = vsel %vm1645_vm6, %v2082_v57, %v16962_v60  ;;  %v16972_v52 = vld [vmem:[#allocation213_spill] sm:$0xff]  ;;  %v16977_v21 = vld [vmem:[#allocation215_spill] sm:$0xff] }
 0x40a   :  { %16959 = vst [vmem:[#allocation165_spill] sm:$0xff] %v10909_v24  ;;  %v1658_v3 = vsel %vm1655_vm5, %v1653_v29, %v10668_v5  ;;  %v2083_v20 = vsel %vm1640_vm7, %v2075_v41, %v16963_v43  ;;  %v2098_v25 = vsel %vm1650_vm8, %v2090_v44, %v16964_v47  ;;  %v2053_v5 = vsel %vm1621_vm14, %v2045_v36, %v16966_v54  ;;  %v16978_v6 = vld [vmem:[#allocation219_spill] sm:$0xff]  ;;  %v16983_v54 = vld [vmem:[#allocation126_spill] sm:$0xff]  ;;  %vm16984_vm14 = vmmov %vm16942_vm9 }
 0x40b   :  { %v1663_v35 = vsel %vm1660_vm4, %v1658_v3, %v10705_v2  ;;  %v10927_v22 = vpop.permute.xlu1 %2835  ;;  %3892 = vrot.lane.b32.xlu0 %v10805_v15, %s8629_s17  ;;  %v2091_v46 = vsel %vm1645_vm6, %v2083_v20, %v16967_v45  ;;  %v2106_v14 = vsel %vm1655_vm5, %v2098_v25, %v16968_v11  ;;  %v2068_v2 = vsel %vm16970_vm13, %v2060_v7, %v16969_v19  ;;  %v16979_v60 = vld [vmem:[#allocation123_spill] sm:$0xff]  ;;  %v16980_v3 = vld [vmem:[#allocation129_spill] sm:$0xff]  ;;  %v16981_v20 = vld [vmem:[#allocation214_spill] sm:$0xff] }
 0x40c   :  { %16965 = vst [vmem:[#allocation167_spill] sm:$0xff] %v10927_v22  ;;  %v1668_v33 = vsel %vm1665_vm0, %v1663_v35, %v10798_v12  ;;  %v2099_v8 = vsel %vm1650_vm8, %v2091_v46, %v16971_v37  ;;  %v2114_v38 = vsel %vm1660_vm4, %v2106_v14, %v16972_v52  ;;  %v2076_v57 = vsel %vm1635_vm1, %v2068_v2, %v16975_v55  ;;  %v16976_v12 = vld [vmem:[#allocation212_spill] sm:$0xff]  ;;  %v16985_v46 = vld [vmem:[#allocation133_spill] sm:$0xff]  ;;  %vm17078_vm13 = vmmov %vm17068_vm3 }
 0x40d   :  { %v2137_v36 = vrot.slane %v1668_v33, %v10464_v16  ;;  %3898 = vrot.lane.b32.xlu1 %v16973_v13, %s8629_s17  ;;  %v10948_v56 = vpop.permute.xlu0 %2833  ;;  %v2107_v29 = vsel %vm1655_vm5, %v2099_v8, %v16976_v12  ;;  %v2122_v7 = vsel %vm1665_vm0, %v2114_v38, %v16977_v21  ;;  %v1669_v41 = vsel %vm1665_vm0, %v1664_v31, %v16978_v6  ;;  %v16986_v11 = vld [vmem:[#allocation216_spill] sm:$0xff]  ;;  %v16987_v14 = vld [vmem:[#allocation137_spill] sm:$0xff]  ;;  %v16989_v8 = vld [vmem:[#allocation130_spill] sm:$0xff] }
 0x40e   :  { %16974 = vst [vmem:[#allocation169_spill] sm:$0xff] %v10948_v56  ;;  %v2061_v44 = vsel %vm1626_vm15, %v2053_v5, %v16979_v60  ;;  %v2084_v43 = vsel %vm1640_vm7, %v2076_v57, %v16980_v3  ;;  %v2115_v47 = vsel %vm1660_vm4, %v2107_v29, %v16981_v20  ;;  %v2141_v19 = vrot.slane %v1669_v41, %v10464_v16  ;;  %v16990_v38 = vld [vmem:[#allocation141_spill] sm:$0xff]  ;;  %v16991_v57 = vld [vmem:[#allocation68_spill] sm:$0xff]  ;;  %vm16993_vm15 = vmmov %vm16916_vm2 }
 0x40f   :  { %v2146_v25 = vsub.f32 %v2137_v36, %v2122_v7  ;;  %v10964_v35 = vpop.permute.xlu1 %2839  ;;  %3896 = vrot.lane.b32.xlu0 %v10817_v61, %s8629_s17  ;;  %v2069_v45 = vsel %vm16984_vm14, %v2061_v44, %v16983_v54  ;;  %v2092_v31 = vsel %vm1645_vm6, %v2084_v43, %v16985_v46  ;;  %v2123_v5 = vsel %vm1665_vm0, %v2115_v47, %v16986_v11  ;;  %v16992_v12 = vld [vmem:[#allocation76_spill] sm:$0xff]  ;;  %v16995_v21 = vld [vmem:[#allocation135_spill] sm:$0xff]  ;;  %v16996_v7 = vld [vmem:[#allocation145_spill] sm:$0xff] }
 0x410   :  { %16982 = vst [vmem:[#allocation107_spill] sm:$0xff] %v10964_v35  ;;  %v2100_v33 = vsel %vm1650_vm8, %v2092_v31, %v16987_v14  ;;  %v2147_v2 = vsub.f32 %v2137_v36, %v2123_v5  ;;  %v2077_v52 = vsel %vm1635_vm1, %v2069_v45, %v16989_v8  ;;  %v10988_v29 = vsel %vm16993_vm15, %v16992_v12, %v16991_v57  ;;  %v16998_v60 = vld [vmem:[#allocation138_spill] sm:$0xff]  ;;  %v16999_v3 = vld [vmem:[#allocation149_spill] sm:$0xff]  ;;  %vm17080_vm14 = vmmov %vm16916_vm2 }
 0x411   :  { %8544 = vtanh.f32 %v2146_v25  ;;  %3910 = vrot.lane.b32.xlu1 %v16929_v59, %s8631_s2  ;;  %v10979_v37 = vpop.permute.xlu0 %2837  ;;  %v2108_v55 = vsel %vm1655_vm5, %v2100_v33, %v16990_v38  ;;  %16994 = vst [vmem:[#allocation166_spill] sm:$0xff] %v10988_v29  ;;  %v2085_v36 = vsel %vm1640_vm7, %v2077_v52, %v16995_v21  ;;  %v17000_v20 = vld [vmem:[#allocation142_spill] sm:$0xff]  ;;  %vm17062_vm7 = vcmask 1041409   ;;  %v17172_v22 = vld [vmem:[#allocation81_spill] sm:$0xff] }
 0x412   :  { %16988 = vst [vmem:[#allocation164_spill] sm:$0xff] %v10979_v37  ;;  %v2116_v6 = vsel %vm1660_vm4, %v2108_v55, %v16996_v7  ;;  %v2093_v44 = vsel %vm1645_vm6, %v2085_v36, %v16998_v60  ;;  %8546 = vtanh.f32 %v2147_v2  ;;  %v17002_v45 = vld [vmem:[#allocation146_spill] sm:$0xff]  ;;  %vm17063_vm1 = vcmask 1042434  }
 0x413   :  { %v10994_v41 = vpop.permute.xlu1 %3148  ;;  %3900 = vrot.lane.b32.xlu0 %v10988_v29, %s8629_s17  ;;  %v2124_v43 = vsel %vm1665_vm0, %v2116_v6, %v16999_v3  ;;  %v2101_v47 = vsel %vm1650_vm8, %v2093_v44, %v17000_v20  ;;  %v17003_v31 = vld [vmem:[#allocation150_spill] sm:$0xff]  ;;  %v17016_v20 = vld [vmem:[#allocation143_spill] sm:$0xff]  ;;  %vm17071_vm9 = vmmov %vm17063_vm1  ;;  %v11453_v24 = vrot.slane %v17172_v22, 4 }
 0x414   :  { %16997 = vst [vmem:[#allocation105_spill] sm:$0xff] %v10994_v41  ;;  %v2148_v25 = vsub.f32 %v2141_v19, %v2124_v43  ;;  %v2109_v46 = vsel %vm1655_vm5, %v2101_v47, %v17002_v45  ;;  %v17005_v14 = vld [vmem:[#allocation154_spill] sm:$0xff]  ;;  %v17019_v45 = vld [vmem:[#allocation140_spill] sm:$0xff]  ;;  %v17167_v41 = vld [vmem:[#allocation75_spill] sm:$0xff] }
 0x415   :  { %3914 = vrot.lane.b32.xlu1 %v16943_v42, %s8631_s2  ;;  %v11006_v54 = vpop.permute.xlu0 %2841  ;;  %v2117_v11 = vsel %vm1660_vm4, %v2109_v46, %v17003_v31  ;;  %v17020_v46 = vld [vmem:[#allocation16_spill] sm:$0xff] }
 0x416   :  { %17001 = vst [vmem:[#allocation168_spill] sm:$0xff] %v11006_v54  ;;  %v2125_v33 = vsel %vm1665_vm0, %v2117_v11, %v17005_v14  ;;  %8548 = vtanh.f32 %v2148_v25  ;;  %v17023_v14 = vld [vmem:[#allocation56_spill] sm:$0xff]  ;;  %vm17026_vm0 = vcmask 1044484  }
 0x417   :  { %v11012_v5 = vpop.permute.xlu1 %3152  ;;  %3912 = vrot.lane.b32.xlu0 %v10790_v26, %s8631_s2  ;;  %v2149_v2 = vsub.f32 %v2141_v19, %v2125_v33  ;;  %vm17032_vm4 = vmmov %vm17026_vm0 }
 0x418   :  { %17004 = vst [vmem:[#allocation172_spill] sm:$0xff] %v11012_v5  ;;  %vm17038_vm5 = vmmov %vm17026_vm0  ;;  %v17165_v5 = vld [vmem:[#allocation74_spill] sm:$0xff] }
 0x419   :  { %3918 = vrot.lane.b32.xlu1 %v16958_v10, %s8631_s2  ;;  %v11020_v8 = vpop.permute.xlu0 %3150  ;;  %8550 = vtanh.f32 %v2149_v2  ;;  %v17025_v2 = vld [vmem:[#allocation27_spill] sm:$0xff]  ;;  %vm17043_vm6 = vmmov %vm17026_vm0  ;;  %v11437_v54 = vrot.slane %v17165_v5, 1  ;;  %v17173_v5 = vld [vmem:[#allocation82_spill] sm:$0xff] }
 0x41a   :  { %17006 = vst [vmem:[#allocation171_spill] sm:$0xff] %v11020_v8  ;;  %vm17075_vm11 = vmmov %vm17026_vm0  ;;  %v11456_v53 = vrot.slane %v17173_v5, 3 }
 0x41b   :  { %v8545_v52 = vpop.eup %8544  ;;  %v11022_v38 = vpop.permute.xlu1 %3156  ;;  %3916 = vrot.lane.b32.xlu0 %v10805_v15, %s8631_s2  ;;  %vm17081_vm15 = vmmov %vm17026_vm0  ;;  %17166 = vst [vmem:[#allocation141_spill] sm:$0xff] %v11437_v54 }
 0x41c   :  { %17007 = vst [vmem:[#allocation174_spill] sm:$0xff] %v11022_v38  ;;  %2311 = vmatmul.mubr.f32.gmra.mrb[24].mxu1 %v8545_v52  ;;  %v8547_v19 = vpop.eup %8546 }
 0x41d   :  { %3922 = vrot.lane.b32.xlu1 %v16973_v13, %s8631_s2  ;;  %v11028_v55 = vpop.permute.xlu0 %3154  ;;  %2316 = vmatprep.mubr.f32.mxu1 %v16778_v40 }
 0x41e   :  { %17008 = vst [vmem:[#allocation170_spill] sm:$0xff] %v11028_v55 }
 0x41f   :  { %v11031_v57 = vpop.permute.xlu1 %3160  ;;  %3920 = vrot.lane.b32.xlu0 %v10817_v61, %s8631_s2 }
 0x420   :  { %17009 = vst [vmem:[#allocation173_spill] sm:$0xff] %v11031_v57  ;;  %2317 = vmatmul.mubr.f32.gmra.mrb[26].mxu1 %v8547_v19  ;;  %v8549_v36 = vpop.eup %8548  ;;  %v17146_v57 = vld [vmem:[#allocation58_spill] sm:$0xff] }
 0x421   :  { %3934 = vrot.lane.b32.xlu1 %v16929_v59, %s8632_s12  ;;  %v11037_v21 = vpop.permute.xlu0 %3158  ;;  %2322 = vmatprep.mubr.f32.mxu1 %v16778_v40  ;;  %v11395_v55 = vrot.slane %v17146_v57, 3 }
 0x422   :  { %17010 = vst [vmem:[#allocation176_spill] sm:$0xff] %v11037_v21  ;;  %v17145_v21 = vld [vmem:[#allocation51_spill] sm:$0xff] }
 0x423   :  { %v11040_v7 = vpop.permute.xlu1 %3172  ;;  %3924 = vrot.lane.b32.xlu0 %v10988_v29, %s8631_s2  ;;  %v8551_v60 = vpop.eup %8550 }
 0x424   :  { %17011 = vst [vmem:[#allocation175_spill] sm:$0xff] %v11040_v7  ;;  %2323 = vmatmul.mubr.f32.gmra.mrb[28].mxu1 %v8549_v36 }
 0x425   :  { %3938 = vrot.lane.b32.xlu1 %v16943_v42, %s8632_s12  ;;  %v11046_v6 = vpop.permute.xlu0 %3162  ;;  %2328 = vmatprep.mubr.f32.mxu1 %v16778_v40 }
 0x426   :  { %17012 = vst [vmem:[#allocation178_spill] sm:$0xff] %v11046_v6 }
 0x427   :  { %v11049_v44 = vpop.permute.xlu1 %3176  ;;  %3936 = vrot.lane.b32.xlu0 %v10790_v26, %s8632_s12  ;;  %v17042_v26 = vld [vmem:[#allocation70_spill] sm:$0xff] }
 0x428   :  { %17013 = vst [vmem:[#allocation177_spill] sm:$0xff] %v11049_v44  ;;  %2329 = vmatmul.mubr.f32.gmra.mrb[30].mxu1 %v8551_v60  ;;  %v11134_v42 = vsel %vm17043_vm6, %v16992_v12, %v17042_v26 }
 0x429   :  { %3942 = vrot.lane.b32.xlu1 %v16958_v10, %s8632_s12  ;;  %v11055_v3 = vpop.permute.xlu0 %3174  ;;  %2399 = vmatprep.mubr.f32.mxu1 %v16778_v40  ;;  %17044 = vst [vmem:[#allocation113_spill] sm:$0xff] %v11134_v42 }
 0x42a   :  { %17014 = vst [vmem:[#allocation180_spill] sm:$0xff] %v11055_v3 }
 0x42b   :  { %v11058_v43 = vpop.permute.xlu1 %3180  ;;  %3940 = vrot.lane.b32.xlu0 %v10805_v15, %s8632_s12  ;;  %v17037_v15 = vld [vmem:[#allocation95_spill] sm:$0xff] }
 0x42c   :  { %17015 = vst [vmem:[#allocation179_spill] sm:$0xff] %v11058_v43  ;;  %2400 = vmatmul.mubr.f32.vlgmr.msra.gmra.mrb[32].mxu1 %v17016_v20  ;;  %v11091_v20 = vsel %vm17026_vm0, %v8944_v34, %v17025_v2  ;;  %v11120_v10 = vsel %vm17038_vm5, %v9805_v23, %v17037_v15  ;;  %vm17085_vm0 = vcmask 1045509   ;;  %v17134_v43 = vld [vmem:[#allocation45_spill] sm:$0xff] }
 0x42d   :  { %3946 = vrot.lane.b32.xlu1 %v16973_v13, %s8632_s12  ;;  %v11065_v47 = vpop.permute.xlu0 %3178  ;;  %2405 = vmatprep.mubr.f32.mxu1 %v16778_v40  ;;  %17027 = vst [vmem:[#allocation188_spill] sm:$0xff] %v11091_v20  ;;  %17039 = vst [vmem:[#allocation111_spill] sm:$0xff] %v11120_v10  ;;  %v11369_v3 = vrot.slane %v17134_v43, 2 }
 0x42e   :  { %17017 = vst [vmem:[#allocation182_spill] sm:$0xff] %v11065_v47  ;;  %vm17089_vm6 = vmmov %vm17085_vm0 }
 0x42f   :  { %v11068_v25 = vpop.permute.xlu1 %3184  ;;  %3944 = vrot.lane.b32.xlu0 %v10817_v61, %s8632_s12 }
 0x430   :  { %17018 = vst [vmem:[#allocation181_spill] sm:$0xff] %v11068_v25  ;;  %2406 = vmatmul.mubr.f32.gmra.mrb[34].mxu1 %v17019_v45 }
 0x431   :  { %4255 = vrot.lane.b32.xlu1 %v17020_v46, %s8629_s17  ;;  %v11075_v31 = vpop.permute.xlu0 %3182  ;;  %2411 = vmatprep.mubr.f32.mxu1 %v16778_v40 }
 0x432   :  { %17021 = vst [vmem:[#allocation184_spill] sm:$0xff] %v11075_v31  ;;  %v17129_v31 = vld [vmem:[#allocation41_spill] sm:$0xff] }
 0x433   :  { %v11078_v11 = vpop.permute.xlu1 %3196  ;;  %3948 = vrot.lane.b32.xlu0 %v10988_v29, %s8632_s12  ;;  %v17031_v29 = vld [vmem:[#allocation59_spill] sm:$0xff] }
 0x434   :  { %17022 = vst [vmem:[#allocation183_spill] sm:$0xff] %v11078_v11  ;;  %2412 = vmatmul.mubr.f32.gmra.mrb[36].mxu1 %v10819_v58  ;;  %v17029_v58 = vld [vmem:[#allocation91_spill] sm:$0xff]  ;;  %v11106_v61 = vsel %vm17032_vm4, %v9689_v32, %v17031_v29  ;;  %vm17087_vm4 = vmmov %vm17085_vm0 }
 0x435   :  { %4259 = vrot.lane.b32.xlu1 %v17023_v14, %s8629_s17  ;;  %v11085_v33 = vpop.permute.xlu0 %3186  ;;  %2417 = vmatprep.mubr.f32.mxu1 %v16778_v40  ;;  %17033 = vst [vmem:[#allocation108_spill] sm:$0xff] %v11106_v61  ;;  %v17123_v11 = vld [vmem:[#allocation39_spill] sm:$0xff] }
 0x436   :  { %17024 = vst [vmem:[#allocation186_spill] sm:$0xff] %v11085_v33  ;;  %v17120_v33 = vld [vmem:[#allocation93_spill] sm:$0xff] }
 0x437   :  { %v11093_v45 = vpop.permute.xlu1 %3200  ;;  %4257 = vrot.lane.b32.xlu0 %v11091_v20, %s8629_s17 }
 0x438   :  { %17028 = vst [vmem:[#allocation190_spill] sm:$0xff] %v11093_v45  ;;  %2418 = vmatmul.mubr.f32.gmra.mrb[38].mxu1 %v10857_v28  ;;  %v17035_v28 = vld [vmem:[#allocation60_spill] sm:$0xff] }
 0x439   :  { %4263 = vrot.lane.b32.xlu1 %v17029_v58, %s8629_s17  ;;  %v11100_v16 = vpop.permute.xlu0 %3198  ;;  %2423 = vmatprep.mubr.f32.mxu1 %v16778_v40 }
 0x43a   :  { %17030 = vst [vmem:[#allocation103_spill] sm:$0xff] %v11100_v16 }
 0x43b   :  { %v11108_v2 = vpop.permute.xlu1 %3204  ;;  %4261 = vrot.lane.b32.xlu0 %v11106_v61, %s8629_s17 }
 0x43c   :  { %17034 = vst [vmem:[#allocation191_spill] sm:$0xff] %v11108_v2  ;;  %2424 = vmatmul.mubr.f32.gmra.mrb[40].mxu1 %v8545_v52 }
 0x43d   :  { %4267 = vrot.lane.b32.xlu1 %v17035_v28, %s8629_s17  ;;  %v11114_v13 = vpop.permute.xlu0 %3202  ;;  %2429 = vmatprep.mubr.f32.mxu1 %v16778_v40 }
 0x43e   :  { %17036 = vst [vmem:[#allocation26_spill] sm:$0xff] %v11114_v13  ;;  %v17109_v13 = vld [vmem:[#allocation30_spill] sm:$0xff] }
 0x43f   :  { %v11122_v29 = vpop.permute.xlu1 %3208  ;;  %4265 = vrot.lane.b32.xlu0 %v11120_v10, %s8629_s17  ;;  %v11305_v2 = vrot.slane %v17109_v13, 1  ;;  %v17117_v13 = vld [vmem:[#allocation155_spill] sm:$0xff] }
 0x440   :  { %17040 = vst [vmem:[#allocation193_spill] sm:$0xff] %v11122_v29  ;;  %2430 = vmatmul.mubr.f32.gmra.mrb[42].mxu1 %v8547_v19  ;;  %v17104_v29 = vld [vmem:[#allocation42_spill] sm:$0xff]  ;;  %v11324_v45 = vsub.s32 1, %v17117_v13  ;;  %v11357_v25 = vsub.s32 6, %v17117_v13 }
 0x441   :  { %4279 = vrot.lane.b32.xlu1 %v17020_v46, %s8631_s2  ;;  %v11128_v52 = vpop.permute.xlu0 %3206  ;;  %2435 = vmatprep.mubr.f32.mxu1 %v16778_v40  ;;  %17110 = vst [vmem:[#allocation206_spill] sm:$0xff] %v11305_v2 }
 0x442   :  { %17041 = vst [vmem:[#allocation54_spill] sm:$0xff] %v11128_v52  ;;  %17118 = vst [vmem:[#allocation208_spill] sm:$0xff] %v11324_v45 }
 0x443   :  { %v11136_v15 = vpop.permute.xlu1 %3517  ;;  %4269 = vrot.lane.b32.xlu0 %v11134_v42, %s8629_s17  ;;  %17130 = vst [vmem:[#allocation215_spill] sm:$0xff] %v11357_v25 }
 0x444   :  { %17045 = vst [vmem:[#allocation192_spill] sm:$0xff] %v11136_v15  ;;  %2436 = vmatmul.mubr.f32.gmra.mrb[44].mxu1 %v8549_v36 }
 0x445   :  { %4283 = vrot.lane.b32.xlu1 %v17023_v14, %s8631_s2  ;;  %v11142_v19 = vpop.permute.xlu0 %3210  ;;  %2441 = vmatprep.mubr.f32.mxu1 %v16778_v40 }
 0x446   :  { %17046 = vst [vmem:[#allocation94_spill] sm:$0xff] %v11142_v19  ;;  %v17091_v19 = vld [vmem:[#allocation83_spill] sm:$0xff] }
 0x447   :  { %v11145_v59 = vpop.permute.xlu1 %3521  ;;  %4281 = vrot.lane.b32.xlu0 %v11091_v20, %s8631_s2 }
 0x448   :  { %17047 = vst [vmem:[#allocation115_spill] sm:$0xff] %v11145_v59  ;;  %2442 = vmatmul.mubr.f32.gmra.mrb[46].mxu1 %v8551_v60 }
 0x449   :  { %4287 = vrot.lane.b32.xlu1 %v17029_v58, %s8631_s2  ;;  %v11151_v26 = vpop.permute.xlu0 %3519 }
 0x44a   :  { %17048 = vst [vmem:[#allocation195_spill] sm:$0xff] %v11151_v26  ;;  %v17076_v26 = vld [vmem:[#allocation34_spill] sm:$0xff] }
 0x44b   :  { %v11153_v48 = vpop.permute.xlu1 %3525  ;;  %4285 = vrot.lane.b32.xlu0 %v11106_v61, %s8631_s2 }
 0x44c   :  { %17049 = vst [vmem:[#allocation109_spill] sm:$0xff] %v11153_v48 }
 0x44d   :  { %4291 = vrot.lane.b32.xlu1 %v17035_v28, %s8631_s2  ;;  %v11159_v40 = vpop.permute.xlu0 %3523 }
 0x44e   :  { %17050 = vst [vmem:[#allocation112_spill] sm:$0xff] %v11159_v40 }
 0x44f   :  { %v11161_v36 = vpop.permute.xlu1 %3529  ;;  %4289 = vrot.lane.b32.xlu0 %v11120_v10, %s8631_s2 }
 0x450   :  { %17051 = vst [vmem:[#allocation194_spill] sm:$0xff] %v11161_v36 }
 0x451   :  { %4303 = vrot.lane.b32.xlu1 %v17020_v46, %s8632_s12  ;;  %v11167_v60 = vpop.permute.xlu0 %3527 }
 0x452   :  { %17052 = vst [vmem:[#allocation114_spill] sm:$0xff] %v11167_v60  ;;  %v17057_v60 = vld [vmem:[#allocation12_spill] sm:$0xff] }
 0x453   :  { %v11169_v51 = vpop.permute.xlu1 %3541  ;;  %4293 = vrot.lane.b32.xlu0 %v11134_v42, %s8631_s2 }
 0x454   :  { %17053 = vst [vmem:[#allocation196_spill] sm:$0xff] %v11169_v51  ;;  %v11186_v51 = vrot.slane %v17057_v60, 7 }
 0x455   :  { %4307 = vrot.lane.b32.xlu1 %v17023_v14, %s8632_s12  ;;  %v11175_v39 = vpop.permute.xlu0 %3531  ;;  %v17059_v14 = vld [vmem:[#allocation15_spill] sm:$0xff] }
 0x456   :  { %17054 = vst [vmem:[#allocation116_spill] sm:$0xff] %v11175_v39  ;;  %v11193_v39 = vrot.slane %v17059_v14, 6  ;;  %v17065_v14 = vld [vmem:[#allocation17_spill] sm:$0xff] }
 0x457   :  { %v11177_v27 = vpop.permute.xlu1 %3545  ;;  %4305 = vrot.lane.b32.xlu0 %v11091_v20, %s8632_s12 }
 0x458   :  { %17055 = vst [vmem:[#allocation79_spill] sm:$0xff] %v11177_v27  ;;  %v17061_v27 = vld [vmem:[#allocation11_spill] sm:$0xff] }
 0x459   :  { %4311 = vrot.lane.b32.xlu1 %v17029_v58, %s8632_s12  ;;  %v11183_v46 = vpop.permute.xlu0 %3543  ;;  %v5363_v58 = vsel %vm17062_vm7, %v11186_v51, %v17061_v27  ;;  %v5598_v60 = vsel %vm17063_vm1, %v11186_v51, %v17061_v27  ;;  %v5966_v40 = vsel %vm16916_vm2, %v11186_v51, %v17061_v27  ;;  %vm17092_vm7 = vmmov %vm17068_vm3  ;;  %vm17096_vm1 = vcmask 1046534  }
 0x45a   :  { %17056 = vst [vmem:[#allocation132_spill] sm:$0xff] %v11183_v46  ;;  %v17066_v46 = vld [vmem:[#allocation13_spill] sm:$0xff]  ;;  %v5967_v1 = vsel %vm17075_vm11, %v11193_v39, %v5966_v40  ;;  %v17084_v40 = vld [vmem:[#allocation28_spill] sm:$0xff]  ;;  %vm17100_vm2 = vmmov %vm17085_vm0 }
 0x45b   :  { %v11188_v36 = vpop.permute.xlu1 %3549  ;;  %4309 = vrot.lane.b32.xlu0 %v11106_v61, %s8632_s12  ;;  %v11210_v61 = vrot.slane %v17065_v14, 5  ;;  %v5599_v14 = vsel %vm17072_vm10, %v11193_v39, %v5598_v60  ;;  %v11256_v59 = vsel %vm17085_vm0, %v8944_v34, %v17084_v40  ;;  %v17094_v40 = vld [vmem:[#allocation23_spill] sm:$0xff]  ;;  %vm17105_vm10 = vmmov %vm17092_vm7 }
 0x45c   :  { %17058 = vst [vmem:[#allocation117_spill] sm:$0xff] %v11188_v36  ;;  %17086 = vst [vmem:[#allocation200_spill] sm:$0xff] %v11256_v59  ;;  %v11274_v15 = vrot.slane %v17094_v40, 2 }
 0x45d   :  { %4315 = vrot.lane.b32.xlu1 %v17035_v28, %s8632_s12  ;;  %v11197_v20 = vpop.permute.xlu0 %3547  ;;  %v17067_v28 = vld [vmem:[#allocation14_spill] sm:$0xff]  ;;  %vm17107_vm11 = vmmov %vm17092_vm7 }
 0x45e   :  { %17060 = vst [vmem:[#allocation197_spill] sm:$0xff] %v11197_v20  ;;  %v11215_v20 = vsel %vm17068_vm3, %v17067_v28, %v17066_v46  ;;  %vm17098_vm3 = vmmov %vm17085_vm0 }
 0x45f   :  { %v11205_v36 = vpop.permute.xlu1 %3553  ;;  %4313 = vrot.lane.b32.xlu0 %v11120_v10, %s8632_s12  ;;  %17069 = vst [vmem:[#allocation118_spill] sm:$0xff] %v11215_v20  ;;  %v5365_v10 = vsel %vm17071_vm9, %v11193_v39, %v5363_v58  ;;  %vm17101_vm9 = vmmov %vm17096_vm1 }
 0x460   :  { %17064 = vst [vmem:[#allocation217_spill] sm:$0xff] %v11205_v36  ;;  %v17073_v36 = vld [vmem:[#allocation19_spill] sm:$0xff]  ;;  %v5367_v58 = vsel %vm17080_vm14, %v11210_v61, %v5365_v10  ;;  %vm17114_vm14 = vmmov %vm17092_vm7 }
 0x461   :  { %4624 = vrot.lane.b32.xlu1 %v11215_v20, %s8629_s17  ;;  %v11222_v62 = vpop.permute.xlu0 %3551  ;;  %v11229_v48 = vrot.slane %v17073_v36, 4  ;;  %v5600_v36 = vsel %vm17081_vm15, %v11210_v61, %v5599_v14  ;;  %vm17121_vm15 = vmmov %vm17085_vm0  ;;  %vm17137_vm0 = vcmask 1041409  }
 0x462   :  { %17070 = vst [vmem:[#allocation134_spill] sm:$0xff] %v11222_v62  ;;  %v11240_v62 = vsel %vm17078_vm13, %v17077_v18, %v17076_v26  ;;  %v5968_v18 = vsel %vm17087_vm4, %v11210_v61, %v5967_v1  ;;  %vm17113_vm13 = vmmov %vm17096_vm1 }
 0x463   :  { %v11231_v28 = vpop.permute.xlu1 %3565  ;;  %4317 = vrot.lane.b32.xlu0 %v11134_v42, %s8632_s12  ;;  %17079 = vst [vmem:[#allocation198_spill] sm:$0xff] %v11240_v62  ;;  %v17083_v42 = vld [vmem:[#allocation21_spill] sm:$0xff]  ;;  %v5369_v14 = vsel %vm17038_vm5, %v11229_v48, %v5367_v58  ;;  %vm17142_vm4 = vmmov %vm17100_vm2  ;;  %vm17144_vm5 = vcmask 1042434  }
 0x464   :  { %17074 = vst [vmem:[#allocation199_spill] sm:$0xff] %v11231_v28  ;;  %v11251_v28 = vrot.slane %v17083_v42, 3  ;;  %v5601_v42 = vsel %vm17089_vm6, %v11229_v48, %v5600_v36  ;;  %v17097_v58 = vld [vmem:[#allocation61_spill] sm:$0xff]  ;;  %vm17149_vm6 = vmmov %vm17096_vm1 }
 0x465   :  { %4628 = vrot.lane.b32.xlu1 %v11240_v62, %s8629_s17  ;;  %v11248_v60 = vpop.permute.xlu0 %3555  ;;  %v11285_v36 = vsel %vm17098_vm3, %v9689_v32, %v17097_v58  ;;  %vm17155_vm3 = vcmask 1044484  }
 0x466   :  { %17082 = vst [vmem:[#allocation201_spill] sm:$0xff] %v11248_v60  ;;  %v17090_v60 = vld [vmem:[#allocation73_spill] sm:$0xff]  ;;  %17099 = vst [vmem:[#allocation205_spill] sm:$0xff] %v11285_v36  ;;  %v5602_v40 = vsel %vm17101_vm9, %v11251_v28, %v5601_v42 }
 0x467   :  { %v11260_v10 = vpop.permute.xlu1 %3569  ;;  %4626 = vrot.lane.b32.xlu0 %v11256_v59, %s8629_s17  ;;  %v11271_v9 = vsel %vm17092_vm7, %v17091_v19, %v17090_v60  ;;  %v5371_v19 = vsel %vm17100_vm2, %v11251_v28, %v5369_v14  ;;  %v17111_v14 = vld [vmem:[#allocation33_spill] sm:$0xff]  ;;  %vm17151_vm7 = vcmask 1043459   ;;  %vm17157_vm2 = vmmov %vm17137_vm0 }
 0x468   :  { %17088 = vst [vmem:[#allocation203_spill] sm:$0xff] %v11260_v10  ;;  %17093 = vst [vmem:[#allocation85_spill] sm:$0xff] %v11271_v9  ;;  %v5969_v10 = vsel %vm17096_vm1, %v11229_v48, %v5968_v18  ;;  %v11308_v16 = vrot.slane %v17111_v14, 7  ;;  %v11327_v14 = vsub.s32 2, %v17117_v13 }
 0x469   :  { %4632 = vrot.lane.b32.xlu1 %v11271_v9, %s8629_s17  ;;  %v11278_v1 = vpop.permute.xlu0 %3567  ;;  %v11302_v58 = vsel %vm17107_vm11, %v11251_v28, %v5969_v10  ;;  %v17116_v10 = vld [vmem:[#allocation36_spill] sm:$0xff]  ;;  %vm17153_vm1 = vmmov %vm17105_vm10 }
 0x46a   :  { %17095 = vst [vmem:[#allocation202_spill] sm:$0xff] %v11278_v1  ;;  %v17103_v1 = vld [vmem:[#allocation38_spill] sm:$0xff]  ;;  %17108 = vst [vmem:[#allocation207_spill] sm:$0xff] %v11302_v58  ;;  %v11321_v58 = vrot.slane %v17116_v10, 6  ;;  %v11341_v10 = vsub.s32 4, %v17117_v13 }
 0x46b   :  { %v11291_v52 = vpop.permute.xlu1 %3573  ;;  %4630 = vrot.lane.b32.xlu0 %v11285_v36, %s8629_s17  ;;  %v11298_v18 = vsel %vm17105_vm10, %v17104_v29, %v17103_v1  ;;  %v11318_v29 = vsel %vm17114_vm14, %v11274_v15, %v5602_v40  ;;  %17119 = vst [vmem:[#allocation211_spill] sm:$0xff] %v11327_v14  ;;  %v11338_v40 = vsub.s32 3, %v17117_v13  ;;  %v17128_v14 = vld [vmem:[#allocation40_spill] sm:$0xff]  ;;  %vm17160_vm9 = vmmov %vm17149_vm6 }
 0x46c   :  { %17102 = vst [vmem:[#allocation119_spill] sm:$0xff] %v11291_v52  ;;  %17106 = vst [vmem:[#allocation204_spill] sm:$0xff] %v11298_v18  ;;  %v5373_v52 = vsel %vm17113_vm13, %v11274_v15, %v5371_v19  ;;  %v11335_v19 = vrot.slane %v17123_v11, 5  ;;  %v11354_v11 = vrot.slane %v17129_v31, 4 }
 0x46d   :  { %4636 = vrot.lane.b32.xlu1 %v11298_v18, %s8629_s17  ;;  %v11312_v42 = vpop.permute.xlu0 %3571  ;;  %17115 = vst [vmem:[#allocation120_spill] sm:$0xff] %v11318_v29  ;;  %17124 = vst [vmem:[#allocation210_spill] sm:$0xff] %v11338_v40  ;;  %v11344_v29 = vsub.s32 5, %v17117_v13  ;;  %v11360_v40 = vsub.s32 7, %v17117_v13  ;;  %v17138_v13 = vld [vmem:[#allocation46_spill] sm:$0xff]  ;;  %v11413_v57 = vsel %vm17153_vm1, %v11305_v2, %v5373_v52 }
 0x46e   :  { %17112 = vst [vmem:[#allocation209_spill] sm:$0xff] %v11312_v42  ;;  %v11332_v42 = vsel %vm17121_vm15, %v9805_v23, %v17120_v33  ;;  %17125 = vst [vmem:[#allocation213_spill] sm:$0xff] %v11341_v10  ;;  %v11351_v33 = vrot.slane %v17128_v14, 7  ;;  %v17132_v10 = vld [vmem:[#allocation43_spill] sm:$0xff]  ;;  %v17136_v14 = vld [vmem:[#allocation32_spill] sm:$0xff]  ;;  %v11379_v44 = vrot.slane %v17138_v13, 1 }
 0x46f   :  { %17122 = vst [vmem:[#allocation122_spill] sm:$0xff] %v11332_v42  ;;  %17126 = vst [vmem:[#allocation125_spill] sm:$0xff] %v11344_v29  ;;  %v11346_v45 = vpop.permute.xlu1 %3577  ;;  %4634 = vrot.lane.b32.xlu0 %v11332_v42, %s8629_s17  ;;  %v11363_v47 = vrot.slane %v17132_v10, 3  ;;  %v17133_v29 = vld [vmem:[#allocation44_spill] sm:$0xff]  ;;  %v5377_v25 = vsel %vm17137_vm0, %v11308_v16, %v17136_v14  ;;  %v17140_v10 = vld [vmem:[#allocation47_spill] sm:$0xff] }
 0x470   :  { %17127 = vst [vmem:[#allocation212_spill] sm:$0xff] %v11346_v45  ;;  %17131 = vst [vmem:[#allocation219_spill] sm:$0xff] %v11360_v40  ;;  %v11366_v45 = vrot.slane %v17133_v29, 6  ;;  %v11382_v6 = vrot.slane %v17140_v10, 5  ;;  %v17141_v29 = vld [vmem:[#allocation71_spill] sm:$0xff]  ;;  %v5379_v7 = vsel %vm17144_vm5, %v11321_v58, %v5377_v25  ;;  %v17148_v13 = vld [vmem:[#allocation29_spill] sm:$0xff] }
 0x471   :  { %4648 = vrot.lane.b32.xlu1 %v11215_v20, %s8631_s2  ;;  %v11373_v31 = vpop.permute.xlu0 %3575  ;;  %17139 = vst [vmem:[#allocation129_spill] sm:$0xff] %v11379_v44  ;;  %v11387_v43 = vsel %vm17142_vm4, %v16992_v12, %v17141_v29  ;;  %v11404_v10 = vsel %vm17149_vm6, %v8944_v34, %v17148_v13  ;;  %v5381_v29 = vsel %vm17151_vm7, %v11335_v19, %v5379_v7  ;;  %v17152_v25 = vld [vmem:[#allocation63_spill] sm:$0xff]  ;;  %17154 = vst [vmem:[#allocation216_spill] sm:$0xff] %v11413_v57  ;;  %v17159_v7 = vld [vmem:[#allocation64_spill] sm:$0xff] }
 0x472   :  { %17135 = vst [vmem:[#allocation123_spill] sm:$0xff] %v11373_v31  ;;  %17143 = vst [vmem:[#allocation214_spill] sm:$0xff] %v11387_v43  ;;  %v11392_v31 = vrot.slane %v17145_v21, 4  ;;  %v11409_v38 = vrot.slane %v17152_v25, 2  ;;  %v5383_v21 = vsel %vm17155_vm3, %v11354_v11, %v5381_v29  ;;  %v11427_v25 = vsel %vm17160_vm9, %v9689_v32, %v17159_v7 }
 0x473   :  { %v11397_v40 = vpop.permute.xlu1 %3886  ;;  %4638 = vrot.lane.b32.xlu0 %v11387_v43, %s8629_s17  ;;  %17150 = vst [vmem:[#allocation133_spill] sm:$0xff] %v11404_v10  ;;  %17161 = vst [vmem:[#allocation130_spill] sm:$0xff] %v11427_v25 }
 0x474   :  { %17147 = vst [vmem:[#allocation126_spill] sm:$0xff] %v11397_v40  ;;  %v17156_v40 = vld [vmem:[#allocation37_spill] sm:$0xff]  ;;  %vm17162_vm10 = vmmov %vm17142_vm4 }
 0x475   :  { %v5405_v8 = vsel %vm17157_vm2, %v11351_v33, %v17156_v40  ;;  %4652 = vrot.lane.b32.xlu1 %v11240_v62, %s8631_s2  ;;  %v11422_v13 = vpop.permute.xlu0 %3579  ;;  %v5385_v52 = vsel %vm17162_vm10, %v11363_v47, %v5383_v21  ;;  %vm17163_vm11 = vmmov %vm17144_vm5  ;;  %v17170_v21 = vld [vmem:[#allocation77_spill] sm:$0xff] }
 0x476   :  { %17158 = vst [vmem:[#allocation137_spill] sm:$0xff] %v11422_v13  ;;  %v5407_v29 = vsel %vm17163_vm11, %v11366_v45, %v5405_v8  ;;  %vm17164_vm13 = vmmov %vm17144_vm5  ;;  %v11440_v13 = vrot.slane %v17167_v41, 7  ;;  %v11447_v35 = vrot.slane %v17170_v21, 6  ;;  %v17171_v8 = vld [vmem:[#allocation80_spill] sm:$0xff] }
 0x477   :  { %v5604_v57 = vsel %vm17164_vm13, %v11308_v16, %v17136_v14  ;;  %vm17168_vm14 = vmmov %vm17149_vm6  ;;  %v11450_v56 = vrot.slane %v17171_v8, 5  ;;  %v11458_v41 = vpop.permute.xlu1 %3890  ;;  %4650 = vrot.lane.b32.xlu0 %v11256_v59, %s8631_s2 }
 0x478   :  { %v5387_v7 = vsel %vm17168_vm14, %v11369_v3, %v5385_v52  ;;  %vm17169_vm15 = vmmov %vm17151_vm7  ;;  %17174 = vst [vmem:[#allocation68_spill] sm:$0xff] %v11458_v41  ;;  %v17175_v52 = vld [vmem:[#allocation84_spill] sm:$0xff] }
 0x479   :  { %v5605_v37 = vsel %vm17169_vm15, %v11321_v58, %v5604_v57  ;;  %v11463_v17 = vrot.slane %v17175_v52, 2  ;;  %v17176_v57 = vld [vmem:[#allocation86_spill] sm:$0xff]  ;;  %vm17179_vm0 = vmmov %vm17149_vm6  ;;  %4656 = vrot.lane.b32.xlu1 %v11271_v9, %s8631_s2  ;;  %v11479_v5 = vpop.permute.xlu0 %3888 }
 0x47a   :  { %v11466_v21 = vrot.slane %v17176_v57, 1  ;;  %v11471_v8 = vsel %vm17179_vm0, %v16992_v12, %v17178_v63  ;;  %vm17181_vm4 = vmmov %vm17153_vm1  ;;  %17183 = vst [vmem:[#allocation149_spill] sm:$0xff] %v11479_v5 }
 0x47b   :  { %17180 = vst [vmem:[#allocation145_spill] sm:$0xff] %v11471_v8  ;;  %v11475_v22 = vsel %vm17181_vm4, %v11379_v44, %v5387_v7  ;;  %vm17184_vm5 = vmmov %vm17151_vm7  ;;  %v11500_v49 = vpop.permute.xlu1 %3894  ;;  %4654 = vrot.lane.b32.xlu0 %v11285_v36, %s8631_s2 }
 0x47c   :  { %17177 = vst [vmem:[#allocation135_spill] sm:$0xff] %v11466_v21  ;;  %17182 = vst [vmem:[#allocation138_spill] sm:$0xff] %v11475_v22  ;;  %v5409_v52 = vsel %vm17184_vm5, %v11382_v6, %v5407_v29  ;;  %v17188_v22 = vld [vmem:[#allocation69_spill] sm:$0xff] }
 0x47d   :  { %vm17185_vm6 = vmmov %vm17155_vm3  ;;  %17193 = vst [vmem:[#allocation142_spill] sm:$0xff] %v11500_v49  ;;  %4660 = vrot.lane.b32.xlu1 %v11298_v18, %s8631_s2 }
 0x47e   :  { %v5606_v57 = vsel %vm17185_vm6, %v11335_v19, %v5605_v37  ;;  %vm17186_vm7 = vmmov %vm17163_vm11 }
 0x47f   :  { %v5616_v63 = vsel %vm17186_vm7, %v11351_v33, %v17156_v40  ;;  %vm17187_vm1 = vmmov %vm17155_vm3  ;;  %4658 = vrot.lane.b32.xlu0 %v11332_v42, %s8631_s2 }
 0x480   :  { %v6334_v7 = vsel %vm17187_vm1, %v11186_v51, %v17061_v27  ;;  %vm17189_vm3 = vmmov %vm17157_vm2 }
 0x481   :  { %v5391_v41 = vsel %vm17189_vm3, %v11440_v13, %v17188_v22  ;;  %vm17190_vm2 = vmmov %vm17187_vm1  ;;  %4672 = vrot.lane.b32.xlu1 %v11215_v20, %s8632_s12 }
 0x482   :  { %v5411_v5 = vsel %vm17190_vm2, %v11392_v31, %v5409_v52  ;;  %vm17191_vm9 = vmmov %vm17162_vm10 }
 0x483   :  { %v5607_v29 = vsel %vm17191_vm9, %v11354_v11, %v5606_v57  ;;  %vm17192_vm10 = vmmov %vm17184_vm5  ;;  %4662 = vrot.lane.b32.xlu0 %v11387_v43, %s8631_s2 }
 0x484   :  { %v5617_v37 = vsel %vm17192_vm10, %v11366_v45, %v5616_v63  ;;  %vm17194_vm11 = vmmov %vm17191_vm9 }
 0x485   :  { %v5413_v50 = vsel %vm17194_vm11, %v11395_v55, %v5411_v5  ;;  %vm17195_vm13 = vmmov %vm17179_vm0  ;;  %vm17210_vm11 = vcmask 1041409   ;;  %4676 = vrot.lane.b32.xlu1 %v11240_v62, %s8632_s12 }
 0x486   :  { %v5608_v12 = vsel %vm17195_vm13, %v11363_v47, %v5607_v29  ;;  %vm17196_vm14 = vmmov %vm17187_vm1  ;;  %v5415_v63 = vsel %vm17179_vm0, %v11409_v38, %v5413_v50  ;;  %v11523_v29 = vpop.permute.xlu0 %3892 }
 0x487   :  { %v5618_v52 = vsel %vm17196_vm14, %v11382_v6, %v5617_v37  ;;  %vm17197_vm15 = vmmov %vm17184_vm5  ;;  %17201 = vst [vmem:[#allocation146_spill] sm:$0xff] %v11523_v29  ;;  %v5393_v37 = vsel %vm17186_vm7, %v11447_v35, %v5391_v41  ;;  %v11546_v41 = vsel %vm17210_vm11, %v11305_v2, %v11274_v15  ;;  %4674 = vrot.lane.b32.xlu0 %v11256_v59, %s8632_s12  ;;  %v17276_v59 = vld [vmem:[#allocation92_spill] sm:$0xff] }
 0x488   :  { %v5972_v57 = vsel %vm17197_vm15, %v11308_v16, %v17136_v14  ;;  %vm17198_vm4 = vmmov %vm17191_vm9  ;;  %17211 = vst [vmem:[#allocation140_spill] sm:$0xff] %v11546_v41 }
 0x489   :  { %v5619_v49 = vsel %vm17198_vm4, %v11392_v31, %v5618_v52  ;;  %vm17199_vm5 = vmmov %vm17187_vm1  ;;  %vm17202_vm1 = vcmask 1047559   ;;  %4680 = vrot.lane.b32.xlu1 %v11271_v9, %s8632_s12 }
 0x48a   :  { %v5973_v30 = vsel %vm17199_vm5, %v11321_v58, %v5972_v57  ;;  %vm17200_vm6 = vmmov %vm17198_vm4  ;;  %v11529_v50 = vsel %vm17202_vm1, %v11437_v54, %v5415_v63  ;;  %v11551_v63 = vpop.permute.xlu1 %3898 }
 0x48b   :  { %v6335_v5 = vsel %vm17200_vm6, %v11193_v39, %v6334_v7  ;;  %17203 = vst [vmem:[#allocation150_spill] sm:$0xff] %v11529_v50  ;;  %vm17204_vm3 = vmmov %vm17202_vm1  ;;  %4678 = vrot.lane.b32.xlu0 %v11285_v36, %s8632_s12 }
 0x48c   :  { %v11533_v52 = vsel %vm17204_vm3, %v11369_v3, %v5608_v12  ;;  %vm17206_vm2 = vmmov %vm17179_vm0  ;;  %17213 = vst [vmem:[#allocation27_spill] sm:$0xff] %v11551_v63 }
 0x48d   :  { %17205 = vst [vmem:[#allocation154_spill] sm:$0xff] %v11533_v52  ;;  %v5620_v57 = vsel %vm17206_vm2, %v11395_v55, %v5619_v49  ;;  %vm17207_vm9 = vmmov %vm17202_vm1  ;;  %4684 = vrot.lane.b32.xlu1 %v11298_v18, %s8632_s12  ;;  %v17304_v18 = vld [vmem:[#allocation102_spill] sm:$0xff] }
 0x48e   :  { %v11539_v7 = vsel %vm17207_vm9, %v11409_v38, %v5620_v57  ;;  %vm17209_vm10 = vmmov %vm17198_vm4 }
 0x48f   :  { %17208 = vst [vmem:[#allocation143_spill] sm:$0xff] %v11539_v7  ;;  %v5974_v29 = vsel %vm17209_vm10, %v11335_v19, %v5973_v30  ;;  %vm17212_vm13 = vmmov %vm17197_vm15  ;;  %4682 = vrot.lane.b32.xlu0 %v11332_v42, %s8632_s12 }
 0x490   :  { %v5984_v12 = vsel %vm17212_vm13, %v11351_v33, %v17156_v40  ;;  %vm17214_vm14 = vmmov %vm17179_vm0 }
 0x491   :  { %v5975_v49 = vsel %vm17214_vm14, %v11354_v11, %v5974_v29  ;;  %vm17215_vm15 = vmmov %vm17210_vm11  ;;  %4993 = vrot.lane.b32.xlu1 %v17066_v46, %s8629_s17 }
 0x492   :  { %v11560_v30 = vsel %vm17215_vm15, %v11379_v44, %v11369_v3  ;;  %vm17217_vm0 = vmmov %vm17199_vm5 }
 0x493   :  { %17216 = vst [vmem:[#allocation59_spill] sm:$0xff] %v11560_v30  ;;  %v5985_v57 = vsel %vm17217_vm0, %v11366_v45, %v5984_v12  ;;  %vm17218_vm4 = vmmov %vm17206_vm2  ;;  %v11578_v12 = vpop.permute.xlu0 %3896  ;;  %4686 = vrot.lane.b32.xlu0 %v11387_v43, %s8632_s12  ;;  %v17537_v43 = vld [vmem:[#allocation25_spill] sm:$0xff] }
 0x494   :  { %v6336_v41 = vsel %vm17218_vm4, %v11210_v61, %v6335_v5  ;;  %vm17219_vm5 = vmmov %vm17212_vm13  ;;  %17223 = vst [vmem:[#allocation95_spill] sm:$0xff] %v11578_v12  ;;  %v11582_v5 = vsel %vm17204_vm3, %v11363_v47, %v5975_v49  ;;  %v11607_v12 = vpop.permute.xlu1 %3910 }
 0x495   :  { %v5395_v7 = vsel %vm17219_vm5, %v11450_v56, %v5393_v37  ;;  %vm17220_vm6 = vmmov %vm17186_vm7  ;;  %17224 = vst [vmem:[#allocation70_spill] sm:$0xff] %v11582_v5  ;;  %4997 = vrot.lane.b32.xlu1 %v17076_v26, %s8629_s17 }
 0x496   :  { %v5610_v52 = vsel %vm17220_vm6, %v11440_v13, %v17188_v22  ;;  %vm17221_vm7 = vmmov %vm17209_vm10  ;;  %17234 = vst [vmem:[#allocation14_spill] sm:$0xff] %v11607_v12 }
 0x497   :  { %v5986_v29 = vsel %vm17221_vm7, %v11382_v6, %v5985_v57  ;;  %vm17222_vm1 = vmmov %vm17210_vm11  ;;  %4995 = vrot.lane.b32.xlu0 %v11404_v10, %s8629_s17 }
 0x498   :  { %v6338_v30 = vsel %vm17222_vm1, %v11274_v15, %v11251_v28  ;;  %v5987_v37 = vsel %vm17206_vm2, %v11392_v31, %v5986_v29  ;;  %vm17225_vm9 = vmmov %vm17217_vm0 }
 0x499   :  { %v6340_v57 = vsel %vm17225_vm9, %v11308_v16, %v17136_v14  ;;  %vm17226_vm10 = vmmov %vm17221_vm7  ;;  %5001 = vrot.lane.b32.xlu1 %v17090_v60, %s8629_s17 }
 0x49a   :  { %v6702_v50 = vsel %vm17226_vm10, %v11186_v51, %v17061_v27  ;;  %vm17227_vm11 = vmmov %vm17204_vm3 }
 0x49b   :  { %v11594_v20 = vsel %vm17227_vm11, %v11395_v55, %v5987_v37  ;;  %vm17229_vm13 = vmmov %vm17222_vm1  ;;  %v5397_v37 = vsel %vm17217_vm0, %v11453_v24, %v5395_v7  ;;  %4999 = vrot.lane.b32.xlu0 %v11427_v25, %s8629_s17 }
 0x49c   :  { %17228 = vst [vmem:[#allocation12_spill] sm:$0xff] %v11594_v20  ;;  %v11599_v49 = vsel %vm17229_vm13, %v11437_v54, %v11409_v38  ;;  %vm17231_vm14 = vmmov %vm17204_vm3 }
 0x49d   :  { %17230 = vst [vmem:[#allocation15_spill] sm:$0xff] %v11599_v49  ;;  %v11603_v29 = vsel %vm17231_vm14, %v11229_v48, %v6336_v41  ;;  %vm17233_vm15 = vmmov %vm17221_vm7  ;;  %v11619_v41 = vsel %vm17220_vm6, %v11305_v2, %v6338_v30  ;;  %v11634_v30 = vpop.permute.xlu0 %3900  ;;  %5005 = vrot.lane.b32.xlu1 %v17103_v1, %s8629_s17 }
 0x49e   :  { %17232 = vst [vmem:[#allocation17_spill] sm:$0xff] %v11603_v29  ;;  %v6341_v5 = vsel %vm17233_vm15, %v11321_v58, %v6340_v57  ;;  %vm17235_vm4 = vmmov %vm17219_vm5 }
 0x49f   :  { %v5611_v20 = vsel %vm17235_vm4, %v11447_v35, %v5610_v52  ;;  %vm17236_vm5 = vmmov %vm17206_vm2  ;;  %17237 = vst [vmem:[#allocation19_spill] sm:$0xff] %v11619_v41  ;;  %v7070_v52 = vsel %vm17206_vm2, %v11186_v51, %v17061_v27 }
 0x4a0   :  { %v6342_v49 = vsel %vm17236_vm5, %v11335_v19, %v6341_v5  ;;  %vm17238_vm7 = vmmov %vm17222_vm1  ;;  %17241 = vst [vmem:[#allocation35_spill] sm:$0xff] %v11634_v30 }
 0x4a1   :  { %v6344_v57 = vsel %vm17238_vm7, %v11369_v3, %v11363_v47  ;;  %vm17239_vm1 = vmmov %vm17217_vm0  ;;  %5017 = vrot.lane.b32.xlu1 %v17066_v46, %s8631_s2 }
 0x4a2   :  { %v6352_v29 = vsel %vm17239_vm1, %v11351_v33, %v17156_v40  ;;  %vm17240_vm3 = vmmov %vm17206_vm2 }
 0x4a3   :  { %v6703_v7 = vsel %vm17240_vm3, %v11193_v39, %v6702_v50  ;;  %vm17242_vm9 = vmmov %vm17235_vm4 }
 0x4a4   :  { %v5978_v5 = vsel %vm17242_vm9, %v11440_v13, %v17188_v22  ;;  %vm17243_vm10 = vmmov %vm17227_vm11  ;;  %vm17265_vm9 = vcmask 1041409  }
 0x4a5   :  { %v11641_v41 = vsel %vm17243_vm10, %v11354_v11, %v6342_v49  ;;  %vm17245_vm11 = vmmov %vm17220_vm6  ;;  %5021 = vrot.lane.b32.xlu1 %v17076_v26, %s8631_s2 }
 0x4a6   :  { %17244 = vst [vmem:[#allocation21_spill] sm:$0xff] %v11641_v41  ;;  %v11645_v50 = vsel %vm17245_vm11, %v11379_v44, %v6344_v57  ;;  %vm17247_vm13 = vmmov %vm17233_vm15  ;;  %v11658_v41 = vpop.permute.xlu1 %3914  ;;  %v17260_v57 = vld [vmem:[#allocation97_spill] sm:$0xff] }
 0x4a7   :  { %17246 = vst [vmem:[#allocation28_spill] sm:$0xff] %v11645_v50  ;;  %v6353_v12 = vsel %vm17247_vm13, %v11366_v45, %v6352_v29  ;;  %vm17248_vm14 = vmmov %vm17247_vm13  ;;  %v17261_v50 = vld [vmem:[#allocation24_spill] sm:$0xff] }
 0x4a8   :  { %v5399_v62 = vsel %vm17248_vm14, %v11456_v53, %v5397_v37  ;;  %vm17249_vm15 = vmmov %vm17217_vm0  ;;  %17252 = vst [vmem:[#allocation83_spill] sm:$0xff] %v11658_v41  ;;  %v11679_v41 = vsel %vm1611_vm12, %v17261_v50, %v17260_v57  ;;  %v11695_v50 = vpop.permute.xlu0 %3912  ;;  %vm17273_vm14 = vcmask 523264  }
 0x4a9   :  { %v5612_v30 = vsel %vm17249_vm15, %v11450_v56, %v5611_v20  ;;  %vm17250_vm0 = vmmov %vm17206_vm2  ;;  %5025 = vrot.lane.b32.xlu1 %v17090_v60, %s8631_s2 }
 0x4aa   :  { %v6354_v63 = vsel %vm17250_vm0, %v11382_v6, %v6353_v12  ;;  %vm17251_vm4 = vmmov %vm17247_vm13 }
 0x4ab   :  { %v6708_v49 = vsel %vm17251_vm4, %v11308_v16, %v17136_v14  ;;  %vm17253_vm5 = vmmov %vm17243_vm10 }
 0x4ac   :  { %v11664_v29 = vsel %vm17253_vm5, %v11392_v31, %v6354_v63  ;;  %vm17255_vm6 = vmmov %vm17253_vm5 }
 0x4ad   :  { %17254 = vst [vmem:[#allocation23_spill] sm:$0xff] %v11664_v29  ;;  %v11668_v37 = vsel %vm17255_vm6, %v11210_v61, %v6703_v7  ;;  %vm17257_vm7 = vmmov %vm17250_vm0  ;;  %v6705_v7 = vsel %vm17265_vm9, %v11251_v28, %v11229_v48  ;;  %vm17280_vm6 = vcmask 1042434   ;;  %5029 = vrot.lane.b32.xlu1 %v17103_v1, %s8631_s2 }
 0x4ae   :  { %17256 = vst [vmem:[#allocation61_spill] sm:$0xff] %v11668_v37  ;;  %v6709_v20 = vsel %vm17257_vm7, %v11321_v58, %v6708_v49  ;;  %vm17258_vm1 = vmmov %vm17253_vm5  ;;  %v17266_v49 = vld [vmem:[#allocation98_spill] sm:$0xff]  ;;  %v17267_v37 = vld [vmem:[#allocation31_spill] sm:$0xff] }
 0x4af   :  { %v11674_v12 = vsel %vm17258_vm1, %v11193_v39, %v7070_v52  ;;  %vm17262_vm3 = vmmov %vm17249_vm15  ;;  %v2623_v52 = vsel %vm1611_vm12, %v17267_v37, %v17266_v49  ;;  %v17272_v37 = vld [vmem:[#allocation99_spill] sm:$0xff] }
 0x4b0   :  { %17259 = vst [vmem:[#allocation42_spill] sm:$0xff] %v11674_v12  ;;  %v5979_v63 = vsel %vm17262_vm3, %v11447_v35, %v5978_v5  ;;  %vm17263_vm2 = vmmov %vm17258_vm1  ;;  %v17271_v12 = vld [vmem:[#allocation101_spill] sm:$0xff]  ;;  %v2627_v49 = vsel %vm17273_vm14, %v2623_v52, %v17272_v37  ;;  %v6706_v52 = vsel %vm17280_vm6, %v11274_v15, %v6705_v7  ;;  %v11746_v7 = vpop.permute.xlu0 %3916 }
 0x4b1   :  { %v11685_v29 = vsel %vm17263_vm2, %v11335_v19, %v6709_v20  ;;  %vm17268_vm10 = vmmov %vm17250_vm0  ;;  %5041 = vrot.lane.b32.xlu1 %v17066_v46, %s8632_s12  ;;  %v17523_v46 = vld [vmem:[#allocation52_spill] sm:$0xff] }
 0x4b2   :  { %17264 = vst [vmem:[#allocation30_spill] sm:$0xff] %v11685_v29  ;;  %v5401_v5 = vsel %vm17268_vm10, %v11463_v17, %v5399_v62  ;;  %vm17269_vm11 = vmmov %vm17251_vm4  ;;  %v11707_v29 = vsel %vm1611_vm12, %v8944_v34, %v17271_v12 }
 0x4b3   :  { %v5613_v20 = vsel %vm17269_vm11, %v11453_v24, %v5612_v30  ;;  %vm17270_vm13 = vmmov %vm17251_vm4  ;;  %v11716_v30 = vpop.permute.xlu1 %3918  ;;  %v11737_v36 = vsel %vm17258_vm1, %v11466_v21, %v5401_v5 }
 0x4b4   :  { %v6720_v57 = vsel %vm17270_vm13, %v11351_v33, %v17156_v40  ;;  %vm17274_vm15 = vmmov %vm17265_vm9  ;;  %17275 = vst [vmem:[#allocation33_spill] sm:$0xff] %v11716_v30 }
 0x4b5   :  { %v6711_v9 = vsel %vm17274_vm15, %v11363_v47, %v11354_v11  ;;  %v6721_v62 = vsel %vm17250_vm0, %v11366_v45, %v6720_v57  ;;  %vm17277_vm4 = vmmov %vm17250_vm0  ;;  %v17282_v57 = vld [vmem:[#allocation100_spill] sm:$0xff]  ;;  %17284 = vst [vmem:[#allocation93_spill] sm:$0xff] %v11737_v36  ;;  %5045 = vrot.lane.b32.xlu1 %v17076_v26, %s8632_s12 }
 0x4b6   :  { %v11723_v34 = vsel %vm17277_vm4, %v9805_v23, %v17276_v59  ;;  %vm17279_vm5 = vmmov %vm17269_vm11  ;;  %v11733_v30 = vsel %vm1650_vm8, %v2627_v49, %v17282_v57 }
 0x4b7   :  { %17278 = vst [vmem:[#allocation36_spill] sm:$0xff] %v11723_v34  ;;  %v5980_v12 = vsel %vm17279_vm5, %v11450_v56, %v5979_v63  ;;  %vm17281_vm7 = vmmov %vm17280_vm6  ;;  %vm17301_vm6 = vcmask 1044484   ;;  %5003 = vrot.lane.b32.xlu0 %v11723_v34, %s8629_s17 }
 0x4b8   :  { %v6712_v37 = vsel %vm17281_vm7, %v11369_v3, %v6711_v9  ;;  %17283 = vst [vmem:[#allocation155_spill] sm:$0xff] %v11733_v30  ;;  %vm17285_vm3 = vmmov %vm17250_vm0  ;;  %v17309_v30 = vld [vmem:[#allocation104_spill] sm:$0xff] }
 0x4b9   :  { %v5614_v59 = vsel %vm17285_vm3, %v11456_v53, %v5613_v20  ;;  %vm17286_vm2 = vmmov %vm17265_vm9  ;;  %vm17287_vm9 = vcmask 1043459   ;;  %5049 = vrot.lane.b32.xlu1 %v17090_v60, %s8632_s12  ;;  %v17576_v60 = vld [vmem:[#allocation90_spill] sm:$0xff] }
 0x4ba   :  { %v7072_v63 = vsel %vm17286_vm2, %v11229_v48, %v11210_v61  ;;  %v11750_v9 = vsel %vm17287_vm9, %v11379_v44, %v6712_v37  ;;  %vm17289_vm10 = vmmov %vm17258_vm1 }
 0x4bb   :  { %17288 = vst [vmem:[#allocation39_spill] sm:$0xff] %v11750_v9  ;;  %v11754_v5 = vsel %vm17289_vm10, %v11382_v6, %v6721_v62  ;;  %vm17291_vm11 = vmmov %vm17286_vm2  ;;  %vm17310_vm10 = vcmask 523264   ;;  %5007 = vrot.lane.b32.xlu0 %v11471_v8, %s8629_s17 }
 0x4bc   :  { %17290 = vst [vmem:[#allocation40_spill] sm:$0xff] %v11754_v5  ;;  %v7439_v20 = vsel %vm17291_vm11, %v11210_v61, %v11193_v39  ;;  %vm17292_vm13 = vmmov %vm17286_vm2  ;;  %v11774_v5 = vpop.permute.xlu1 %3922 }
 0x4bd   :  { %v7806_v49 = vsel %vm17292_vm13, %v11193_v39, %v11186_v51  ;;  %vm17293_vm14 = vmmov %vm17250_vm0  ;;  %17298 = vst [vmem:[#allocation43_spill] sm:$0xff] %v11774_v5  ;;  %v17305_v5 = vld [vmem:[#allocation78_spill] sm:$0xff]  ;;  %5053 = vrot.lane.b32.xlu1 %v17103_v1, %s8632_s12 }
 0x4be   :  { %v5981_v57 = vsel %vm17293_vm14, %v11453_v24, %v5980_v12  ;;  %vm17294_vm15 = vmmov %vm17286_vm2  ;;  %v6346_v12 = vsel %vm17301_vm6, %v11440_v13, %v17188_v22  ;;  %v2626_v36 = vsel %vm1611_vm12, %v17305_v5, %v17304_v18 }
 0x4bf   :  { %v6356_v37 = vsel %vm17294_vm15, %v11409_v38, %v11395_v55  ;;  %vm17295_vm0 = vmmov %vm17287_vm9  ;;  %vm17317_vm15 = vcmask 1045509   ;;  %5019 = vrot.lane.b32.xlu0 %v11404_v10, %s8631_s2 }
 0x4c0   :  { %v11769_v9 = vsel %vm17295_vm0, %v11305_v2, %v6706_v52  ;;  %vm17297_vm4 = vmmov %vm17286_vm2  ;;  %v11787_v52 = vsel %vm17281_vm7, %v11437_v54, %v6356_v37  ;;  %v2630_v37 = vsel %vm17310_vm10, %v2626_v36, %v17309_v30  ;;  %v6347_v36 = vsel %vm17317_vm15, %v11447_v35, %v6346_v12  ;;  %v17325_v12 = vld [vmem:[#allocation106_spill] sm:$0xff] }
 0x4c1   :  { %17296 = vst [vmem:[#allocation41_spill] sm:$0xff] %v11769_v9  ;;  %v6723_v62 = vsel %vm17297_vm4, %v11395_v55, %v11392_v31  ;;  %vm17299_vm5 = vmmov %vm17258_vm1 }
 0x4c2   :  { %v11780_v39 = vsel %vm17299_vm5, %v11463_v17, %v5614_v59  ;;  %17302 = vst [vmem:[#allocation45_spill] sm:$0xff] %v11787_v52  ;;  %vm17303_vm1 = vmmov %vm17281_vm7 }
 0x4c3   :  { %17300 = vst [vmem:[#allocation44_spill] sm:$0xff] %v11780_v39  ;;  %v7073_v9 = vsel %vm17303_vm1, %v11251_v28, %v7072_v63  ;;  %vm17306_vm3 = vmmov %vm17303_vm1  ;;  %v11804_v63 = vpop.permute.xlu0 %3920  ;;  %5023 = vrot.lane.b32.xlu0 %v11427_v25, %s8631_s2 }
 0x4c4   :  { %v6724_v42 = vsel %vm17306_vm3, %v11409_v38, %v6723_v62  ;;  %vm17307_vm2 = vmmov %vm17303_vm1 }
 0x4c5   :  { %v7440_v59 = vsel %vm17307_vm2, %v11229_v48, %v7439_v20  ;;  %vm17308_vm9 = vmmov %vm17303_vm1 }
 0x4c6   :  { %v7807_v39 = vsel %vm17308_vm9, %v11210_v61, %v7806_v49  ;;  %vm17311_vm11 = vmmov %vm17299_vm5  ;;  %v11829_v49 = vpop.permute.xlu1 %3934 }
 0x4c7   :  { %v11808_v18 = vsel %vm17311_vm11, %v11456_v53, %v5981_v57  ;;  %vm17313_vm13 = vmmov %vm17295_vm0  ;;  %vm17318_vm0 = vcmask 1046534   ;;  %5027 = vrot.lane.b32.xlu0 %v11723_v34, %s8631_s2 }
 0x4c8   :  { %17312 = vst [vmem:[#allocation46_spill] sm:$0xff] %v11808_v18  ;;  %v11812_v5 = vsel %vm17313_vm13, %v11437_v54, %v6724_v42  ;;  %vm17315_vm14 = vmmov %vm17299_vm5  ;;  %v7076_v30 = vsel %vm17318_vm0, %v11308_v16, %v17136_v14  ;;  %vm17320_vm5 = vcmask 1041409   ;;  %v17486_v18 = vld [vmem:[#allocation175_spill] sm:$0xff] }
 0x4c9   :  { %17314 = vst [vmem:[#allocation47_spill] sm:$0xff] %v11812_v5  ;;  %v11817_v61 = vsel %vm17315_vm14, %v11186_v51, %v17061_v27  ;;  %vm17319_vm4 = vmmov %vm17313_vm13  ;;  %v7078_v42 = vsel %vm17320_vm5, %v11354_v11, %v11335_v19  ;;  %v11844_v27 = vsel %vm1650_vm8, %v2630_v37, %v17325_v12  ;;  %vm17335_vm14 = vcmask 1044484  }
 0x4ca   :  { %17316 = vst [vmem:[#allocation71_spill] sm:$0xff] %v11817_v61  ;;  %v7074_v20 = vsel %vm17319_vm4, %v11274_v15, %v7073_v9  ;;  %vm17321_vm6 = vmmov %vm17303_vm1 }
 0x4cb   :  { %v7079_v51 = vsel %vm17321_vm6, %v11363_v47, %v7078_v42  ;;  %vm17322_vm7 = vmmov %vm17318_vm0  ;;  %17326 = vst [vmem:[#allocation51_spill] sm:$0xff] %v11844_v27  ;;  %v11869_v37 = vsel %vm17335_vm14, %v11305_v2, %v7074_v20  ;;  %v11885_v20 = vpop.f32.mrb[16].mxu1  ;;  %5031 = vrot.lane.b32.xlu0 %v11471_v8, %s8631_s2 }
 0x4cc   :  { %v7088_v57 = vsel %vm17322_vm7, %v11351_v33, %v17156_v40  ;;  %vm17323_vm1 = vmmov %vm17319_vm4  ;;  %17336 = vst [vmem:[#allocation64_spill] sm:$0xff] %v11869_v37  ;;  %vm17343_vm7 = vcmask 1042434  }
 0x4cd   :  { %v7441_v62 = vsel %vm17323_vm1, %v11251_v28, %v7440_v59  ;;  %vm17324_vm3 = vmmov %vm17323_vm1  ;;  %v11858_v59 = vpop.permute.xlu0 %3924 }
 0x4ce   :  { %v7808_v9 = vsel %vm17324_vm3, %v11229_v48, %v7807_v39  ;;  %vm17327_vm2 = vmmov %vm17311_vm11 }
 0x4cf   :  { %v11848_v61 = vsel %vm17327_vm2, %v11321_v58, %v7076_v30  ;;  %vm17329_vm9 = vmmov %vm17323_vm1  ;;  %5043 = vrot.lane.b32.xlu0 %v11404_v10, %s8632_s12  ;;  %v17567_v10 = vld [vmem:[#allocation126_spill] sm:$0xff] }
 0x4d0   :  { %17328 = vst [vmem:[#allocation58_spill] sm:$0xff] %v11848_v61  ;;  %v7080_v42 = vsel %vm17329_vm9, %v11369_v3, %v7079_v51  ;;  %vm17330_vm10 = vmmov %vm17327_vm2 }
 0x4d1   :  { %v11854_v5 = vsel %vm17330_vm10, %v11366_v45, %v7088_v57  ;;  %vm17332_vm11 = vmmov %vm17320_vm5  ;;  %vm17350_vm10 = vcmask 1043459  }
 0x4d2   :  { %17331 = vst [vmem:[#allocation29_spill] sm:$0xff] %v11854_v5  ;;  %v11863_v48 = vsel %vm17332_vm11, %v11466_v21, %v11463_v17  ;;  %vm17334_vm13 = vmmov %vm17318_vm0  ;;  %v11887_v5 = vpop.permute.xlu1 %3938 }
 0x4d3   :  { %17333 = vst [vmem:[#allocation63_spill] sm:$0xff] %v11863_v48  ;;  %v6348_v39 = vsel %vm17334_vm13, %v11450_v56, %v6347_v36  ;;  %vm17337_vm15 = vmmov %vm17335_vm14  ;;  %5047 = vrot.lane.b32.xlu0 %v11427_v25, %s8632_s12 }
 0x4d4   :  { %v11873_v30 = vsel %vm17337_vm15, %v11379_v44, %v7080_v42  ;;  %vm17339_vm0 = vmmov %vm17320_vm5  ;;  %vm17356_vm15 = vcmask 1045509  }
 0x4d5   :  { %17338 = vst [vmem:[#allocation74_spill] sm:$0xff] %v11873_v30  ;;  %v7090_v51 = vsel %vm17339_vm0, %v11392_v31, %v11382_v6  ;;  %vm17340_vm4 = vmmov %vm17335_vm14 }
 0x4d6   :  { %v7442_v57 = vsel %vm17340_vm4, %v11274_v15, %v7441_v62  ;;  %vm17341_vm5 = vmmov %vm17339_vm0  ;;  %v7091_v42 = vsel %vm17343_vm7, %v11395_v55, %v7090_v51 }
 0x4d7   :  { %v7445_v12 = vsel %vm17341_vm5, %v11335_v19, %v11321_v58  ;;  %vm17342_vm6 = vmmov %vm17340_vm4  ;;  %v7092_v51 = vsel %vm17350_vm10, %v11409_v38, %v7091_v42  ;;  %v11928_v42 = vsel %vm17356_vm15, %v11305_v2, %v7442_v57  ;;  %5051 = vrot.lane.b32.xlu0 %v11723_v34, %s8632_s12 }
 0x4d8   :  { %v7809_v36 = vsel %vm17342_vm6, %v11251_v28, %v7808_v9  ;;  %vm17344_vm1 = vmmov %vm17327_vm2  ;;  %v11903_v9 = vpop.f32.mrb[17].mxu1  ;;  %17357 = vst [vmem:[#allocation82_spill] sm:$0xff] %v11928_v42 }
 0x4d9   :  { %v11896_v62 = vsel %vm17344_vm1, %v11308_v16, %v17136_v14  ;;  %vm17346_vm3 = vmmov %vm17343_vm7  ;;  %v11945_v42 = vpop.f32.mrb[18].mxu1 }
 0x4da   :  { %17345 = vst [vmem:[#allocation75_spill] sm:$0xff] %v11896_v62  ;;  %v7446_v30 = vsel %vm17346_vm3, %v11354_v11, %v7445_v12  ;;  %vm17347_vm2 = vmmov %vm17339_vm0  ;;  %v11920_v62 = vpop.permute.xlu0 %3936 }
 0x4db   :  { %v7818_v28 = vsel %vm17347_vm2, %v11447_v35, %v11440_v13  ;;  %vm17348_vm9 = vmmov %vm17344_vm1  ;;  %5055 = vrot.lane.b32.xlu0 %v11471_v8, %s8632_s12 }
 0x4dc   :  { %v11907_v37 = vsel %vm17348_vm9, %v11453_v24, %v6348_v39  ;;  %vm17351_vm11 = vmmov %vm17350_vm10 }
 0x4dd   :  { %17349 = vst [vmem:[#allocation77_spill] sm:$0xff] %v11907_v37  ;;  %v7447_v14 = vsel %vm17351_vm11, %v11363_v47, %v7446_v30  ;;  %vm17352_vm13 = vmmov %vm17344_vm1 }
 0x4de   :  { %v11916_v12 = vsel %vm17352_vm13, %v11351_v33, %v17156_v40  ;;  %vm17354_vm14 = vmmov %vm17340_vm4  ;;  %vm17370_vm13 = vcmask 1043459  }
 0x4df   :  { %17353 = vst [vmem:[#allocation80_spill] sm:$0xff] %v11916_v12  ;;  %v11924_v39 = vsel %vm17354_vm14, %v11437_v54, %v7092_v51  ;;  %vm17358_vm0 = vmmov %vm17340_vm4  ;;  %vm17371_vm14 = vcmask 1046534  }
 0x4e0   :  { %17355 = vst [vmem:[#allocation81_spill] sm:$0xff] %v11924_v39  ;;  %v7448_v30 = vsel %vm17358_vm0, %v11369_v3, %v7447_v14  ;;  %vm17359_vm4 = vmmov %vm17356_vm15  ;;  %v11947_v14 = vpop.permute.xlu1 %3942 }
 0x4e1   :  { %v7810_v40 = vsel %vm17359_vm4, %v11274_v15, %v7809_v36  ;;  %vm17360_vm5 = vmmov %vm17347_vm2 }
 0x4e2   :  { %v7451_v12 = vsel %vm17360_vm5, %v11450_v56, %v11447_v35  ;;  %vm17361_vm6 = vmmov %vm17347_vm2  ;;  %v11971_v37 = vsel %vm17371_vm14, %v11305_v2, %v7810_v40  ;;  %v17553_v2 = vld [vmem:[#allocation201_spill] sm:$0xff] }
 0x4e3   :  { %v7457_v61 = vsel %vm17361_vm6, %v11382_v6, %v11366_v45  ;;  %vm17362_vm7 = vmmov %vm17347_vm2  ;;  %17372 = vst [vmem:[#allocation86_spill] sm:$0xff] %v11971_v37 }
 0x4e4   :  { %v7812_v51 = vsel %vm17362_vm7, %v11321_v58, %v11308_v16  ;;  %vm17363_vm1 = vmmov %vm17346_vm3 }
 0x4e5   :  { %v7819_v57 = vsel %vm17363_vm1, %v11450_v56, %v7818_v28  ;;  %vm17364_vm3 = vmmov %vm17359_vm4  ;;  %v11962_v28 = vpop.f32.mrb[19].mxu1  ;;  %vm17375_vm4 = vcmask 1044484  }
 0x4e6   :  { %v6714_v15 = vsel %vm17364_vm3, %v11440_v13, %v17188_v22  ;;  %vm17365_vm2 = vmmov %vm17364_vm3 }
 0x4e7   :  { %v11956_v36 = vsel %vm17365_vm2, %v11379_v44, %v7448_v30  ;;  %vm17367_vm9 = vmmov %vm17363_vm1 }
 0x4e8   :  { %17366 = vst [vmem:[#allocation84_spill] sm:$0xff] %v11956_v36  ;;  %v7458_v16 = vsel %vm17367_vm9, %v11392_v31, %v7457_v61  ;;  %vm17368_vm10 = vmmov %vm17363_vm1  ;;  %v17415_v36 = vld [vmem:[#allocation189_spill] sm:$0xff] }
 0x4e9   :  { %v7813_v58 = vsel %vm17368_vm10, %v11335_v19, %v7812_v51  ;;  %vm17369_vm11 = vmmov %vm17360_vm5  ;;  %v7459_v52 = vsel %vm17370_vm13, %v11395_v55, %v7458_v16  ;;  %v11977_v19 = vpop.permute.xlu0 %3940 }
 0x4ea   :  { %v7084_v39 = vsel %vm17369_vm11, %v11453_v24, %v11450_v56  ;;  %vm17373_vm15 = vmmov %vm17370_vm13  ;;  %v7460_v51 = vsel %vm17375_vm4, %v11409_v38, %v7459_v52 }
 0x4eb   :  { %v7814_v30 = vsel %vm17373_vm15, %v11354_v11, %v7813_v58  ;;  %vm17374_vm0 = vmmov %vm17363_vm1  ;;  %v6350_v11 = vsel %vm17362_vm7, %v11463_v17, %v11456_v53 }
 0x4ec   :  { %v7452_v61 = vsel %vm17374_vm0, %v11453_v24, %v7451_v12  ;;  %vm17376_vm5 = vmmov %vm17375_vm4  ;;  %v11997_v12 = vpop.permute.xlu1 %3946 }
 0x4ed   :  { %v7815_v16 = vsel %vm17376_vm5, %v11363_v47, %v7814_v30  ;;  %vm17377_vm6 = vmmov %vm17370_vm13  ;;  %v17391_v30 = vld [vmem:[#allocation157_spill] sm:$0xff] }
 0x4ee   :  { %v7820_v40 = vsel %vm17377_vm6, %v11453_v24, %v7819_v57  ;;  %vm17378_vm1 = vmmov %vm17371_vm14 }
 0x4ef   :  { %v6715_v58 = vsel %vm17378_vm1, %v11447_v35, %v6714_v15  ;;  %vm17379_vm3 = vmmov %vm17365_vm2 }
 0x4f0   :  { %v7816_v37 = vsel %vm17379_vm3, %v11369_v3, %v7815_v16  ;;  %vm17380_vm2 = vmmov %vm17362_vm7  ;;  %v17392_v16 = vld [vmem:[#allocation110_spill] sm:$0xff] }
 0x4f1   :  { %v7824_v52 = vsel %vm17380_vm2, %v11366_v45, %v11351_v33  ;;  %vm17381_vm9 = vmmov %vm17380_vm2 }
 0x4f2   :  { %v6717_v47 = vsel %vm17381_vm9, %v11456_v53, %v11453_v24  ;;  %vm17382_vm10 = vmmov %vm17374_vm0 }
 0x4f3   :  { %v7085_v57 = vsel %vm17382_vm10, %v11456_v53, %v7084_v39  ;;  %vm17383_vm11 = vmmov %vm17379_vm3 }
 0x4f4   :  { %v12008_v15 = vsel %vm17383_vm11, %v11437_v54, %v7460_v51  ;;  %vm17385_vm13 = vmmov %vm17374_vm0  ;;  %v2624_v51 = vsel %vm1611_vm12, %v17392_v16, %v17391_v30  ;;  %v17403_v30 = vld [vmem:[#allocation185_spill] sm:$0xff]  ;;  %v17404_v16 = vld [vmem:[#allocation127_spill] sm:$0xff] }
 0x4f5   :  { %17384 = vst [vmem:[#allocation72_spill] sm:$0xff] %v12008_v15  ;;  %v7825_v3 = vsel %vm17385_vm13, %v11382_v6, %v7824_v52  ;;  %vm17386_vm14 = vmmov %vm17377_vm6  ;;  %v12027_v6 = vpop.permute.xlu0 %3944 }
 0x4f6   :  { %v7453_v45 = vsel %vm17386_vm14, %v11456_v53, %v7452_v61  ;;  %vm17387_vm15 = vmmov %vm17378_vm1  ;;  %vm17399_vm1 = vcmask 523264  }
 0x4f7   :  { %v12016_v33 = vsel %vm17387_vm15, %v11379_v44, %v7816_v37  ;;  %vm17389_vm0 = vmmov %vm17375_vm4  ;;  %v17540_v44 = vld [vmem:[#allocation132_spill] sm:$0xff] }
 0x4f8   :  { %17388 = vst [vmem:[#allocation97_spill] sm:$0xff] %v12016_v33  ;;  %v7821_v24 = vsel %vm17389_vm0, %v11456_v53, %v7820_v40  ;;  %vm17390_vm4 = vmmov %vm17377_vm6  ;;  %vm17395_vm6 = vcmask 1047559   ;;  %v17409_v33 = vld [vmem:[#allocation161_spill] sm:$0xff] }
 0x4f9   :  { %v7826_v39 = vsel %vm17390_vm4, %v11392_v31, %v7825_v3  ;;  %vm17393_vm5 = vmmov %vm17382_vm10  ;;  %v12035_v37 = vsel %vm17395_vm6, %v11450_v56, %v6715_v58  ;;  %v17398_v31 = vld [vmem:[#allocation159_spill] sm:$0xff]  ;;  %v2625_v56 = vsel %vm1611_vm12, %v17404_v16, %v17403_v30  ;;  %v12051_v58 = vpop.permute.xlu1 %4255 }
 0x4fa   :  { %v12031_v61 = vsel %vm17393_vm5, %v11466_v21, %v6350_v11  ;;  %17396 = vst [vmem:[#allocation98_spill] sm:$0xff] %v12035_v37  ;;  %vm17397_vm7 = vmmov %vm17389_vm0  ;;  %v2628_v40 = vsel %vm17399_vm1, %v2624_v51, %v17398_v31  ;;  %v17407_v51 = vld [vmem:[#allocation151_spill] sm:$0xff] }
 0x4fb   :  { %17394 = vst [vmem:[#allocation24_spill] sm:$0xff] %v12031_v61  ;;  %v7827_v53 = vsel %vm17397_vm7, %v11395_v55, %v7826_v39  ;;  %vm17400_vm3 = vmmov %vm17393_vm5  ;;  %v12066_v30 = vsel %vm1650_vm8, %v2628_v40, %v17409_v33  ;;  %v17411_v16 = vld [vmem:[#allocation187_spill] sm:$0xff]  ;;  %v17423_v40 = vld [vmem:[#allocation222_spill] sm:$0xff] }
 0x4fc   :  { %v6718_v52 = vsel %vm17400_vm3, %v11463_v17, %v6717_v47  ;;  %vm17401_vm2 = vmmov %vm17387_vm15  ;;  %v7822_v47 = vsel %vm17383_vm11, %v11463_v17, %v7821_v24  ;;  %17410 = vst [vmem:[#allocation31_spill] sm:$0xff] %v12066_v30  ;;  %v17476_v37 = vld [vmem:[#allocation87_spill] sm:$0xff]  ;;  %v17485_v61 = vld [vmem:[#allocation221_spill] sm:$0xff] }
 0x4fd   :  { %v7082_v3 = vsel %vm17401_vm2, %v11440_v13, %v17188_v22  ;;  %vm17402_vm9 = vmmov %vm17390_vm4  ;;  %v17568_v30 = vld [vmem:[#allocation18_spill] sm:$0xff] }
 0x4fe   :  { %v7086_v11 = vsel %vm17402_vm9, %v11463_v17, %v7085_v57  ;;  %vm17405_vm10 = vmmov %vm17389_vm0  ;;  %v17408_v57 = vld [vmem:[#allocation49_spill] sm:$0xff] }
 0x4ff   :  { %v7454_v55 = vsel %vm17405_vm10, %v11463_v17, %v7453_v45  ;;  %vm17406_vm13 = vmmov %vm17383_vm11  ;;  %v2853_v31 = vsel %vm1611_vm12, %v17408_v57, %v17407_v51  ;;  %v17434_v51 = vld [vmem:[#allocation66_spill] sm:$0xff] }
 0x500   :  { %v7828_v39 = vsel %vm17406_vm13, %v11409_v38, %v7827_v53  ;;  %vm17412_vm14 = vmmov %vm17399_vm1  ;;  %v12080_v38 = vpop.permute.xlu0 %3948 }
 0x501   :  { %v2629_v15 = vsel %vm17412_vm14, %v2625_v56, %v17411_v16  ;;  %vm17413_vm15 = vmmov %vm17401_vm2  ;;  %v12100_v56 = vld [vmem:[%s16162_s4] sm:$0xff]  ;;  %v17435_v16 = vld [vmem:[#allocation128_spill] sm:$0xff] }
 0x502   :  { %v12072_v45 = vsel %vm17413_vm15, %v11437_v54, %v7828_v39  ;;  %v12076_v17 = vsel %vm1650_vm8, %v2629_v15, %v17415_v36  ;;  %vm17417_vm0 = vmmov %vm17390_vm4  ;;  %v17424_v36 = vld [vmem:[#allocation88_spill] sm:$0xff]  ;;  %17425 = vst [vmem:[#allocation78_spill] sm:$0xff] %v12100_v56  ;;  %v17538_v54 = vld [vmem:[#allocation79_spill] sm:$0xff] }
 0x503   :  { %17414 = vst [vmem:[#allocation101_spill] sm:$0xff] %v12072_v45  ;;  %17416 = vst [vmem:[#allocation99_spill] sm:$0xff] %v12076_v17  ;;  %v12084_v33 = vsel %vm17417_vm0, %v11466_v21, %v6718_v52  ;;  %v2855_v15 = vsel %vm1611_vm12, %v17424_v36, %v17423_v40  ;;  %v12105_v52 = vld [vmem:[%s16162_s4 + $0x8] sm:$0xff]  ;;  %v17437_v36 = vld [vmem:[#allocation65_spill] sm:$0xff] }
 0x504   :  { %17418 = vst [vmem:[#allocation92_spill] sm:$0xff] %v12084_v33  ;;  %vm17419_vm4 = vmmov %vm17395_vm6  ;;  %v17433_v39 = vld [vmem:[#allocation124_spill] sm:$0xff]  ;;  %v17439_v45 = vld [vmem:[#allocation131_spill] sm:$0xff] }
 0x505   :  { %v12088_v24 = vsel %vm17419_vm4, %v11447_v35, %v7082_v3  ;;  %vm17421_vm5 = vmmov %vm17397_vm7  ;;  %17426 = vst [vmem:[#allocation104_spill] sm:$0xff] %v12105_v52  ;;  %v2857_v57 = vsel %vm1611_vm12, %v17434_v51, %v17433_v39  ;;  %v17475_v33 = vld [vmem:[#allocation174_spill] sm:$0xff]  ;;  %v17508_v17 = vld [vmem:[#allocation103_spill] sm:$0xff] }
 0x506   :  { %17420 = vst [vmem:[#allocation100_spill] sm:$0xff] %v12088_v24  ;;  %v12092_v53 = vsel %vm17421_vm5, %v11466_v21, %v7086_v11  ;;  %vm17427_vm6 = vmmov %vm17419_vm4 }
 0x507   :  { %17422 = vst [vmem:[#allocation102_spill] sm:$0xff] %v12092_v53  ;;  %v12110_v35 = vsel %vm17427_vm6, %v11440_v13, %v17188_v22  ;;  %vm17429_vm7 = vmmov %vm17383_vm11  ;;  %v17461_v53 = vld [vmem:[#allocation169_spill] sm:$0xff] }
 0x508   :  { %17428 = vst [vmem:[#allocation106_spill] sm:$0xff] %v12110_v35  ;;  %v12114_v3 = vsel %vm17429_vm7, %v11466_v21, %v7454_v55  ;;  %vm17431_vm1 = vmmov %vm17401_vm2  ;;  %v12130_v55 = vpop.permute.xlu1 %4259 }
 0x509   :  { %17430 = vst [vmem:[#allocation157_spill] sm:$0xff] %v12114_v3  ;;  %v12118_v11 = vsel %vm17431_vm1, %v11466_v21, %v7822_v47  ;;  %vm17436_vm3 = vmmov %vm17412_vm14  ;;  %v17441_v47 = vld [vmem:[#allocation136_spill] sm:$0xff] }
 0x50a   :  { %17432 = vst [vmem:[#allocation110_spill] sm:$0xff] %v12118_v11  ;;  %v2859_v40 = vsel %vm17436_vm3, %v11679_v41, %v17435_v16  ;;  %vm17438_vm2 = vmmov %vm17436_vm3  ;;  %v17443_v3 = vld [vmem:[#allocation144_spill] sm:$0xff]  ;;  %v2854_v41 = vsel %vm1611_vm12, %v9689_v32, %v10686_v0  ;;  %v17449_v32 = vld [vmem:[#allocation67_spill] sm:$0xff] }
 0x50b   :  { %v2861_v13 = vsel %vm17438_vm2, %v2853_v31, %v17437_v36  ;;  %vm17440_vm9 = vmmov %vm17438_vm2  ;;  %v12138_v39 = vsel %vm1650_vm8, %v2859_v40, %v17443_v3  ;;  %v2856_v31 = vsel %vm1611_vm12, %v9805_v23, %v10725_v4  ;;  %v17447_v16 = vld [vmem:[#allocation96_spill] sm:$0xff]  ;;  %v12154_v3 = vadd.f32 %v12100_v56, %v11885_v20  ;;  %v12162_v23 = vpop.permute.xlu0 %4257  ;;  %v17451_v4 = vld [vmem:[#allocation153_spill] sm:$0xff] }
 0x50c   :  { %v2863_v22 = vsel %vm17440_vm9, %v2855_v15, %v17439_v45  ;;  %vm17442_vm10 = vmmov %vm17438_vm2  ;;  %17444 = vst [vmem:[#allocation159_spill] sm:$0xff] %v12138_v39  ;;  %v17445_v45 = vld [vmem:[#allocation50_spill] sm:$0xff]  ;;  %v17446_v15 = vld [vmem:[#allocation76_spill] sm:$0xff]  ;;  %v12158_v40 = vadd.f32 %v12105_v52, %v11903_v9 }
 0x50d   :  { %v2865_v11 = vsel %vm17442_vm10, %v2857_v57, %v17441_v47  ;;  %v2858_v51 = vsel %vm1611_vm12, %v17446_v15, %v17445_v45  ;;  %vm17448_vm11 = vmmov %vm17438_vm2  ;;  %v17455_v20 = vld [vmem:[#allocation162_spill] sm:$0xff]  ;;  %v17457_v9 = vld [vmem:[#allocation165_spill] sm:$0xff] }
 0x50e   :  { %v2860_v57 = vsel %vm17448_vm11, %v11707_v29, %v17447_v16  ;;  %vm17450_vm13 = vmmov %vm17438_vm2  ;;  %v17453_v29 = vld [vmem:[#allocation163_spill] sm:$0xff]  ;;  %v12172_v45 = vsel %vm1650_vm8, %v2861_v13, %v17455_v20  ;;  %v17465_v13 = vld [vmem:[#allocation164_spill] sm:$0xff] }
 0x50f   :  { %v2862_v0 = vsel %vm17450_vm13, %v2854_v41, %v17449_v32  ;;  %vm17452_vm14 = vmmov %vm17438_vm2  ;;  %17456 = vst [vmem:[#allocation185_spill] sm:$0xff] %v12172_v45  ;;  %v12176_v15 = vsel %vm1650_vm8, %v2860_v57, %v17457_v9  ;;  %v17459_v16 = vld [vmem:[#allocation167_spill] sm:$0xff]  ;;  %v17469_v20 = vld [vmem:[#allocation168_spill] sm:$0xff] }
 0x510   :  { %v2864_v36 = vsel %vm17452_vm14, %v2856_v31, %v17451_v4  ;;  %vm17454_vm15 = vmmov %vm17438_vm2  ;;  %17458 = vst [vmem:[#allocation127_spill] sm:$0xff] %v12176_v15  ;;  %v12180_v35 = vsel %vm1650_vm8, %v2863_v22, %v17459_v16  ;;  %v12184_v41 = vsel %vm1650_vm8, %v2862_v0, %v17461_v53  ;;  %v17463_v31 = vld [vmem:[#allocation107_spill] sm:$0xff]  ;;  %v17467_v4 = vld [vmem:[#allocation105_spill] sm:$0xff] }
 0x511   :  { %v2866_v47 = vsel %vm17454_vm15, %v2858_v51, %v17453_v29  ;;  %17460 = vst [vmem:[#allocation151_spill] sm:$0xff] %v12180_v35  ;;  %17462 = vst [vmem:[#allocation49_spill] sm:$0xff] %v12184_v41  ;;  %v12188_v32 = vsel %vm1650_vm8, %v2865_v11, %v17463_v31  ;;  %v12190_v51 = vpop.permute.xlu1 %4263  ;;  %v12196_v57 = vsel %vm1650_vm8, %v2864_v36, %v17465_v13  ;;  %v17468_v22 = vld [vmem:[#allocation22_spill] sm:$0xff]  ;;  %v17471_v0 = vld [vmem:[#allocation172_spill] sm:$0xff]  ;;  %v12216_v13 = vpop.permute.xlu0 %4261 }
 0x512   :  { %17464 = vst [vmem:[#allocation161_spill] sm:$0xff] %v12188_v32  ;;  %17466 = vst [vmem:[#allocation187_spill] sm:$0xff] %v12196_v57  ;;  %v3220_v29 = vsel %vm1611_vm12, %v17468_v22, %v17467_v4  ;;  %v12203_v53 = vsel %vm1650_vm8, %v2866_v47, %v17469_v20  ;;  %v17472_v11 = vld [vmem:[#allocation48_spill] sm:$0xff]  ;;  %v17473_v16 = vld [vmem:[#allocation171_spill] sm:$0xff]  ;;  %v3224_v36 = vsel %vm1611_vm12, %v17476_v37, %v17475_v33 }
 0x513   :  { %17470 = vst [vmem:[#allocation189_spill] sm:$0xff] %v12203_v53  ;;  %v3222_v9 = vsel %vm1611_vm12, %v17472_v11, %v17471_v0  ;;  %v17474_v31 = vld [vmem:[#allocation218_spill] sm:$0xff]  ;;  %v17477_v4 = vld [vmem:[#allocation219_spill] sm:$0xff]  ;;  %v17481_v0 = vld [vmem:[#allocation220_spill] sm:$0xff] }
 0x514   :  { %v3221_v24 = vsel %vm1611_vm12, %v17474_v31, %v17473_v16  ;;  %v12220_v47 = vrot.slane %v12154_v3, %v17477_v4  ;;  %v12224_v22 = vrot.slane %v12158_v40, %v17477_v4  ;;  %v17480_v20 = vld [vmem:[#allocation170_spill] sm:$0xff]  ;;  %v17482_v16 = vld [vmem:[#allocation173_spill] sm:$0xff]  ;;  %v17484_v33 = vld [vmem:[#allocation176_spill] sm:$0xff] }
 0x515   :  { %v3223_v11 = vsel %vm1611_vm12, %v17481_v0, %v17480_v20  ;;  %v17483_v31 = vld [vmem:[#allocation62_spill] sm:$0xff]  ;;  %v3225_v48 = vsel %vm1611_vm12, %v17485_v61, %v17484_v33  ;;  %vm17487_vm0 = vmmov %vm17438_vm2  ;;  %v17489_v32 = vld [vmem:[#allocation139_spill] sm:$0xff] }
 0x516   :  { %17478 = vst [vmem:[#allocation222_spill] sm:$0xff] %v12220_v47  ;;  %17479 = vst [vmem:[#allocation88_spill] sm:$0xff] %v12224_v22  ;;  %v3226_v37 = vsel %vm1611_vm12, %v17483_v31, %v17482_v16  ;;  %v3228_v53 = vsel %vm17487_vm0, %v3220_v29, %v17486_v18  ;;  %v17488_v47 = vld [vmem:[#allocation178_spill] sm:$0xff]  ;;  %v17490_v22 = vld [vmem:[#allocation177_spill] sm:$0xff]  ;;  %v12246_v31 = vpop.permute.xlu1 %4267 }
 0x517   :  { %v3227_v27 = vsel %vm1611_vm12, %v17489_v32, %v17488_v47  ;;  %vm17491_vm4 = vmmov %vm17487_vm0  ;;  %v17492_v35 = vld [vmem:[#allocation180_spill] sm:$0xff]  ;;  %v17494_v0 = vld [vmem:[#allocation179_spill] sm:$0xff] }
 0x518   :  { %v3230_v57 = vsel %vm17491_vm4, %v3222_v9, %v17490_v22  ;;  %vm17493_vm5 = vmmov %vm17487_vm0  ;;  %v17496_v61 = vld [vmem:[#allocation182_spill] sm:$0xff]  ;;  %v17498_v29 = vld [vmem:[#allocation181_spill] sm:$0xff] }
 0x519   :  { %v3229_v20 = vsel %vm17493_vm5, %v3221_v24, %v17492_v35  ;;  %vm17495_vm6 = vmmov %vm17487_vm0  ;;  %v17500_v47 = vld [vmem:[#allocation184_spill] sm:$0xff]  ;;  %v17502_v22 = vld [vmem:[#allocation183_spill] sm:$0xff] }
 0x51a   :  { %v3232_v16 = vsel %vm17495_vm6, %v3224_v36, %v17494_v0  ;;  %vm17497_vm7 = vmmov %vm17487_vm0  ;;  %v12258_v24 = vsel %vm1650_vm8, %v3228_v53, %v17502_v22  ;;  %v17504_v35 = vld [vmem:[#allocation186_spill] sm:$0xff]  ;;  %v17596_v56 = vld [vmem:[#allocation216_spill] sm:$0xff] }
 0x51b   :  { %v3231_v18 = vsel %vm17497_vm7, %v3223_v11, %v17496_v61  ;;  %vm17499_vm1 = vmmov %vm17487_vm0  ;;  %17503 = vst [vmem:[#allocation124_spill] sm:$0xff] %v12258_v24  ;;  %v17506_v33 = vld [vmem:[#allocation190_spill] sm:$0xff]  ;;  %v12268_v11 = vsel %vm1650_vm8, %v3229_v20, %v17508_v17  ;;  %v17510_v61 = vld [vmem:[#allocation191_spill] sm:$0xff]  ;;  %vm3372_vm7 = vcmask 1045504   ;;  %5422 = vrot.lane.b32.xlu1 %v17596_v56, %s8629_s17 }
 0x51c   :  { %v3234_v32 = vsel %vm17499_vm1, %v3226_v37, %v17498_v29  ;;  %vm17501_vm3 = vmmov %vm17487_vm0  ;;  %v12264_v0 = vsel %vm1650_vm8, %v3230_v57, %v17506_v33  ;;  %17509 = vst [vmem:[#allocation128_spill] sm:$0xff] %v12268_v11  ;;  %v12272_v37 = vsel %vm1650_vm8, %v3232_v16, %v17510_v61  ;;  %v17512_v53 = vld [vmem:[#allocation26_spill] sm:$0xff]  ;;  %v17514_v29 = vld [vmem:[#allocation193_spill] sm:$0xff] }
 0x51d   :  { %v3233_v9 = vsel %vm17501_vm3, %v3225_v48, %v17500_v47  ;;  %vm17505_vm2 = vmmov %vm17487_vm0  ;;  %17507 = vst [vmem:[#allocation66_spill] sm:$0xff] %v12264_v0  ;;  %v12276_v48 = vpop.permute.xlu0 %4265  ;;  %v12284_v57 = vsel %vm1650_vm8, %v3234_v32, %v17514_v29  ;;  %v17516_v47 = vld [vmem:[#allocation54_spill] sm:$0xff]  ;;  %v17518_v20 = vld [vmem:[#allocation192_spill] sm:$0xff] }
 0x51e   :  { %v3235_v36 = vsel %vm17505_vm2, %v3227_v27, %v17504_v35  ;;  %17511 = vst [vmem:[#allocation65_spill] sm:$0xff] %v12272_v37  ;;  %v12280_v27 = vsel %vm1650_vm8, %v3231_v18, %v17512_v53  ;;  %17515 = vst [vmem:[#allocation136_spill] sm:$0xff] %v12284_v57  ;;  %v12288_v17 = vsel %vm1650_vm8, %v3233_v9, %v17516_v47  ;;  %v17519_v16 = vld [vmem:[#allocation20_spill] sm:$0xff]  ;;  %v17520_v35 = vld [vmem:[#allocation94_spill] sm:$0xff]  ;;  %v12306_v47 = vpop.permute.xlu1 %4279  ;;  %vm3741_vm2 = vcmask 1044480  }
 0x51f   :  { %17513 = vst [vmem:[#allocation131_spill] sm:$0xff] %v12280_v27  ;;  %17517 = vst [vmem:[#allocation144_spill] sm:$0xff] %v12288_v17  ;;  %v3589_v22 = vsel %vm1611_vm12, %v17519_v16, %v17518_v20  ;;  %v12295_v33 = vsel %vm1650_vm8, %v3235_v36, %v17520_v35  ;;  %v17522_v61 = vld [vmem:[#allocation115_spill] sm:$0xff]  ;;  %v17526_v29 = vld [vmem:[#allocation109_spill] sm:$0xff] }
 0x520   :  { %17521 = vst [vmem:[#allocation50_spill] sm:$0xff] %v12295_v33  ;;  %v3591_v18 = vsel %vm1611_vm12, %v17523_v46, %v17522_v61  ;;  %v17524_v53 = vld [vmem:[#allocation195_spill] sm:$0xff]  ;;  %v17527_v57 = vld [vmem:[#allocation89_spill] sm:$0xff]  ;;  %v17528_v20 = vld [vmem:[#allocation112_spill] sm:$0xff] }
 0x521   :  { %v17525_v37 = vld [vmem:[#allocation147_spill] sm:$0xff]  ;;  %v3593_v9 = vsel %vm1611_vm12, %v17527_v57, %v17526_v29  ;;  %v17529_v36 = vld [vmem:[#allocation148_spill] sm:$0xff]  ;;  %v17530_v35 = vld [vmem:[#allocation194_spill] sm:$0xff] }
 0x522   :  { %v3590_v32 = vsel %vm1611_vm12, %v17525_v37, %v17524_v53  ;;  %v3592_v16 = vsel %vm1611_vm12, %v17529_v36, %v17528_v20  ;;  %v17531_v33 = vld [vmem:[#allocation55_spill] sm:$0xff]  ;;  %v17532_v61 = vld [vmem:[#allocation114_spill] sm:$0xff]  ;;  %v17533_v17 = vld [vmem:[#allocation152_spill] sm:$0xff] }
 0x523   :  { %v3595_v46 = vsel %vm1611_vm12, %v17531_v33, %v17530_v35  ;;  %v3594_v37 = vsel %vm1611_vm12, %v17533_v17, %v17532_v61  ;;  %v17534_v53 = vld [vmem:[#allocation196_spill] sm:$0xff]  ;;  %vm17535_vm9 = vmmov %vm17487_vm0  ;;  %v12332_v17 = vpop.permute.xlu0 %4269  ;;  %v17543_v35 = vld [vmem:[#allocation117_spill] sm:$0xff] }
 0x524   :  { %v3597_v57 = vsel %vm17535_vm9, %v3589_v22, %v17534_v53  ;;  %v17536_v29 = vld [vmem:[#allocation116_spill] sm:$0xff]  ;;  %vm17539_vm10 = vmmov %vm17487_vm0  ;;  %v17545_v61 = vld [vmem:[#allocation197_spill] sm:$0xff] }
 0x525   :  { %v3596_v4 = vsel %vm1611_vm12, %v17537_v43, %v17536_v29  ;;  %v3599_v21 = vsel %vm17539_vm10, %v3591_v18, %v17538_v54  ;;  %vm17541_vm11 = vmmov %vm17487_vm0  ;;  %v17542_v36 = vld [vmem:[#allocation208_spill] sm:$0xff]  ;;  %v17547_v53 = vld [vmem:[#allocation217_spill] sm:$0xff] }
 0x526   :  { %v3598_v20 = vsel %vm17541_vm11, %v3590_v32, %v17540_v44  ;;  %v2878_v33 = vrot.slane %v12154_v3, %v17542_v36  ;;  %vm17544_vm13 = vmmov %vm17487_vm0  ;;  %v2882_v44 = vrot.slane %v12158_v40, %v17542_v36  ;;  %v17549_v18 = vld [vmem:[#allocation134_spill] sm:$0xff]  ;;  %v17551_v29 = vld [vmem:[#allocation199_spill] sm:$0xff]  ;;  %vm4110_vm11 = vcmask 1043456  }
 0x527   :  { %v3601_v22 = vsel %vm17544_vm13, %v3593_v9, %v17543_v35  ;;  %vm17546_vm14 = vmmov %vm17487_vm0  ;;  %v12346_v26 = vsel %vm1650_vm8, %v3597_v57, %v17551_v29  ;;  %v17555_v35 = vld [vmem:[#allocation203_spill] sm:$0xff]  ;;  %v17586_v0 = vld [vmem:[#allocation210_spill] sm:$0xff] }
 0x528   :  { %v3600_v43 = vsel %vm17546_vm14, %v3592_v16, %v17545_v61  ;;  %vm17548_vm15 = vmmov %vm17487_vm0  ;;  %vm3003_vm0 = vcmask 1046528   ;;  %17552 = vst [vmem:[#allocation76_spill] sm:$0xff] %v12346_v26  ;;  %v12352_v16 = vsel %vm1650_vm8, %v3599_v21, %v17555_v35  ;;  %v12354_v61 = vpop.permute.xlu1 %4283  ;;  %v17565_v29 = vld [vmem:[#allocation123_spill] sm:$0xff]  ;;  %v3616_v41 = vrot.slane %v12154_v3, %v17586_v0 }
 0x529   :  { %v3603_v54 = vsel %vm17548_vm15, %v3595_v46, %v17547_v53  ;;  %vm17550_vm4 = vmmov %vm17499_vm1  ;;  %17556 = vst [vmem:[#allocation96_spill] sm:$0xff] %v12352_v16  ;;  %v17557_v46 = vld [vmem:[#allocation202_spill] sm:$0xff]  ;;  %v3620_v25 = vrot.slane %v12158_v40, %v17586_v0 }
 0x52a   :  { %v3602_v32 = vsel %vm17550_vm4, %v3594_v37, %v17549_v18  ;;  %vm17554_vm5 = vmmov %vm17499_vm1  ;;  %v12360_v53 = vsel %vm1650_vm8, %v3598_v20, %v17557_v46  ;;  %v17559_v37 = vld [vmem:[#allocation119_spill] sm:$0xff]  ;;  %v17561_v18 = vld [vmem:[#allocation209_spill] sm:$0xff]  ;;  %v3958_v20 = vsel %vm1611_vm12, %v17568_v30, %v17567_v10  ;;  %v2939_v46 = vmul.f32 %v2878_v33, %v12138_v39 }
 0x52b   :  { %v3604_v9 = vsel %vm17554_vm5, %v3596_v4, %v17553_v2  ;;  %17558 = vst [vmem:[#allocation67_spill] sm:$0xff] %v12360_v53  ;;  %v12364_v57 = vsel %vm1650_vm8, %v3601_v22, %v17559_v37  ;;  %v12368_v2 = vsel %vm1650_vm8, %v3600_v43, %v17561_v18  ;;  %v17563_v4 = vld [vmem:[#allocation212_spill] sm:$0xff]  ;;  %v12376_v35 = vsel %vm1650_vm8, %v3602_v32, %v17565_v29  ;;  %v12385_v43 = vpop.permute.xlu0 %4281  ;;  %v17569_v37 = vld [vmem:[#allocation137_spill] sm:$0xff]  ;;  %v17578_v16 = vld [vmem:[#allocation158_spill] sm:$0xff] }
 0x52c   :  { %17560 = vst [vmem:[#allocation153_spill] sm:$0xff] %v12364_v57  ;;  %17562 = vst [vmem:[#allocation163_spill] sm:$0xff] %v12368_v2  ;;  %v12372_v21 = vsel %vm1650_vm8, %v3603_v54, %v17563_v4  ;;  %v2943_v22 = vmul.f32 %v2878_v33, %v12176_v15  ;;  %v12389_v54 = vsel %vm1650_vm8, %v3604_v9, %v17569_v37  ;;  %v17571_v18 = vld [vmem:[#allocation68_spill] sm:$0xff]  ;;  %v17572_v32 = vld [vmem:[#allocation53_spill] sm:$0xff]  ;;  %vm4479_vm5 = vcmask 1042432  }
 0x52d   :  { %17564 = vst [vmem:[#allocation162_spill] sm:$0xff] %v12372_v21  ;;  %17566 = vst [vmem:[#allocation165_spill] sm:$0xff] %v12376_v35  ;;  %v3960_v4 = vsel %vm1611_vm12, %v17572_v32, %v17571_v18  ;;  %v2940_v29 = vmul.f32 %v2882_v44, %v12138_v39  ;;  %v2944_v10 = vmul.f32 %v2882_v44, %v12176_v15  ;;  %v17573_v30 = vld [vmem:[#allocation149_spill] sm:$0xff]  ;;  %v17574_v21 = vld [vmem:[#allocation156_spill] sm:$0xff]  ;;  %v12407_v18 = vpop.permute.xlu1 %4287 }
 0x52e   :  { %17570 = vst [vmem:[#allocation167_spill] sm:$0xff] %v12389_v54  ;;  %v3959_v33 = vsel %vm1611_vm12, %v17574_v21, %v17573_v30  ;;  %v17575_v35 = vld [vmem:[#allocation142_spill] sm:$0xff]  ;;  %v17579_v37 = vld [vmem:[#allocation211_spill] sm:$0xff]  ;;  %v17581_v32 = vld [vmem:[#allocation57_spill] sm:$0xff]  ;;  %v3005_v27 = vrot.slane %v2943_v22, 1  ;;  %v3678_v34 = vmul.f32 %v3620_v25, %v12346_v26 }
 0x52f   :  { %v3962_v57 = vsel %vm1611_vm12, %v17576_v60, %v17575_v35  ;;  %v17577_v2 = vld [vmem:[#allocation146_spill] sm:$0xff]  ;;  %v3247_v54 = vrot.slane %v12154_v3, %v17579_v37  ;;  %v17580_v44 = vld [vmem:[#allocation27_spill] sm:$0xff]  ;;  %v17583_v15 = vld [vmem:[#allocation160_spill] sm:$0xff]  ;;  %v3007_v22 = vrot.slane %v2940_v29, 1 }
 0x530   :  { %v3961_v9 = vsel %vm1611_vm12, %v17578_v16, %v17577_v2  ;;  %v3964_v21 = vsel %vm1611_vm12, %v17581_v32, %v17580_v44  ;;  %v17582_v30 = vld [vmem:[#allocation95_spill] sm:$0xff]  ;;  %v17584_v35 = vld [vmem:[#allocation14_spill] sm:$0xff]  ;;  %vm17585_vm6 = vmmov %vm17499_vm1  ;;  %v3251_v16 = vrot.slane %v12158_v40, %v17579_v37  ;;  %v3004_v2 = vrot.slane %v2939_v46, 1  ;;  %v12427_v44 = vpop.permute.xlu0 %4285 }
 0x531   :  { %v3963_v60 = vsel %vm1611_vm12, %v17583_v15, %v17582_v30  ;;  %v3966_v39 = vsel %vm17585_vm6, %v3958_v20, %v17584_v35  ;;  %v17587_v15 = vld [vmem:[#allocation35_spill] sm:$0xff]  ;;  %v17588_v32 = vld [vmem:[#allocation166_spill] sm:$0xff]  ;;  %v3008_v35 = vrot.slane %v2944_v10, 1  ;;  %vm17590_vm3 = vmmov %vm17499_vm1  ;;  %v3308_v36 = vmul.f32 %v3247_v54, %v12258_v24  ;;  %v12441_v52 = vpop.permute.xlu1 %4291 }
 0x532   :  { %v3965_v20 = vsel %vm1611_vm12, %v17588_v32, %v17587_v15  ;;  %v17589_v30 = vld [vmem:[#allocation83_spill] sm:$0xff]  ;;  %v3967_v45 = vsel %vm17590_vm3, %v3959_v33, %v11695_v50  ;;  %v17591_v37 = vld [vmem:[#allocation121_spill] sm:$0xff]  ;;  %17592 = vst [vmem:[#allocation169_spill] sm:$0xff] %v12441_v52  ;;  %vm17594_vm9 = vmmov %vm17499_vm1  ;;  %v3312_v50 = vmul.f32 %v3247_v54, %v12268_v11  ;;  %v3309_v10 = vmul.f32 %v3251_v16, %v12258_v24 }
 0x533   :  { %v3968_v46 = vsel %vm17499_vm1, %v3960_v4, %v17589_v30  ;;  %v2638_v0 = vrot.slane %v12154_v3, %v17591_v37  ;;  %v2642_v1 = vrot.slane %v12158_v40, %v17591_v37  ;;  %v17593_v4 = vld [vmem:[#allocation33_spill] sm:$0xff]  ;;  %v3313_v33 = vmul.f32 %v3251_v16, %v12268_v11  ;;  %vm17595_vm10 = vmmov %vm17499_vm1 }
 0x534   :  { %v12447_v29 = vsel %vm17594_vm9, %v3962_v57, %v17593_v4  ;;  %v12454_v15 = vsel %vm17595_vm10, %v3961_v9, %v11746_v7  ;;  %v3006_v32 = vsel %vm3003_vm0, %v3004_v2, %v3005_v27  ;;  %v3677_v30 = vmul.f32 %v3616_v41, %v12346_v26  ;;  %v12461_v57 = vpop.permute.xlu0 %4289  ;;  %v17598_v11 = vld [vmem:[#allocation213_spill] sm:$0xff]  ;;  %v17599_v9 = vld [vmem:[#allocation155_spill] sm:$0xff]  ;;  %vm17604_vm13 = vmmov %vm17499_vm1 }
 0x535   :  { %17597 = vst [vmem:[#allocation107_spill] sm:$0xff] %v12461_v57  ;;  %v3009_v54 = vsel %vm3003_vm0, %v3007_v22, %v3008_v35  ;;  %v3681_v4 = vmul.f32 %v3616_v41, %v12360_v53  ;;  %v3682_v16 = vmul.f32 %v3620_v25, %v12360_v53  ;;  %v3985_v7 = vrot.slane %v12154_v3, %v17598_v11  ;;  %v4304_v52 = vpop.permute.xlu1 %4303  ;;  %v17603_v57 = vld [vmem:[#allocation43_spill] sm:$0xff]  ;;  %vm17605_vm14 = vmmov %vm17499_vm1 }
 0x536   :  { %v2699_v27 = vmul.f32 %v2638_v0, %v17599_v9  ;;  %v3373_v2 = vrot.slane %v3308_v36, 2  ;;  %v2700_v24 = vmul.f32 %v2642_v1, %v17599_v9  ;;  %v3989_v26 = vrot.slane %v12158_v40, %v17598_v11  ;;  %v17602_v9 = vld [vmem:[#allocation93_spill] sm:$0xff]  ;;  %vm17607_vm15 = vmmov %vm17499_vm1 }
 0x537   :  { %v3374_v22 = vrot.slane %v3312_v50, 2  ;;  %v3376_v35 = vrot.slane %v3309_v10, 2  ;;  %v3377_v41 = vrot.slane %v3313_v33, 2  ;;  %v12476_v25 = vsel %vm1650_vm8, %v3967_v45, %v11920_v62  ;;  %5426 = vrot.lane.b32.xlu1 %v17602_v9, %s8629_s17  ;;  %vm17610_vm4 = vmmov %vm17499_vm1 }
 0x538   :  { %17600 = vst [vmem:[#allocation164_spill] sm:$0xff] %v12476_v25  ;;  %v12480_v0 = vsel %vm1650_vm8, %v3966_v39, %v11829_v49  ;;  %v3068_v1 = vadd.f32 %v3006_v32, %v2699_v27  ;;  %v3069_v36 = vadd.f32 %v3009_v54, %v2700_v24  ;;  %v3742_v53 = vrot.slane %v3677_v30, 3  ;;  %v12484_v11 = vpop.permute.xlu0 %4293  ;;  %v17606_v32 = vld [vmem:[#allocation138_spill] sm:$0xff]  ;;  %vm17614_vm6 = vmmov %vm17499_vm1 }
 0x539   :  { %17601 = vst [vmem:[#allocation105_spill] sm:$0xff] %v12480_v0  ;;  %v3743_v50 = vrot.slane %v3681_v4, 3  ;;  %v3745_v10 = vrot.slane %v3678_v34, 3  ;;  %v3746_v33 = vrot.slane %v3682_v16, 3  ;;  %v4046_v8 = vmul.f32 %v3985_v7, %v12480_v0  ;;  %v12493_v24 = vpop.permute.xlu1 %4307  ;;  %5424 = vrot.lane.b32.xlu0 %v17606_v32, %s8629_s17  ;;  %v17609_v4 = vld [vmem:[#allocation188_spill] sm:$0xff]  ;;  %vm17633_vm3 = vmmov %vm17499_vm1 }
 0x53a   :  { %v3972_v62 = vsel %vm17604_vm13, %v3964_v21, %v17603_v57  ;;  %v3971_v49 = vsel %vm17605_vm14, %v3963_v60, %v11804_v63  ;;  %v4047_v39 = vmul.f32 %v3989_v26, %v12480_v0  ;;  %v4050_v45 = vmul.f32 %v3985_v7, %v12476_v25  ;;  %vm17634_vm9 = vmmov %vm17499_vm1 }
 0x53b   :  { %v3973_v34 = vsel %vm17607_vm15, %v3965_v20, %v11858_v59  ;;  %v3375_v30 = vsel %vm3372_vm7, %v3373_v2, %v3374_v22  ;;  %v3378_v54 = vsel %vm3372_vm7, %v3376_v35, %v3377_v41  ;;  %v4051_v21 = vmul.f32 %v3989_v26, %v12476_v25  ;;  %5434 = vrot.lane.b32.xlu1 %v17596_v56, %s8631_s2  ;;  %v12516_v26 = vld [vmem:[%s16162_s4 + $0x20] sm:$0xff]  ;;  %v17613_v41 = vld [vmem:[#allocation150_spill] sm:$0xff]  ;;  %vm17636_vm10 = vmmov %vm17499_vm1 }
 0x53c   :  { %v12504_v63 = vsel %vm1650_vm8, %v3968_v46, %v11887_v5  ;;  %v3437_v60 = vadd.f32 %v3375_v30, %v3068_v1  ;;  %v3438_v57 = vadd.f32 %v3378_v54, %v3069_v36  ;;  %v4328_v16 = vsel %vm1611_vm12, %v17609_v4, %v12162_v23  ;;  %v4306_v59 = vpop.permute.xlu0 %4305  ;;  %v12523_v23 = vld [vmem:[%s16162_s4 + $0x28] sm:$0xff]  ;;  %v17615_v36 = vld [vmem:[#allocation125_spill] sm:$0xff]  ;;  %vm17638_vm13 = vmmov %vm17499_vm1 }
 0x53d   :  { %17608 = vst [vmem:[#allocation22_spill] sm:$0xff] %v12504_v63  ;;  %v3744_v20 = vsel %vm3741_vm2, %v3742_v53, %v3743_v50  ;;  %v3747_v7 = vsel %vm3741_vm2, %v3745_v10, %v3746_v33  ;;  %v4111_v27 = vrot.slane %v4046_v8, 4  ;;  %v4336_v5 = vsel %vm17610_vm4, %v4328_v16, %v12385_v43  ;;  %v17611_v53 = vld [vmem:[#allocation16_spill] sm:$0xff]  ;;  %v4312_v35 = vpop.permute.xlu1 %4311  ;;  %5428 = vrot.lane.b32.xlu0 %v17613_v41, %s8629_s17  ;;  %vm17640_vm14 = vmmov %vm17499_vm1 }
 0x53e   :  { %v4114_v46 = vrot.slane %v4047_v39, 4  ;;  %v4112_v2 = vrot.slane %v4050_v45, 4  ;;  %v4327_v22 = vsel %vm1611_vm12, %v17611_v53, %v12051_v58  ;;  %v12529_v8 = vsel %vm1650_vm8, %v4336_v5, %v4306_v59  ;;  %v17624_v16 = vld [vmem:[#allocation56_spill] sm:$0xff]  ;;  %v17631_v53 = vld [vmem:[#allocation111_spill] sm:$0xff]  ;;  %vm17677_vm15 = vmmov %vm17499_vm1 }
 0x53f   :  { %17612 = vst [vmem:[#allocation168_spill] sm:$0xff] %v12529_v8  ;;  %v4115_v43 = vrot.slane %v4051_v21, 4  ;;  %v4335_v1 = vsel %vm17614_vm6, %v4327_v22, %v12306_v47  ;;  %v4354_v50 = vrot.slane %v12154_v3, %v17615_v36  ;;  %v4358_v10 = vrot.slane %v12158_v40, %v17615_v36  ;;  %5438 = vrot.lane.b32.xlu1 %v17602_v9, %s8631_s2  ;;  %vm17683_vm4 = vmmov %vm17499_vm1 }
 0x540   :  { %v3806_v33 = vadd.f32 %v3744_v20, %v3437_v60  ;;  %v3807_v58 = vadd.f32 %v3747_v7, %v3438_v57  ;;  %v12541_v39 = vadd.f32 %v12516_v26, %v11945_v42  ;;  %v12544_v45 = vsel %vm1650_vm8, %v4335_v1, %v4304_v52  ;;  %v4310_v30 = vpop.permute.xlu0 %4309  ;;  %v17626_v7 = vld [vmem:[#allocation215_spill] sm:$0xff]  ;;  %vm17684_vm6 = vmmov %vm17499_vm1 }
 0x541   :  { %17617 = vst [vmem:[#allocation48_spill] sm:$0xff] %v12544_v45  ;;  %v12551_v47 = vsel %vm1650_vm8, %v12447_v29, %v11947_v14  ;;  %v12555_v54 = vadd.f32 %v12523_v23, %v11962_v28  ;;  %v4419_v21 = vmul.f32 %v4354_v50, %v12529_v8  ;;  %v4420_v42 = vmul.f32 %v4358_v10, %v12529_v8  ;;  %v4316_v28 = vpop.permute.xlu1 %4315  ;;  %v17659_v8 = vld [vmem:[#allocation96_spill] sm:$0xff] }
 0x542   :  { %17616 = vst [vmem:[#allocation172_spill] sm:$0xff] %v12541_v39  ;;  %17618 = vst [vmem:[#allocation171_spill] sm:$0xff] %v12551_v47  ;;  %v4113_v52 = vsel %vm4110_vm11, %v4111_v27, %v4112_v2  ;;  %v12563_v60 = vsel %vm1650_vm8, %v12454_v15, %v11977_v19  ;;  %v12567_v57 = vsel %vm1650_vm8, %v3972_v62, %v11997_v12  ;;  %5436 = vrot.lane.b32.xlu0 %v17606_v32, %s8631_s2 }
 0x543   :  { %17619 = vst [vmem:[#allocation218_spill] sm:$0xff] %v12555_v54  ;;  %17620 = vst [vmem:[#allocation174_spill] sm:$0xff] %v12563_v60  ;;  %v12571_v14 = vsel %vm1650_vm8, %v3971_v49, %v12027_v6  ;;  %v4116_v29 = vsel %vm4110_vm11, %v4114_v46, %v4115_v43  ;;  %v12578_v4 = vsel %vm1650_vm8, %v3973_v34, %v12080_v38  ;;  %v17625_v49 = vld [vmem:[#allocation91_spill] sm:$0xff]  ;;  %5446 = vrot.lane.b32.xlu1 %v17596_v56, %s8632_s12  ;;  %v17632_v43 = vld [vmem:[#allocation113_spill] sm:$0xff] }
 0x544   :  { %17621 = vst [vmem:[#allocation87_spill] sm:$0xff] %v12567_v57  ;;  %17622 = vst [vmem:[#allocation170_spill] sm:$0xff] %v12571_v14  ;;  %v4415_v19 = vmul.f32 %v4354_v50, %v12544_v45  ;;  %v4416_v15 = vmul.f32 %v4358_v10, %v12544_v45  ;;  %v4175_v12 = vadd.f32 %v4113_v52, %v3806_v33  ;;  %v4314_v20 = vpop.permute.xlu0 %4313  ;;  %v4481_v38 = vrot.slane %v4419_v21, 5  ;;  %v17635_v33 = vld [vmem:[#allocation169_spill] sm:$0xff] }
 0x545   :  { %17623 = vst [vmem:[#allocation220_spill] sm:$0xff] %v12578_v4  ;;  %v4176_v62 = vadd.f32 %v4116_v29, %v3807_v58  ;;  %v4329_v6 = vsel %vm1611_vm12, %v17624_v16, %v12130_v55  ;;  %v4331_v59 = vsel %vm1611_vm12, %v17625_v49, %v12190_v51  ;;  %v4484_v34 = vrot.slane %v4420_v42, 5  ;;  %v17629_v55 = vld [vmem:[#allocation108_spill] sm:$0xff]  ;;  %v4625_v1 = vpop.permute.xlu1 %4624  ;;  %v2300_v58 = vpop.f32.mrb[20].mxu1  ;;  %v17637_v42 = vld [vmem:[#allocation107_spill] sm:$0xff] }
 0x546   :  { %v12592_v27 = vrot.slane %v12154_v3, %v17626_v7  ;;  %v12596_v5 = vrot.slane %v12158_v40, %v17626_v7  ;;  %v4330_v46 = vsel %vm1611_vm12, %v17629_v55, %v12216_v13  ;;  %v17630_v51 = vld [vmem:[#allocation60_spill] sm:$0xff]  ;;  %v4332_v22 = vsel %vm1611_vm12, %v17631_v53, %v12276_v48  ;;  %5440 = vrot.lane.b32.xlu0 %v17613_v41, %s8631_s2 }
 0x547   :  { %v4333_v2 = vsel %vm1611_vm12, %v17630_v51, %v12246_v31  ;;  %v4334_v3 = vsel %vm1611_vm12, %v17632_v43, %v12332_v17  ;;  %v4337_v40 = vsel %vm17499_vm1, %v4329_v6, %v12354_v61  ;;  %v4480_v13 = vrot.slane %v4415_v19, 5  ;;  %5450 = vrot.lane.b32.xlu1 %v17602_v9, %s8632_s12  ;;  %v17639_v19 = vld [vmem:[#allocation78_spill] sm:$0xff]  ;;  %v17646_v51 = vld [vmem:[#allocation211_spill] sm:$0xff]  ;;  %v17665_v4 = vld [vmem:[#allocation44_spill] sm:$0xff] }
 0x548   :  { %17627 = vst [vmem:[#allocation173_spill] sm:$0xff] %v12592_v27  ;;  %17628 = vst [vmem:[#allocation62_spill] sm:$0xff] %v12596_v5  ;;  %v4483_v50 = vrot.slane %v4416_v15, 5  ;;  %v4339_v10 = vsel %vm17633_vm3, %v4331_v59, %v12407_v18  ;;  %v4338_v48 = vsel %vm17634_vm9, %v4330_v46, %v12427_v44  ;;  %v4341_v17 = vsel %vm17636_vm10, %v4333_v2, %v17635_v33  ;;  %v4318_v21 = vpop.permute.xlu0 %4317  ;;  %v2302_v15 = vpop.f32.mrb[21].mxu1  ;;  %v17643_v59 = vld [vmem:[#allocation104_spill] sm:$0xff]  ;;  %v17647_v2 = vld [vmem:[#allocation210_spill] sm:$0xff] }
 0x549   :  { %v4340_v52 = vsel %vm17638_vm13, %v4332_v22, %v17637_v42  ;;  %v4482_v29 = vsel %vm4479_vm5, %v4480_v13, %v4481_v38  ;;  %v12631_v44 = vadd.f32 %v17639_v19, %v2300_v58  ;;  %v4342_v16 = vsel %vm17640_vm14, %v4334_v3, %v12484_v11  ;;  %v12645_v38 = vpop.permute.xlu1 %4628  ;;  %v17645_v46 = vld [vmem:[#allocation208_spill] sm:$0xff]  ;;  %v17650_v3 = vld [vmem:[#allocation213_spill] sm:$0xff]  ;;  %v12668_v13 = vpop.f32.mrb[22].mxu1  ;;  %v17654_v58 = vld [vmem:[#allocation66_spill] sm:$0xff] }
 0x54a   :  { %v4485_v18 = vsel %vm4479_vm5, %v4483_v50, %v4484_v34  ;;  %v12637_v6 = vsel %vm1650_vm8, %v4337_v40, %v12493_v24  ;;  %v12640_v49 = vsel %vm1650_vm8, %v4339_v10, %v4312_v35  ;;  %v12643_v55 = vadd.f32 %v17643_v59, %v2302_v15  ;;  %5448 = vrot.lane.b32.xlu0 %v17606_v32, %s8632_s12  ;;  %v17651_v40 = vld [vmem:[#allocation120_spill] sm:$0xff]  ;;  %v17652_v10 = vld [vmem:[#allocation185_spill] sm:$0xff]  ;;  %v17657_v61 = vld [vmem:[#allocation118_spill] sm:$0xff] }
 0x54b   :  { %17641 = vst [vmem:[#allocation176_spill] sm:$0xff] %v12637_v6  ;;  %17642 = vst [vmem:[#allocation221_spill] sm:$0xff] %v12640_v49  ;;  %v12650_v34 = vsel %vm1650_vm8, %v4338_v48, %v4310_v30  ;;  %v2894_v11 = vrot.slane %v12631_v44, %v17645_v46  ;;  %v3263_v24 = vrot.slane %v12631_v44, %v17646_v51  ;;  %5630 = vrot.lane.b32.xlu1 %v17651_v40, %s8629_s17  ;;  %v17653_v33 = vld [vmem:[#allocation49_spill] sm:$0xff]  ;;  %v17658_v32 = vld [vmem:[#allocation131_spill] sm:$0xff]  ;;  %vm4848_vm14 = vcmask 1041408  }
 0x54c   :  { %17644 = vst [vmem:[#allocation175_spill] sm:$0xff] %v12650_v34  ;;  %v3632_v35 = vrot.slane %v12631_v44, %v17647_v2  ;;  %v12658_v53 = vadd.f32 %v4482_v29, %v4175_v12  ;;  %v12660_v22 = vadd.f32 %v4485_v18, %v4176_v62  ;;  %v2654_v43 = vrot.slane %v12631_v44, %v17591_v37  ;;  %v12670_v50 = vpop.permute.xlu0 %4626  ;;  %v2308_v29 = vpop.f32.mrb[23].mxu1  ;;  %vm17685_vm3 = vmmov %vm17499_vm1 }
 0x54d   :  { %v4001_v30 = vrot.slane %v12631_v44, %v17650_v3  ;;  %v2947_v48 = vmul.f32 %v2894_v11, %v17652_v10  ;;  %v2951_v12 = vmul.f32 %v2894_v11, %v17653_v33  ;;  %v12675_v62 = vmul.f32 %v3263_v24, %v17654_v58  ;;  %v4633_v11 = vpop.permute.xlu1 %4632  ;;  %vm17690_vm9 = vmmov %vm17499_vm1 }
 0x54e   :  { %17648 = vst [vmem:[#allocation178_spill] sm:$0xff] %v12658_v53  ;;  %17649 = vst [vmem:[#allocation139_spill] sm:$0xff] %v12660_v22  ;;  %v2898_v42 = vrot.slane %v12643_v55, %v17645_v46  ;;  %v12680_v18 = vsel %vm1650_vm8, %v4341_v17, %v4316_v28  ;;  %v12683_v15 = vsel %vm1650_vm8, %v4340_v52, %v4314_v20  ;;  %5452 = vrot.lane.b32.xlu0 %v17613_v41, %s8632_s12  ;;  %v17661_v20 = vld [vmem:[#allocation31_spill] sm:$0xff] }
 0x54f   :  { %17655 = vst [vmem:[#allocation177_spill] sm:$0xff] %v12680_v18  ;;  %17656 = vst [vmem:[#allocation180_spill] sm:$0xff] %v12683_v15  ;;  %v12687_v31 = vsel %vm1611_vm12, %v17657_v61, %v4625_v1  ;;  %v12690_v9 = vmul.f32 %v3263_v24, %v17658_v32  ;;  %v3016_v56 = vrot.slane %v2947_v48, 1  ;;  %v3017_v49 = vrot.slane %v2951_v12, 1  ;;  %v17662_v52 = vld [vmem:[#allocation163_spill] sm:$0xff]  ;;  %v17663_v48 = vld [vmem:[#allocation154_spill] sm:$0xff] }
 0x550   :  { %v12695_v45 = vmul.f32 %v3632_v35, %v17659_v8  ;;  %v12698_v28 = vsel %vm1650_vm8, %v4342_v16, %v4318_v21  ;;  %v2703_v17 = vmul.f32 %v2654_v43, %v17661_v20  ;;  %v12702_v1 = vmul.f32 %v3632_v35, %v17662_v52  ;;  %5634 = vrot.lane.b32.xlu1 %v17663_v48, %s8629_s17  ;;  %v4631_v12 = vpop.permute.xlu0 %4630  ;;  %vm17711_vm10 = vmmov %vm17499_vm1 }
 0x551   :  { %17660 = vst [vmem:[#allocation179_spill] sm:$0xff] %v12698_v28  ;;  %v12706_v61 = vrot.slane %v12631_v44, %v17615_v36  ;;  %v2658_v24 = vrot.slane %v12643_v55, %v17591_v37  ;;  %v3385_v41 = vrot.slane %v12675_v62, 2  ;;  %v12714_v21 = vmul.f32 %v4001_v30, %v12504_v63  ;;  %v4637_v25 = vpop.permute.xlu1 %4636  ;;  %v17664_v62 = vld [vmem:[#allocation206_spill] sm:$0xff]  ;;  %vm17723_vm13 = vmmov %vm17499_vm1 }
 0x552   :  { %v12717_v16 = vmul.f32 %v4001_v30, %v12563_v60  ;;  %v2948_v35 = vmul.f32 %v2898_v42, %v17652_v10  ;;  %v3386_v43 = vrot.slane %v12690_v9, 2  ;;  %v2952_v28 = vmul.f32 %v2898_v42, %v17653_v33  ;;  %5632 = vrot.lane.b32.xlu0 %v17664_v62, %s8629_s17 }
 0x553   :  { %v3267_v18 = vrot.slane %v12643_v55, %v17646_v51  ;;  %v3636_v15 = vrot.slane %v12643_v55, %v17647_v2  ;;  %v3018_v0 = vsel %vm3003_vm0, %v3016_v56, %v3017_v49  ;;  %v3754_v30 = vrot.slane %v12695_v45, 3 }
 0x554   :  { %v3019_v22 = vrot.slane %v2948_v35, 1  ;;  %v4005_v9 = vrot.slane %v12643_v55, %v17650_v3  ;;  %v3020_v10 = vrot.slane %v2952_v28, 1  ;;  %5638 = vrot.lane.b32.xlu1 %v17665_v4, %s8629_s17  ;;  %v4635_v57 = vpop.permute.xlu0 %4634  ;;  %v2704_v5 = vmul.f32 %v2658_v24, %v17661_v20  ;;  %v17707_v20 = vld [vmem:[#allocation170_spill] sm:$0xff] }
 0x555   :  { %v3317_v42 = vmul.f32 %v3267_v18, %v17654_v58  ;;  %v3321_v33 = vmul.f32 %v3267_v18, %v17658_v32  ;;  %v3686_v53 = vmul.f32 %v3636_v15, %v17659_v8  ;;  %v3690_v56 = vmul.f32 %v3636_v15, %v17662_v52  ;;  %v4649_v32 = vpop.permute.xlu1 %4648  ;;  %v17666_v8 = vld [vmem:[#allocation129_spill] sm:$0xff] }
 0x556   :  { %v4055_v45 = vmul.f32 %v4005_v9, %v12504_v63  ;;  %v4059_v49 = vmul.f32 %v4005_v9, %v12563_v60  ;;  %v3755_v28 = vrot.slane %v12702_v1, 3  ;;  %v3021_v35 = vsel %vm3003_vm0, %v3019_v22, %v3020_v10  ;;  %5636 = vrot.lane.b32.xlu0 %v17666_v8, %s8629_s17  ;;  %v17667_v1 = vld [vmem:[#allocation198_spill] sm:$0xff]  ;;  %v17668_v10 = vld [vmem:[#allocation143_spill] sm:$0xff] }
 0x557   :  { %v3388_v58 = vrot.slane %v3317_v42, 2  ;;  %v3389_v18 = vrot.slane %v3321_v33, 2  ;;  %v3072_v27 = vadd.f32 %v3018_v0, %v2703_v17  ;;  %v4123_v14 = vrot.slane %v12714_v21, 4 }
 0x558   :  { %v4124_v24 = vrot.slane %v12717_v16, 4  ;;  %v3073_v15 = vadd.f32 %v3021_v35, %v2704_v5  ;;  %v3757_v52 = vrot.slane %v3686_v53, 3  ;;  %v3758_v63 = vrot.slane %v3690_v56, 3  ;;  %5642 = vrot.lane.b32.xlu1 %v17668_v10, %s8629_s17  ;;  %v4639_v33 = vpop.permute.xlu0 %4638  ;;  %v17670_v5 = vld [vmem:[#allocation200_spill] sm:$0xff]  ;;  %v17672_v16 = vld [vmem:[#allocation85_spill] sm:$0xff]  ;;  %v17673_v35 = vld [vmem:[#allocation135_spill] sm:$0xff] }
 0x559   :  { %v4374_v9 = vrot.slane %v12643_v55, %v17615_v36  ;;  %v4698_v22 = vsel %vm1611_vm12, %v17667_v1, %v12645_v38  ;;  %v4126_v42 = vrot.slane %v4055_v45, 4  ;;  %v4127_v0 = vrot.slane %v4059_v49, 4  ;;  %v4653_v56 = vpop.permute.xlu1 %4652 }
 0x55a   :  { %v12756_v17 = vadd.f32 %v12516_v26, %v12668_v13  ;;  %v4697_v53 = vsel %vm1611_vm12, %v17670_v5, %v12670_v50  ;;  %v12762_v21 = vadd.f32 %v12523_v23, %v2308_v29  ;;  %v4700_v38 = vsel %vm1611_vm12, %v17672_v16, %v4633_v11  ;;  %5640 = vrot.lane.b32.xlu0 %v17673_v35, %s8629_s17  ;;  %v17674_v13 = vld [vmem:[#allocation205_spill] sm:$0xff] }
 0x55b   :  { %v3387_v45 = vsel %vm3372_vm7, %v3385_v41, %v3386_v43  ;;  %v3390_v49 = vsel %vm3372_vm7, %v3388_v58, %v3389_v18  ;;  %v4699_v1 = vsel %vm1611_vm12, %v17674_v13, %v4631_v12  ;;  %v3756_v41 = vsel %vm3741_vm2, %v3754_v30, %v3755_v28  ;;  %v17679_v30 = vld [vmem:[#allocation219_spill] sm:$0xff] }
 0x55c   :  { %17669 = vst [vmem:[#allocation182_spill] sm:$0xff] %v12756_v17  ;;  %17671 = vst [vmem:[#allocation181_spill] sm:$0xff] %v12762_v21  ;;  %v17675_v17 = vld [vmem:[#allocation204_spill] sm:$0xff]  ;;  %v3441_v5 = vadd.f32 %v3387_v45, %v3072_v27  ;;  %v3442_v29 = vadd.f32 %v3390_v49, %v3073_v15  ;;  %v17676_v21 = vld [vmem:[#allocation122_spill] sm:$0xff]  ;;  %5654 = vrot.lane.b32.xlu1 %v17651_v40, %s8631_s2  ;;  %v4651_v11 = vpop.permute.xlu0 %4650  ;;  %v3759_v58 = vsel %vm3741_vm2, %v3757_v52, %v3758_v63 }
 0x55d   :  { %v4702_v50 = vsel %vm1611_vm12, %v17675_v17, %v4637_v25  ;;  %v12776_v60 = vsel %vm1611_vm12, %v17676_v21, %v4635_v57  ;;  %v4423_v12 = vmul.f32 %v12706_v61, %v12637_v6  ;;  %v12786_v25 = vsel %vm17677_vm15, %v12687_v31, %v4649_v32  ;;  %v4657_v18 = vpop.permute.xlu1 %4656  ;;  %v17678_v15 = vld [vmem:[#allocation141_spill] sm:$0xff]  ;;  %vm17961_vm15 = vmmov %vm17499_vm1 }
 0x55e   :  { %v3810_v27 = vadd.f32 %v3756_v41, %v3441_v5  ;;  %v3811_v43 = vadd.f32 %v3759_v58, %v3442_v29  ;;  %v4424_v57 = vmul.f32 %v4374_v9, %v12637_v6  ;;  %5644 = vrot.lane.b32.xlu0 %v17678_v15, %s8629_s17  ;;  %v4125_v17 = vsel %vm4110_vm11, %v4123_v14, %v4124_v24 }
 0x55f   :  { %v4427_v63 = vmul.f32 %v12706_v61, %v12650_v34  ;;  %v4428_v52 = vmul.f32 %v4374_v9, %v12650_v34  ;;  %v12797_v28 = vrot.slane %v12631_v44, %v17679_v30  ;;  %v4128_v32 = vsel %vm4110_vm11, %v4126_v42, %v4127_v0  ;;  %v17682_v9 = vld [vmem:[#allocation214_spill] sm:$0xff] }
 0x560   :  { %v4179_v31 = vadd.f32 %v4125_v17, %v3810_v27  ;;  %v4492_v21 = vrot.slane %v4423_v12, 5  ;;  %v4495_v16 = vrot.slane %v4424_v57, 5  ;;  %5658 = vrot.lane.b32.xlu1 %v17663_v48, %s8631_s2  ;;  %v4655_v45 = vpop.permute.xlu0 %4654  ;;  %v4180_v49 = vadd.f32 %v4128_v32, %v3811_v43 }
 0x561   :  { %17680 = vst [vmem:[#allocation184_spill] sm:$0xff] %v12797_v28  ;;  %v4493_v14 = vrot.slane %v4427_v63, 5  ;;  %v4496_v24 = vrot.slane %v4428_v52, 5  ;;  %v12804_v61 = vrot.slane %v12643_v55, %v17679_v30  ;;  %v12808_v13 = vsel %vm1611_vm12, %v17682_v9, %v4639_v33  ;;  %v4661_v58 = vpop.permute.xlu1 %4660 }
 0x562   :  { %v12811_v42 = vsel %vm17683_vm4, %v4698_v22, %v4653_v56  ;;  %v12815_v0 = vrot.slane %v12631_v44, %v17626_v7  ;;  %v12819_v5 = vrot.slane %v12643_v55, %v17626_v7  ;;  %v12822_v29 = vsel %vm17684_vm6, %v4697_v53, %v4651_v11  ;;  %v2312_v22 = vpop.f32.mrb[24].mxu1  ;;  %5656 = vrot.lane.b32.xlu0 %v17664_v62, %s8631_s2  ;;  %vm17992_vm4 = vmmov %vm17499_vm1 }
 0x563   :  { %17681 = vst [vmem:[#allocation183_spill] sm:$0xff] %v12804_v61  ;;  %v12825_v41 = vsel %vm17499_vm1, %v4700_v38, %v4657_v18  ;;  %v12828_v33 = vsel %vm17685_vm3, %v4699_v1, %v4655_v45  ;;  %v12834_v44 = vrot.slane %v12541_v39, %v17645_v46  ;;  %v12837_v55 = vadd.f32 %v17639_v19, %v2312_v22  ;;  %v2314_v53 = vpop.f32.mrb[25].mxu1  ;;  %v17704_v61 = vld [vmem:[#allocation165_spill] sm:$0xff]  ;;  %vm18022_vm6 = vmmov %vm17499_vm1 }
 0x564   :  { %17686 = vst [vmem:[#allocation186_spill] sm:$0xff] %v12828_v33  ;;  %v4494_v56 = vsel %vm4479_vm5, %v4492_v21, %v4493_v14  ;;  %v4497_v38 = vsel %vm4479_vm5, %v4495_v16, %v4496_v24  ;;  %v12843_v1 = vrot.slane %v12555_v54, %v17645_v46  ;;  %v12846_v11 = vsel %vm17690_vm9, %v4702_v50, %v4661_v58  ;;  %v4659_v27 = vpop.permute.xlu0 %4658  ;;  %v12875_v45 = vpop.f32.mrb[26].mxu1  ;;  %v17697_v24 = vld [vmem:[#allocation151_spill] sm:$0xff]  ;;  %v17702_v54 = vld [vmem:[#allocation153_spill] sm:$0xff]  ;;  %vm18030_vm3 = vmmov %vm17499_vm1 }
 0x565   :  { %17687 = vst [vmem:[#allocation190_spill] sm:$0xff] %v12834_v44  ;;  %17688 = vst [vmem:[#allocation103_spill] sm:$0xff] %v12837_v55  ;;  %v12849_v12 = vadd.f32 %v17643_v59, %v2314_v53  ;;  %5662 = vrot.lane.b32.xlu1 %v17665_v4, %s8631_s2  ;;  %v12853_v43 = vadd.f32 %v4494_v56, %v4179_v31  ;;  %v12855_v57 = vadd.f32 %v4497_v38, %v4180_v49  ;;  %v4673_v16 = vpop.permute.xlu1 %4672  ;;  %v17696_v49 = vld [vmem:[#allocation99_spill] sm:$0xff]  ;;  %v17699_v53 = vld [vmem:[#allocation65_spill] sm:$0xff]  ;;  %v2320_v38 = vpop.f32.mrb[27].mxu1 }
 0x566   :  { %17689 = vst [vmem:[#allocation191_spill] sm:$0xff] %v12843_v1  ;;  %17691 = vst [vmem:[#allocation26_spill] sm:$0xff] %v12846_v11  ;;  %v2670_v18 = vrot.slane %v12837_v55, %v17591_v37  ;;  %v2910_v17 = vrot.slane %v12837_v55, %v17645_v46  ;;  %v3279_v50 = vrot.slane %v12837_v55, %v17646_v51  ;;  %5660 = vrot.lane.b32.xlu0 %v17666_v8, %s8631_s2  ;;  %v17698_v58 = vld [vmem:[#allocation187_spill] sm:$0xff]  ;;  %v17701_v1 = vld [vmem:[#allocation144_spill] sm:$0xff]  ;;  %v2324_v33 = vpop.f32.mrb[28].mxu1 }
 0x567   :  { %17692 = vst [vmem:[#allocation193_spill] sm:$0xff] %v12849_v12  ;;  %17693 = vst [vmem:[#allocation54_spill] sm:$0xff] %v12853_v43  ;;  %v3648_v63 = vrot.slane %v12837_v55, %v17647_v2  ;;  %v4017_v52 = vrot.slane %v12837_v55, %v17650_v3  ;;  %v12869_v32 = vrot.slane %v12837_v55, %v17615_v36 }
 0x568   :  { %17694 = vst [vmem:[#allocation192_spill] sm:$0xff] %v12855_v57  ;;  %v2674_v31 = vrot.slane %v12849_v12, %v17591_v37  ;;  %v2914_v21 = vrot.slane %v12849_v12, %v17645_v46  ;;  %v2707_v14 = vmul.f32 %v2670_v18, %v17696_v49  ;;  %v2955_v9 = vmul.f32 %v2910_v17, %v17697_v24  ;;  %v4663_v18 = vpop.permute.xlu0 %4662  ;;  %vm18031_vm9 = vmmov %vm17499_vm1 }
 0x569   :  { %17695 = vst [vmem:[#allocation20_spill] sm:$0xff] %v12869_v32  ;;  %v2959_v22 = vmul.f32 %v2910_v17, %v17698_v58  ;;  %v12883_v56 = vmul.f32 %v3279_v50, %v17699_v53  ;;  %v12886_v44 = vmul.f32 %v3279_v50, %v17701_v1  ;;  %v12889_v39 = vmul.f32 %v3648_v63, %v17702_v54  ;;  %v4677_v11 = vpop.permute.xlu1 %4676  ;;  %v2326_v32 = vpop.f32.mrb[29].mxu1 }
 0x56a   :  { %v12892_v28 = vmul.f32 %v3648_v63, %v17704_v61  ;;  %v12895_v30 = vmul.f32 %v4017_v52, %v12551_v47  ;;  %5666 = vrot.lane.b32.xlu1 %v17668_v10, %s8631_s2  ;;  %v3028_v17 = vrot.slane %v2955_v9, 1  ;;  %v12901_v50 = vmul.f32 %v4017_v52, %v17707_v20  ;;  %5664 = vrot.lane.b32.xlu0 %v17673_v35, %s8631_s2 }
 0x56b   :  { %17700 = vst [vmem:[#allocation94_spill] sm:$0xff] %v12883_v56  ;;  %17703 = vst [vmem:[#allocation115_spill] sm:$0xff] %v12889_v39  ;;  %v3029_v34 = vrot.slane %v2959_v22, 1  ;;  %v2708_v52 = vmul.f32 %v2674_v31, %v17696_v49  ;;  %v2956_v6 = vmul.f32 %v2914_v21, %v17697_v24  ;;  %v2960_v57 = vmul.f32 %v2914_v21, %v17698_v58  ;;  %v12945_v24 = vpop.f32.mrb[30].mxu1 }
 0x56c   :  { %17705 = vst [vmem:[#allocation52_spill] sm:$0xff] %v12892_v28  ;;  %17706 = vst [vmem:[#allocation195_spill] sm:$0xff] %v12895_v30  ;;  %v3283_v43 = vrot.slane %v12849_v12, %v17646_v51  ;;  %v3652_v63 = vrot.slane %v12849_v12, %v17647_v2  ;;  %v4021_v31 = vrot.slane %v12849_v12, %v17650_v3  ;;  %v17738_v30 = vld [vmem:[#allocation50_spill] sm:$0xff] }
 0x56d   :  { %17708 = vst [vmem:[#allocation147_spill] sm:$0xff] %v12901_v50  ;;  %v3030_v9 = vsel %vm3003_vm0, %v3028_v17, %v3029_v34  ;;  %v12922_v34 = vpop.permute.xlu0 %4674  ;;  %v3031_v17 = vrot.slane %v2956_v6, 1  ;;  %v12932_v21 = vsel %vm17711_vm10, %v12776_v60, %v4659_v27  ;;  %v12943_v58 = vpop.permute.xlu1 %4680  ;;  %v12987_v49 = vadd.f32 %v12516_v26, %v12875_v45  ;;  %vm18033_vm10 = vmmov %vm17499_vm1 }
 0x56e   :  { %v12913_v56 = vadd.f32 %v3030_v9, %v2707_v14  ;;  %5678 = vrot.lane.b32.xlu1 %v17651_v40, %s8632_s12  ;;  %v12928_v14 = vrot.slane %v12849_v12, %v17615_v36  ;;  %17712 = vst [vmem:[#allocation112_spill] sm:$0xff] %v12932_v21  ;;  %v3032_v9 = vrot.slane %v2960_v57, 1  ;;  %v12935_v22 = vmul.f32 %v3283_v43, %v17699_v53  ;;  %v17720_v53 = vld [vmem:[#allocation62_spill] sm:$0xff]  ;;  %v17734_v21 = vld [vmem:[#allocation161_spill] sm:$0xff] }
 0x56f   :  { %v12938_v40 = vmul.f32 %v3283_v43, %v17701_v1  ;;  %v12941_v6 = vmul.f32 %v3652_v63, %v17702_v54  ;;  %5668 = vrot.lane.b32.xlu0 %v17678_v15, %s8631_s2  ;;  %v12950_v60 = vmul.f32 %v3652_v63, %v17704_v61  ;;  %v12953_v27 = vmul.f32 %v4021_v31, %v12551_v47  ;;  %v12962_v54 = vpop.f32.mrb[31].mxu1 }
 0x570   :  { %17709 = vst [vmem:[#allocation109_spill] sm:$0xff] %v12913_v56  ;;  %17710 = vst [vmem:[#allocation89_spill] sm:$0xff] %v12928_v14  ;;  %v12956_v57 = vmul.f32 %v4021_v31, %v17707_v20  ;;  %v12960_v43 = vsel %vm1650_vm8, %v12786_v25, %v4673_v16  ;;  %v3033_v1 = vsel %vm3003_vm0, %v3031_v17, %v3032_v9  ;;  %v17719_v17 = vld [vmem:[#allocation173_spill] sm:$0xff]  ;;  %v12994_v16 = vpop.f32.mrb[32].mxu1  ;;  %v17736_v14 = vld [vmem:[#allocation136_spill] sm:$0xff] }
 0x571   :  { %17713 = vst [vmem:[#allocation148_spill] sm:$0xff] %v12941_v6  ;;  %17714 = vst [vmem:[#allocation194_spill] sm:$0xff] %v12950_v60  ;;  %v12970_v47 = vpop.permute.xlu0 %4678  ;;  %v12972_v31 = vadd.f32 %v3033_v1, %v2708_v52  ;;  %v12979_v9 = vmul.f32 %v17719_v17, %v12960_v43  ;;  %v12983_v63 = vmul.f32 %v17720_v53, %v12960_v43  ;;  %v12992_v52 = vpop.permute.xlu1 %4684 }
 0x572   :  { %17715 = vst [vmem:[#allocation55_spill] sm:$0xff] %v12953_v27  ;;  %17716 = vst [vmem:[#allocation114_spill] sm:$0xff] %v12956_v57  ;;  %5682 = vrot.lane.b32.xlu1 %v17663_v48, %s8632_s12  ;;  %v12990_v1 = vadd.f32 %v12523_v23, %v2320_v38  ;;  %v13000_v20 = vsel %vm17723_vm13, %v12808_v13, %v4663_v18  ;;  %v13004_v25 = vsel %vm1650_vm8, %v12811_v42, %v4677_v11  ;;  %v13012_v48 = vpop.f32.mrb[33].mxu1 }
 0x573   :  { %17717 = vst [vmem:[#allocation152_spill] sm:$0xff] %v12960_v43  ;;  %17718 = vst [vmem:[#allocation196_spill] sm:$0xff] %v12972_v31  ;;  %5680 = vrot.lane.b32.xlu0 %v17664_v62, %s8632_s12  ;;  %v13007_v45 = vadd.f32 %v17639_v19, %v2324_v33  ;;  %v13010_v38 = vadd.f32 %v17643_v59, %v2326_v32  ;;  %v13018_v13 = vmul.f32 %v12815_v0, %v13004_v25  ;;  %v13046_v61 = vpop.f32.mrb[34].mxu1 }
 0x574   :  { %17721 = vst [vmem:[#allocation116_spill] sm:$0xff] %v12987_v49  ;;  %17722 = vst [vmem:[#allocation25_spill] sm:$0xff] %v12990_v1  ;;  %v13022_v42 = vmul.f32 %v12819_v5, %v13004_v25  ;;  %v13056_v57 = vpop.f32.mrb[35].mxu1 }
 0x575   :  { %17724 = vst [vmem:[#allocation79_spill] sm:$0xff] %v13000_v20  ;;  %17725 = vst [vmem:[#allocation132_spill] sm:$0xff] %v13004_v25  ;;  %v13026_v19 = vpop.permute.xlu0 %4682  ;;  %v2686_v59 = vrot.slane %v13007_v45, %v17591_v37  ;;  %v2926_v33 = vrot.slane %v13007_v45, %v17645_v46  ;;  %v3295_v11 = vrot.slane %v13007_v45, %v17646_v51  ;;  %v13044_v49 = vpop.permute.xlu1 %4993  ;;  %v17733_v25 = vld [vmem:[#allocation51_spill] sm:$0xff] }
 0x576   :  { %17726 = vst [vmem:[#allocation117_spill] sm:$0xff] %v13007_v45  ;;  %17727 = vst [vmem:[#allocation197_spill] sm:$0xff] %v13010_v38  ;;  %5686 = vrot.lane.b32.xlu1 %v17665_v4, %s8632_s12  ;;  %v3664_v32 = vrot.slane %v13007_v45, %v17647_v2  ;;  %v4033_v1 = vrot.slane %v13007_v45, %v17650_v3  ;;  %v13042_v4 = vrot.slane %v13007_v45, %v17615_v36 }
 0x577   :  { %17728 = vst [vmem:[#allocation217_spill] sm:$0xff] %v13022_v42  ;;  %17729 = vst [vmem:[#allocation134_spill] sm:$0xff] %v13026_v19  ;;  %5684 = vrot.lane.b32.xlu0 %v17666_v8, %s8632_s12  ;;  %v2711_v20 = vmul.f32 %v2686_v59, %v17733_v25  ;;  %v2963_v18 = vmul.f32 %v2926_v33, %v17734_v21  ;;  %v17735_v19 = vld [vmem:[#allocation189_spill] sm:$0xff]  ;;  %v13054_v27 = vmul.f32 %v3295_v11, %v17736_v14  ;;  %v17741_v8 = vld [vmem:[#allocation87_spill] sm:$0xff] }
 0x578   :  { %17730 = vst [vmem:[#allocation199_spill] sm:$0xff] %v13042_v4  ;;  %17731 = vst [vmem:[#allocation201_spill] sm:$0xff] %v13044_v49  ;;  %v2967_v62 = vmul.f32 %v2926_v33, %v17735_v19  ;;  %v13059_v4 = vmul.f32 %v3295_v11, %v17738_v30  ;;  %v17739_v49 = vld [vmem:[#allocation162_spill] sm:$0xff]  ;;  %v13068_v59 = vmul.f32 %v4033_v1, %v17741_v8  ;;  %v17744_v11 = vld [vmem:[#allocation220_spill] sm:$0xff] }
 0x579   :  { %17732 = vst [vmem:[#allocation203_spill] sm:$0xff] %v13046_v61  ;;  %17737 = vst [vmem:[#allocation202_spill] sm:$0xff] %v13056_v57  ;;  %v13062_v50 = vmul.f32 %v3664_v32, %v17739_v49  ;;  %v17740_v61 = vld [vmem:[#allocation167_spill] sm:$0xff]  ;;  %v13072_v33 = vpop.permute.xlu0 %4686  ;;  %v3040_v60 = vrot.slane %v2963_v18, 1  ;;  %v13076_v28 = vmul.f32 %v4033_v1, %v17744_v11  ;;  %v13082_v42 = vpop.permute.xlu1 %4997  ;;  %v2690_v18 = vrot.slane %v13010_v38, %v17591_v37 }
 0x57a   :  { %v13065_v6 = vmul.f32 %v3664_v32, %v17740_v61  ;;  %17742 = vst [vmem:[#allocation119_spill] sm:$0xff] %v13068_v59  ;;  %5690 = vrot.lane.b32.xlu1 %v17668_v10, %s8632_s12  ;;  %17743 = vst [vmem:[#allocation209_spill] sm:$0xff] %v13072_v33  ;;  %v3041_v39 = vrot.slane %v2967_v62, 1  ;;  %v13084_v10 = vpop.f32.mrb[36].mxu1  ;;  %v2930_v32 = vrot.slane %v13010_v38, %v17645_v46 }
 0x57b   :  { %17745 = vst [vmem:[#allocation212_spill] sm:$0xff] %v13076_v28  ;;  %17746 = vst [vmem:[#allocation123_spill] sm:$0xff] %v13082_v42  ;;  %5688 = vrot.lane.b32.xlu0 %v17673_v35, %s8632_s12  ;;  %v13094_v56 = vpop.f32.mrb[37].mxu1  ;;  %v3299_v57 = vrot.slane %v13010_v38, %v17646_v51  ;;  %v3668_v31 = vrot.slane %v13010_v38, %v17647_v2  ;;  %v2712_v35 = vmul.f32 %v2690_v18, %v17733_v25 }
 0x57c   :  { %17747 = vst [vmem:[#allocation126_spill] sm:$0xff] %v13084_v10  ;;  %v3042_v62 = vsel %vm3003_vm0, %v3040_v60, %v3041_v39  ;;  %17748 = vst [vmem:[#allocation18_spill] sm:$0xff] %v13094_v56  ;;  %v4037_v39 = vrot.slane %v13010_v38, %v17650_v3  ;;  %v17749_v60 = vld [vmem:[#allocation207_spill] sm:$0xff]  ;;  %v2964_v56 = vmul.f32 %v2930_v32, %v17734_v21  ;;  %v13129_v21 = vpop.f32.mrb[38].mxu1 }
 0x57d   :  { %v13096_v43 = vadd.f32 %v3042_v62, %v2711_v20  ;;  %v13106_v1 = vpop.permute.xlu0 %4995  ;;  %v2968_v20 = vmul.f32 %v2930_v32, %v17735_v19  ;;  %v13113_v62 = vrot.slane %v13010_v38, %v17615_v36  ;;  %v13116_v10 = vmul.f32 %v3299_v57, %v17736_v14  ;;  %v13127_v18 = vpop.permute.xlu1 %5001  ;;  %17755 = vst [vmem:[#allocation142_spill] sm:$0xff] %v13129_v21  ;;  %vm18043_vm13 = vmmov %vm17499_vm1 }
 0x57e   :  { %5998 = vrot.lane.b32.xlu1 %v17749_v60, %s8629_s17  ;;  %17750 = vst [vmem:[#allocation137_spill] sm:$0xff] %v13106_v1  ;;  %v13119_v42 = vmul.f32 %v3299_v57, %v17738_v30  ;;  %v13122_v33 = vmul.f32 %v3668_v31, %v17739_v49  ;;  %v13125_v1 = vmul.f32 %v3668_v31, %v17740_v61  ;;  %17754 = vst [vmem:[#allocation156_spill] sm:$0xff] %v13127_v18  ;;  %v13139_v49 = vpop.f32.mrb[39].mxu1 }
 0x57f   :  { %17751 = vst [vmem:[#allocation68_spill] sm:$0xff] %v13113_v62  ;;  %5692 = vrot.lane.b32.xlu0 %v17678_v15, %s8632_s12  ;;  %v3043_v32 = vrot.slane %v2964_v56, 1  ;;  %v3044_v19 = vrot.slane %v2968_v20, 1  ;;  %v13134_v14 = vmul.f32 %v4037_v39, %v17741_v8  ;;  %v13137_v57 = vmul.f32 %v4037_v39, %v17744_v11  ;;  %17758 = vst [vmem:[#allocation158_spill] sm:$0xff] %v13139_v49  ;;  %v17759_v15 = vld [vmem:[#allocation70_spill] sm:$0xff]  ;;  %v13170_v39 = vpop.f32.mrb[40].mxu1 }
 0x580   :  { %17752 = vst [vmem:[#allocation53_spill] sm:$0xff] %v13122_v33  ;;  %17753 = vst [vmem:[#allocation149_spill] sm:$0xff] %v13125_v1  ;;  %v13155_v31 = vsel %vm1650_vm8, %v12822_v29, %v12922_v34  ;;  %v17764_v29 = vld [vmem:[#allocation140_spill] sm:$0xff]  ;;  %v13180_v34 = vrot.slane %v12849_v12, %v17626_v7  ;;  %v17768_v11 = vld [vmem:[#allocation186_spill] sm:$0xff] }
 0x581   :  { %17756 = vst [vmem:[#allocation90_spill] sm:$0xff] %v13134_v14  ;;  %17757 = vst [vmem:[#allocation146_spill] sm:$0xff] %v13137_v57  ;;  %v13147_v56 = vpop.permute.xlu0 %4999  ;;  %v3045_v20 = vsel %vm3003_vm0, %v3043_v32, %v3044_v19  ;;  %v4788_v30 = vmul.f32 %v17719_v17, %v13155_v31  ;;  %v4789_v25 = vmul.f32 %v17720_v53, %v13155_v31  ;;  %v13168_v32 = vpop.permute.xlu1 %5005  ;;  %v17770_v12 = vld [vmem:[#allocation26_spill] sm:$0xff]  ;;  %v17810_v49 = vld [vmem:[#allocation124_spill] sm:$0xff] }
 0x582   :  { %6002 = vrot.lane.b32.xlu1 %v17759_v15, %s8629_s17  ;;  %17760 = vst [vmem:[#allocation27_spill] sm:$0xff] %v13147_v56  ;;  %v13157_v61 = vadd.f32 %v3045_v20, %v2712_v35  ;;  %v13166_v19 = vsel %vm1650_vm8, %v12825_v41, %v12943_v58  ;;  %17762 = vst [vmem:[#allocation95_spill] sm:$0xff] %v13168_v32  ;;  %v13176_v35 = vrot.slane %v12837_v55, %v17626_v7  ;;  %v13190_v58 = vpop.f32.mrb[41].mxu1 }
 0x583   :  { %17761 = vst [vmem:[#allocation57_spill] sm:$0xff] %v13166_v19  ;;  %17763 = vst [vmem:[#allocation160_spill] sm:$0xff] %v13170_v39  ;;  %6000 = vrot.lane.b32.xlu0 %v17764_v29, %s8629_s17  ;;  %v13184_v53 = vadd.f32 %v12516_v26, %v12945_v24  ;;  %v13188_v41 = vadd.f32 %v12523_v23, %v12962_v54  ;;  %v4850_v17 = vrot.slane %v4788_v30, 6  ;;  %v4853_v20 = vrot.slane %v4789_v25, 6  ;;  %v17772_v26 = vld [vmem:[#allocation46_spill] sm:$0xff] }
 0x584   :  { %17767 = vst [vmem:[#allocation166_spill] sm:$0xff] %v13190_v58  ;;  %v13195_v55 = vsel %vm1650_vm8, %v17768_v11, %v12970_v47  ;;  %v13200_v8 = vsel %vm1650_vm8, %v17770_v12, %v12992_v52  ;;  %v13208_v23 = vmul.f32 %v13176_v35, %v13166_v19  ;;  %v13212_v54 = vmul.f32 %v13180_v34, %v13166_v19 }
 0x585   :  { %17765 = vst [vmem:[#allocation14_spill] sm:$0xff] %v13184_v53  ;;  %17766 = vst [vmem:[#allocation35_spill] sm:$0xff] %v13188_v41  ;;  %v13204_v24 = vpop.permute.xlu0 %5003  ;;  %v4796_v47 = vmul.f32 %v12815_v0, %v13195_v55  ;;  %v4797_v30 = vmul.f32 %v12819_v5, %v13195_v55  ;;  %v17774_v12 = vrot.slane %v12979_v9, 6  ;;  %v17775_v52 = vrot.slane %v12983_v63, 6  ;;  %v13235_v0 = vld [vmem:[%s16162_s4 + $0x10] sm:$0xff]  ;;  %v13240_v5 = vld [vmem:[%s16162_s4 + $0x18] sm:$0xff]  ;;  %v13242_v63 = vpop.permute.xlu1 %5017 }
 0x586   :  { %17769 = vst [vmem:[#allocation83_spill] sm:$0xff] %v13195_v55  ;;  %17771 = vst [vmem:[#allocation121_spill] sm:$0xff] %v13200_v8  ;;  %6006 = vrot.lane.b32.xlu1 %v17772_v26, %s8629_s17  ;;  %v13226_v41 = vrot.slane %v13007_v45, %v17626_v7  ;;  %v13230_v53 = vrot.slane %v13010_v38, %v17626_v7  ;;  %v13244_v9 = vpop.f32.mrb[42].mxu1  ;;  %v17811_v55 = vld [vmem:[#allocation128_spill] sm:$0xff] }
 0x587   :  { %17773 = vst [vmem:[#allocation33_spill] sm:$0xff] %v13204_v24  ;;  %v4851_v25 = vsel %vm4848_vm14, %v17774_v12, %v4850_v17  ;;  %v4854_v11 = vsel %vm4848_vm14, %v17775_v52, %v4853_v20  ;;  %17778 = vst [vmem:[#allocation16_spill] sm:$0xff] %v13235_v0  ;;  %v17782_v17 = vld [vmem:[#allocation59_spill] sm:$0xff]  ;;  %v17783_v20 = vld [vmem:[#allocation178_spill] sm:$0xff]  ;;  %v13252_v24 = vpop.f32.mrb[43].mxu1  ;;  %v4862_v58 = vrot.slane %v4796_v47, 6  ;;  %v13272_v47 = vadd.f32 %v13240_v5, %v13012_v48 }
 0x588   :  { %17776 = vst [vmem:[#allocation43_spill] sm:$0xff] %v13226_v41  ;;  %17777 = vst [vmem:[#allocation188_spill] sm:$0xff] %v13230_v53  ;;  %6004 = vrot.lane.b32.xlu0 %v17782_v17, %s8629_s17  ;;  %v4913_v12 = vadd.f32 %v4851_v25, %v17783_v20  ;;  %v17784_v52 = vld [vmem:[#allocation139_spill] sm:$0xff]  ;;  %v4865_v39 = vrot.slane %v4797_v30, 6  ;;  %v17788_v25 = vld [vmem:[#allocation12_spill] sm:$0xff]  ;;  %v13268_v20 = vadd.f32 %v13235_v0, %v12994_v16  ;;  %v17792_v30 = vrot.slane %v12886_v44, 2 }
 0x589   :  { %17779 = vst [vmem:[#allocation56_spill] sm:$0xff] %v13240_v5  ;;  %17780 = vst [vmem:[#allocation91_spill] sm:$0xff] %v13242_v63  ;;  %v4914_v38 = vadd.f32 %v4854_v11, %v17784_v52  ;;  %v13256_v63 = vmul.f32 %v13226_v41, %v13200_v8  ;;  %v13264_v11 = vpop.permute.xlu0 %5007  ;;  %v17793_v52 = vld [vmem:[#allocation94_spill] sm:$0xff]  ;;  %v17797_v16 = vrot.slane %v13018_v13, 6  ;;  %v17798_v48 = vld [vmem:[#allocation217_spill] sm:$0xff] }
 0x58a   :  { %17781 = vst [vmem:[#allocation108_spill] sm:$0xff] %v13244_v9  ;;  %17785 = vst [vmem:[#allocation60_spill] sm:$0xff] %v13252_v24  ;;  %v13260_v9 = vmul.f32 %v13230_v53, %v13200_v8  ;;  %6010 = vrot.lane.b32.xlu1 %v17788_v25, %s8629_s17  ;;  %v17794_v19 = vrot.slane %v17793_v52, 2  ;;  %v17795_v8 = vrot.slane %v12938_v40, 2  ;;  %v17799_v24 = vrot.slane %v17798_v48, 6  ;;  %v13298_v40 = vpop.f32.mrb[44].mxu1 }
 0x58b   :  { %17786 = vst [vmem:[#allocation111_spill] sm:$0xff] %v13256_v63  ;;  %17789 = vst [vmem:[#allocation169_spill] sm:$0xff] %v13264_v11  ;;  %v4863_v11 = vsel %vm4848_vm14, %v17797_v16, %v4862_v58  ;;  %v17804_v13 = vld [vmem:[#allocation192_spill] sm:$0xff]  ;;  %v2646_v58 = vrot.slane %v13268_v20, %v17591_v37  ;;  %v3255_v16 = vrot.slane %v13268_v20, %v17646_v51  ;;  %v17808_v52 = vld [vmem:[#allocation159_spill] sm:$0xff] }
 0x58c   :  { %17787 = vst [vmem:[#allocation113_spill] sm:$0xff] %v13260_v9  ;;  %4929 = vst [vmem:[#allocation7] sm:$0xff] %v4913_v12  ;;  %v13279_v45 = vsel %vm3372_vm7, %v17794_v19, %v17792_v30  ;;  %v17796_v12 = vrot.slane %v12935_v22, 2  ;;  %v4866_v44 = vsel %vm4848_vm14, %v17799_v24, %v4865_v39  ;;  %v13296_v30 = vpop.permute.xlu1 %5021  ;;  %v17802_v22 = vld [vmem:[#allocation63_spill] sm:$0xff]  ;;  %v2886_v39 = vrot.slane %v13268_v20, %v17645_v46  ;;  %v13308_v24 = vpop.f32.mrb[45].mxu1  ;;  %v17812_v63 = vld [vmem:[#allocation76_spill] sm:$0xff] }
 0x58d   :  { %4930 = vst [vmem:[#allocation7 + $0x8] sm:$0xff] %v4914_v38  ;;  %17790 = vst [vmem:[#allocation107_spill] sm:$0xff] %v13268_v20  ;;  %6008 = vrot.lane.b32.xlu0 %v17802_v22, %s8629_s17  ;;  %v4918_v32 = vadd.f32 %v4866_v44, %v17804_v13  ;;  %v3624_v48 = vrot.slane %v13268_v20, %v17647_v2  ;;  %v3993_v19 = vrot.slane %v13268_v20, %v17650_v3  ;;  %v13320_v44 = vpop.permute.xlu0 %5019  ;;  %v17813_v5 = vld [vmem:[#allocation67_spill] sm:$0xff]  ;;  %v17817_v53 = vld [vmem:[#allocation105_spill] sm:$0xff] }
 0x58e   :  { %17791 = vst [vmem:[#allocation78_spill] sm:$0xff] %v13272_v47  ;;  %v13286_v38 = vsel %vm3372_vm7, %v17796_v12, %v17795_v8  ;;  %17800 = vst [vmem:[#allocation104_spill] sm:$0xff] %v13296_v30  ;;  %v17803_v8 = vld [vmem:[#allocation54_spill] sm:$0xff]  ;;  %6022 = vrot.lane.b32.xlu1 %v17749_v60, %s8631_s2  ;;  %v4731_v56 = vrot.slane %v13268_v20, %v17626_v7  ;;  %v3310_v21 = vmul.f32 %v3255_v16, %v17810_v49 }
 0x58f   :  { %17801 = vst [vmem:[#allocation118_spill] sm:$0xff] %v13298_v40  ;;  %v4917_v12 = vadd.f32 %v4863_v11, %v17803_v8  ;;  %17805 = vst [vmem:[#allocation198_spill] sm:$0xff] %v13308_v24  ;;  %v4362_v11 = vrot.slane %v13268_v20, %v17615_v36  ;;  %v17807_v8 = vld [vmem:[#allocation155_spill] sm:$0xff]  ;;  %v2941_v24 = vmul.f32 %v2886_v39, %v17808_v52  ;;  %v17818_v20 = vld [vmem:[#allocation164_spill] sm:$0xff] }
 0x590   :  { %17806 = vst [vmem:[#allocation200_spill] sm:$0xff] %v13320_v44  ;;  %4934 = vst [vmem:[#allocation7 + $0x28] sm:$0xff] %v4918_v32  ;;  %v2701_v13 = vmul.f32 %v2646_v58, %v17807_v8  ;;  %v17809_v40 = vld [vmem:[#allocation127_spill] sm:$0xff]  ;;  %v3314_v9 = vmul.f32 %v3255_v16, %v17811_v55  ;;  %v3679_v18 = vmul.f32 %v3624_v48, %v17812_v63  ;;  %v13331_v44 = vpop.permute.xlu1 %5025  ;;  %v13333_v32 = vpop.f32.mrb[46].mxu1  ;;  %v3379_v16 = vrot.slane %v3310_v21, 2  ;;  %v17822_v21 = vld [vmem:[#allocation168_spill] sm:$0xff] }
 0x591   :  { %4933 = vst [vmem:[#allocation7 + $0x20] sm:$0xff] %v4917_v12  ;;  %v2945_v30 = vmul.f32 %v2886_v39, %v17809_v40  ;;  %v3683_v0 = vmul.f32 %v3624_v48, %v17813_v5  ;;  %17814 = vst [vmem:[#allocation85_spill] sm:$0xff] %v13331_v44  ;;  %v17816_v12 = vld [vmem:[#allocation15_spill] sm:$0xff]  ;;  %v3010_v58 = vrot.slane %v2941_v24, 1  ;;  %v4048_v41 = vmul.f32 %v3993_v19, %v17817_v53  ;;  %v13339_v14 = vpop.f32.mrb[47].mxu1  ;;  %v13343_v48 = vpop.permute.xlu0 %5023 }
 0x592   :  { %17815 = vst [vmem:[#allocation205_spill] sm:$0xff] %v13333_v32  ;;  %6012 = vrot.lane.b32.xlu0 %v17816_v12, %s8629_s17  ;;  %v4052_v62 = vmul.f32 %v3993_v19, %v17818_v20  ;;  %17819 = vst [vmem:[#allocation204_spill] sm:$0xff] %v13339_v14  ;;  %v3380_v57 = vrot.slane %v3314_v9, 2  ;;  %v3748_v59 = vrot.slane %v3679_v18, 3  ;;  %6026 = vrot.lane.b32.xlu1 %v17759_v15, %s8631_s2 }
 0x593   :  { %v3011_v39 = vrot.slane %v2945_v30, 1  ;;  %v3749_v28 = vrot.slane %v3683_v0, 3  ;;  %17820 = vst [vmem:[#allocation122_spill] sm:$0xff] %v13343_v48  ;;  %v4117_v44 = vrot.slane %v4048_v41, 4  ;;  %v17821_v30 = vld [vmem:[#allocation48_spill] sm:$0xff]  ;;  %v4421_v9 = vmul.f32 %v4362_v11, %v17822_v21 }
 0x594   :  { %v4118_v24 = vrot.slane %v4052_v62, 4  ;;  %v4417_v33 = vmul.f32 %v4362_v11, %v17821_v30  ;;  %v3381_v19 = vsel %vm3372_vm7, %v3379_v16, %v3380_v57  ;;  %v13350_v18 = vpop.permute.xlu1 %5029  ;;  %v4790_v62 = vmul.f32 %v4731_v56, %v13155_v31 }
 0x595   :  { %v3012_v32 = vsel %vm3003_vm0, %v3010_v58, %v3011_v39  ;;  %v3750_v14 = vsel %vm3741_vm2, %v3748_v59, %v3749_v28  ;;  %v17823_v58 = vld [vmem:[#allocation152_spill] sm:$0xff]  ;;  %v2650_v57 = vrot.slane %v13272_v47, %v17591_v37  ;;  %v2890_v28 = vrot.slane %v13272_v47, %v17645_v46  ;;  %v13363_v59 = vpop.permute.xlu0 %5027 }
 0x596   :  { %v3070_v1 = vadd.f32 %v3012_v32, %v2701_v13  ;;  %6024 = vrot.lane.b32.xlu0 %v17764_v29, %s8631_s2  ;;  %v4119_v0 = vsel %vm4110_vm11, %v4117_v44, %v4118_v24  ;;  %v4486_v48 = vrot.slane %v4417_v33, 5  ;;  %v4786_v41 = vmul.f32 %v4731_v56, %v17823_v58  ;;  %6030 = vrot.lane.b32.xlu1 %v17772_v26, %s8631_s2 }
 0x597   :  { %v4487_v13 = vrot.slane %v4421_v9, 5  ;;  %17824 = vst [vmem:[#allocation214_spill] sm:$0xff] %v13363_v59  ;;  %v4856_v44 = vrot.slane %v4790_v62, 6  ;;  %v3259_v33 = vrot.slane %v13272_v47, %v17646_v51  ;;  %v2702_v16 = vmul.f32 %v2650_v57, %v17807_v8 }
 0x598   :  { %v3439_v39 = vadd.f32 %v3381_v19, %v3070_v1  ;;  %v4855_v11 = vrot.slane %v4786_v41, 6  ;;  %v3628_v1 = vrot.slane %v13272_v47, %v17647_v2  ;;  %v2942_v24 = vmul.f32 %v2890_v28, %v17808_v52  ;;  %v13372_v19 = vpop.permute.xlu1 %5041 }
 0x599   :  { %v4488_v32 = vsel %vm4479_vm5, %v4486_v48, %v4487_v13  ;;  %17825 = vst [vmem:[#allocation173_spill] sm:$0xff] %v13372_v19  ;;  %v2946_v41 = vmul.f32 %v2890_v28, %v17809_v40  ;;  %v3311_v62 = vmul.f32 %v3259_v33, %v17810_v49  ;;  %v3315_v59 = vmul.f32 %v3259_v33, %v17811_v55  ;;  %v13384_v52 = vpop.permute.xlu0 %5031 }
 0x59a   :  { %v3808_v56 = vadd.f32 %v3750_v14, %v3439_v39  ;;  %6028 = vrot.lane.b32.xlu0 %v17782_v17, %s8631_s2  ;;  %v4857_v9 = vsel %vm4848_vm14, %v4855_v11, %v4856_v44  ;;  %v3013_v39 = vrot.slane %v2942_v24, 1  ;;  %v3680_v48 = vmul.f32 %v3628_v1, %v17812_v63  ;;  %6034 = vrot.lane.b32.xlu1 %v17788_v25, %s8631_s2 }
 0x59b   :  { %v3684_v8 = vmul.f32 %v3628_v1, %v17813_v5  ;;  %17826 = vst [vmem:[#allocation62_spill] sm:$0xff] %v13384_v52  ;;  %v3014_v13 = vrot.slane %v2946_v41, 1  ;;  %v3382_v57 = vrot.slane %v3311_v62, 2  ;;  %v3383_v11 = vrot.slane %v3315_v59, 2 }
 0x59c   :  { %v4177_v14 = vadd.f32 %v4119_v0, %v3808_v56  ;;  %v3997_v40 = vrot.slane %v13272_v47, %v17650_v3  ;;  %v3751_v28 = vrot.slane %v3680_v48, 3  ;;  %v4366_v0 = vrot.slane %v13272_v47, %v17615_v36  ;;  %v13390_v63 = vpop.permute.xlu1 %5045 }
 0x59d   :  { %v3752_v55 = vrot.slane %v3684_v8, 3  ;;  %17827 = vst [vmem:[#allocation186_spill] sm:$0xff] %v13390_v63  ;;  %v3015_v5 = vsel %vm3003_vm0, %v3013_v39, %v3014_v13  ;;  %v3384_v44 = vsel %vm3372_vm7, %v3382_v57, %v3383_v11  ;;  %v13402_v41 = vpop.permute.xlu0 %5043  ;;  %v17830_v8 = vld [vmem:[#allocation196_spill] sm:$0xff] }
 0x59e   :  { %v4546_v49 = vadd.f32 %v4488_v32, %v4177_v14  ;;  %6032 = vrot.lane.b32.xlu0 %v17802_v22, %s8631_s2  ;;  %v4049_v59 = vmul.f32 %v3997_v40, %v17817_v53  ;;  %v4053_v33 = vmul.f32 %v3997_v40, %v17818_v20  ;;  %v3071_v56 = vadd.f32 %v3015_v5, %v2702_v16  ;;  %v17829_v16 = vld [vmem:[#allocation109_spill] sm:$0xff] }
 0x59f   :  { %v3753_v32 = vsel %vm3741_vm2, %v3751_v28, %v3752_v55  ;;  %v4418_v24 = vmul.f32 %v4366_v0, %v17821_v30  ;;  %6046 = vrot.lane.b32.xlu1 %v17749_v60, %s8632_s12  ;;  %17828 = vst [vmem:[#allocation26_spill] sm:$0xff] %v13402_v41  ;;  %v4422_v39 = vmul.f32 %v4366_v0, %v17822_v21  ;;  %v17832_v28 = vld [vmem:[#allocation52_spill] sm:$0xff]  ;;  %v17834_v0 = vld [vmem:[#allocation115_spill] sm:$0xff] }
 0x5a0   :  { %v4915_v1 = vadd.f32 %v4857_v9, %v4546_v49  ;;  %v4120_v62 = vrot.slane %v4049_v59, 4  ;;  %v4121_v14 = vrot.slane %v4053_v33, 4  ;;  %v4735_v53 = vrot.slane %v13272_v47, %v17626_v7  ;;  %v13411_v13 = vpop.permute.xlu1 %5049  ;;  %v17838_v59 = vld [vmem:[#allocation148_spill] sm:$0xff] }
 0x5a1   :  { %v3440_v20 = vadd.f32 %v3384_v44, %v3071_v56  ;;  %v4489_v9 = vrot.slane %v4418_v24, 5  ;;  %v3445_v48 = vadd.f32 %v13279_v45, %v17829_v16  ;;  %v3446_v30 = vadd.f32 %v13286_v38, %v17830_v8  ;;  %17831 = vst [vmem:[#allocation178_spill] sm:$0xff] %v13411_v13  ;;  %v17836_v38 = vld [vmem:[#allocation194_spill] sm:$0xff]  ;;  %v17840_v56 = vld [vmem:[#allocation147_spill] sm:$0xff] }
 0x5a2   :  { %4931 = vst [vmem:[#allocation7 + $0x10] sm:$0xff] %v4915_v1  ;;  %6036 = vrot.lane.b32.xlu0 %v17816_v12, %s8631_s2  ;;  %v4122_v57 = vsel %vm4110_vm11, %v4120_v62, %v4121_v14  ;;  %v4490_v21 = vrot.slane %v4422_v39, 5  ;;  %v4787_v11 = vmul.f32 %v4735_v53, %v17823_v58  ;;  %v4791_v40 = vmul.f32 %v4735_v53, %v13155_v31  ;;  %v17842_v62 = vld [vmem:[#allocation195_spill] sm:$0xff]  ;;  %v13435_v31 = vpop.permute.xlu0 %5047 }
 0x5a3   :  { %v3809_v49 = vadd.f32 %v3753_v32, %v3440_v20  ;;  %v17833_v55 = vrot.slane %v17832_v28, 3  ;;  %v17835_v45 = vrot.slane %v17834_v0, 3  ;;  %v17837_v44 = vrot.slane %v17836_v38, 3  ;;  %6050 = vrot.lane.b32.xlu1 %v17759_v15, %s8632_s12  ;;  %17844 = vst [vmem:[#allocation139_spill] sm:$0xff] %v13435_v31  ;;  %v17845_v28 = vld [vmem:[#allocation114_spill] sm:$0xff]  ;;  %v17847_v0 = vld [vmem:[#allocation55_spill] sm:$0xff] }
 0x5a4   :  { %v17839_v33 = vrot.slane %v17838_v59, 3  ;;  %v17841_v24 = vrot.slane %v17840_v56, 4  ;;  %v17843_v14 = vrot.slane %v17842_v62, 4  ;;  %v4491_v32 = vsel %vm4479_vm5, %v4489_v9, %v4490_v21  ;;  %v17850_v59 = vld [vmem:[#allocation20_spill] sm:$0xff]  ;;  %v13445_v56 = vpop.permute.xlu1 %5053  ;;  %v13464_v62 = vld [vmem:[%s16162_s4 + $0x38] sm:$0xff]  ;;  %v17930_v13 = vld [vmem:[#allocation23_spill] sm:$0xff] }
 0x5a5   :  { %v3768_v5 = vsel %vm3741_vm2, %v17835_v45, %v17833_v55  ;;  %v4858_v39 = vrot.slane %v4787_v11, 6  ;;  %v4859_v53 = vrot.slane %v4791_v40, 6  ;;  %v4178_v16 = vadd.f32 %v4122_v57, %v3809_v49  ;;  %17851 = vst [vmem:[#allocation94_spill] sm:$0xff] %v13445_v56  ;;  %v17853_v57 = vld [vmem:[#allocation180_spill] sm:$0xff] }
 0x5a6   :  { %v3771_v1 = vsel %vm3741_vm2, %v17839_v33, %v17837_v44  ;;  %v4137_v58 = vsel %vm4110_vm11, %v17843_v14, %v17841_v24  ;;  %v3814_v20 = vadd.f32 %v3768_v5, %v3445_v48  ;;  %v17846_v55 = vrot.slane %v17845_v28, 4  ;;  %v17849_v44 = vld [vmem:[#allocation221_spill] sm:$0xff]  ;;  %6048 = vrot.lane.b32.xlu0 %v17764_v29, %s8632_s12  ;;  %v13468_v14 = vpop.permute.xlu0 %5051 }
 0x5a7   :  { %v3815_v8 = vadd.f32 %v3771_v1, %v3446_v30  ;;  %v17848_v45 = vrot.slane %v17847_v0, 4  ;;  %v4431_v33 = vmul.f32 %v17850_v59, %v17849_v44  ;;  %v4860_v9 = vsel %vm4848_vm14, %v4858_v39, %v4859_v53  ;;  %v17852_v48 = vld [vmem:[#allocation89_spill] sm:$0xff]  ;;  %6054 = vrot.lane.b32.xlu1 %v17772_v26, %s8632_s12  ;;  %17854 = vst [vmem:[#allocation217_spill] sm:$0xff] %v13468_v14  ;;  %v17855_v39 = vld [vmem:[#allocation134_spill] sm:$0xff]  ;;  %v17856_v53 = vld [vmem:[#allocation112_spill] sm:$0xff] }
 0x5a8   :  { %v4183_v21 = vadd.f32 %v4137_v58, %v3814_v20  ;;  %v4432_v30 = vmul.f32 %v17852_v48, %v17849_v44  ;;  %v4435_v11 = vmul.f32 %v17850_v59, %v17853_v57  ;;  %v4547_v40 = vadd.f32 %v4491_v32, %v4178_v16  ;;  %v13459_v24 = vld [vmem:[%s16162_s4 + $0x30] sm:$0xff]  ;;  %v13484_v59 = vpop.permute.xlu1 %5422  ;;  %v17911_v26 = vld [vmem:[#allocation111_spill] sm:$0xff]  ;;  %s8646_s4 = smov [#allocation7]  }
 0x5a9   :  { %v4140_v38 = vsel %vm4110_vm11, %v17848_v45, %v17846_v55  ;;  %v4436_v5 = vmul.f32 %v17852_v48, %v17853_v57  ;;  %v4504_v1 = vrot.slane %v4431_v33, 5  ;;  %v13473_v20 = vsel %vm1650_vm8, %v17856_v53, %v17855_v39  ;;  %v17857_v16 = vld [vmem:[#allocation201_spill] sm:$0xff]  ;;  %17859 = vst [vmem:[#allocation54_spill] sm:$0xff] %v13484_v59  ;;  %v17860_v48 = vld [vmem:[#allocation203_spill] sm:$0xff] }
 0x5aa   :  { %v4184_v49 = vadd.f32 %v4140_v38, %v3815_v8  ;;  %v4505_v58 = vrot.slane %v4435_v11, 5  ;;  %v4507_v32 = vrot.slane %v4432_v30, 5  ;;  %v17858_v8 = vld [vmem:[#allocation13_spill] sm:$0xff]  ;;  %v4916_v55 = vadd.f32 %v4860_v9, %v4547_v40  ;;  %6052 = vrot.lane.b32.xlu0 %v17782_v17, %s8632_s12  ;;  %v17862_v11 = vld [vmem:[#allocation202_spill] sm:$0xff] }
 0x5ab   :  { %v13478_v28 = vsel %vm1611_vm12, %v17858_v8, %v17857_v16  ;;  %v4508_v0 = vrot.slane %v4436_v5, 5  ;;  %v4804_v45 = vmul.f32 %v13176_v35, %v13473_v20  ;;  %v4805_v38 = vmul.f32 %v13180_v34, %v13473_v20  ;;  %6058 = vrot.lane.b32.xlu1 %v17788_v25, %s8632_s12 }
 0x5ac   :  { %v4506_v33 = vsel %vm4479_vm5, %v4504_v1, %v4505_v58  ;;  %v13491_v30 = vadd.f32 %v13459_v24, %v17860_v48  ;;  %v13495_v9 = vadd.f32 %v13464_v62, %v17862_v11  ;;  %v17864_v35 = vrot.slane %v13059_v4, 2  ;;  %4932 = vst [vmem:[#allocation7 + $0x18] sm:$0xff] %v4916_v55  ;;  %v13505_v58 = vpop.permute.xlu0 %5055  ;;  %v17875_v11 = vld [vmem:[#allocation53_spill] sm:$0xff] }
 0x5ad   :  { %v17865_v40 = vrot.slane %v13054_v27, 2  ;;  %v4509_v5 = vsel %vm4479_vm5, %v4507_v32, %v4508_v0  ;;  %v4552_v39 = vadd.f32 %v4506_v33, %v4183_v21  ;;  %v4874_v53 = vrot.slane %v4804_v45, 6  ;;  %17866 = vst [vmem:[#allocation159_spill] sm:$0xff] %v13505_v58 }
 0x5ae   :  { %17861 = vst [vmem:[#allocation192_spill] sm:$0xff] %v13491_v30  ;;  %17863 = vst [vmem:[#allocation155_spill] sm:$0xff] %v13495_v9  ;;  %v4877_v1 = vrot.slane %v4805_v38, 6  ;;  %v4553_v16 = vadd.f32 %v4509_v5, %v4184_v49  ;;  %v17867_v8 = vrot.slane %v13119_v42, 2  ;;  %v17868_v4 = vrot.slane %v13116_v10, 2  ;;  %v17873_v38 = vld [vmem:[#allocation149_spill] sm:$0xff]  ;;  %6056 = vrot.lane.b32.xlu0 %v17802_v22, %s8632_s12 }
 0x5af   :  { %v3411_v34 = vsel %vm3372_vm7, %v17865_v40, %v17864_v35  ;;  %v17869_v55 = vrot.slane %v13065_v6, 3  ;;  %v17870_v21 = vrot.slane %v13062_v50, 3  ;;  %v17871_v0 = vrot.slane %v13208_v23, 6  ;;  %v13530_v35 = vpop.permute.xlu1 %5426  ;;  %v17880_v5 = vld [vmem:[#allocation119_spill] sm:$0xff]  ;;  %v17910_v22 = vld [vmem:[#allocation73_spill] sm:$0xff]  ;;  %v17922_v9 = vld [vmem:[#allocation66_spill] sm:$0xff] }
 0x5b0   :  { %v3414_v27 = vsel %vm3372_vm7, %v17868_v4, %v17867_v8  ;;  %v3449_v48 = vadd.f32 %v3411_v34, %v13096_v43  ;;  %v17872_v49 = vrot.slane %v13212_v54, 6  ;;  %v17874_v33 = vrot.slane %v17873_v38, 3  ;;  %17877 = vst [vmem:[#allocation127_spill] sm:$0xff] %v13530_v35  ;;  %v17878_v34 = vld [vmem:[#allocation212_spill] sm:$0xff]  ;;  %v17882_v8 = vld [vmem:[#allocation146_spill] sm:$0xff] }
 0x5b1   :  { %v3780_v32 = vsel %vm3741_vm2, %v17870_v21, %v17869_v55  ;;  %v4875_v45 = vsel %vm4848_vm14, %v17871_v0, %v4874_v53  ;;  %v3450_v10 = vadd.f32 %v3414_v27, %v13157_v61  ;;  %v17876_v43 = vrot.slane %v17875_v11, 3  ;;  %v17884_v27 = vld [vmem:[#allocation90_spill] sm:$0xff]  ;;  %v17886_v0 = vld [vmem:[#allocation177_spill] sm:$0xff] }
 0x5b2   :  { %v4878_v42 = vsel %vm4848_vm14, %v17872_v49, %v4877_v1  ;;  %v4921_v50 = vadd.f32 %v4875_v45, %v4552_v39  ;;  %v3818_v40 = vadd.f32 %v3780_v32, %v3449_v48  ;;  %v17879_v54 = vrot.slane %v17878_v34, 4  ;;  %v17887_v49 = vld [vmem:[#allocation199_spill] sm:$0xff]  ;;  %v17888_v39 = vld [vmem:[#allocation68_spill] sm:$0xff]  ;;  %v17889_v48 = vld [vmem:[#allocation17_spill] sm:$0xff]  ;;  %v13550_v32 = vpop.permute.xlu0 %5424  ;;  %6060 = vrot.lane.b32.xlu0 %v17816_v12, %s8632_s12 }
 0x5b3   :  { %v3783_v6 = vsel %vm3741_vm2, %v17876_v43, %v17874_v33  ;;  %v4922_v23 = vadd.f32 %v4878_v42, %v4553_v16  ;;  %v17881_v53 = vrot.slane %v17880_v5, 4  ;;  %v17883_v4 = vrot.slane %v17882_v8, 4  ;;  %6366 = vrot.lane.b32.xlu1 %v17889_v48, %s8629_s17  ;;  %17890 = vst [vmem:[#allocation124_spill] sm:$0xff] %v13550_v32  ;;  %v17891_v42 = vld [vmem:[#allocation179_spill] sm:$0xff]  ;;  %v17892_v11 = vld [vmem:[#allocation209_spill] sm:$0xff]  ;;  %v17927_v32 = vld [vmem:[#allocation174_spill] sm:$0xff] }
 0x5b4   :  { %v3819_v1 = vadd.f32 %v3783_v6, %v3450_v10  ;;  %v17885_v55 = vrot.slane %v17884_v27, 4  ;;  %v4439_v38 = vmul.f32 %v17887_v49, %v17886_v0  ;;  %v4440_v16 = vmul.f32 %v17888_v39, %v17886_v0  ;;  %4937 = vst [vmem:[#allocation7 + $0x40] sm:$0xff] %v4921_v50  ;;  %v17893_v43 = vld [vmem:[#allocation79_spill] sm:$0xff]  ;;  %v13563_v50 = vpop.permute.xlu1 %5434 }
 0x5b5   :  { %v4149_v61 = vsel %vm4110_vm11, %v17881_v53, %v17879_v54  ;;  %4938 = vst [vmem:[#allocation7 + $0x48] sm:$0xff] %v4922_v23  ;;  %v4443_v10 = vmul.f32 %v17887_v49, %v17891_v42  ;;  %v4444_v33 = vmul.f32 %v17888_v39, %v17891_v42  ;;  %v13559_v6 = vsel %vm1650_vm8, %v17893_v43, %v17892_v11  ;;  %v17894_v53 = vld [vmem:[#allocation43_spill] sm:$0xff]  ;;  %v17903_v11 = vld [vmem:[#allocation56_spill] sm:$0xff] }
 0x5b6   :  { %v4152_v21 = vsel %vm4110_vm11, %v17885_v55, %v17883_v4  ;;  %v4187_v45 = vadd.f32 %v4149_v61, %v3818_v40  ;;  %v4516_v54 = vrot.slane %v4439_v38, 5  ;;  %v4519_v5 = vrot.slane %v4440_v16, 5  ;;  %17895 = vst [vmem:[#allocation128_spill] sm:$0xff] %v13563_v50  ;;  %v17896_v61 = vld [vmem:[#allocation188_spill] sm:$0xff]  ;;  %v17897_v27 = vld [vmem:[#allocation123_spill] sm:$0xff]  ;;  %v17898_v55 = vld [vmem:[#allocation34_spill] sm:$0xff]  ;;  %v13589_v12 = vpop.permute.xlu0 %5428 }
 0x5b7   :  { %v4188_v34 = vadd.f32 %v4152_v21, %v3819_v1  ;;  %v4812_v8 = vmul.f32 %v17894_v53, %v13559_v6  ;;  %v4517_v23 = vrot.slane %v4443_v10, 5  ;;  %v4520_v40 = vrot.slane %v4444_v33, 5  ;;  %v17899_v21 = vld [vmem:[#allocation126_spill] sm:$0xff]  ;;  %v17900_v38 = vld [vmem:[#allocation16_spill] sm:$0xff]  ;;  %v17905_v53 = vld [vmem:[#allocation137_spill] sm:$0xff]  ;;  %17908 = vst [vmem:[#allocation105_spill] sm:$0xff] %v13589_v12 }
 0x5b8   :  { %v4813_v4 = vmul.f32 %v17896_v61, %v13559_v6  ;;  %v13572_v49 = vsel %vm1611_vm12, %v17898_v55, %v17897_v27  ;;  %v13576_v39 = vadd.f32 %v17900_v38, %v17899_v21  ;;  %v17902_v16 = vld [vmem:[#allocation18_spill] sm:$0xff]  ;;  %v17906_v10 = vld [vmem:[#allocation133_spill] sm:$0xff]  ;;  %v17909_v21 = vld [vmem:[#allocation156_spill] sm:$0xff]  ;;  %v13603_v15 = vpop.permute.xlu1 %5438 }
 0x5b9   :  { %v4886_v1 = vrot.slane %v4812_v8, 6  ;;  %v13580_v43 = vadd.f32 %v17903_v11, %v17902_v16  ;;  %v13585_v33 = vsel %vm1611_vm12, %v17906_v10, %v17905_v53  ;;  %v17907_v61 = vld [vmem:[#allocation21_spill] sm:$0xff]  ;;  %v4518_v8 = vsel %vm4479_vm5, %v4516_v54, %v4517_v23  ;;  %17913 = vst [vmem:[#allocation164_spill] sm:$0xff] %v13603_v15  ;;  %v17914_v54 = vld [vmem:[#allocation19_spill] sm:$0xff] }
 0x5ba   :  { %17901 = vst [vmem:[#allocation76_spill] sm:$0xff] %v13576_v39  ;;  %6370 = vrot.lane.b32.xlu1 %v17907_v61, %s8629_s17  ;;  %v4521_v27 = vsel %vm4479_vm5, %v4519_v5, %v4520_v40  ;;  %v4889_v55 = vrot.slane %v4813_v4, 6  ;;  %v13596_v16 = vsel %vm1611_vm12, %v17910_v22, %v17909_v21  ;;  %v4556_v25 = vadd.f32 %v4518_v8, %v4187_v45  ;;  %v17915_v5 = vld [vmem:[#allocation113_spill] sm:$0xff]  ;;  %v17923_v15 = vld [vmem:[#allocation131_spill] sm:$0xff] }
 0x5bb   :  { %17904 = vst [vmem:[#allocation67_spill] sm:$0xff] %v13580_v43  ;;  %v4557_v17 = vadd.f32 %v4521_v27, %v4188_v34  ;;  %v17912_v53 = vrot.slane %v17911_v26, 6  ;;  %v2662_v29 = vrot.slane %v13576_v39, %v17591_v37  ;;  %6368 = vrot.lane.b32.xlu0 %v17914_v54, %s8629_s17  ;;  %v17916_v23 = vrot.slane %v17915_v5, 6  ;;  %v17918_v21 = vld [vmem:[#allocation77_spill] sm:$0xff] }
 0x5bc   :  { %v2902_v22 = vrot.slane %v13576_v39, %v17645_v46  ;;  %v3271_v26 = vrot.slane %v13576_v39, %v17646_v51  ;;  %v3640_v45 = vrot.slane %v13576_v39, %v17647_v2  ;;  %v4009_v27 = vrot.slane %v13576_v39, %v17650_v3  ;;  %v13631_v58 = vpop.permute.xlu1 %5446 }
 0x5bd   :  { %v4887_v10 = vsel %vm4848_vm14, %v17912_v53, %v4886_v1  ;;  %v4890_v40 = vsel %vm4848_vm14, %v17916_v23, %v4889_v55  ;;  %v17917_v1 = vld [vmem:[#allocation31_spill] sm:$0xff]  ;;  %v13621_v55 = vpop.permute.xlu0 %5436  ;;  %v17920_v53 = vld [vmem:[#allocation185_spill] sm:$0xff]  ;;  %17928 = vst [vmem:[#allocation168_spill] sm:$0xff] %v13631_v58  ;;  %v4378_v41 = vrot.slane %v13576_v39, %v17615_v36 }
 0x5be   :  { %v4925_v34 = vadd.f32 %v4887_v10, %v4556_v25  ;;  %v4926_v4 = vadd.f32 %v4890_v40, %v4557_v17  ;;  %v2705_v8 = vmul.f32 %v2662_v29, %v17917_v1  ;;  %6374 = vrot.lane.b32.xlu1 %v17918_v21, %s8629_s17  ;;  %17919 = vst [vmem:[#allocation48_spill] sm:$0xff] %v13621_v55  ;;  %v17921_v23 = vld [vmem:[#allocation49_spill] sm:$0xff]  ;;  %v17924_v17 = vld [vmem:[#allocation96_spill] sm:$0xff]  ;;  %v17925_v25 = vld [vmem:[#allocation163_spill] sm:$0xff] }
 0x5bf   :  { %v2949_v5 = vmul.f32 %v2902_v22, %v17920_v53  ;;  %v2953_v60 = vmul.f32 %v2902_v22, %v17921_v23  ;;  %v3318_v30 = vmul.f32 %v3271_v26, %v17922_v9  ;;  %v3322_v12 = vmul.f32 %v3271_v26, %v17923_v15  ;;  %v17926_v40 = vld [vmem:[#allocation22_spill] sm:$0xff]  ;;  %v17929_v55 = vld [vmem:[#allocation28_spill] sm:$0xff] }
 0x5c0   :  { %4941 = vst [vmem:[#allocation7 + $0x60] sm:$0xff] %v4925_v34  ;;  %4942 = vst [vmem:[#allocation7 + $0x68] sm:$0xff] %v4926_v4  ;;  %v3687_v29 = vmul.f32 %v3640_v45, %v17924_v17  ;;  %v3691_v10 = vmul.f32 %v3640_v45, %v17925_v25  ;;  %v4056_v50 = vmul.f32 %v4009_v27, %v17926_v40  ;;  %6372 = vrot.lane.b32.xlu0 %v17929_v55, %s8629_s17 }
 0x5c1   :  { %v4060_v35 = vmul.f32 %v4009_v27, %v17927_v32  ;;  %v3022_v22 = vrot.slane %v2949_v5, 1  ;;  %v3023_v59 = vrot.slane %v2953_v60, 1  ;;  %v3391_v14 = vrot.slane %v3318_v30, 2  ;;  %v13637_v45 = vpop.permute.xlu0 %5440  ;;  %v13649_v5 = vpop.permute.xlu1 %5450 }
 0x5c2   :  { %v3392_v56 = vrot.slane %v3322_v12, 2  ;;  %v3760_v26 = vrot.slane %v3687_v29, 3  ;;  %v3761_v34 = vrot.slane %v3691_v10, 3  ;;  %v4129_v4 = vrot.slane %v4056_v50, 4  ;;  %6378 = vrot.lane.b32.xlu1 %v17930_v13, %s8629_s17  ;;  %17931 = vst [vmem:[#allocation152_spill] sm:$0xff] %v13637_v45  ;;  %17932 = vst [vmem:[#allocation109_spill] sm:$0xff] %v13649_v5 }
 0x5c3   :  { %v4130_v31 = vrot.slane %v4060_v35, 4  ;;  %v3024_v27 = vsel %vm3003_vm0, %v3022_v22, %v3023_v59  ;;  %v4747_v60 = vrot.slane %v13576_v39, %v17626_v7  ;;  %v2666_v50 = vrot.slane %v13580_v43, %v17591_v37  ;;  %v17933_v59 = vld [vmem:[#allocation24_spill] sm:$0xff]  ;;  %v17935_v29 = vld [vmem:[#allocation175_spill] sm:$0xff] }
 0x5c4   :  { %v3393_v58 = vsel %vm3372_vm7, %v3391_v14, %v3392_v56  ;;  %v3074_v12 = vadd.f32 %v3024_v27, %v2705_v8  ;;  %v3762_v30 = vsel %vm3741_vm2, %v3760_v26, %v3761_v34  ;;  %6376 = vrot.lane.b32.xlu0 %v17933_v59, %s8629_s17  ;;  %v17934_v56 = vld [vmem:[#allocation176_spill] sm:$0xff]  ;;  %v4429_v10 = vmul.f32 %v4378_v41, %v17935_v29  ;;  %v17937_v39 = vld [vmem:[#allocation83_spill] sm:$0xff] }
 0x5c5   :  { %v4131_v35 = vsel %vm4110_vm11, %v4129_v4, %v4130_v31  ;;  %v4425_v14 = vmul.f32 %v4378_v41, %v17934_v56  ;;  %v17936_v22 = vld [vmem:[#allocation132_spill] sm:$0xff]  ;;  %v4798_v8 = vmul.f32 %v4747_v60, %v17937_v39  ;;  %v2706_v26 = vmul.f32 %v2666_v50, %v17917_v1  ;;  %v13664_v4 = vpop.permute.xlu0 %5448  ;;  %v17940_v50 = vld [vmem:[#allocation45_spill] sm:$0xff] }
 0x5c6   :  { %v4794_v45 = vmul.f32 %v4747_v60, %v17936_v22  ;;  %v3443_v27 = vadd.f32 %v3393_v58, %v3074_v12  ;;  %v2906_v31 = vrot.slane %v13580_v43, %v17645_v46  ;;  %v3275_v34 = vrot.slane %v13580_v43, %v17646_v51  ;;  %6390 = vrot.lane.b32.xlu1 %v17889_v48, %s8631_s2  ;;  %v13669_v12 = vpop.permute.xlu1 %5630 }
 0x5c7   :  { %17938 = vst [vmem:[#allocation196_spill] sm:$0xff] %v13664_v4  ;;  %v4498_v5 = vrot.slane %v4425_v14, 5  ;;  %v4499_v41 = vrot.slane %v4429_v10, 5  ;;  %v4868_v52 = vrot.slane %v4798_v8, 6  ;;  %17939 = vst [vmem:[#allocation52_spill] sm:$0xff] %v13669_v12 }
 0x5c8   :  { %v4867_v63 = vrot.slane %v4794_v45, 6  ;;  %v3812_v47 = vadd.f32 %v3762_v30, %v3443_v27  ;;  %v2950_v58 = vmul.f32 %v2906_v31, %v17920_v53  ;;  %v2954_v1 = vmul.f32 %v2906_v31, %v17921_v23  ;;  %6380 = vrot.lane.b32.xlu0 %v17940_v50, %s8629_s17 }
 0x5c9   :  { %v3319_v60 = vmul.f32 %v3275_v34, %v17922_v9  ;;  %v4500_v19 = vsel %vm4479_vm5, %v4498_v5, %v4499_v41  ;;  %v3323_v14 = vmul.f32 %v3275_v34, %v17923_v15  ;;  %v3644_v45 = vrot.slane %v13580_v43, %v17647_v2  ;;  %v13680_v9 = vpop.permute.xlu0 %5452 }
 0x5ca   :  { %v4869_v4 = vsel %vm4848_vm14, %v4867_v63, %v4868_v52  ;;  %v4181_v30 = vadd.f32 %v4131_v35, %v3812_v47  ;;  %v3025_v53 = vrot.slane %v2950_v58, 1  ;;  %v3026_v10 = vrot.slane %v2954_v1, 1  ;;  %6394 = vrot.lane.b32.xlu1 %v17907_v61, %s8631_s2  ;;  %17941 = vst [vmem:[#allocation115_spill] sm:$0xff] %v13680_v9  ;;  %v13691_v31 = vpop.permute.xlu1 %5634  ;;  %v17972_v9 = vld [vmem:[#allocation165_spill] sm:$0xff] }
 0x5cb   :  { %v3394_v23 = vrot.slane %v3319_v60, 2  ;;  %v3395_v8 = vrot.slane %v3323_v14, 2  ;;  %v3688_v27 = vmul.f32 %v3644_v45, %v17924_v17  ;;  %v3692_v5 = vmul.f32 %v3644_v45, %v17925_v25  ;;  %17942 = vst [vmem:[#allocation194_spill] sm:$0xff] %v13691_v31 }
 0x5cc   :  { %v4013_v15 = vrot.slane %v13580_v43, %v17650_v3  ;;  %v4550_v52 = vadd.f32 %v4500_v19, %v4181_v30  ;;  %v3027_v63 = vsel %vm3003_vm0, %v3025_v53, %v3026_v10  ;;  %v4382_v47 = vrot.slane %v13580_v43, %v17615_v36  ;;  %6392 = vrot.lane.b32.xlu0 %v17914_v54, %s8631_s2 }
 0x5cd   :  { %v4751_v35 = vrot.slane %v13580_v43, %v17626_v7  ;;  %v3075_v17 = vadd.f32 %v3027_v63, %v2706_v26  ;;  %v3396_v25 = vsel %vm3372_vm7, %v3394_v23, %v3395_v8  ;;  %v3763_v34 = vrot.slane %v3688_v27, 3  ;;  %v13703_v14 = vpop.permute.xlu0 %5632 }
 0x5ce   :  { %v3764_v41 = vrot.slane %v3692_v5, 3  ;;  %v13696_v58 = vadd.f32 %v4869_v4, %v4550_v52  ;;  %v4057_v19 = vmul.f32 %v4013_v15, %v17926_v40  ;;  %v4061_v1 = vmul.f32 %v4013_v15, %v17927_v32  ;;  %6398 = vrot.lane.b32.xlu1 %v17918_v21, %s8631_s2  ;;  %17944 = vst [vmem:[#allocation147_spill] sm:$0xff] %v13703_v14  ;;  %v13709_v32 = vpop.permute.xlu1 %5638  ;;  %v17946_v5 = vld [vmem:[#allocation142_spill] sm:$0xff]  ;;  %v17971_v14 = vld [vmem:[#allocation153_spill] sm:$0xff] }
 0x5cf   :  { %v4426_v60 = vmul.f32 %v4382_v47, %v17934_v56  ;;  %v3444_v45 = vadd.f32 %v3396_v25, %v3075_v17  ;;  %v4430_v30 = vmul.f32 %v4382_v47, %v17935_v29  ;;  %v4795_v53 = vmul.f32 %v4751_v35, %v17936_v22  ;;  %17945 = vst [vmem:[#allocation195_spill] sm:$0xff] %v13709_v32  ;;  %v17948_v52 = vld [vmem:[#allocation158_spill] sm:$0xff] }
 0x5d0   :  { %17943 = vst [vmem:[#allocation148_spill] sm:$0xff] %v13696_v58  ;;  %v3765_v26 = vsel %vm3741_vm2, %v3763_v34, %v3764_v41  ;;  %v4132_v4 = vrot.slane %v4057_v19, 4  ;;  %v4133_v10 = vrot.slane %v4061_v1, 4  ;;  %v4799_v40 = vmul.f32 %v4751_v35, %v17937_v39  ;;  %6396 = vrot.lane.b32.xlu0 %v17929_v55, %s8631_s2  ;;  %v17950_v39 = vld [vmem:[#allocation27_spill] sm:$0xff]  ;;  %v17951_v47 = vld [vmem:[#allocation130_spill] sm:$0xff] }
 0x5d1   :  { %v4501_v23 = vrot.slane %v4426_v60, 5  ;;  %v3813_v56 = vadd.f32 %v3765_v26, %v3444_v45  ;;  %v4502_v8 = vrot.slane %v4430_v30, 5  ;;  %v4870_v27 = vrot.slane %v4795_v53, 6  ;;  %v13729_v17 = vpop.permute.xlu0 %5636  ;;  %v17953_v41 = vld [vmem:[#allocation95_spill] sm:$0xff]  ;;  %v17954_v19 = vld [vmem:[#allocation38_spill] sm:$0xff]  ;;  %v17955_v60 = vld [vmem:[#allocation160_spill] sm:$0xff] }
 0x5d2   :  { %v13715_v15 = vadd.f32 %v13459_v24, %v17946_v5  ;;  %v4134_v29 = vsel %vm4110_vm11, %v4132_v4, %v4133_v10  ;;  %v4871_v22 = vrot.slane %v4799_v40, 6  ;;  %v13720_v63 = vadd.f32 %v13464_v62, %v17948_v52  ;;  %6402 = vrot.lane.b32.xlu1 %v17930_v13, %s8631_s2  ;;  %17952 = vst [vmem:[#allocation221_spill] sm:$0xff] %v13729_v17  ;;  %v17957_v30 = vld [vmem:[#allocation166_spill] sm:$0xff]  ;;  %v17958_v4 = vld [vmem:[#allocation33_spill] sm:$0xff]  ;;  %v17959_v10 = vld [vmem:[#allocation36_spill] sm:$0xff] }
 0x5d3   :  { %v13725_v35 = vsel %vm1611_vm12, %v17951_v47, %v17950_v39  ;;  %v4182_v25 = vadd.f32 %v4134_v29, %v3813_v56  ;;  %v4503_v34 = vsel %vm4479_vm5, %v4501_v23, %v4502_v8  ;;  %v13735_v1 = vsel %vm1611_vm12, %v17954_v19, %v17953_v41  ;;  %v17960_v23 = vld [vmem:[#allocation91_spill] sm:$0xff]  ;;  %v13756_v8 = vpop.permute.xlu1 %5642  ;;  %v17970_v17 = vld [vmem:[#allocation144_spill] sm:$0xff] }
 0x5d4   :  { %17947 = vst [vmem:[#allocation114_spill] sm:$0xff] %v13715_v15  ;;  %17949 = vst [vmem:[#allocation55_spill] sm:$0xff] %v13720_v63  ;;  %v13739_v45 = vadd.f32 %v17900_v38, %v17955_v60  ;;  %v4872_v26 = vsel %vm4848_vm14, %v4870_v27, %v4871_v22  ;;  %v13744_v53 = vadd.f32 %v17903_v11, %v17957_v30  ;;  %6400 = vrot.lane.b32.xlu0 %v17933_v59, %s8631_s2  ;;  %v17966_v41 = vld [vmem:[#allocation99_spill] sm:$0xff] }
 0x5d5   :  { %v13749_v40 = vsel %vm1611_vm12, %v17959_v10, %v17958_v4  ;;  %v13754_v56 = vsel %vm17961_vm15, %v13478_v28, %v17960_v23  ;;  %17963 = vst [vmem:[#allocation180_spill] sm:$0xff] %v13756_v8  ;;  %v4551_v27 = vadd.f32 %v4503_v34, %v4182_v25  ;;  %v13776_v25 = vpop.permute.xlu0 %5640  ;;  %v17967_v60 = vld [vmem:[#allocation151_spill] sm:$0xff]  ;;  %v17969_v23 = vld [vmem:[#allocation65_spill] sm:$0xff]  ;;  %vm5217_vm15 = vcmask 1040384  }
 0x5d6   :  { %17956 = vst [vmem:[#allocation20_spill] sm:$0xff] %v13739_v45  ;;  %17962 = vst [vmem:[#allocation89_spill] sm:$0xff] %v13754_v56  ;;  %v2678_v5 = vrot.slane %v13739_v45, %v17591_v37  ;;  %v2918_v29 = vrot.slane %v13739_v45, %v17645_v46  ;;  %v3287_v22 = vrot.slane %v13739_v45, %v17646_v51  ;;  %6414 = vrot.lane.b32.xlu1 %v17889_v48, %s8632_s12  ;;  %v17968_v4 = vld [vmem:[#allocation187_spill] sm:$0xff] }
 0x5d7   :  { %v3656_v52 = vrot.slane %v13739_v45, %v17647_v2  ;;  %v4025_v28 = vrot.slane %v13739_v45, %v17650_v3  ;;  %v4394_v39 = vrot.slane %v13739_v45, %v17615_v36  ;;  %v4763_v47 = vrot.slane %v13739_v45, %v17626_v7  ;;  %17964 = vst [vmem:[#allocation134_spill] sm:$0xff] %v13776_v25  ;;  %v13787_v63 = vpop.permute.xlu1 %5654  ;;  %v17975_v25 = vld [vmem:[#allocation170_spill] sm:$0xff] }
 0x5d8   :  { %v13778_v34 = vadd.f32 %v4872_v26, %v4551_v27  ;;  %v2709_v19 = vmul.f32 %v2678_v5, %v17966_v41  ;;  %v2957_v30 = vmul.f32 %v2918_v29, %v17967_v60  ;;  %v2961_v10 = vmul.f32 %v2918_v29, %v17968_v4  ;;  %17973 = vst [vmem:[#allocation201_spill] sm:$0xff] %v13787_v63  ;;  %v17974_v5 = vld [vmem:[#allocation171_spill] sm:$0xff] }
 0x5d9   :  { %v3326_v8 = vmul.f32 %v3287_v22, %v17969_v23  ;;  %v3330_v32 = vmul.f32 %v3287_v22, %v17970_v17  ;;  %v3695_v31 = vmul.f32 %v3656_v52, %v17971_v14  ;;  %v3699_v12 = vmul.f32 %v3656_v52, %v17972_v9  ;;  %6404 = vrot.lane.b32.xlu0 %v17940_v50, %s8631_s2  ;;  %v13795_v22 = vpop.permute.xlu0 %5644 }
 0x5da   :  { %17965 = vst [vmem:[#allocation112_spill] sm:$0xff] %v13778_v34  ;;  %v3034_v26 = vrot.slane %v2957_v30, 1  ;;  %v3035_v27 = vrot.slane %v2961_v10, 1  ;;  %v4064_v48 = vmul.f32 %v4025_v28, %v17974_v5  ;;  %v4068_v15 = vmul.f32 %v4025_v28, %v17975_v25  ;;  %6418 = vrot.lane.b32.xlu1 %v17907_v61, %s8632_s12  ;;  %v18007_v61 = vld [vmem:[#allocation167_spill] sm:$0xff] }
 0x5db   :  { %v3403_v29 = vrot.slane %v3326_v8, 2  ;;  %v3404_v34 = vrot.slane %v3330_v32, 2  ;;  %v3772_v58 = vrot.slane %v3695_v31, 3  ;;  %v3773_v45 = vrot.slane %v3699_v12, 3  ;;  %v13802_v31 = vpop.permute.xlu1 %5658 }
 0x5dc   :  { %v3036_v52 = vsel %vm3003_vm0, %v3034_v26, %v3035_v27  ;;  %v4141_v63 = vrot.slane %v4064_v48, 4  ;;  %v4142_v43 = vrot.slane %v4068_v15, 4  ;;  %v4433_v30 = vmul.f32 %v4394_v39, %v17849_v44  ;;  %17976 = vst [vmem:[#allocation13_spill] sm:$0xff] %v13802_v31  ;;  %v17977_v26 = vld [vmem:[#allocation57_spill] sm:$0xff] }
 0x5dd   :  { %v3078_v10 = vadd.f32 %v3036_v52, %v2709_v19  ;;  %v3405_v56 = vsel %vm3372_vm7, %v3403_v29, %v3404_v34  ;;  %v3774_v28 = vsel %vm3741_vm2, %v3772_v58, %v3773_v45  ;;  %v4437_v32 = vmul.f32 %v4394_v39, %v17853_v57  ;;  %6416 = vrot.lane.b32.xlu0 %v17914_v54, %s8632_s12  ;;  %v13815_v45 = vpop.permute.xlu0 %5656 }
 0x5de   :  { %v4143_v12 = vsel %vm4110_vm11, %v4141_v63, %v4142_v43  ;;  %v4510_v8 = vrot.slane %v4433_v30, 5  ;;  %v4802_v48 = vmul.f32 %v4763_v47, %v17977_v26  ;;  %v4806_v15 = vmul.f32 %v4763_v47, %v13473_v20  ;;  %6422 = vrot.lane.b32.xlu1 %v17918_v21, %s8632_s12  ;;  %17978 = vst [vmem:[#allocation203_spill] sm:$0xff] %v13815_v45  ;;  %v18011_v45 = vld [vmem:[#allocation220_spill] sm:$0xff] }
 0x5df   :  { %v3447_v27 = vadd.f32 %v3405_v56, %v3078_v10  ;;  %v4511_v19 = vrot.slane %v4437_v32, 5  ;;  %v2682_v34 = vrot.slane %v13744_v53, %v17591_v37  ;;  %v2922_v58 = vrot.slane %v13744_v53, %v17645_v46  ;;  %v13824_v10 = vpop.permute.xlu1 %5662 }
 0x5e0   :  { %v4879_v39 = vrot.slane %v4802_v48, 6  ;;  %v4880_v43 = vrot.slane %v4806_v15, 6  ;;  %v3291_v63 = vrot.slane %v13744_v53, %v17646_v51  ;;  %v3660_v56 = vrot.slane %v13744_v53, %v17647_v2  ;;  %17979 = vst [vmem:[#allocation202_spill] sm:$0xff] %v13824_v10 }
 0x5e1   :  { %v3816_v47 = vadd.f32 %v3774_v28, %v3447_v27  ;;  %v4512_v29 = vsel %vm4479_vm5, %v4510_v8, %v4511_v19  ;;  %v2710_v52 = vmul.f32 %v2682_v34, %v17966_v41  ;;  %v2958_v30 = vmul.f32 %v2922_v58, %v17967_v60  ;;  %6420 = vrot.lane.b32.xlu0 %v17929_v55, %s8632_s12  ;;  %v13836_v60 = vpop.permute.xlu0 %5660  ;;  %v18006_v55 = vld [vmem:[#allocation162_spill] sm:$0xff] }
 0x5e2   :  { %v4881_v32 = vsel %vm4848_vm14, %v4879_v39, %v4880_v43  ;;  %v2962_v48 = vmul.f32 %v2922_v58, %v17968_v4  ;;  %v3327_v15 = vmul.f32 %v3291_v63, %v17969_v23  ;;  %v3331_v21 = vmul.f32 %v3291_v63, %v17970_v17  ;;  %6426 = vrot.lane.b32.xlu1 %v17930_v13, %s8632_s12 }
 0x5e3   :  { %v4185_v28 = vadd.f32 %v4143_v12, %v3816_v47  ;;  %v3037_v27 = vrot.slane %v2958_v30, 1  ;;  %v3696_v8 = vmul.f32 %v3660_v56, %v17971_v14  ;;  %v3700_v41 = vmul.f32 %v3660_v56, %v17972_v9  ;;  %17980 = vst [vmem:[#allocation149_spill] sm:$0xff] %v13836_v60  ;;  %v13842_v14 = vpop.permute.xlu1 %5666 }
 0x5e4   :  { %v3038_v19 = vrot.slane %v2962_v48, 1  ;;  %v3406_v34 = vrot.slane %v3327_v15, 2  ;;  %v3407_v39 = vrot.slane %v3331_v21, 2  ;;  %v4029_v4 = vrot.slane %v13744_v53, %v17650_v3  ;;  %17981 = vst [vmem:[#allocation53_spill] sm:$0xff] %v13842_v14  ;;  %v17982_v48 = vld [vmem:[#allocation61_spill] sm:$0xff] }
 0x5e5   :  { %v4554_v23 = vadd.f32 %v4512_v29, %v4185_v28  ;;  %v3775_v58 = vrot.slane %v3696_v8, 3  ;;  %v3776_v17 = vrot.slane %v3700_v41, 3  ;;  %v4398_v12 = vrot.slane %v13744_v53, %v17615_v36  ;;  %6424 = vrot.lane.b32.xlu0 %v17933_v59, %s8632_s12  ;;  %v13856_v15 = vpop.permute.xlu0 %5664  ;;  %v17984_v41 = vld [vmem:[#allocation108_spill] sm:$0xff]  ;;  %v18005_v59 = vld [vmem:[#allocation50_spill] sm:$0xff] }
 0x5e6   :  { %v3039_v9 = vsel %vm3003_vm0, %v3037_v27, %v3038_v19  ;;  %v3408_v43 = vsel %vm3372_vm7, %v3406_v34, %v3407_v39  ;;  %v4065_v21 = vmul.f32 %v4029_v4, %v17974_v5  ;;  %v4069_v63 = vmul.f32 %v4029_v4, %v17975_v25  ;;  %6734 = vrot.lane.b32.xlu1 %v17982_v48, %s8629_s17  ;;  %v17986_v19 = vld [vmem:[#allocation60_spill] sm:$0xff] }
 0x5e7   :  { %v13850_v56 = vadd.f32 %v4881_v32, %v4554_v23  ;;  %v3079_v47 = vadd.f32 %v3039_v9, %v2710_v52  ;;  %v3777_v29 = vsel %vm3741_vm2, %v3775_v58, %v3776_v17  ;;  %v4434_v30 = vmul.f32 %v4398_v12, %v17849_v44  ;;  %17983 = vst [vmem:[#allocation212_spill] sm:$0xff] %v13856_v15  ;;  %v13869_v34 = vpop.permute.xlu1 %5678  ;;  %v17989_v17 = vld [vmem:[#allocation169_spill] sm:$0xff]  ;;  %v18010_v15 = vld [vmem:[#allocation39_spill] sm:$0xff] }
 0x5e8   :  { %v4144_v28 = vrot.slane %v4065_v21, 4  ;;  %v4145_v27 = vrot.slane %v4069_v63, 4  ;;  %v4438_v8 = vmul.f32 %v4398_v12, %v17853_v57  ;;  %v4767_v5 = vrot.slane %v13744_v53, %v17626_v7  ;;  %17988 = vst [vmem:[#allocation90_spill] sm:$0xff] %v13869_v34  ;;  %v17990_v12 = vld [vmem:[#allocation145_spill] sm:$0xff]  ;;  %v17993_v63 = vld [vmem:[#allocation118_spill] sm:$0xff] }
 0x5e9   :  { %v3448_v25 = vadd.f32 %v3408_v43, %v3079_v47  ;;  %v4513_v32 = vrot.slane %v4434_v30, 5  ;;  %v13863_v52 = vadd.f32 %v13459_v24, %v17984_v41  ;;  %v13867_v44 = vadd.f32 %v13464_v62, %v17986_v19  ;;  %6428 = vrot.lane.b32.xlu0 %v17940_v50, %s8632_s12  ;;  %v17991_v43 = vld [vmem:[#allocation104_spill] sm:$0xff]  ;;  %v17994_v30 = vld [vmem:[#allocation30_spill] sm:$0xff] }
 0x5ea   :  { %v4146_v57 = vsel %vm4110_vm11, %v4144_v28, %v4145_v27  ;;  %v4514_v39 = vrot.slane %v4438_v8, 5  ;;  %v4803_v4 = vmul.f32 %v4767_v5, %v17977_v26  ;;  %v4807_v23 = vmul.f32 %v4767_v5, %v13473_v20  ;;  %6738 = vrot.lane.b32.xlu1 %v17994_v30, %s8629_s17  ;;  %v13892_v26 = vpop.permute.xlu0 %5668  ;;  %v17996_v27 = vld [vmem:[#allocation198_spill] sm:$0xff] }
 0x5eb   :  { %17985 = vst [vmem:[#allocation119_spill] sm:$0xff] %v13863_v52  ;;  %17987 = vst [vmem:[#allocation146_spill] sm:$0xff] %v13867_v44  ;;  %v3817_v58 = vadd.f32 %v3777_v29, %v3448_v25  ;;  %v13879_v9 = vsel %vm1611_vm12, %v17990_v12, %v17989_v17  ;;  %v13884_v21 = vsel %vm17992_vm4, %v13572_v49, %v17991_v43  ;;  %v13905_v41 = vpop.permute.xlu1 %5682  ;;  %v18000_v17 = vld [vmem:[#allocation161_spill] sm:$0xff] }
 0x5ec   :  { %v13888_v47 = vadd.f32 %v17900_v38, %v17993_v63  ;;  %17995 = vst [vmem:[#allocation177_spill] sm:$0xff] %v13892_v26  ;;  %v4515_v20 = vsel %vm4479_vm5, %v4513_v32, %v4514_v39  ;;  %v4882_v29 = vrot.slane %v4803_v4, 6  ;;  %v4883_v28 = vrot.slane %v4807_v23, 6  ;;  %17997 = vst [vmem:[#allocation199_spill] sm:$0xff] %v13905_v41  ;;  %v17998_v32 = vld [vmem:[#allocation41_spill] sm:$0xff]  ;;  %v17999_v23 = vld [vmem:[#allocation51_spill] sm:$0xff] }
 0x5ed   :  { %v13897_v8 = vadd.f32 %v17903_v11, %v17996_v27  ;;  %v4186_v5 = vadd.f32 %v4146_v57, %v3817_v58  ;;  %6736 = vrot.lane.b32.xlu0 %v17998_v32, %s8629_s17  ;;  %v18001_v43 = vld [vmem:[#allocation189_spill] sm:$0xff]  ;;  %v18002_v27 = vld [vmem:[#allocation98_spill] sm:$0xff]  ;;  %v18008_v26 = vld [vmem:[#allocation87_spill] sm:$0xff] }
 0x5ee   :  { %v2694_v49 = vrot.slane %v13888_v47, %v17591_v37  ;;  %v2934_v38 = vrot.slane %v13888_v47, %v17645_v46  ;;  %v3303_v25 = vrot.slane %v13888_v47, %v17646_v51  ;;  %v4884_v19 = vsel %vm4848_vm14, %v4882_v29, %v4883_v28  ;;  %6742 = vrot.lane.b32.xlu1 %v18002_v27, %s8629_s17  ;;  %v13921_v29 = vpop.permute.xlu0 %5680  ;;  %v18004_v28 = vld [vmem:[#allocation136_spill] sm:$0xff]  ;;  %vm18098_vm4 = vmmov %vm17499_vm1 }
 0x5ef   :  { %v3672_v11 = vrot.slane %v13888_v47, %v17647_v2  ;;  %v4041_v57 = vrot.slane %v13888_v47, %v17650_v3  ;;  %v4410_v39 = vrot.slane %v13888_v47, %v17615_v36  ;;  %v4555_v4 = vadd.f32 %v4515_v20, %v4186_v5  ;;  %18003 = vst [vmem:[#allocation68_spill] sm:$0xff] %v13921_v29 }
 0x5f0   :  { %v2713_v58 = vmul.f32 %v2694_v49, %v17999_v23  ;;  %v2965_v12 = vmul.f32 %v2934_v38, %v18000_v17  ;;  %v2969_v63 = vmul.f32 %v2934_v38, %v18001_v43  ;;  %v3334_v50 = vmul.f32 %v3303_v25, %v18004_v28  ;;  %v13930_v38 = vpop.permute.xlu1 %5686 }
 0x5f1   :  { %v3338_v13 = vmul.f32 %v3303_v25, %v18005_v59  ;;  %v3703_v54 = vmul.f32 %v3672_v11, %v18006_v55  ;;  %v3707_v41 = vmul.f32 %v3672_v11, %v18007_v61  ;;  %v13927_v20 = vadd.f32 %v4884_v19, %v4555_v4  ;;  %18009 = vst [vmem:[#allocation179_spill] sm:$0xff] %v13930_v38  ;;  %v18012_v4 = vld [vmem:[#allocation40_spill] sm:$0xff] }
 0x5f2   :  { %v3046_v5 = vrot.slane %v2965_v12, 1  ;;  %v3047_v49 = vrot.slane %v2969_v63, 1  ;;  %v4072_v34 = vmul.f32 %v4041_v57, %v18008_v26  ;;  %6740 = vrot.lane.b32.xlu0 %v18010_v15, %s8629_s17  ;;  %v3415_v29 = vrot.slane %v3334_v50, 2  ;;  %6746 = vrot.lane.b32.xlu1 %v18012_v4, %s8629_s17  ;;  %v13939_v12 = vpop.permute.xlu0 %5684 }
 0x5f3   :  { %v3416_v14 = vrot.slane %v3338_v13, 2  ;;  %v3784_v60 = vrot.slane %v3703_v54, 3  ;;  %v3785_v10 = vrot.slane %v3707_v41, 3  ;;  %v4076_v31 = vmul.f32 %v4041_v57, %v18011_v45  ;;  %18013 = vst [vmem:[#allocation209_spill] sm:$0xff] %v13939_v12 }
 0x5f4   :  { %v3048_v25 = vsel %vm3003_vm0, %v3046_v5, %v3047_v49  ;;  %v4153_v11 = vrot.slane %v4072_v34, 4  ;;  %v4441_v19 = vmul.f32 %v4410_v39, %v17886_v0  ;;  %v4445_v13 = vmul.f32 %v4410_v39, %v17891_v42  ;;  %v13948_v5 = vpop.permute.xlu1 %5690  ;;  %v18015_v49 = vld [vmem:[#allocation92_spill] sm:$0xff] }
 0x5f5   :  { %v3082_v63 = vadd.f32 %v3048_v25, %v2713_v58  ;;  %v3417_v38 = vsel %vm3372_vm7, %v3415_v29, %v3416_v14  ;;  %v3786_v50 = vsel %vm3741_vm2, %v3784_v60, %v3785_v10  ;;  %v4154_v54 = vrot.slane %v4076_v31, 4  ;;  %18014 = vst [vmem:[#allocation79_spill] sm:$0xff] %v13948_v5  ;;  %v18016_v14 = vld [vmem:[#allocation121_spill] sm:$0xff] }
 0x5f6   :  { %v4522_v41 = vrot.slane %v4441_v19, 5  ;;  %v4779_v57 = vrot.slane %v13888_v47, %v17626_v7  ;;  %v2698_v34 = vrot.slane %v13897_v8, %v17591_v37  ;;  %6744 = vrot.lane.b32.xlu0 %v18015_v49, %s8629_s17  ;;  %v4523_v25 = vrot.slane %v4445_v13, 5  ;;  %6758 = vrot.lane.b32.xlu1 %v17982_v48, %s8631_s2  ;;  %v13962_v5 = vpop.permute.xlu0 %5688 }
 0x5f7   :  { %v3451_v58 = vadd.f32 %v3417_v38, %v3082_v63  ;;  %v2938_v10 = vrot.slane %v13897_v8, %v17645_v46  ;;  %v3307_v31 = vrot.slane %v13897_v8, %v17646_v51  ;;  %v4155_v60 = vsel %vm4110_vm11, %v4153_v11, %v4154_v54  ;;  %18017 = vst [vmem:[#allocation43_spill] sm:$0xff] %v13962_v5 }
 0x5f8   :  { %v4810_v39 = vmul.f32 %v4779_v57, %v18016_v14  ;;  %v4814_v29 = vmul.f32 %v4779_v57, %v13559_v6  ;;  %v2714_v19 = vmul.f32 %v2698_v34, %v17999_v23  ;;  %v4524_v63 = vsel %vm4479_vm5, %v4522_v41, %v4523_v25  ;;  %v13969_v46 = vpop.permute.xlu1 %5998  ;;  %v18018_v23 = vld [vmem:[#allocation47_spill] sm:$0xff] }
 0x5f9   :  { %v3820_v38 = vadd.f32 %v3786_v50, %v3451_v58  ;;  %v2966_v13 = vmul.f32 %v2938_v10, %v18000_v17  ;;  %v2970_v51 = vmul.f32 %v2938_v10, %v18001_v43  ;;  %v3335_v54 = vmul.f32 %v3307_v31, %v18004_v28 }
 0x5fa   :  { %v4891_v12 = vrot.slane %v4810_v39, 6  ;;  %v4892_v11 = vrot.slane %v4814_v29, 6  ;;  %v3339_v57 = vmul.f32 %v3307_v31, %v18005_v59  ;;  %6748 = vrot.lane.b32.xlu0 %v18018_v23, %s8629_s17  ;;  %v3676_v41 = vrot.slane %v13897_v8, %v17647_v2  ;;  %6762 = vrot.lane.b32.xlu1 %v17994_v30, %s8631_s2  ;;  %v13980_v59 = vpop.permute.xlu0 %5692 }
 0x5fb   :  { %v4189_v34 = vadd.f32 %v4155_v60, %v3820_v38  ;;  %v3049_v5 = vrot.slane %v2966_v13, 1  ;;  %v3050_v50 = vrot.slane %v2970_v51, 1  ;;  %v3418_v43 = vrot.slane %v3335_v54, 2 }
 0x5fc   :  { %v4893_v17 = vsel %vm4848_vm14, %v4891_v12, %v4892_v11  ;;  %v3419_v58 = vrot.slane %v3339_v57, 2  ;;  %v4045_v28 = vrot.slane %v13897_v8, %v17650_v3  ;;  %v3704_v51 = vmul.f32 %v3676_v41, %v18006_v55  ;;  %v13988_v38 = vpop.permute.xlu1 %6002 }
 0x5fd   :  { %v4558_v25 = vadd.f32 %v4524_v63, %v4189_v34  ;;  %v3051_v10 = vsel %vm3003_vm0, %v3049_v5, %v3050_v50  ;;  %v3708_v31 = vmul.f32 %v3676_v41, %v18007_v61  ;;  %18019 = vst [vmem:[#allocation188_spill] sm:$0xff] %v13988_v38  ;;  %v4414_v55 = vrot.slane %v13897_v8, %v17615_v36  ;;  %v18021_v50 = vld [vmem:[#allocation200_spill] sm:$0xff] }
 0x5fe   :  { %v3083_v60 = vadd.f32 %v3051_v10, %v2714_v19  ;;  %v3420_v12 = vsel %vm3372_vm7, %v3418_v43, %v3419_v58  ;;  %v4073_v39 = vmul.f32 %v4045_v28, %v18008_v26  ;;  %v4077_v29 = vmul.f32 %v4045_v28, %v18011_v45  ;;  %6760 = vrot.lane.b32.xlu0 %v17998_v32, %s8631_s2  ;;  %v14000_v45 = vpop.permute.xlu0 %6000 }
 0x5ff   :  { %v13992_v13 = vadd.f32 %v4893_v17, %v4558_v25  ;;  %v3787_v63 = vrot.slane %v3704_v51, 3  ;;  %v3788_v5 = vrot.slane %v3708_v31, 3  ;;  %v4783_v26 = vrot.slane %v13897_v8, %v17626_v7  ;;  %6766 = vrot.lane.b32.xlu1 %v18002_v27, %s8631_s2  ;;  %18020 = vst [vmem:[#allocation123_spill] sm:$0xff] %v14000_v45  ;;  %v18024_v51 = vld [vmem:[#allocation85_spill] sm:$0xff] }
 0x600   :  { %v3452_v61 = vadd.f32 %v3420_v12, %v3083_v60  ;;  %v4156_v19 = vrot.slane %v4073_v39, 4  ;;  %v4157_v11 = vrot.slane %v4077_v29, 4  ;;  %v4442_v57 = vmul.f32 %v4414_v55, %v17886_v0  ;;  %v14011_v25 = vpop.permute.xlu1 %6006  ;;  %v18025_v31 = vld [vmem:[#allocation205_spill] sm:$0xff]  ;;  %v18026_v39 = vld [vmem:[#allocation204_spill] sm:$0xff] }
 0x601   :  { %v3789_v54 = vsel %vm3741_vm2, %v3787_v63, %v3788_v5  ;;  %v4446_v34 = vmul.f32 %v4414_v55, %v17891_v42  ;;  %v5074_v41 = vsel %vm18022_vm6, %v13585_v33, %v18021_v50  ;;  %v4811_v58 = vmul.f32 %v4783_v26, %v18016_v14  ;;  %18023 = vst [vmem:[#allocation34_spill] sm:$0xff] %v14011_v25  ;;  %v18029_v5 = vld [vmem:[#allocation122_spill] sm:$0xff]  ;;  %vm18102_vm6 = vmmov %vm17499_vm1  ;;  %v18140_v25 = vld [vmem:[#allocation221_spill] sm:$0xff] }
 0x602   :  { %v3821_v17 = vadd.f32 %v3789_v54, %v3452_v61  ;;  %v4158_v43 = vsel %vm4110_vm11, %v4156_v19, %v4157_v11  ;;  %v4815_v28 = vmul.f32 %v4783_v26, %v13559_v6  ;;  %6764 = vrot.lane.b32.xlu0 %v18010_v15, %s8631_s2  ;;  %v4525_v10 = vrot.slane %v4442_v57, 5  ;;  %v14028_v29 = vpop.permute.xlu0 %6004  ;;  %v18032_v55 = vld [vmem:[#allocation214_spill] sm:$0xff]  ;;  %v18034_v11 = vld [vmem:[#allocation173_spill] sm:$0xff]  ;;  %v18036_v57 = vld [vmem:[#allocation219_spill] sm:$0xff] }
 0x603   :  { %v4526_v0 = vrot.slane %v4446_v34, 5  ;;  %v5077_v42 = vsel %vm17499_vm1, %v13596_v16, %v18024_v51  ;;  %v14020_v33 = vadd.f32 %v13459_v24, %v18025_v31  ;;  %v4894_v12 = vrot.slane %v4811_v58, 6  ;;  %6770 = vrot.lane.b32.xlu1 %v18012_v4, %s8631_s2  ;;  %18028 = vst [vmem:[#allocation16_spill] sm:$0xff] %v14028_v29  ;;  %v18035_v26 = vld [vmem:[#allocation89_spill] sm:$0xff]  ;;  %v18044_v31 = vld [vmem:[#allocation186_spill] sm:$0xff] }
 0x604   :  { %v4190_v60 = vadd.f32 %v4158_v43, %v3821_v17  ;;  %v4895_v14 = vrot.slane %v4815_v28, 6  ;;  %v14024_v6 = vadd.f32 %v13464_v62, %v18026_v39  ;;  %v14034_v16 = vsel %vm18030_vm3, %v13725_v35, %v18029_v5  ;;  %v18037_v35 = vld [vmem:[#allocation107_spill] sm:$0xff]  ;;  %v14052_v50 = vpop.permute.xlu1 %6010  ;;  %v18041_v43 = vld [vmem:[#allocation88_spill] sm:$0xff]  ;;  %v18042_v28 = vld [vmem:[#allocation62_spill] sm:$0xff] }
 0x605   :  { %v4527_v63 = vsel %vm4479_vm5, %v4525_v10, %v4526_v0  ;;  %v14039_v24 = vsel %vm18031_vm9, %v13735_v1, %v13350_v18  ;;  %v14044_v62 = vsel %vm18033_vm10, %v13749_v40, %v18032_v55  ;;  %v5081_v54 = vsel %vm1650_vm8, %v18035_v26, %v18034_v11  ;;  %18038 = vst [vmem:[#allocation18_spill] sm:$0xff] %v14052_v50  ;;  %v18039_v18 = vld [vmem:[#allocation78_spill] sm:$0xff]  ;;  %v18047_v55 = vld [vmem:[#allocation67_spill] sm:$0xff]  ;;  %v18048_v11 = vld [vmem:[#allocation184_spill] sm:$0xff] }
 0x606   :  { %18027 = vst [vmem:[#allocation126_spill] sm:$0xff] %v14024_v6  ;;  %v4559_v61 = vadd.f32 %v4527_v63, %v4190_v60  ;;  %v4896_v19 = vsel %vm4848_vm14, %v4894_v12, %v4895_v14  ;;  %v5100_v34 = vrot.slane %v18037_v35, %v18036_v57  ;;  %6768 = vrot.lane.b32.xlu0 %v18015_v49, %s8631_s2  ;;  %v18040_v40 = vld [vmem:[#allocation222_spill] sm:$0xff]  ;;  %v18045_v12 = vld [vmem:[#allocation76_spill] sm:$0xff]  ;;  %v14076_v39 = vpop.permute.xlu0 %6008  ;;  %vm18108_vm3 = vmmov %vm17499_vm1 }
 0x607   :  { %v5104_v1 = vrot.slane %v18039_v18, %v18036_v57  ;;  %v5153_v17 = vmul.f32 %v18040_v40, %v5081_v54  ;;  %v5154_v58 = vmul.f32 %v18041_v43, %v5081_v54  ;;  %v14063_v10 = vsel %vm18043_vm13, %v13879_v9, %v18042_v28  ;;  %6782 = vrot.lane.b32.xlu1 %v17982_v48, %s8632_s12  ;;  %v18141_v45 = vld [vmem:[#allocation129_spill] sm:$0xff]  ;;  %vm18151_vm9 = vmmov %vm17499_vm1 }
 0x608   :  { %v14065_v0 = vadd.f32 %v4896_v19, %v4559_v61  ;;  %v5155_v51 = vmul.f32 %v5100_v34, %v5081_v54  ;;  %v5083_v60 = vsel %vm1650_vm8, %v13884_v21, %v18044_v31  ;;  %v14072_v14 = vrot.slane %v18045_v12, %v18036_v57  ;;  %18046 = vst [vmem:[#allocation56_spill] sm:$0xff] %v14076_v39  ;;  %v18049_v21 = vld [vmem:[#allocation183_spill] sm:$0xff]  ;;  %v14089_v28 = vpop.permute.xlu1 %6022  ;;  %vm18155_vm10 = vmmov %vm17499_vm1 }
 0x609   :  { %v5156_v63 = vmul.f32 %v5104_v1, %v5081_v54  ;;  %v5218_v5 = vrot.slane %v5153_v17, 7  ;;  %v5221_v9 = vrot.slane %v5154_v58, 7  ;;  %v5120_v61 = vrot.slane %v18047_v55, %v18036_v57  ;;  %18050 = vst [vmem:[#allocation137_spill] sm:$0xff] %v14089_v28  ;;  %v18051_v58 = vld [vmem:[#allocation26_spill] sm:$0xff]  ;;  %v18054_v12 = vld [vmem:[#allocation103_spill] sm:$0xff]  ;;  %vm18157_vm13 = vmmov %vm17499_vm1 }
 0x60a   :  { %v5224_v19 = vrot.slane %v5155_v51, 7  ;;  %v14081_v26 = vmul.f32 %v18048_v11, %v5083_v60  ;;  %v14084_v35 = vmul.f32 %v18049_v21, %v5083_v60  ;;  %v14087_v18 = vmul.f32 %v14072_v14, %v5083_v60  ;;  %6772 = vrot.lane.b32.xlu0 %v18018_v23, %s8631_s2  ;;  %v14103_v36 = vpop.permute.xlu0 %6012 }
 0x60b   :  { %v5227_v54 = vrot.slane %v5156_v63, 7  ;;  %v14093_v17 = vmul.f32 %v5120_v61, %v5083_v60  ;;  %v5082_v51 = vsel %vm1650_vm8, %v5074_v41, %v18051_v58  ;;  %6786 = vrot.lane.b32.xlu1 %v17994_v30, %s8632_s12  ;;  %18052 = vst [vmem:[#allocation133_spill] sm:$0xff] %v14103_v36  ;;  %v18053_v58 = vld [vmem:[#allocation178_spill] sm:$0xff]  ;;  %v14111_v55 = vrot.slane %v18054_v12, %v18036_v57 }
 0x60c   :  { %v5157_v7 = vmul.f32 %v18040_v40, %v5082_v51  ;;  %v5158_v63 = vmul.f32 %v18041_v43, %v5082_v51  ;;  %v5159_v3 = vmul.f32 %v5100_v34, %v5082_v51  ;;  %v5160_v48 = vmul.f32 %v5104_v1, %v5082_v51  ;;  %v18055_v40 = vld [vmem:[#allocation193_spill] sm:$0xff]  ;;  %v14117_v30 = vpop.permute.xlu1 %6026 }
 0x60d   :  { %v5085_v31 = vsel %vm1650_vm8, %v5077_v42, %v18053_v58  ;;  %v14115_v2 = vrot.slane %v18055_v40, %v18036_v57  ;;  %18056 = vst [vmem:[#allocation156_spill] sm:$0xff] %v14117_v30  ;;  %v4945_v42 = vld [vmem:[#allocation7] sm:$0xff]  ;;  %v14128_v58 = vrot.slane %v13744_v53, %v18036_v57 }
 0x60e   :  { %v5219_v41 = vrot.slane %v5157_v7, 7  ;;  %6784 = vrot.lane.b32.xlu0 %v17998_v32, %s8632_s12  ;;  %v5222_v43 = vrot.slane %v5158_v63, 7  ;;  %v5225_v34 = vrot.slane %v5159_v3, 7  ;;  %v5228_v1 = vrot.slane %v5160_v48, 7  ;;  %v18057_v7 = vld [vmem:[#allocation20_spill] sm:$0xff]  ;;  %v14138_v3 = vpop.permute.xlu0 %6024  ;;  %v4947_v63 = vld [vmem:[#allocation7 + $0x10] sm:$0xff] }
 0x60f   :  { %v14123_v51 = vrot.slane %v18057_v7, %v18036_v57  ;;  %v14131_v40 = vmul.f32 %v14111_v55, %v5085_v31  ;;  %v14134_v60 = vmul.f32 %v14115_v2, %v5085_v31  ;;  %6790 = vrot.lane.b32.xlu1 %v18002_v27, %s8632_s12  ;;  %18058 = vst [vmem:[#allocation73_spill] sm:$0xff] %v14138_v3  ;;  %v4946_v48 = vld [vmem:[#allocation7 + $0x8] sm:$0xff]  ;;  %v4948_v7 = vld [vmem:[#allocation7 + $0x18] sm:$0xff] }
 0x610   :  { %v5220_v12 = vsel %vm5217_vm15, %v5218_v5, %v5219_v41  ;;  %v5223_v5 = vsel %vm5217_vm15, %v5221_v9, %v5222_v43  ;;  %v5226_v41 = vsel %vm5217_vm15, %v5224_v19, %v5225_v34  ;;  %v5229_v53 = vsel %vm5217_vm15, %v5227_v54, %v5228_v1  ;;  %v14154_v3 = vpop.permute.xlu1 %6030  ;;  %v18060_v43 = vld [vmem:[#allocation139_spill] sm:$0xff] }
 0x611   :  { %v14143_v32 = vadd.f32 %v5220_v12, %v4945_v42  ;;  %v14145_v30 = vadd.f32 %v5223_v5, %v4946_v48  ;;  %v14147_v36 = vadd.f32 %v5226_v41, %v4947_v63  ;;  %v14149_v28 = vadd.f32 %v5229_v53, %v4948_v7  ;;  %18059 = vst [vmem:[#allocation111_spill] sm:$0xff] %v14154_v3  ;;  %v18062_v5 = vld [vmem:[#allocation94_spill] sm:$0xff]  ;;  %v18063_v41 = vld [vmem:[#allocation117_spill] sm:$0xff] }
 0x612   :  { %v14152_v27 = vmul.f32 %v14123_v51, %v5085_v31  ;;  %6788 = vrot.lane.b32.xlu0 %v18010_v15, %s8632_s12  ;;  %v14159_v9 = vmul.f32 %v14128_v58, %v5085_v31  ;;  %v5084_v34 = vsel %vm1650_vm8, %v14034_v16, %v18060_v43  ;;  %v14172_v31 = vpop.permute.xlu0 %6028  ;;  %v5087_v16 = vsel %vm1650_vm8, %v14039_v24, %v18062_v5  ;;  %v4949_v5 = vld [vmem:[#allocation7 + $0x20] sm:$0xff] }
 0x613   :  { %v5165_v42 = vmul.f32 %v18048_v11, %v5084_v34  ;;  %v5166_v12 = vmul.f32 %v18049_v21, %v5084_v34  ;;  %v5167_v48 = vmul.f32 %v14072_v14, %v5084_v34  ;;  %6794 = vrot.lane.b32.xlu1 %v18012_v4, %s8632_s12  ;;  %18061 = vst [vmem:[#allocation113_spill] sm:$0xff] %v14172_v31  ;;  %v18064_v14 = vld [vmem:[#allocation197_spill] sm:$0xff]  ;;  %v18068_v19 = vrot.slane %v14087_v18, 7  ;;  %v18073_v18 = vld [vmem:[#allocation112_spill] sm:$0xff] }
 0x614   :  { %v5168_v7 = vmul.f32 %v5120_v61, %v5084_v34  ;;  %v5140_v53 = vrot.slane %v18063_v41, %v18036_v57  ;;  %v5144_v1 = vrot.slane %v18064_v14, %v18036_v57  ;;  %v14182_v54 = vpop.permute.xlu1 %6034  ;;  %v5148_v61 = vrot.slane %v13888_v47, %v18036_v57  ;;  %v18069_v47 = vld [vmem:[#allocation42_spill] sm:$0xff]  ;;  %v4954_v31 = vld [vmem:[#allocation7 + $0x48] sm:$0xff] }
 0x615   :  { %v5231_v11 = vrot.slane %v5165_v42, 7  ;;  %v5234_v43 = vrot.slane %v5166_v12, 7  ;;  %v5237_v21 = vrot.slane %v5167_v48, 7  ;;  %18065 = vst [vmem:[#allocation31_spill] sm:$0xff] %v14182_v54  ;;  %v5152_v24 = vrot.slane %v13897_v8, %v18036_v57  ;;  %v4950_v42 = vld [vmem:[#allocation7 + $0x28] sm:$0xff] }
 0x616   :  { %6792 = vrot.lane.b32.xlu0 %v18015_v49, %s8632_s12  ;;  %v5240_v63 = vrot.slane %v5168_v7, 7  ;;  %v5177_v34 = vmul.f32 %v5140_v53, %v5087_v16  ;;  %v18066_v12 = vrot.slane %v14081_v26, 7  ;;  %v18067_v41 = vrot.slane %v14084_v35, 7  ;;  %v14201_v8 = vpop.permute.xlu0 %6032  ;;  %v18072_v35 = vld [vmem:[#allocation148_spill] sm:$0xff] }
 0x617   :  { %v5238_v7 = vsel %vm5217_vm15, %v18068_v19, %v5237_v21  ;;  %v5178_v49 = vmul.f32 %v5144_v1, %v5087_v16  ;;  %7102 = vrot.lane.b32.xlu1 %v18069_v47, %s8629_s17  ;;  %18070 = vst [vmem:[#allocation185_spill] sm:$0xff] %v14201_v8  ;;  %v18071_v57 = vrot.slane %v14093_v17, 7  ;;  %v5179_v19 = vmul.f32 %v5148_v61, %v5087_v16 }
 0x618   :  { %v5232_v48 = vsel %vm5217_vm15, %v18066_v12, %v5231_v11  ;;  %v5235_v14 = vsel %vm5217_vm15, %v18067_v41, %v5234_v43  ;;  %v14211_v43 = vadd.f32 %v5238_v7, %v18072_v35  ;;  %v5180_v21 = vmul.f32 %v5152_v24, %v5087_v16  ;;  %v14216_v15 = vpop.permute.xlu1 %6046 }
 0x619   :  { %v5241_v26 = vsel %vm5217_vm15, %v18071_v57, %v5240_v63  ;;  %v14206_v4 = vadd.f32 %v5232_v48, %v4949_v5  ;;  %v14208_v11 = vadd.f32 %v5235_v14, %v4950_v42  ;;  %v5254_v41 = vrot.slane %v5177_v34, 7  ;;  %18074 = vst [vmem:[#allocation49_spill] sm:$0xff] %v14216_v15  ;;  %v18075_v57 = vld [vmem:[#allocation217_spill] sm:$0xff]  ;;  %v18076_v5 = vld [vmem:[#allocation54_spill] sm:$0xff]  ;;  %v18077_v42 = vld [vmem:[#allocation216_spill] sm:$0xff] }
 0x61a   :  { %v14214_v12 = vadd.f32 %v5241_v26, %v18073_v18  ;;  %6796 = vrot.lane.b32.xlu0 %v18018_v23, %s8632_s12  ;;  %v5257_v17 = vrot.slane %v5178_v49, 7  ;;  %v5086_v63 = vsel %vm1650_vm8, %v14044_v62, %v18075_v57  ;;  %v5458_v48 = vsel %vm1611_vm12, %v18077_v42, %v18076_v5  ;;  %v18078_v14 = vld [vmem:[#allocation159_spill] sm:$0xff]  ;;  %v18079_v49 = vld [vmem:[#allocation58_spill] sm:$0xff]  ;;  %v14233_v18 = vpop.permute.xlu0 %6036 }
 0x61b   :  { %v5088_v7 = vsel %vm1650_vm8, %v14063_v10, %v18078_v14  ;;  %v5260_v16 = vrot.slane %v5179_v19, 7  ;;  %v5263_v34 = vrot.slane %v5180_v21, 7  ;;  %v5173_v26 = vmul.f32 %v14111_v55, %v5086_v63  ;;  %7106 = vrot.lane.b32.xlu1 %v18079_v49, %s8629_s17  ;;  %18080 = vst [vmem:[#allocation66_spill] sm:$0xff] %v14233_v18  ;;  %v18082_v55 = vld [vmem:[#allocation64_spill] sm:$0xff]  ;;  %v4953_v18 = vld [vmem:[#allocation7 + $0x40] sm:$0xff] }
 0x61c   :  { %v5174_v35 = vmul.f32 %v14115_v2, %v5086_v63  ;;  %v5175_v62 = vmul.f32 %v14123_v51, %v5086_v63  ;;  %v5176_v57 = vmul.f32 %v14128_v58, %v5086_v63  ;;  %v5181_v5 = vmul.f32 %v5140_v53, %v5088_v7  ;;  %v14237_v21 = vpop.permute.xlu1 %6050  ;;  %v18085_v63 = vld [vmem:[#allocation100_spill] sm:$0xff] }
 0x61d   :  { %v5182_v42 = vmul.f32 %v5144_v1, %v5088_v7  ;;  %v5243_v23 = vrot.slane %v5173_v26, 7  ;;  %v5183_v10 = vmul.f32 %v5148_v61, %v5088_v7  ;;  %v5184_v19 = vmul.f32 %v5152_v24, %v5088_v7  ;;  %18081 = vst [vmem:[#allocation131_spill] sm:$0xff] %v14237_v21 }
 0x61e   :  { %v5246_v15 = vrot.slane %v5174_v35, 7  ;;  %7104 = vrot.lane.b32.xlu0 %v18082_v55, %s8629_s17  ;;  %v5249_v2 = vrot.slane %v5175_v62, 7  ;;  %v5252_v14 = vrot.slane %v5176_v57, 7  ;;  %v5255_v8 = vrot.slane %v5181_v5, 7  ;;  %v14249_v7 = vpop.permute.xlu0 %6048  ;;  %v4957_v5 = vld [vmem:[#allocation7 + $0x60] sm:$0xff] }
 0x61f   :  { %v5258_v54 = vrot.slane %v5182_v42, 7  ;;  %v18083_v51 = vrot.slane %v14131_v40, 7  ;;  %v18084_v1 = vrot.slane %v14134_v60, 7  ;;  %v5261_v61 = vrot.slane %v5183_v10, 7  ;;  %7110 = vrot.lane.b32.xlu1 %v18085_v63, %s8629_s17  ;;  %18086 = vst [vmem:[#allocation96_spill] sm:$0xff] %v14249_v7  ;;  %v4958_v42 = vld [vmem:[#allocation7 + $0x68] sm:$0xff] }
 0x620   :  { %v5264_v24 = vrot.slane %v5184_v19, 7  ;;  %v18087_v26 = vrot.slane %v14152_v27, 7  ;;  %v18088_v62 = vrot.slane %v14159_v9, 7  ;;  %v5256_v10 = vsel %vm5217_vm15, %v5254_v41, %v5255_v8  ;;  %v18090_v27 = vld [vmem:[#allocation74_spill] sm:$0xff]  ;;  %v18092_v41 = vld [vmem:[#allocation93_spill] sm:$0xff] }
 0x621   :  { %v5244_v58 = vsel %vm5217_vm15, %v18083_v51, %v5243_v23  ;;  %v5247_v53 = vsel %vm5217_vm15, %v18084_v1, %v5246_v15  ;;  %v5259_v19 = vsel %vm5217_vm15, %v5257_v17, %v5258_v54  ;;  %v14261_v51 = vpop.permute.xlu1 %6054  ;;  %v5262_v9 = vsel %vm5217_vm15, %v5260_v16, %v5261_v61  ;;  %v18091_v54 = vld [vmem:[#allocation127_spill] sm:$0xff]  ;;  %v18097_v1 = vld [vmem:[#allocation128_spill] sm:$0xff]  ;;  %v18100_v61 = vld [vmem:[#allocation150_spill] sm:$0xff] }
 0x622   :  { %v5250_v35 = vsel %vm5217_vm15, %v18087_v26, %v5249_v2  ;;  %v5253_v40 = vsel %vm5217_vm15, %v18088_v62, %v5252_v14  ;;  %v5290_v23 = vadd.f32 %v5244_v58, %v4953_v18  ;;  %v5291_v57 = vadd.f32 %v5247_v53, %v4954_v31  ;;  %18089 = vst [vmem:[#allocation163_spill] sm:$0xff] %v14261_v51  ;;  %v18093_v2 = vld [vmem:[#allocation124_spill] sm:$0xff]  ;;  %v18094_v14 = vld [vmem:[#allocation138_spill] sm:$0xff]  ;;  %v14285_v58 = vpop.permute.xlu0 %6052  ;;  %v18099_v53 = vld [vmem:[#allocation105_spill] sm:$0xff] }
 0x623   :  { %v5292_v60 = vadd.f32 %v5250_v35, %v13850_v56  ;;  %v5293_v15 = vadd.f32 %v5253_v40, %v13927_v20  ;;  %7108 = vrot.lane.b32.xlu0 %v18090_v27, %s8629_s17  ;;  %v5265_v18 = vsel %vm5217_vm15, %v5263_v34, %v5264_v24  ;;  %v14267_v31 = vadd.f32 %v5256_v10, %v4957_v5  ;;  %v18095_v34 = vld [vmem:[#allocation29_spill] sm:$0xff]  ;;  %v18101_v24 = vld [vmem:[#allocation164_spill] sm:$0xff] }
 0x624   :  { %v14269_v56 = vadd.f32 %v5259_v19, %v4958_v42  ;;  %v14272_v20 = vadd.f32 %v5262_v9, %v13992_v13  ;;  %v14275_v8 = vadd.f32 %v5265_v18, %v14065_v0  ;;  %v5460_v17 = vsel %vm1611_vm12, %v18092_v41, %v18091_v54  ;;  %7114 = vrot.lane.b32.xlu1 %v18095_v34, %s8629_s17  ;;  %v18103_v35 = vld [vmem:[#allocation48_spill] sm:$0xff]  ;;  %v18106_v19 = vld [vmem:[#allocation155_spill] sm:$0xff]  ;;  %v18110_v41 = vld [vmem:[#allocation102_spill] sm:$0xff] }
 0x625   :  { %v5459_v16 = vsel %vm1611_vm12, %v18094_v14, %v18093_v2  ;;  %18096 = vst [vmem:[#allocation22_spill] sm:$0xff] %v14285_v58  ;;  %v5462_v13 = vsel %vm18098_vm4, %v5458_v48, %v18097_v1  ;;  %v5461_v0 = vsel %vm1611_vm12, %v18100_v61, %v18099_v53  ;;  %v5464_v26 = vsel %vm18102_vm6, %v5460_v17, %v18101_v24  ;;  %v18104_v40 = vld [vmem:[#allocation168_spill] sm:$0xff]  ;;  %v14304_v54 = vpop.permute.xlu1 %6058  ;;  %v18115_v53 = vld [vmem:[#allocation109_spill] sm:$0xff]  ;;  %vm18159_vm4 = vmmov %vm17499_vm1 }
 0x626   :  { %v5463_v62 = vsel %vm17499_vm1, %v5459_v16, %v18103_v35  ;;  %v5466_v5 = vsel %vm1650_vm8, %v5462_v13, %v18104_v40  ;;  %v18105_v42 = vld [vmem:[#allocation192_spill] sm:$0xff]  ;;  %v5485_v9 = vrot.slane %v18106_v19, %v17591_v37  ;;  %18109 = vst [vmem:[#allocation174_spill] sm:$0xff] %v14304_v54  ;;  %v18113_v16 = vld [vmem:[#allocation218_spill] sm:$0xff]  ;;  %v5468_v61 = vsel %vm1650_vm8, %v5464_v26, %v18115_v53  ;;  %vm18161_vm6 = vmmov %vm17499_vm1 }
 0x627   :  { %v5481_v10 = vrot.slane %v18105_v42, %v17591_v37  ;;  %v18107_v48 = vld [vmem:[#allocation152_spill] sm:$0xff]  ;;  %7112 = vrot.lane.b32.xlu0 %v18110_v41, %s8629_s17  ;;  %v18114_v1 = vrot.slane %v18113_v16, %v17591_v37  ;;  %v5513_v58 = vrot.slane %v13863_v52, %v17591_v37 }
 0x628   :  { %v5465_v18 = vsel %vm18108_vm3, %v5461_v0, %v18107_v48  ;;  %v18111_v17 = vld [vmem:[#allocation172_spill] sm:$0xff]  ;;  %v5537_v40 = vmul.f32 %v5485_v9, %v5466_v5  ;;  %v18117_v48 = vld [vmem:[#allocation25_spill] sm:$0xff]  ;;  %7126 = vrot.lane.b32.xlu1 %v18069_v47, %s8631_s2  ;;  %vm18164_vm3 = vmmov %vm17499_vm1 }
 0x629   :  { %v18112_v2 = vrot.slane %v18111_v17, %v17591_v37  ;;  %v5535_v13 = vmul.f32 %v18114_v1, %v5466_v5  ;;  %v18116_v24 = vld [vmem:[#allocation116_spill] sm:$0xff]  ;;  %v5536_v0 = vmul.f32 %v5481_v10, %v5466_v5  ;;  %v5509_v54 = vrot.slane %v18117_v48, %v17591_v37  ;;  %v14340_v21 = vpop.permute.xlu1 %6366 }
 0x62a   :  { %v5505_v35 = vrot.slane %v18116_v24, %v17591_v37  ;;  %v14338_v53 = vadd.f32 %v5537_v40, %v14149_v28  ;;  %v5544_v7 = vmul.f32 %v5513_v58, %v5468_v61  ;;  %18119 = vst [vmem:[#allocation175_spill] sm:$0xff] %v14340_v21  ;;  %v18123_v58 = vld [vmem:[#allocation114_spill] sm:$0xff]  ;;  %v18124_v40 = vld [vmem:[#allocation55_spill] sm:$0xff] }
 0x62b   :  { %v5534_v14 = vmul.f32 %v18112_v2, %v5466_v5  ;;  %v14324_v2 = vpop.permute.xlu0 %6056  ;;  %v14330_v26 = vadd.f32 %v5535_v13, %v14145_v30  ;;  %v5517_v5 = vrot.slane %v13867_v44, %v17591_v37  ;;  %v14335_v9 = vadd.f32 %v5536_v0, %v14147_v36  ;;  %v18121_v13 = vld [vmem:[#allocation182_spill] sm:$0xff] }
 0x62c   :  { %18118 = vst [vmem:[#allocation176_spill] sm:$0xff] %v14324_v2  ;;  %v5542_v10 = vmul.f32 %v5505_v35, %v5468_v61  ;;  %v5543_v51 = vmul.f32 %v5509_v54, %v5468_v61  ;;  %v5489_v2 = vrot.slane %v18121_v13, %v17591_v37  ;;  %v18122_v35 = vld [vmem:[#allocation181_spill] sm:$0xff]  ;;  %v14352_v28 = vadd.f32 %v5544_v7, %v5292_v60  ;;  %v18129_v60 = vld [vmem:[#allocation14_spill] sm:$0xff] }
 0x62d   :  { %v14327_v1 = vadd.f32 %v5534_v14, %v14143_v32  ;;  %v18120_v32 = vld [vmem:[#allocation81_spill] sm:$0xff]  ;;  %v5545_v14 = vmul.f32 %v5517_v5, %v5468_v61  ;;  %v5493_v36 = vrot.slane %v18122_v35, %v17591_v37  ;;  %v5497_v54 = vrot.slane %v18123_v58, %v17591_v37  ;;  %7130 = vrot.lane.b32.xlu1 %v18079_v49, %s8631_s2  ;;  %v18126_v5 = vld [vmem:[#allocation196_spill] sm:$0xff]  ;;  %v14371_v29 = vpop.permute.xlu1 %6370 }
 0x62e   :  { %7116 = vrot.lane.b32.xlu0 %v18120_v32, %s8629_s17  ;;  %v14344_v30 = vadd.f32 %v5542_v10, %v5290_v23  ;;  %v14350_v0 = vadd.f32 %v5543_v51, %v5291_v57  ;;  %v5501_v21 = vrot.slane %v18124_v40, %v17591_v37  ;;  %v5467_v10 = vsel %vm1650_vm8, %v5463_v62, %v18126_v5  ;;  %v18127_v57 = vld [vmem:[#allocation52_spill] sm:$0xff] }
 0x62f   :  { %v14360_v23 = vpop.permute.xlu0 %6060  ;;  %v14362_v61 = vadd.f32 %v5545_v14, %v5293_v15  ;;  %v18128_v51 = vld [vmem:[#allocation120_spill] sm:$0xff]  ;;  %v5521_v16 = vrot.slane %v18129_v60, %v17591_v37  ;;  %v5538_v17 = vmul.f32 %v5489_v2, %v5467_v10  ;;  %v5539_v3 = vmul.f32 %v5493_v36, %v5467_v10  ;;  %18130 = vst [vmem:[#allocation83_spill] sm:$0xff] %v14371_v29  ;;  %v18131_v15 = vld [vmem:[#allocation35_spill] sm:$0xff] }
 0x630   :  { %18125 = vst [vmem:[#allocation132_spill] sm:$0xff] %v14360_v23  ;;  %v5702_v7 = vsel %vm1611_vm12, %v18128_v51, %v18127_v57  ;;  %v5540_v39 = vmul.f32 %v5497_v54, %v5467_v10  ;;  %v5541_v50 = vmul.f32 %v5501_v21, %v5467_v10  ;;  %v5525_v14 = vrot.slane %v18131_v15, %v17591_v37  ;;  %v18132_v57 = vld [vmem:[#allocation115_spill] sm:$0xff]  ;;  %v18137_v23 = vld [vmem:[#allocation206_spill] sm:$0xff] }
 0x631   :  { %v5529_v62 = vrot.slane %v14020_v33, %v17591_v37  ;;  %v5533_v5 = vrot.slane %v14024_v6, %v17591_v37  ;;  %v5469_v2 = vsel %vm1650_vm8, %v5465_v18, %v18132_v57  ;;  %v14384_v36 = vadd.f32 %v5538_v17, %v14206_v4  ;;  %7134 = vrot.lane.b32.xlu1 %v18085_v63, %s8631_s2  ;;  %v18134_v4 = vld [vmem:[#allocation194_spill] sm:$0xff] }
 0x632   :  { %7128 = vrot.lane.b32.xlu0 %v18082_v55, %s8631_s2  ;;  %v14387_v21 = vadd.f32 %v5539_v3, %v14208_v11  ;;  %v14390_v54 = vadd.f32 %v5540_v39, %v14211_v43  ;;  %v14393_v10 = vadd.f32 %v5541_v50, %v14214_v12  ;;  %v5546_v37 = vmul.f32 %v5521_v16, %v5469_v2  ;;  %v18135_v17 = vld [vmem:[#allocation154_spill] sm:$0xff]  ;;  %v18136_v11 = vld [vmem:[#allocation147_spill] sm:$0xff]  ;;  %v18139_v50 = vld [vmem:[#allocation44_spill] sm:$0xff]  ;;  %v14411_v16 = vpop.permute.xlu1 %6374 }
 0x633   :  { %v14397_v51 = vpop.permute.xlu0 %6368  ;;  %v5547_v29 = vmul.f32 %v5525_v14, %v5469_v2  ;;  %v5548_v18 = vmul.f32 %v5529_v62, %v5469_v2  ;;  %v5549_v57 = vmul.f32 %v5533_v5, %v5469_v2  ;;  %v5704_v3 = vsel %vm1611_vm12, %v18135_v17, %v18134_v4  ;;  %v18138_v43 = vld [vmem:[#allocation195_spill] sm:$0xff]  ;;  %18142 = vst [vmem:[#allocation158_spill] sm:$0xff] %v14411_v16  ;;  %v18146_v2 = vld [vmem:[#allocation180_spill] sm:$0xff] }
 0x634   :  { %18133 = vst [vmem:[#allocation142_spill] sm:$0xff] %v14397_v51  ;;  %v5703_v39 = vsel %vm1611_vm12, %v18137_v23, %v18136_v11  ;;  %v5706_v12 = vsel %vm1611_vm12, %v18139_v50, %v18138_v43  ;;  %v5705_v51 = vsel %vm1611_vm12, %v18141_v45, %v18140_v25  ;;  %v14416_v14 = vadd.f32 %v5546_v37, %v14267_v31  ;;  %v18147_v4 = vld [vmem:[#allocation143_spill] sm:$0xff]  ;;  %v18148_v25 = vld [vmem:[#allocation134_spill] sm:$0xff]  ;;  %v18150_v43 = vld [vmem:[#allocation201_spill] sm:$0xff] }
 0x635   :  { %v14419_v62 = vadd.f32 %v5547_v29, %v14269_v56  ;;  %v14422_v23 = vadd.f32 %v5548_v18, %v14272_v20  ;;  %v14425_v5 = vadd.f32 %v5549_v57, %v14275_v8  ;;  %v5708_v45 = vsel %vm1611_vm12, %v18147_v4, %v18146_v2  ;;  %v18149_v17 = vld [vmem:[#allocation135_spill] sm:$0xff]  ;;  %v18152_v29 = vld [vmem:[#allocation141_spill] sm:$0xff]  ;;  %7138 = vrot.lane.b32.xlu1 %v18095_v34, %s8631_s2  ;;  %v18158_v50 = vld [vmem:[#allocation202_spill] sm:$0xff] }
 0x636   :  { %7132 = vrot.lane.b32.xlu0 %v18090_v27, %s8631_s2  ;;  %v5707_v11 = vsel %vm1611_vm12, %v18149_v17, %v18148_v25  ;;  %v5710_v31 = vsel %vm18151_vm9, %v5702_v7, %v18150_v43  ;;  %v5709_v56 = vsel %vm1611_vm12, %v18152_v29, %v13795_v22  ;;  %v18154_v8 = vld [vmem:[#allocation13_spill] sm:$0xff]  ;;  %v18156_v18 = vld [vmem:[#allocation203_spill] sm:$0xff]  ;;  %v5714_v2 = vsel %vm18159_vm4, %v5706_v12, %v18158_v50  ;;  %v18163_v17 = vld [vmem:[#allocation212_spill] sm:$0xff] }
 0x637   :  { %18143 = vst [vmem:[#allocation27_spill] sm:$0xff] %v14419_v62  ;;  %18144 = vst [vmem:[#allocation130_spill] sm:$0xff] %v14422_v23  ;;  %v14440_v20 = vpop.permute.xlu0 %6372  ;;  %v5712_v37 = vsel %vm18155_vm10, %v5704_v3, %v18154_v8  ;;  %v5711_v57 = vsel %vm18157_vm13, %v5703_v39, %v18156_v18  ;;  %v18160_v4 = vld [vmem:[#allocation149_spill] sm:$0xff]  ;;  %v14458_v43 = vsel %vm18164_vm3, %v5707_v11, %v18163_v17  ;;  %v18165_v29 = vld [vmem:[#allocation90_spill] sm:$0xff]  ;;  %v14464_v18 = vpop.permute.xlu1 %6378 }
 0x638   :  { %18145 = vst [vmem:[#allocation95_spill] sm:$0xff] %v14425_v5  ;;  %18153 = vst [vmem:[#allocation38_spill] sm:$0xff] %v14440_v20  ;;  %v14450_v7 = vsel %vm18161_vm6, %v5705_v51, %v18160_v4  ;;  %v18162_v25 = vld [vmem:[#allocation53_spill] sm:$0xff]  ;;  %v5718_v3 = vsel %vm1650_vm8, %v5710_v31, %v18165_v29  ;;  %v18166_v8 = vld [vmem:[#allocation208_spill] sm:$0xff] }
 0x639   :  { %v14454_v22 = vsel %vm17499_vm1, %v5708_v45, %v18162_v25  ;;  %v5737_v39 = vrot.slane %v18105_v42, %v18166_v8  ;;  %18167 = vst [vmem:[#allocation160_spill] sm:$0xff] %v14464_v18  ;;  %v5741_v51 = vrot.slane %v18106_v19, %v18166_v8  ;;  %v18168_v12 = vld [vmem:[#allocation190_spill] sm:$0xff]  ;;  %v18169_v50 = vld [vmem:[#allocation191_spill] sm:$0xff]  ;;  %v18170_v11 = vld [vmem:[#allocation177_spill] sm:$0xff]  ;;  %v5745_v18 = vrot.slane %v18121_v13, %v18166_v8 }
 0x63a   :  { %7136 = vrot.lane.b32.xlu0 %v18110_v41, %s8631_s2  ;;  %v5790_v45 = vmul.f32 %v18168_v12, %v5718_v3  ;;  %v5791_v4 = vmul.f32 %v18169_v50, %v5718_v3  ;;  %vm18171_vm9 = vmmov %vm17499_vm1  ;;  %v18172_v17 = vld [vmem:[#allocation199_spill] sm:$0xff]  ;;  %v5749_v20 = vrot.slane %v18122_v35, %v18166_v8  ;;  %7150 = vrot.lane.b32.xlu1 %v18069_v47, %s8632_s12 }
 0x63b   :  { %v14474_v25 = vsel %vm18171_vm9, %v5709_v56, %v18170_v11  ;;  %v5792_v31 = vmul.f32 %v5737_v39, %v5718_v3  ;;  %v5720_v29 = vsel %vm1650_vm8, %v5712_v37, %v18172_v17  ;;  %v14484_v16 = vpop.permute.xlu0 %6376  ;;  %v5793_v19 = vmul.f32 %v5741_v51, %v5718_v3  ;;  %v14494_v35 = vpop.permute.xlu1 %6390 }
 0x63c   :  { %18173 = vst [vmem:[#allocation166_spill] sm:$0xff] %v14484_v16  ;;  %v5854_v42 = vrot.slane %v5790_v45, 1  ;;  %v5857_v38 = vrot.slane %v5791_v4, 1  ;;  %v5753_v56 = vrot.slane %v18123_v58, %v18166_v8  ;;  %v5757_v37 = vrot.slane %v18124_v40, %v18166_v8  ;;  %18174 = vst [vmem:[#allocation33_spill] sm:$0xff] %v14494_v35  ;;  %v18175_v45 = vld [vmem:[#allocation68_spill] sm:$0xff]  ;;  %v18176_v16 = vld [vmem:[#allocation179_spill] sm:$0xff] }
 0x63d   :  { %v5860_v11 = vrot.slane %v5792_v31, 1  ;;  %v14490_v17 = vmul.f32 %v5745_v18, %v5720_v29  ;;  %v14492_v13 = vmul.f32 %v5749_v20, %v5720_v29  ;;  %v5863_v47 = vrot.slane %v5793_v19, 1 }
 0x63e   :  { %7140 = vrot.lane.b32.xlu0 %v18120_v32, %s8631_s2  ;;  %v14498_v3 = vmul.f32 %v5753_v56, %v5720_v29  ;;  %v5719_v4 = vsel %vm1650_vm8, %v5711_v57, %v18175_v45  ;;  %v5722_v31 = vsel %vm1650_vm8, %v5714_v2, %v18176_v16  ;;  %v14504_v58 = vmul.f32 %v5757_v37, %v5720_v29 }
 0x63f   :  { %v5866_v40 = vrot.slane %v14490_v17, 1  ;;  %v5869_v5 = vrot.slane %v14492_v13, 1  ;;  %v5794_v35 = vmul.f32 %v18168_v12, %v5719_v4  ;;  %7154 = vrot.lane.b32.xlu1 %v18079_v49, %s8632_s12  ;;  %v14511_v19 = vpop.permute.xlu0 %6380  ;;  %v5795_v57 = vmul.f32 %v18169_v50, %v5719_v4  ;;  %v14524_v12 = vpop.permute.xlu1 %6394 }
 0x640   :  { %18177 = vst [vmem:[#allocation36_spill] sm:$0xff] %v14511_v19  ;;  %v5872_v23 = vrot.slane %v14498_v3, 1  ;;  %v5796_v45 = vmul.f32 %v5737_v39, %v5719_v4  ;;  %v5797_v62 = vmul.f32 %v5741_v51, %v5719_v4  ;;  %v5875_v16 = vrot.slane %v14504_v58, 1  ;;  %18178 = vst [vmem:[#allocation91_spill] sm:$0xff] %v14524_v12 }
 0x641   :  { %v5855_v2 = vrot.slane %v5794_v35, 1  ;;  %v14518_v29 = vrot.slane %v18116_v24, %v18166_v8  ;;  %v14522_v13 = vrot.slane %v18117_v48, %v18166_v8  ;;  %v5858_v17 = vrot.slane %v5795_v57, 1 }
 0x642   :  { %7152 = vrot.lane.b32.xlu0 %v18082_v55, %s8632_s12  ;;  %v5861_v50 = vrot.slane %v5796_v45, 1  ;;  %v5864_v39 = vrot.slane %v5797_v62, 1  ;;  %v14530_v58 = vrot.slane %v13863_v52, %v18166_v8  ;;  %v14535_v51 = vrot.slane %v13867_v44, %v18166_v8 }
 0x643   :  { %v5856_v35 = vsel %vm3003_vm0, %v5854_v42, %v5855_v2  ;;  %v14538_v3 = vmul.f32 %v14518_v29, %v5722_v31  ;;  %v14541_v4 = vmul.f32 %v14522_v13, %v5722_v31  ;;  %7158 = vrot.lane.b32.xlu1 %v18085_v63, %s8632_s12  ;;  %v14545_v62 = vpop.permute.xlu0 %6392  ;;  %v5859_v57 = vsel %vm3003_vm0, %v5857_v38, %v5858_v17  ;;  %v14565_v38 = vpop.permute.xlu1 %6398 }
 0x644   :  { %18179 = vst [vmem:[#allocation99_spill] sm:$0xff] %v14545_v62  ;;  %v5862_v45 = vsel %vm3003_vm0, %v5860_v11, %v5861_v50  ;;  %v5865_v42 = vsel %vm3003_vm0, %v5863_v47, %v5864_v39  ;;  %v14551_v2 = vadd.f32 %v5856_v35, %v14327_v1  ;;  %v14554_v55 = vadd.f32 %v5859_v57, %v14330_v26  ;;  %v18185_v26 = vld [vmem:[#allocation71_spill] sm:$0xff] }
 0x645   :  { %v14557_v49 = vadd.f32 %v5862_v45, %v14335_v9  ;;  %v14560_v12 = vadd.f32 %v5865_v42, %v14338_v53  ;;  %v14563_v63 = vmul.f32 %v14530_v58, %v5722_v31  ;;  %18180 = vst [vmem:[#allocation151_spill] sm:$0xff] %v14565_v38  ;;  %v14570_v47 = vmul.f32 %v14535_v51, %v5722_v31  ;;  %v18181_v9 = vld [vmem:[#allocation209_spill] sm:$0xff]  ;;  %v18183_v45 = vld [vmem:[#allocation79_spill] sm:$0xff] }
 0x646   :  { %7156 = vrot.lane.b32.xlu0 %v18090_v27, %s8632_s12  ;;  %v5721_v53 = vsel %vm1650_vm8, %v14450_v7, %v18181_v9  ;;  %v5724_v42 = vsel %vm1650_vm8, %v14454_v22, %v18183_v45  ;;  %v5777_v7 = vrot.slane %v18129_v60, %v18166_v8  ;;  %v5789_v22 = vrot.slane %v14024_v6, %v18166_v8 }
 0x647   :  { %v5802_v17 = vmul.f32 %v5745_v18, %v5721_v53  ;;  %v5803_v50 = vmul.f32 %v5749_v20, %v5721_v53  ;;  %v5804_v39 = vmul.f32 %v5753_v56, %v5721_v53  ;;  %7162 = vrot.lane.b32.xlu1 %v18095_v34, %s8632_s12  ;;  %v14580_v35 = vpop.permute.xlu0 %6396  ;;  %v5887_v31 = vrot.slane %v14570_v47, 1  ;;  %v14590_v56 = vpop.permute.xlu1 %6402 }
 0x648   :  { %18182 = vst [vmem:[#allocation187_spill] sm:$0xff] %v14580_v35  ;;  %v5805_v57 = vmul.f32 %v5757_v37, %v5721_v53  ;;  %v5781_v20 = vrot.slane %v18131_v15, %v18166_v8  ;;  %18184 = vst [vmem:[#allocation65_spill] sm:$0xff] %v14590_v56  ;;  %v5785_v37 = vrot.slane %v14020_v33, %v18166_v8 }
 0x649   :  { %v5867_v9 = vrot.slane %v5802_v17, 1  ;;  %v5870_v11 = vrot.slane %v5803_v50, 1  ;;  %v5873_v18 = vrot.slane %v5804_v39, 1  ;;  %v5814_v53 = vmul.f32 %v5777_v7, %v5724_v42 }
 0x64a   :  { %7160 = vrot.lane.b32.xlu0 %v18110_v41, %s8632_s12  ;;  %v5876_v47 = vrot.slane %v5805_v57, 1  ;;  %v5815_v45 = vmul.f32 %v5781_v20, %v5724_v42 }
 0x64b   :  { %v5868_v17 = vsel %vm3003_vm0, %v5866_v40, %v5867_v9  ;;  %v5871_v50 = vsel %vm3003_vm0, %v5869_v5, %v5870_v11  ;;  %v5874_v39 = vsel %vm3003_vm0, %v5872_v23, %v5873_v18  ;;  %7470 = vrot.lane.b32.xlu1 %v18185_v26, %s8629_s17  ;;  %v14603_v1 = vpop.permute.xlu0 %6400  ;;  %v5816_v23 = vmul.f32 %v5785_v37, %v5724_v42  ;;  %v14618_v18 = vpop.permute.xlu1 %6414 }
 0x64c   :  { %18186 = vst [vmem:[#allocation144_spill] sm:$0xff] %v14603_v1  ;;  %v5877_v57 = vsel %vm3003_vm0, %v5875_v16, %v5876_v47  ;;  %v14607_v41 = vadd.f32 %v5868_v17, %v14384_v36  ;;  %v14610_v8 = vadd.f32 %v5871_v50, %v14387_v21  ;;  %v14613_v40 = vadd.f32 %v5874_v39, %v14390_v54  ;;  %v18188_v36 = vld [vmem:[#allocation43_spill] sm:$0xff] }
 0x64d   :  { %v14616_v5 = vadd.f32 %v5877_v57, %v14393_v10  ;;  %v5817_v11 = vmul.f32 %v5789_v22, %v5724_v42  ;;  %v5890_v9 = vrot.slane %v5814_v53, 1  ;;  %18187 = vst [vmem:[#allocation153_spill] sm:$0xff] %v14618_v18  ;;  %v5893_v16 = vrot.slane %v5815_v45, 1  ;;  %v18189_v47 = vld [vmem:[#allocation207_spill] sm:$0xff]  ;;  %v18249_v18 = vld [vmem:[#allocation181_spill] sm:$0xff] }
 0x64e   :  { %7164 = vrot.lane.b32.xlu0 %v18120_v32, %s8632_s12  ;;  %v5723_v21 = vsel %vm1650_vm8, %v14458_v43, %v18188_v36  ;;  %v6070_v54 = vsel %vm1611_vm12, %v18189_v47, %v13969_v46  ;;  %v5725_v10 = vsel %vm1650_vm8, %v14474_v25, %v13980_v59  ;;  %v5896_v42 = vrot.slane %v5816_v23, 1  ;;  %v18190_v39 = vld [vmem:[#allocation75_spill] sm:$0xff] }
 0x64f   :  { %v5899_v53 = vrot.slane %v5817_v11, 1  ;;  %v5810_v17 = vmul.f32 %v14518_v29, %v5723_v21  ;;  %v5811_v50 = vmul.f32 %v14522_v13, %v5723_v21  ;;  %7474 = vrot.lane.b32.xlu1 %v18190_v39, %s8629_s17  ;;  %v14635_v45 = vpop.permute.xlu0 %6404  ;;  %v5812_v43 = vmul.f32 %v14530_v58, %v5723_v21  ;;  %v14639_v23 = vpop.permute.xlu1 %6418  ;;  %v18193_v29 = vld [vmem:[#allocation82_spill] sm:$0xff] }
 0x650   :  { %18191 = vst [vmem:[#allocation165_spill] sm:$0xff] %v14635_v45  ;;  %v5813_v57 = vmul.f32 %v14535_v51, %v5723_v21  ;;  %v5818_v46 = vmul.f32 %v5777_v7, %v5725_v10  ;;  %v5819_v36 = vmul.f32 %v5781_v20, %v5725_v10  ;;  %v5820_v59 = vmul.f32 %v5785_v37, %v5725_v10 }
 0x651   :  { %v5879_v47 = vrot.slane %v5810_v17, 1  ;;  %v5882_v32 = vrot.slane %v5811_v50, 1  ;;  %v5821_v25 = vmul.f32 %v5789_v22, %v5725_v10  ;;  %18192 = vst [vmem:[#allocation171_spill] sm:$0xff] %v14639_v23  ;;  %v5885_v13 = vrot.slane %v5812_v43, 1  ;;  %v18196_v22 = vld [vmem:[#allocation106_spill] sm:$0xff] }
 0x652   :  { %7472 = vrot.lane.b32.xlu0 %v18193_v29, %s8629_s17  ;;  %v5888_v11 = vrot.slane %v5813_v57, 1  ;;  %v5891_v34 = vrot.slane %v5818_v46, 1  ;;  %v5894_v27 = vrot.slane %v5819_v36, 1  ;;  %v18194_v45 = vrot.slane %v14538_v3, 1 }
 0x653   :  { %v18195_v51 = vrot.slane %v14541_v4, 1  ;;  %v5897_v20 = vrot.slane %v5820_v59, 1  ;;  %v5900_v37 = vrot.slane %v5821_v25, 1  ;;  %7478 = vrot.lane.b32.xlu1 %v18196_v22, %s8629_s17  ;;  %v14651_v21 = vpop.permute.xlu0 %6416  ;;  %v18198_v10 = vrot.slane %v14563_v63, 1  ;;  %v14671_v57 = vpop.permute.xlu1 %6422  ;;  %v18208_v25 = vld [vmem:[#allocation123_spill] sm:$0xff] }
 0x654   :  { %v5880_v58 = vsel %vm3003_vm0, %v18194_v45, %v5879_v47  ;;  %18197 = vst [vmem:[#allocation170_spill] sm:$0xff] %v14651_v21  ;;  %v5889_v50 = vsel %vm3003_vm0, %v5887_v31, %v5888_v11  ;;  %v5892_v43 = vsel %vm3003_vm0, %v5890_v9, %v5891_v34  ;;  %v5895_v63 = vsel %vm3003_vm0, %v5893_v16, %v5894_v27  ;;  %v18200_v31 = vld [vmem:[#allocation84_spill] sm:$0xff]  ;;  %v18204_v34 = vld [vmem:[#allocation95_spill] sm:$0xff]  ;;  %v18207_v16 = vld [vmem:[#allocation70_spill] sm:$0xff] }
 0x655   :  { %v5883_v7 = vsel %vm3003_vm0, %v18195_v51, %v5882_v32  ;;  %v5886_v17 = vsel %vm3003_vm0, %v18198_v10, %v5885_v13  ;;  %v14658_v3 = vadd.f32 %v5880_v58, %v14344_v30  ;;  %v14667_v45 = vadd.f32 %v5889_v50, %v14362_v61  ;;  %18199 = vst [vmem:[#allocation57_spill] sm:$0xff] %v14671_v57  ;;  %v18202_v61 = vld [vmem:[#allocation130_spill] sm:$0xff]  ;;  %v18206_v9 = vld [vmem:[#allocation188_spill] sm:$0xff] }
 0x656   :  { %v14661_v4 = vadd.f32 %v5883_v7, %v14350_v0  ;;  %v14664_v32 = vadd.f32 %v5886_v17, %v14352_v28  ;;  %7476 = vrot.lane.b32.xlu0 %v18200_v31, %s8629_s17  ;;  %v5898_v30 = vsel %vm3003_vm0, %v5896_v42, %v5897_v20  ;;  %v5901_v0 = vsel %vm3003_vm0, %v5899_v53, %v5900_v37  ;;  %v18201_v28 = vld [vmem:[#allocation27_spill] sm:$0xff]  ;;  %v18209_v42 = vld [vmem:[#allocation140_spill] sm:$0xff]  ;;  %v18212_v11 = vld [vmem:[#allocation34_spill] sm:$0xff] }
 0x657   :  { %v14678_v46 = vadd.f32 %v5892_v43, %v14416_v14  ;;  %v14681_v36 = vadd.f32 %v5895_v63, %v18201_v28  ;;  %v14684_v47 = vadd.f32 %v5898_v30, %v18202_v61  ;;  %v14687_v27 = vadd.f32 %v5901_v0, %v18204_v34  ;;  %v18210_v14 = vld [vmem:[#allocation80_spill] sm:$0xff]  ;;  %v14697_v13 = vpop.permute.xlu0 %6420  ;;  %v18213_v58 = vld [vmem:[#allocation46_spill] sm:$0xff]  ;;  %v18215_v20 = vld [vmem:[#allocation59_spill] sm:$0xff] }
 0x658   :  { %v6072_v59 = vsel %vm1611_vm12, %v18207_v16, %v18206_v9  ;;  %v6071_v53 = vsel %vm1611_vm12, %v18209_v42, %v18208_v25  ;;  %7482 = vrot.lane.b32.xlu1 %v18210_v14, %s8629_s17  ;;  %18211 = vst [vmem:[#allocation169_spill] sm:$0xff] %v14697_v13  ;;  %v6074_v51 = vsel %vm1611_vm12, %v18213_v58, %v18212_v11  ;;  %v18214_v7 = vld [vmem:[#allocation16_spill] sm:$0xff]  ;;  %v18216_v10 = vld [vmem:[#allocation18_spill] sm:$0xff]  ;;  %v18219_v63 = vld [vmem:[#allocation63_spill] sm:$0xff]  ;;  %v14720_v58 = vpop.permute.xlu1 %6426 }
 0x659   :  { %18203 = vst [vmem:[#allocation108_spill] sm:$0xff] %v14684_v47  ;;  %18205 = vst [vmem:[#allocation60_spill] sm:$0xff] %v14687_v27  ;;  %v6073_v37 = vsel %vm1611_vm12, %v18215_v20, %v18214_v7  ;;  %v18217_v17 = vld [vmem:[#allocation12_spill] sm:$0xff]  ;;  %v18220_v0 = vld [vmem:[#allocation137_spill] sm:$0xff] }
 0x65a   :  { %v6076_v50 = vsel %vm1611_vm12, %v18217_v17, %v18216_v10  ;;  %v18218_v43 = vld [vmem:[#allocation56_spill] sm:$0xff]  ;;  %vm18221_vm0 = vmmov %vm17499_vm1  ;;  %v18222_v61 = vld [vmem:[#allocation133_spill] sm:$0xff]  ;;  %18228 = vst [vmem:[#allocation145_spill] sm:$0xff] %v14720_v58 }
 0x65b   :  { %v6075_v30 = vsel %vm1611_vm12, %v18219_v63, %v18218_v43  ;;  %v6078_v28 = vsel %vm18221_vm0, %v6070_v54, %v18220_v0  ;;  %v18223_v34 = vld [vmem:[#allocation15_spill] sm:$0xff]  ;;  %v18224_v16 = vld [vmem:[#allocation156_spill] sm:$0xff]  ;;  %vm18225_vm10 = vmmov %vm18221_vm0 }
 0x65c   :  { %v6077_v9 = vsel %vm1611_vm12, %v18223_v34, %v18222_v61  ;;  %v6080_v25 = vsel %vm18225_vm10, %v6072_v59, %v18224_v16  ;;  %v18226_v42 = vld [vmem:[#allocation73_spill] sm:$0xff]  ;;  %vm18227_vm13 = vmmov %vm18221_vm0  ;;  %v18230_v20 = vld [vmem:[#allocation111_spill] sm:$0xff]  ;;  %7494 = vrot.lane.b32.xlu1 %v18185_v26, %s8631_s2 }
 0x65d   :  { %v6079_v11 = vsel %vm18227_vm13, %v6071_v53, %v18226_v42  ;;  %v18229_v7 = vld [vmem:[#allocation157_spill] sm:$0xff]  ;;  %vm18231_vm4 = vmmov %vm18221_vm0  ;;  %v18234_v43 = vld [vmem:[#allocation31_spill] sm:$0xff] }
 0x65e   :  { %7480 = vrot.lane.b32.xlu0 %v18229_v7, %s8629_s17  ;;  %v6082_v10 = vsel %vm18231_vm4, %v6074_v51, %v18230_v20  ;;  %v18232_v17 = vld [vmem:[#allocation113_spill] sm:$0xff]  ;;  %vm18233_vm6 = vmmov %vm18221_vm0  ;;  %v18238_v53 = vld [vmem:[#allocation211_spill] sm:$0xff] }
 0x65f   :  { %v14728_v54 = vsel %vm18233_vm6, %v6073_v37, %v18232_v17  ;;  %vm18235_vm1 = vmmov %vm18221_vm0  ;;  %v18236_v59 = vld [vmem:[#allocation185_spill] sm:$0xff]  ;;  %v18239_v61 = vld [vmem:[#allocation172_spill] sm:$0xff]  ;;  %v14796_v27 = vrot.slane %v18116_v24, %v18238_v53 }
 0x660   :  { %v14732_v63 = vsel %vm18235_vm1, %v6076_v50, %v18234_v43  ;;  %vm18237_vm3 = vmmov %vm18221_vm0  ;;  %v6097_v34 = vrot.slane %v18239_v61, %v18238_v53  ;;  %v18240_v16 = vld [vmem:[#allocation218_spill] sm:$0xff]  ;;  %v18241_v58 = vld [vmem:[#allocation49_spill] sm:$0xff]  ;;  %v14748_v50 = vpop.permute.xlu0 %6424  ;;  %7498 = vrot.lane.b32.xlu1 %v18190_v39, %s8631_s2 }
 0x661   :  { %v14736_v0 = vsel %vm18237_vm3, %v6075_v30, %v18236_v59  ;;  %v6101_v42 = vrot.slane %v18240_v16, %v18238_v53  ;;  %v6086_v51 = vsel %vm1650_vm8, %v6078_v28, %v18241_v58  ;;  %v18242_v37 = vld [vmem:[#allocation192_spill] sm:$0xff]  ;;  %18243 = vst [vmem:[#allocation104_spill] sm:$0xff] %v14748_v50  ;;  %v18244_v30 = vld [vmem:[#allocation155_spill] sm:$0xff]  ;;  %v18245_v43 = vld [vmem:[#allocation66_spill] sm:$0xff]  ;;  %v14764_v50 = vrot.slane %v18249_v18, %v18238_v53  ;;  %v14766_v16 = vpop.permute.xlu1 %6734 }
 0x662   :  { %v6105_v20 = vrot.slane %v18242_v37, %v18238_v53  ;;  %v6109_v17 = vrot.slane %v18244_v30, %v18238_v53  ;;  %vm18246_vm9 = vmmov %vm18221_vm0  ;;  %v18247_v13 = vld [vmem:[#allocation131_spill] sm:$0xff]  ;;  %v18248_v28 = vld [vmem:[#allocation182_spill] sm:$0xff]  ;;  %v6158_v21 = vmul.f32 %v6097_v34, %v6086_v51  ;;  %18250 = vst [vmem:[#allocation118_spill] sm:$0xff] %v14766_v16 }
 0x663   :  { %v14754_v59 = vsel %vm18246_vm9, %v6077_v9, %v18245_v43  ;;  %v6088_v57 = vsel %vm1650_vm8, %v6080_v25, %v18247_v13  ;;  %v14760_v58 = vrot.slane %v18248_v28, %v18238_v53  ;;  %v6159_v23 = vmul.f32 %v6101_v42, %v6086_v51  ;;  %v18251_v30 = vld [vmem:[#allocation72_spill] sm:$0xff]  ;;  %v18252_v43 = vld [vmem:[#allocation114_spill] sm:$0xff]  ;;  %v18253_v25 = vld [vmem:[#allocation55_spill] sm:$0xff] }
 0x664   :  { %v6160_v37 = vmul.f32 %v6105_v20, %v6086_v51  ;;  %7484 = vrot.lane.b32.xlu0 %v18251_v30, %s8629_s17  ;;  %v6161_v9 = vmul.f32 %v6109_v17, %v6086_v51  ;;  %v6121_v13 = vrot.slane %v18252_v43, %v18238_v53  ;;  %v6125_v28 = vrot.slane %v18253_v25, %v18238_v53  ;;  %v14782_v16 = vpop.permute.xlu0 %6428  ;;  %vm18304_vm10 = vmmov %vm18221_vm0 }
 0x665   :  { %v14775_v61 = vmul.f32 %v14760_v58, %v6088_v57  ;;  %v6222_v1 = vrot.slane %v6158_v21, 2  ;;  %v6225_v56 = vrot.slane %v6159_v23, 2  ;;  %v14778_v18 = vmul.f32 %v14764_v50, %v6088_v57  ;;  %18254 = vst [vmem:[#allocation198_spill] sm:$0xff] %v14782_v16  ;;  %v18255_v21 = vld [vmem:[#allocation96_spill] sm:$0xff]  ;;  %v14798_v16 = vpop.permute.xlu1 %6738  ;;  %7502 = vrot.lane.b32.xlu1 %v18196_v22, %s8631_s2  ;;  %vm18308_vm13 = vmmov %vm18221_vm0 }
 0x666   :  { %v6228_v35 = vrot.slane %v6160_v37, 2  ;;  %v6231_v51 = vrot.slane %v6161_v9, 2  ;;  %v14784_v38 = vmul.f32 %v6121_v13, %v6088_v57  ;;  %v14786_v43 = vmul.f32 %v6125_v28, %v6088_v57  ;;  %v18256_v37 = vld [vmem:[#allocation163_spill] sm:$0xff]  ;;  %18257 = vst [vmem:[#allocation51_spill] sm:$0xff] %v14798_v16  ;;  %vm18310_vm4 = vmmov %vm18221_vm0 }
 0x667   :  { %v6087_v23 = vsel %vm1650_vm8, %v6079_v11, %v18255_v21  ;;  %v6090_v19 = vsel %vm1650_vm8, %v6082_v10, %v18256_v37  ;;  %v14806_v10 = vrot.slane %v18117_v48, %v18238_v53  ;;  %v14810_v21 = vrot.slane %v13863_v52, %v18238_v53  ;;  %vm18312_vm6 = vmmov %vm18221_vm0 }
 0x668   :  { %7496 = vrot.lane.b32.xlu0 %v18193_v29, %s8631_s2  ;;  %v6162_v62 = vmul.f32 %v6097_v34, %v6087_v23  ;;  %v6163_v25 = vmul.f32 %v6101_v42, %v6087_v23  ;;  %v6164_v47 = vmul.f32 %v6105_v20, %v6087_v23  ;;  %v6165_v11 = vmul.f32 %v6109_v17, %v6087_v23  ;;  %v14814_v37 = vpop.permute.xlu0 %6736  ;;  %vm18314_vm1 = vmmov %vm18221_vm0 }
 0x669   :  { %18258 = vst [vmem:[#allocation161_spill] sm:$0xff] %v14814_v37  ;;  %v14818_v34 = vrot.slane %v13867_v44, %v18238_v53  ;;  %v14821_v42 = vmul.f32 %v14796_v27, %v6090_v19  ;;  %v14824_v23 = vmul.f32 %v14806_v10, %v6090_v19  ;;  %v14827_v9 = vmul.f32 %v14810_v21, %v6090_v19  ;;  %v14829_v52 = vpop.permute.xlu1 %6742  ;;  %vm18323_vm3 = vmmov %vm18221_vm0 }
 0x66a   :  { %v6223_v57 = vrot.slane %v6162_v62, 2  ;;  %v6226_v16 = vrot.slane %v6163_v25, 2  ;;  %v6229_v20 = vrot.slane %v6164_v47, 2  ;;  %v6232_v17 = vrot.slane %v6165_v11, 2  ;;  %18259 = vst [vmem:[#allocation189_spill] sm:$0xff] %v14829_v52  ;;  %7506 = vrot.lane.b32.xlu1 %v18210_v14, %s8631_s2  ;;  %vm18378_vm9 = vmmov %vm18221_vm0 }
 0x66b   :  { %v14836_v37 = vmul.f32 %v14818_v34, %v6090_v19  ;;  %v18264_v47 = vrot.slane %v14775_v61, 2 }
 0x66c   :  { %7500 = vrot.lane.b32.xlu0 %v18200_v31, %s8631_s2  ;;  %v6224_v62 = vsel %vm3372_vm7, %v6222_v1, %v6223_v57  ;;  %v6227_v25 = vsel %vm3372_vm7, %v6225_v56, %v6226_v16  ;;  %v6230_v11 = vsel %vm3372_vm7, %v6228_v35, %v6229_v20  ;;  %v6233_v44 = vsel %vm3372_vm7, %v6231_v51, %v6232_v17  ;;  %v14849_v1 = vpop.permute.xlu0 %6740  ;;  %v18260_v51 = vld [vmem:[#allocation22_spill] sm:$0xff] }
 0x66d   :  { %v14842_v48 = vadd.f32 %v6224_v62, %v14551_v2  ;;  %v14845_v52 = vadd.f32 %v6227_v25, %v14554_v55  ;;  %v14852_v19 = vadd.f32 %v6230_v11, %v14557_v49  ;;  %v14855_v56 = vadd.f32 %v6233_v44, %v14560_v12  ;;  %v18261_v57 = vld [vmem:[#allocation174_spill] sm:$0xff]  ;;  %v14868_v17 = vpop.permute.xlu1 %6746 }
 0x66e   :  { %v6089_v55 = vsel %vm1650_vm8, %v14728_v54, %v18260_v51  ;;  %v6092_v20 = vsel %vm1650_vm8, %v14732_v63, %v18261_v57  ;;  %v6145_v49 = vrot.slane %v18129_v60, %v18238_v53  ;;  %v6149_v54 = vrot.slane %v18131_v15, %v18238_v53  ;;  %7518 = vrot.lane.b32.xlu1 %v18185_v26, %s8632_s12 }
 0x66f   :  { %v6170_v44 = vmul.f32 %v14760_v58, %v6089_v55  ;;  %v6171_v12 = vmul.f32 %v14764_v50, %v6089_v55  ;;  %v6172_v62 = vmul.f32 %v6121_v13, %v6089_v55  ;;  %v6173_v25 = vmul.f32 %v6125_v28, %v6089_v55 }
 0x670   :  { %7504 = vrot.lane.b32.xlu0 %v18229_v7, %s8631_s2  ;;  %v6153_v63 = vrot.slane %v14020_v33, %v18238_v53  ;;  %v6157_v11 = vrot.slane %v14024_v6, %v18238_v53  ;;  %v14880_v51 = vmul.f32 %v6145_v49, %v6092_v20  ;;  %v14884_v57 = vpop.permute.xlu0 %6744  ;;  %v14886_v55 = vmul.f32 %v6149_v54, %v6092_v20 }
 0x671   :  { %18262 = vst [vmem:[#allocation136_spill] sm:$0xff] %v14884_v57  ;;  %v6235_v58 = vrot.slane %v6170_v44, 2  ;;  %v6238_v50 = vrot.slane %v6171_v12, 2  ;;  %v6241_v13 = vrot.slane %v6172_v62, 2  ;;  %v6244_v28 = vrot.slane %v6173_v25, 2  ;;  %v14893_v53 = vpop.permute.xlu1 %6758 }
 0x672   :  { %v14888_v2 = vmul.f32 %v6153_v63, %v6092_v20  ;;  %v14890_v16 = vmul.f32 %v6157_v11, %v6092_v20  ;;  %v6258_v35 = vrot.slane %v14880_v51, 2  ;;  %18263 = vst [vmem:[#allocation50_spill] sm:$0xff] %v14893_v53  ;;  %v18265_v12 = vrot.slane %v14778_v18, 2  ;;  %7522 = vrot.lane.b32.xlu1 %v18190_v39, %s8632_s12 }
 0x673   :  { %v6236_v44 = vsel %vm3372_vm7, %v18264_v47, %v6235_v58  ;;  %v18266_v25 = vrot.slane %v14784_v38, 2  ;;  %v18267_v26 = vrot.slane %v14786_v43, 2  ;;  %v6261_v43 = vrot.slane %v14886_v55, 2  ;;  %v18269_v47 = vld [vmem:[#allocation176_spill] sm:$0xff] }
 0x674   :  { %7508 = vrot.lane.b32.xlu0 %v18251_v30, %s8631_s2  ;;  %v6239_v62 = vsel %vm3372_vm7, %v18265_v12, %v6238_v50  ;;  %v14910_v53 = vadd.f32 %v6236_v44, %v14607_v41  ;;  %v14923_v38 = vpop.permute.xlu0 %6748  ;;  %v6267_v41 = vrot.slane %v14890_v16, 2  ;;  %v18273_v55 = vld [vmem:[#allocation132_spill] sm:$0xff]  ;;  %v18275_v44 = vld [vmem:[#allocation21_spill] sm:$0xff]  ;;  %v18277_v12 = vld [vmem:[#allocation19_spill] sm:$0xff] }
 0x675   :  { %v6242_v20 = vsel %vm3372_vm7, %v18266_v25, %v6241_v13  ;;  %v6245_v51 = vsel %vm3372_vm7, %v18267_v26, %v6244_v28  ;;  %v14913_v57 = vadd.f32 %v6239_v62, %v14610_v8  ;;  %18268 = vst [vmem:[#allocation162_spill] sm:$0xff] %v14923_v38  ;;  %v6264_v26 = vrot.slane %v14888_v2, 2  ;;  %v14935_v13 = vpop.permute.xlu1 %6762  ;;  %v18271_v2 = vld [vmem:[#allocation175_spill] sm:$0xff]  ;;  %v18272_v28 = vld [vmem:[#allocation17_spill] sm:$0xff] }
 0x676   :  { %v14916_v61 = vadd.f32 %v6242_v20, %v14613_v40  ;;  %v14919_v18 = vadd.f32 %v6245_v51, %v14616_v5  ;;  %v6091_v8 = vsel %vm1650_vm8, %v14736_v0, %v18269_v47  ;;  %18270 = vst [vmem:[#allocation167_spill] sm:$0xff] %v14935_v13  ;;  %v6438_v16 = vsel %vm1611_vm12, %v18272_v28, %v18271_v2 }
 0x677   :  { %v6178_v40 = vmul.f32 %v14796_v27, %v6091_v8  ;;  %v6179_v5 = vmul.f32 %v14806_v10, %v6091_v8  ;;  %v6180_v58 = vmul.f32 %v14810_v21, %v6091_v8  ;;  %v6181_v50 = vmul.f32 %v14818_v34, %v6091_v8  ;;  %v18274_v27 = vld [vmem:[#allocation83_spill] sm:$0xff]  ;;  %v18276_v21 = vld [vmem:[#allocation142_spill] sm:$0xff]  ;;  %7526 = vrot.lane.b32.xlu1 %v18196_v22, %s8632_s12 }
 0x678   :  { %7520 = vrot.lane.b32.xlu0 %v18193_v29, %s8632_s12  ;;  %v6093_v0 = vsel %vm1650_vm8, %v14754_v59, %v18273_v55  ;;  %v6440_v10 = vsel %vm1611_vm12, %v18275_v44, %v18274_v27  ;;  %v6439_v34 = vsel %vm1611_vm12, %v18277_v12, %v18276_v21  ;;  %v14953_v47 = vpop.permute.xlu0 %6760  ;;  %v18279_v55 = vrot.slane %v14821_v42, 2 }
 0x679   :  { %v6247_v62 = vrot.slane %v6178_v40, 2  ;;  %v6250_v25 = vrot.slane %v6179_v5, 2  ;;  %v6253_v20 = vrot.slane %v6180_v58, 2  ;;  %v6256_v51 = vrot.slane %v6181_v50, 2  ;;  %18278 = vst [vmem:[#allocation87_spill] sm:$0xff] %v14953_v47 }
 0x67a   :  { %v6186_v8 = vmul.f32 %v6145_v49, %v6093_v0  ;;  %v6187_v2 = vmul.f32 %v6149_v54, %v6093_v0  ;;  %v6188_v59 = vmul.f32 %v6153_v63, %v6093_v0  ;;  %v6189_v28 = vmul.f32 %v6157_v11, %v6093_v0  ;;  %v14967_v49 = vpop.permute.xlu1 %6766 }
 0x67b   :  { %v6248_v27 = vsel %vm3372_vm7, %v18279_v55, %v6247_v62  ;;  %v18280_v44 = vrot.slane %v14824_v23, 2  ;;  %v18281_v5 = vrot.slane %v14827_v9, 2  ;;  %v18282_v50 = vrot.slane %v14836_v37, 2  ;;  %18283 = vst [vmem:[#allocation220_spill] sm:$0xff] %v14967_v49  ;;  %7530 = vrot.lane.b32.xlu1 %v18210_v14, %s8632_s12  ;;  %v18286_v62 = vld [vmem:[#allocation77_spill] sm:$0xff] }
 0x67c   :  { %7524 = vrot.lane.b32.xlu0 %v18200_v31, %s8632_s12  ;;  %v14972_v42 = vadd.f32 %v6248_v27, %v14658_v3  ;;  %v6259_v37 = vrot.slane %v6186_v8, 2  ;;  %v6262_v63 = vrot.slane %v6187_v2, 2  ;;  %v6265_v11 = vrot.slane %v6188_v59, 2  ;;  %v14985_v12 = vpop.permute.xlu0 %6764  ;;  %v18285_v3 = vld [vmem:[#allocation158_spill] sm:$0xff]  ;;  %v18292_v59 = vld [vmem:[#allocation24_spill] sm:$0xff]  ;;  %v18326_v14 = vld [vmem:[#allocation181_spill] sm:$0xff] }
 0x67d   :  { %v6251_v40 = vsel %vm3372_vm7, %v18280_v44, %v6250_v25  ;;  %v6254_v58 = vsel %vm3372_vm7, %v18281_v5, %v6253_v20  ;;  %v6257_v21 = vsel %vm3372_vm7, %v18282_v50, %v6256_v51  ;;  %v6268_v0 = vrot.slane %v6189_v28, 2  ;;  %18284 = vst [vmem:[#allocation121_spill] sm:$0xff] %v14985_v12  ;;  %v18287_v25 = vld [vmem:[#allocation38_spill] sm:$0xff]  ;;  %v18288_v20 = vld [vmem:[#allocation28_spill] sm:$0xff] }
 0x67e   :  { %v14975_v23 = vadd.f32 %v6251_v40, %v14661_v4  ;;  %v14978_v54 = vadd.f32 %v6254_v58, %v14664_v32  ;;  %v14981_v9 = vadd.f32 %v6257_v21, %v14667_v45  ;;  %v6442_v4 = vsel %vm1611_vm12, %v18286_v62, %v18285_v3  ;;  %v18289_v51 = vld [vmem:[#allocation160_spill] sm:$0xff]  ;;  %v18290_v45 = vld [vmem:[#allocation23_spill] sm:$0xff]  ;;  %v18291_v2 = vld [vmem:[#allocation166_spill] sm:$0xff]  ;;  %v15003_v5 = vpop.permute.xlu1 %6770 }
 0x67f   :  { %v6441_v32 = vsel %vm1611_vm12, %v18288_v20, %v18287_v25  ;;  %v6444_v8 = vsel %vm1611_vm12, %v18290_v45, %v18289_v51  ;;  %v6443_v28 = vsel %vm1611_vm12, %v18292_v59, %v18291_v2  ;;  %v6260_v55 = vsel %vm3372_vm7, %v6258_v35, %v6259_v37  ;;  %18293 = vst [vmem:[#allocation200_spill] sm:$0xff] %v15003_v5  ;;  %v18294_v21 = vld [vmem:[#allocation108_spill] sm:$0xff]  ;;  %v18303_v62 = vld [vmem:[#allocation99_spill] sm:$0xff]  ;;  %v18311_v59 = vld [vmem:[#allocation65_spill] sm:$0xff] }
 0x680   :  { %v6263_v27 = vsel %vm3372_vm7, %v6261_v43, %v6262_v63  ;;  %v6266_v44 = vsel %vm3372_vm7, %v6264_v26, %v6265_v11  ;;  %v6269_v40 = vsel %vm3372_vm7, %v6267_v41, %v6268_v0  ;;  %7528 = vrot.lane.b32.xlu0 %v18229_v7, %s8632_s12  ;;  %v15008_v58 = vadd.f32 %v6260_v55, %v14678_v46  ;;  %v18296_v35 = vld [vmem:[#allocation60_spill] sm:$0xff]  ;;  %v18298_v26 = vld [vmem:[#allocation33_spill] sm:$0xff]  ;;  %v18301_v0 = vld [vmem:[#allocation91_spill] sm:$0xff]  ;;  %v15030_v20 = vpop.permute.xlu0 %6768 }
 0x681   :  { %v15011_v50 = vadd.f32 %v6263_v27, %v14681_v36  ;;  %v15014_v3 = vadd.f32 %v6266_v44, %v18294_v21  ;;  %v15017_v43 = vadd.f32 %v6269_v40, %v18296_v35  ;;  %v6446_v41 = vsel %vm18221_vm0, %v6438_v16, %v18298_v26  ;;  %v18299_v37 = vld [vmem:[#allocation36_spill] sm:$0xff]  ;;  %v18300_v63 = vld [vmem:[#allocation45_spill] sm:$0xff]  ;;  %vm18302_vm7 = vmmov %vm18221_vm0  ;;  %18306 = vst [vmem:[#allocation204_spill] sm:$0xff] %v15030_v20 }
 0x682   :  { %v6445_v11 = vsel %vm1611_vm12, %v18300_v63, %v18299_v37  ;;  %v6448_v46 = vsel %vm18302_vm7, %v6440_v10, %v18301_v0  ;;  %v6447_v36 = vsel %vm18304_vm10, %v6439_v34, %v18303_v62  ;;  %v18305_v25 = vld [vmem:[#allocation11_spill] sm:$0xff]  ;;  %v15040_v55 = vsel %vm18312_vm6, %v6444_v8, %v18311_v59  ;;  %v18313_v10 = vld [vmem:[#allocation144_spill] sm:$0xff]  ;;  %v18315_v34 = vld [vmem:[#allocation210_spill] sm:$0xff]  ;;  %v15054_v63 = vpop.permute.xlu1 %6782 }
 0x683   :  { %18295 = vst [vmem:[#allocation85_spill] sm:$0xff] %v15014_v3  ;;  %18297 = vst [vmem:[#allocation205_spill] sm:$0xff] %v15017_v43  ;;  %7838 = vrot.lane.b32.xlu1 %v18305_v25, %s8629_s17  ;;  %v18307_v51 = vld [vmem:[#allocation151_spill] sm:$0xff]  ;;  %v15044_v27 = vsel %vm18314_vm1, %v6443_v28, %v18313_v10  ;;  %v18316_v44 = vld [vmem:[#allocation172_spill] sm:$0xff] }
 0x684   :  { %v6450_v45 = vsel %vm18308_vm13, %v6442_v4, %v18307_v51  ;;  %v18309_v2 = vld [vmem:[#allocation187_spill] sm:$0xff]  ;;  %v6465_v40 = vrot.slane %v18316_v44, %v18315_v34  ;;  %v18317_v21 = vld [vmem:[#allocation218_spill] sm:$0xff]  ;;  %v18318_v26 = vld [vmem:[#allocation153_spill] sm:$0xff]  ;;  %18320 = vst [vmem:[#allocation122_spill] sm:$0xff] %v15054_v63  ;;  %7532 = vrot.lane.b32.xlu0 %v18251_v30, %s8632_s12  ;;  %v15072_v30 = vrot.slane %v18326_v14, %v18315_v34  ;;  %v15076_v22 = vpop.permute.xlu0 %6772 }
 0x685   :  { %v15036_v16 = vsel %vm18310_vm4, %v6441_v32, %v18309_v2  ;;  %v6469_v35 = vrot.slane %v18317_v21, %v18315_v34  ;;  %v6454_v4 = vsel %vm1650_vm8, %v6446_v41, %v18318_v26  ;;  %v18319_v32 = vld [vmem:[#allocation192_spill] sm:$0xff]  ;;  %v18321_v8 = vld [vmem:[#allocation155_spill] sm:$0xff]  ;;  %v18322_v0 = vld [vmem:[#allocation165_spill] sm:$0xff]  ;;  %18328 = vst [vmem:[#allocation214_spill] sm:$0xff] %v15076_v22 }
 0x686   :  { %v6473_v37 = vrot.slane %v18319_v32, %v18315_v34  ;;  %v6477_v28 = vrot.slane %v18321_v8, %v18315_v34  ;;  %v15062_v62 = vsel %vm18323_vm3, %v6445_v11, %v18322_v0  ;;  %v18324_v51 = vld [vmem:[#allocation171_spill] sm:$0xff]  ;;  %v18325_v41 = vld [vmem:[#allocation182_spill] sm:$0xff]  ;;  %v6526_v10 = vmul.f32 %v6465_v40, %v6454_v4  ;;  %v18327_v31 = vld [vmem:[#allocation32_spill] sm:$0xff]  ;;  %v15088_v63 = vpop.permute.xlu1 %6786 }
 0x687   :  { %v6456_v2 = vsel %vm1650_vm8, %v6448_v46, %v18324_v51  ;;  %v15068_v59 = vrot.slane %v18325_v41, %v18315_v34  ;;  %v6527_v26 = vmul.f32 %v6469_v35, %v6454_v4  ;;  %7842 = vrot.lane.b32.xlu1 %v18327_v31, %s8629_s17  ;;  %v18329_v0 = vld [vmem:[#allocation114_spill] sm:$0xff]  ;;  %v18330_v51 = vld [vmem:[#allocation55_spill] sm:$0xff]  ;;  %18331 = vst [vmem:[#allocation173_spill] sm:$0xff] %v15088_v63  ;;  %vm18386_vm7 = vmmov %vm18221_vm0 }
 0x688   :  { %v6528_v7 = vmul.f32 %v6473_v37, %v6454_v4  ;;  %v6529_v11 = vmul.f32 %v6477_v28, %v6454_v4  ;;  %v6489_v46 = vrot.slane %v18329_v0, %v18315_v34  ;;  %v6493_v29 = vrot.slane %v18330_v51, %v18315_v34  ;;  %v18332_v22 = vld [vmem:[#allocation86_spill] sm:$0xff]  ;;  %v15108_v5 = vpop.permute.xlu0 %6784  ;;  %vm18388_vm10 = vmmov %vm18221_vm0 }
 0x689   :  { %v15083_v39 = vmul.f32 %v15068_v59, %v6456_v2  ;;  %v6590_v41 = vrot.slane %v6526_v10, 3  ;;  %v6593_v8 = vrot.slane %v6527_v26, 3  ;;  %v15086_v14 = vmul.f32 %v15072_v30, %v6456_v2  ;;  %7840 = vrot.lane.b32.xlu0 %v18332_v22, %s8629_s17  ;;  %v18333_v10 = vld [vmem:[#allocation170_spill] sm:$0xff]  ;;  %v18334_v26 = vld [vmem:[#allocation57_spill] sm:$0xff]  ;;  %18336 = vst [vmem:[#allocation89_spill] sm:$0xff] %v15108_v5  ;;  %vm18390_vm13 = vmmov %vm18221_vm0 }
 0x68a   :  { %v6596_v32 = vrot.slane %v6528_v7, 3  ;;  %v6599_v4 = vrot.slane %v6529_v11, 3  ;;  %v15092_v21 = vmul.f32 %v6489_v46, %v6456_v2  ;;  %v15094_v0 = vmul.f32 %v6493_v29, %v6456_v2  ;;  %v18335_v11 = vld [vmem:[#allocation69_spill] sm:$0xff]  ;;  %v15120_v47 = vpop.permute.xlu1 %6790  ;;  %vm18392_vm4 = vmmov %vm18221_vm0 }
 0x68b   :  { %v6455_v7 = vsel %vm1650_vm8, %v6447_v36, %v18333_v10  ;;  %v6458_v20 = vsel %vm1650_vm8, %v6450_v45, %v18334_v26  ;;  %v15104_v63 = vrot.slane %v18116_v24, %v18315_v34  ;;  %7846 = vrot.lane.b32.xlu1 %v18335_v11, %s8629_s17  ;;  %v18337_v10 = vld [vmem:[#allocation25_spill] sm:$0xff]  ;;  %v18338_v26 = vld [vmem:[#allocation119_spill] sm:$0xff]  ;;  %18339 = vst [vmem:[#allocation107_spill] sm:$0xff] %v15120_v47  ;;  %vm18401_vm6 = vmmov %vm18221_vm0 }
 0x68c   :  { %v6530_v44 = vmul.f32 %v6465_v40, %v6455_v7  ;;  %v6531_v12 = vmul.f32 %v6469_v35, %v6455_v7  ;;  %v6532_v49 = vmul.f32 %v6473_v37, %v6455_v7  ;;  %v6533_v36 = vmul.f32 %v6477_v28, %v6455_v7  ;;  %v18340_v5 = vld [vmem:[#allocation97_spill] sm:$0xff]  ;;  %v18341_v40 = vld [vmem:[#allocation146_spill] sm:$0xff]  ;;  %vm18440_vm1 = vmmov %vm18221_vm0 }
 0x68d   :  { %v15114_v45 = vrot.slane %v18337_v10, %v18315_v34  ;;  %v15118_v24 = vrot.slane %v18338_v26, %v18315_v34  ;;  %7844 = vrot.lane.b32.xlu0 %v18340_v5, %s8629_s17  ;;  %v15126_v35 = vrot.slane %v18341_v40, %v18315_v34  ;;  %v15129_v37 = vmul.f32 %v15104_v63, %v6458_v20  ;;  %v18342_v10 = vld [vmem:[#allocation37_spill] sm:$0xff]  ;;  %vm18446_vm3 = vmmov %vm18221_vm0 }
 0x68e   :  { %v6591_v2 = vrot.slane %v6530_v44, 3  ;;  %v6594_v13 = vrot.slane %v6531_v12, 3  ;;  %v6597_v28 = vrot.slane %v6532_v49, 3  ;;  %v6600_v7 = vrot.slane %v6533_v36, 3  ;;  %v15139_v44 = vpop.permute.xlu0 %6788 }
 0x68f   :  { %v15132_v51 = vmul.f32 %v15114_v45, %v6458_v20  ;;  %v15135_v26 = vmul.f32 %v15118_v24, %v6458_v20  ;;  %7850 = vrot.lane.b32.xlu1 %v18342_v10, %s8629_s17  ;;  %18343 = vst [vmem:[#allocation78_spill] sm:$0xff] %v15139_v44  ;;  %v15144_v47 = vmul.f32 %v15126_v35, %v6458_v20  ;;  %v15155_v44 = vpop.permute.xlu1 %6794 }
 0x690   :  { %v6592_v12 = vsel %vm3741_vm2, %v6590_v41, %v6591_v2  ;;  %v6595_v40 = vsel %vm3741_vm2, %v6593_v8, %v6594_v13  ;;  %v6598_v36 = vsel %vm3741_vm2, %v6596_v32, %v6597_v28  ;;  %v6601_v38 = vsel %vm3741_vm2, %v6599_v4, %v6600_v7  ;;  %v18344_v41 = vld [vmem:[#allocation110_spill] sm:$0xff]  ;;  %v18345_v4 = vld [vmem:[#allocation169_spill] sm:$0xff] }
 0x691   :  { %v15150_v43 = vadd.f32 %v6592_v12, %v14842_v48  ;;  %v15153_v3 = vadd.f32 %v6595_v40, %v14845_v52  ;;  %7848 = vrot.lane.b32.xlu0 %v18344_v41, %s8629_s17  ;;  %v15160_v13 = vadd.f32 %v6598_v36, %v14852_v19  ;;  %v15163_v20 = vadd.f32 %v6601_v38, %v14855_v56  ;;  %v18346_v2 = vld [vmem:[#allocation145_spill] sm:$0xff] }
 0x692   :  { %v6457_v52 = vsel %vm1650_vm8, %v15036_v16, %v18345_v4  ;;  %v6460_v40 = vsel %vm1650_vm8, %v15040_v55, %v18346_v2  ;;  %v6513_v19 = vrot.slane %v18129_v60, %v18315_v34  ;;  %v15178_v56 = vpop.permute.xlu0 %6792  ;;  %v6517_v16 = vrot.slane %v18131_v15, %v18315_v34  ;;  %v18349_v48 = vld [vmem:[#allocation101_spill] sm:$0xff] }
 0x693   :  { %7862 = vrot.lane.b32.xlu1 %v18305_v25, %s8631_s2  ;;  %18347 = vst [vmem:[#allocation222_spill] sm:$0xff] %v15178_v56  ;;  %v6538_v38 = vmul.f32 %v15068_v59, %v6457_v52  ;;  %v6539_v28 = vmul.f32 %v15072_v30, %v6457_v52  ;;  %v6540_v7 = vmul.f32 %v6489_v46, %v6457_v52  ;;  %v15190_v2 = vpop.permute.xlu1 %7102  ;;  %v18354_v56 = vrot.slane %v15094_v0, 3 }
 0x694   :  { %v6541_v12 = vmul.f32 %v6493_v29, %v6457_v52  ;;  %v6521_v55 = vrot.slane %v14020_v33, %v18315_v34  ;;  %v6525_v36 = vrot.slane %v14024_v6, %v18315_v34  ;;  %v15188_v4 = vmul.f32 %v6513_v19, %v6460_v40  ;;  %18348 = vst [vmem:[#allocation88_spill] sm:$0xff] %v15190_v2 }
 0x695   :  { %7852 = vrot.lane.b32.xlu0 %v18349_v48, %s8629_s17  ;;  %v6603_v59 = vrot.slane %v6538_v38, 3  ;;  %v6606_v30 = vrot.slane %v6539_v28, 3  ;;  %v6609_v46 = vrot.slane %v6540_v7, 3  ;;  %v15194_v52 = vmul.f32 %v6517_v16, %v6460_v40 }
 0x696   :  { %v6612_v29 = vrot.slane %v6541_v12, 3  ;;  %v15196_v8 = vmul.f32 %v6521_v55, %v6460_v40  ;;  %v15198_v32 = vmul.f32 %v6525_v36, %v6460_v40  ;;  %v6626_v49 = vrot.slane %v15188_v4, 3  ;;  %v15203_v34 = vpop.permute.xlu0 %6796 }
 0x697   :  { %7866 = vrot.lane.b32.xlu1 %v18327_v31, %s8631_s2  ;;  %18350 = vst [vmem:[#allocation62_spill] sm:$0xff] %v15203_v34  ;;  %v18351_v2 = vrot.slane %v15083_v39, 3  ;;  %v18352_v28 = vrot.slane %v15086_v14, 3  ;;  %v18353_v12 = vrot.slane %v15092_v21, 3  ;;  %v6629_v21 = vrot.slane %v15194_v52, 3  ;;  %v18358_v52 = vld [vmem:[#allocation198_spill] sm:$0xff] }
 0x698   :  { %v6613_v4 = vsel %vm3741_vm2, %v18354_v56, %v6612_v29  ;;  %v6632_v0 = vrot.slane %v15196_v8, 3  ;;  %v18355_v56 = vld [vmem:[#allocation104_spill] sm:$0xff]  ;;  %v18356_v8 = vld [vmem:[#allocation118_spill] sm:$0xff]  ;;  %v18357_v29 = vld [vmem:[#allocation61_spill] sm:$0xff] }
 0x699   :  { %v6604_v38 = vsel %vm3741_vm2, %v18351_v2, %v6603_v59  ;;  %v6607_v7 = vsel %vm3741_vm2, %v18352_v28, %v6606_v30  ;;  %v6610_v40 = vsel %vm3741_vm2, %v18353_v12, %v6609_v46  ;;  %v15227_v14 = vadd.f32 %v6613_v4, %v14919_v18  ;;  %v15229_v2 = vpop.permute.xlu1 %7106  ;;  %7864 = vrot.lane.b32.xlu0 %v18332_v22, %s8631_s2  ;;  %v18362_v28 = vld [vmem:[#allocation41_spill] sm:$0xff] }
 0x69a   :  { %v15218_v6 = vadd.f32 %v6604_v38, %v14910_v53  ;;  %v15221_v34 = vadd.f32 %v6607_v7, %v14913_v57  ;;  %v15224_v39 = vadd.f32 %v6610_v40, %v14916_v61  ;;  %v6635_v53 = vrot.slane %v15198_v32, 3  ;;  %v15245_v46 = vpop.permute.xlu0 %7104  ;;  %v18360_v38 = vld [vmem:[#allocation30_spill] sm:$0xff] }
 0x69b   :  { %v6459_v57 = vsel %vm1650_vm8, %v15044_v27, %v18355_v56  ;;  %7870 = vrot.lane.b32.xlu1 %v18335_v11, %s8631_s2  ;;  %v6806_v32 = vsel %vm1611_vm12, %v18357_v29, %v18356_v8  ;;  %v6461_v27 = vsel %vm1650_vm8, %v15062_v62, %v18358_v52  ;;  %v18363_v52 = vrot.slane %v15129_v37, 3 }
 0x69c   :  { %v6546_v61 = vmul.f32 %v15104_v63, %v6459_v57  ;;  %v6547_v18 = vmul.f32 %v15114_v45, %v6459_v57  ;;  %v6548_v59 = vmul.f32 %v15118_v24, %v6459_v57  ;;  %v6549_v30 = vmul.f32 %v15126_v35, %v6459_v57  ;;  %v18359_v63 = vld [vmem:[#allocation51_spill] sm:$0xff]  ;;  %v18361_v24 = vld [vmem:[#allocation161_spill] sm:$0xff] }
 0x69d   :  { %v6808_v45 = vsel %vm1611_vm12, %v18360_v38, %v18359_v63  ;;  %v6807_v35 = vsel %vm1611_vm12, %v18362_v28, %v18361_v24  ;;  %v15259_v56 = vpop.permute.xlu1 %7110  ;;  %7868 = vrot.lane.b32.xlu0 %v18340_v5, %s8631_s2  ;;  %v6554_v57 = vmul.f32 %v6513_v19, %v6461_v27  ;;  %v6555_v8 = vmul.f32 %v6517_v16, %v6461_v27 }
 0x69e   :  { %v6615_v7 = vrot.slane %v6546_v61, 3  ;;  %v6618_v12 = vrot.slane %v6547_v18, 3  ;;  %v6621_v40 = vrot.slane %v6548_v59, 3  ;;  %v6624_v4 = vrot.slane %v6549_v30, 3  ;;  %v15277_v19 = vpop.permute.xlu0 %7108 }
 0x69f   :  { %v6556_v62 = vmul.f32 %v6521_v55, %v6461_v27  ;;  %v6557_v29 = vmul.f32 %v6525_v36, %v6461_v27  ;;  %v18364_v38 = vrot.slane %v15132_v51, 3  ;;  %v18365_v18 = vrot.slane %v15135_v26, 3  ;;  %7874 = vrot.lane.b32.xlu1 %v18342_v10, %s8631_s2 }
 0x6a0   :  { %v6616_v63 = vsel %vm3741_vm2, %v18363_v52, %v6615_v7  ;;  %v18366_v30 = vrot.slane %v15144_v47, 3  ;;  %v6627_v47 = vrot.slane %v6554_v57, 3  ;;  %v6630_v55 = vrot.slane %v6555_v8, 3  ;;  %v18368_v7 = vld [vmem:[#allocation98_spill] sm:$0xff]  ;;  %v18372_v57 = vld [vmem:[#allocation92_spill] sm:$0xff] }
 0x6a1   :  { %v6619_v61 = vsel %vm3741_vm2, %v18364_v38, %v6618_v12  ;;  %v6622_v59 = vsel %vm3741_vm2, %v18365_v18, %v6621_v40  ;;  %v15280_v37 = vadd.f32 %v6616_v63, %v14972_v42  ;;  %v6633_v36 = vrot.slane %v6556_v62, 3  ;;  %v15291_v28 = vpop.permute.xlu1 %7114  ;;  %7872 = vrot.lane.b32.xlu0 %v18344_v41, %s8631_s2  ;;  %v18367_v42 = vld [vmem:[#allocation189_spill] sm:$0xff]  ;;  %v18369_v12 = vld [vmem:[#allocation39_spill] sm:$0xff] }
 0x6a2   :  { %v6625_v24 = vsel %vm3741_vm2, %v18366_v30, %v6624_v4  ;;  %v15283_v51 = vadd.f32 %v6619_v61, %v14975_v23  ;;  %v15286_v16 = vadd.f32 %v6622_v59, %v14978_v54  ;;  %v6636_v27 = vrot.slane %v6557_v29, 3  ;;  %v18371_v4 = vld [vmem:[#allocation136_spill] sm:$0xff]  ;;  %v18373_v61 = vld [vmem:[#allocation85_spill] sm:$0xff]  ;;  %v18379_v59 = vld [vmem:[#allocation162_spill] sm:$0xff] }
 0x6a3   :  { %v15289_v26 = vadd.f32 %v6625_v24, %v14981_v9  ;;  %v6810_v23 = vsel %vm1611_vm12, %v18368_v7, %v18367_v42  ;;  %v6809_v54 = vsel %vm1611_vm12, %v18369_v12, %v14849_v1  ;;  %v18370_v9 = vld [vmem:[#allocation40_spill] sm:$0xff]  ;;  %v6811_v8 = vsel %vm1611_vm12, %v18372_v57, %v18371_v4  ;;  %7886 = vrot.lane.b32.xlu1 %v18305_v25, %s8632_s12  ;;  %v15313_v1 = vpop.permute.xlu0 %7112  ;;  %v18380_v30 = vld [vmem:[#allocation47_spill] sm:$0xff]  ;;  %v18387_v7 = vld [vmem:[#allocation121_spill] sm:$0xff] }
 0x6a4   :  { %v6812_v40 = vsel %vm1611_vm12, %v18370_v9, %v14868_v17  ;;  %v6628_v62 = vsel %vm3741_vm2, %v6626_v49, %v6627_v47  ;;  %v6631_v29 = vsel %vm3741_vm2, %v6629_v21, %v6630_v55  ;;  %v6634_v52 = vsel %vm3741_vm2, %v6632_v0, %v6633_v36  ;;  %v18375_v49 = vld [vmem:[#allocation205_spill] sm:$0xff]  ;;  %v18377_v0 = vld [vmem:[#allocation50_spill] sm:$0xff]  ;;  %v18381_v47 = vld [vmem:[#allocation167_spill] sm:$0xff] }
 0x6a5   :  { %v6637_v63 = vsel %vm3741_vm2, %v6635_v53, %v6636_v27  ;;  %v15316_v38 = vadd.f32 %v6628_v62, %v15008_v58  ;;  %v15319_v17 = vadd.f32 %v6631_v29, %v15011_v50  ;;  %v15322_v18 = vadd.f32 %v6634_v52, %v18373_v61  ;;  %vm18382_vm2 = vmmov %vm18221_vm0  ;;  %v18383_v55 = vld [vmem:[#allocation87_spill] sm:$0xff]  ;;  %v15336_v36 = vpop.permute.xlu1 %7126  ;;  %7876 = vrot.lane.b32.xlu0 %v18349_v48, %s8631_s2  ;;  %v18385_v27 = vld [vmem:[#allocation220_spill] sm:$0xff]  ;;  %s8163_s2 = sshll.u32 %s8646_s4, 4  ;;  %s8164_s2 = int_to_ptr.vmem [resolvable:$true] %s8163_s2 }
 0x6a6   :  { %v15325_v21 = vadd.f32 %v6637_v63, %v18375_v49  ;;  %v6814_v53 = vsel %vm18378_vm9, %v6806_v32, %v18377_v0  ;;  %v6813_v24 = vsel %vm1611_vm12, %v18380_v30, %v18379_v59  ;;  %v6816_v58 = vsel %vm18382_vm2, %v6808_v45, %v18381_v47  ;;  %18384 = vst [vmem:[#allocation67_spill] sm:$0xff] %v15336_v36  ;;  %v18389_v12 = vld [vmem:[#allocation200_spill] sm:$0xff]  ;;  %v18395_v29 = vld [vmem:[#allocation218_spill] sm:$0xff]  ;;  %v18402_v30 = vld [vmem:[#allocation173_spill] sm:$0xff]  ;;  %p8601_p3 = scmp.lt.s32.totalorder %s8164_s2, %s8164_s2 }
 0x6a7   :  { %18374 = vst [vmem:[#allocation186_spill] sm:$0xff] %v15322_v18  ;;  %v6815_v50 = vsel %vm18221_vm0, %v6807_v35, %v18383_v55  ;;  %v6818_v42 = vsel %vm18386_vm7, %v6810_v23, %v18385_v27  ;;  %v15344_v32 = vsel %vm18388_vm10, %v6809_v54, %v18387_v7  ;;  %v15348_v9 = vsel %vm18390_vm13, %v6812_v40, %v18389_v12  ;;  %v18391_v45 = vld [vmem:[#allocation204_spill] sm:$0xff]  ;;  %v18393_v35 = vld [vmem:[#allocation213_spill] sm:$0xff]  ;;  %v18396_v63 = vld [vmem:[#allocation122_spill] sm:$0xff]  ;;  %v15364_v40 = vpop.permute.xlu0 %7116 }
 0x6a8   :  { %18376 = vst [vmem:[#allocation76_spill] sm:$0xff] %v15325_v21  ;;  %v15352_v4 = vsel %vm18392_vm4, %v6811_v8, %v18391_v45  ;;  %v18394_v57 = vld [vmem:[#allocation172_spill] sm:$0xff]  ;;  %v6837_v52 = vrot.slane %v18395_v29, %v18393_v35  ;;  %v6822_v23 = vsel %vm1650_vm8, %v6814_v53, %v18396_v63  ;;  %7890 = vrot.lane.b32.xlu1 %v18327_v31, %s8632_s12  ;;  %18398 = vst [vmem:[#allocation184_spill] sm:$0xff] %v15364_v40  ;;  %v18399_v8 = vld [vmem:[#allocation155_spill] sm:$0xff] }
 0x6a9   :  { %v6833_v62 = vrot.slane %v18394_v57, %v18393_v35  ;;  %v18397_v54 = vld [vmem:[#allocation192_spill] sm:$0xff]  ;;  %v6845_v49 = vrot.slane %v18399_v8, %v18393_v35  ;;  %v18400_v0 = vld [vmem:[#allocation214_spill] sm:$0xff]  ;;  %v6824_v47 = vsel %vm1650_vm8, %v6816_v58, %v18402_v30  ;;  %v18404_v45 = vld [vmem:[#allocation181_spill] sm:$0xff]  ;;  %v15382_v31 = vpop.permute.xlu1 %7130  ;;  %7888 = vrot.lane.b32.xlu0 %v18332_v22, %s8632_s12 }
 0x6aa   :  { %v6841_v61 = vrot.slane %v18397_v54, %v18393_v35  ;;  %v15370_v59 = vsel %vm18401_vm6, %v6813_v24, %v18400_v0  ;;  %v18403_v53 = vld [vmem:[#allocation182_spill] sm:$0xff]  ;;  %v6895_v7 = vmul.f32 %v6837_v52, %v6822_v23  ;;  %v15380_v63 = vrot.slane %v18404_v45, %v18393_v35  ;;  %18405 = vst [vmem:[#allocation183_spill] sm:$0xff] %v15382_v31  ;;  %v18407_v30 = vld [vmem:[#allocation55_spill] sm:$0xff]  ;;  %v18411_v36 = vld [vmem:[#allocation116_spill] sm:$0xff] }
 0x6ab   :  { %v15376_v55 = vrot.slane %v18403_v53, %v18393_v35  ;;  %v6894_v27 = vmul.f32 %v6833_v62, %v6822_v23  ;;  %v6897_v24 = vmul.f32 %v6845_v49, %v6822_v23  ;;  %v18406_v0 = vld [vmem:[#allocation114_spill] sm:$0xff]  ;;  %v6861_v25 = vrot.slane %v18407_v30, %v18393_v35  ;;  %v15398_v22 = vpop.permute.xlu0 %7128  ;;  %vm18448_vm9 = vmmov %vm18221_vm0 }
 0x6ac   :  { %v6896_v12 = vmul.f32 %v6841_v61, %v6822_v23  ;;  %v6857_v58 = vrot.slane %v18406_v0, %v18393_v35  ;;  %v6961_v54 = vrot.slane %v6895_v7, 4  ;;  %v15394_v45 = vmul.f32 %v15380_v63, %v6824_v47  ;;  %7894 = vrot.lane.b32.xlu1 %v18335_v11, %s8632_s12  ;;  %18408 = vst [vmem:[#allocation26_spill] sm:$0xff] %v15398_v22  ;;  %vm18450_vm2 = vmmov %vm18221_vm0 }
 0x6ad   :  { %v15391_v53 = vmul.f32 %v15376_v55, %v6824_v47  ;;  %v6958_v8 = vrot.slane %v6894_v27, 4  ;;  %v6967_v23 = vrot.slane %v6897_v24, 4  ;;  %v15402_v0 = vmul.f32 %v6861_v25, %v6824_v47  ;;  %v18409_v27 = vld [vmem:[#allocation89_spill] sm:$0xff]  ;;  %v15414_v22 = vpop.permute.xlu1 %7134  ;;  %7892 = vrot.lane.b32.xlu0 %v18340_v5, %s8632_s12  ;;  %vm18452_vm7 = vmmov %vm18221_vm0 }
 0x6ae   :  { %v6964_v29 = vrot.slane %v6896_v12, 4  ;;  %v15400_v57 = vmul.f32 %v6857_v58, %v6824_v47  ;;  %v6823_v7 = vsel %vm1650_vm8, %v6815_v50, %v18409_v27  ;;  %v18410_v12 = vld [vmem:[#allocation107_spill] sm:$0xff]  ;;  %v15412_v11 = vrot.slane %v18411_v36, %v18393_v35  ;;  %18412 = vst [vmem:[#allocation178_spill] sm:$0xff] %v15414_v22  ;;  %v18413_v27 = vld [vmem:[#allocation25_spill] sm:$0xff]  ;;  %vm18458_vm10 = vmmov %vm18221_vm0 }
 0x6af   :  { %v6826_v40 = vsel %vm1650_vm8, %v6818_v42, %v18410_v12  ;;  %v6979_v24 = vrot.slane %v15402_v0, 4  ;;  %v6898_v31 = vmul.f32 %v6833_v62, %v6823_v7  ;;  %v6899_v30 = vmul.f32 %v6837_v52, %v6823_v7  ;;  %v18414_v12 = vld [vmem:[#allocation119_spill] sm:$0xff]  ;;  %v15430_v5 = vpop.permute.xlu0 %7132  ;;  %v18416_v62 = vld [vmem:[#allocation146_spill] sm:$0xff]  ;;  %vm18479_vm13 = vmmov %vm18221_vm0 }
 0x6b0   :  { %v6976_v47 = vrot.slane %v15400_v57, 4  ;;  %v6900_v21 = vmul.f32 %v6841_v61, %v6823_v7  ;;  %v6901_v50 = vmul.f32 %v6845_v49, %v6823_v7  ;;  %v15422_v42 = vrot.slane %v18413_v27, %v18393_v35  ;;  %7898 = vrot.lane.b32.xlu1 %v18342_v10, %s8632_s12  ;;  %18415 = vst [vmem:[#allocation103_spill] sm:$0xff] %v15430_v5  ;;  %vm18482_vm4 = vmmov %vm18221_vm0 }
 0x6b1   :  { %v15426_v36 = vrot.slane %v18414_v12, %v18393_v35  ;;  %v6959_v57 = vrot.slane %v6898_v31, 4  ;;  %v6962_v22 = vrot.slane %v6899_v30, 4  ;;  %v6877_v52 = vrot.slane %v18416_v62, %v18393_v35  ;;  %v15443_v27 = vpop.permute.xlu1 %7138  ;;  %7896 = vrot.lane.b32.xlu0 %v18344_v41, %s8632_s12  ;;  %vm18483_vm6 = vmmov %vm18221_vm0 }
 0x6b2   :  { %v15435_v61 = vmul.f32 %v15412_v11, %v6826_v40  ;;  %v6965_v49 = vrot.slane %v6900_v21, 4  ;;  %v6968_v0 = vrot.slane %v6901_v50, 4  ;;  %v15438_v7 = vmul.f32 %v15422_v42, %v6826_v40  ;;  %18417 = vst [vmem:[#allocation193_spill] sm:$0xff] %v15443_v27 }
 0x6b3   :  { %v15441_v12 = vmul.f32 %v15426_v36, %v6826_v40  ;;  %v6960_v31 = vsel %vm4110_vm11, %v6958_v8, %v6959_v57  ;;  %v6963_v30 = vsel %vm4110_vm11, %v6961_v54, %v6962_v22  ;;  %v15449_v10 = vmul.f32 %v6877_v52, %v6826_v40  ;;  %v15460_v18 = vpop.permute.xlu0 %7136 }
 0x6b4   :  { %v6966_v50 = vsel %vm4110_vm11, %v6964_v29, %v6965_v49  ;;  %v6969_v62 = vsel %vm4110_vm11, %v6967_v23, %v6968_v0  ;;  %v15455_v5 = vadd.f32 %v6960_v31, %v15150_v43  ;;  %v15458_v27 = vadd.f32 %v6963_v30, %v15153_v3  ;;  %v18418_v23 = vld [vmem:[#allocation78_spill] sm:$0xff] }
 0x6b5   :  { %v15463_v8 = vadd.f32 %v6966_v50, %v15160_v13  ;;  %v15466_v22 = vadd.f32 %v6969_v62, %v15163_v20  ;;  %v6985_v54 = vrot.slane %v15438_v7, 4  ;;  %v6988_v29 = vrot.slane %v15441_v12, 4  ;;  %v15479_v57 = vpop.permute.xlu1 %7150  ;;  %7900 = vrot.lane.b32.xlu0 %v18349_v48, %s8632_s12  ;;  %s8596_s12 = scalar_lea.vmem %s8164_s2, 2048 }
 0x6b6   :  { %v6991_v40 = vrot.slane %v15449_v10, 4  ;;  %v6825_v43 = vsel %vm1650_vm8, %v15344_v32, %v18418_v23  ;;  %v6828_v3 = vsel %vm1650_vm8, %v15348_v9, %v15155_v44  ;;  %v6881_v13 = vrot.slane %v18129_v60, %v18393_v35  ;;  %v18419_v9 = vld [vmem:[#allocation126_spill] sm:$0xff]  ;;  %p8597_p2 = scmp.ne.s32.totalorder %s8164_s2, %s8596_s12  ;;  %p8602_p4 = scmp.lt.s32.totalorder %s8596_s12, %s8596_s12 }
 0x6b7   :  { %v6906_v20 = vmul.f32 %v15376_v55, %v6825_v43  ;;  %v6907_v10 = vmul.f32 %v15380_v63, %v6825_v43  ;;  %v6908_v12 = vmul.f32 %v6857_v58, %v6825_v43  ;;  %v6909_v62 = vmul.f32 %v6861_v25, %v6825_v43  ;;  %v15491_v7 = vpop.permute.xlu0 %7140 }
 0x6b8   :  { %v6885_v32 = vrot.slane %v18131_v15, %v18393_v35  ;;  %v6889_v44 = vrot.slane %v14020_v33, %v18393_v35  ;;  %v6893_v49 = vrot.slane %v18419_v9, %v18393_v35  ;;  %v6918_v0 = vmul.f32 %v6881_v13, %v6828_v3  ;;  %p8603_p5 = por %p8602_p4, %p8601_p3 }
 0x6b9   :  { %v6971_v31 = vrot.slane %v6906_v20, 4  ;;  %v6974_v30 = vrot.slane %v6907_v10, 4  ;;  %v6977_v50 = vrot.slane %v6908_v12, 4  ;;  %v6980_v55 = vrot.slane %v6909_v62, 4  ;;  %v15493_v43 = vpop.permute.xlu1 %7154 }
 0x6ba   :  { %v6919_v23 = vmul.f32 %v6885_v32, %v6828_v3  ;;  %v6920_v63 = vmul.f32 %v6889_v44, %v6828_v3  ;;  %v6921_v58 = vmul.f32 %v6893_v49, %v6828_v3  ;;  %v6994_v25 = vrot.slane %v6918_v0, 4  ;;  %v18424_v0 = vld [vmem:[#allocation42_spill] sm:$0xff]  ;;  %p8604_p6 = pnand %p8603_p5, %p8597_p2 }
 0x6bb   :  { %v18420_v21 = vrot.slane %v15391_v53, 4  ;;  %v18421_v41 = vrot.slane %v15394_v45, 4  ;;  %v6978_v9 = vsel %vm4110_vm11, %v6976_v47, %v6977_v50  ;;  %v6981_v20 = vsel %vm4110_vm11, %v6979_v24, %v6980_v55  ;;  %v18422_v47 = vld [vmem:[#allocation222_spill] sm:$0xff] }
 0x6bc   :  { %v15510_v12 = vadd.f32 %v6978_v9, %v15224_v39  ;;  %v15513_v53 = vadd.f32 %v6981_v20, %v15227_v14  ;;  %v6997_v45 = vrot.slane %v6919_v23, 4  ;;  %v7003_v62 = vrot.slane %v6921_v58, 4  ;;  %v18423_v14 = vld [vmem:[#allocation88_spill] sm:$0xff]  ;;  %v18426_v55 = vld [vmem:[#allocation58_spill] sm:$0xff] }
 0x6bd   :  { %v6972_v48 = vsel %vm4110_vm11, %v18420_v21, %v6971_v31  ;;  %v6975_v35 = vsel %vm4110_vm11, %v18421_v41, %v6974_v30  ;;  %v15515_v21 = vpop.permute.xlu0 %7152  ;;  %v7000_v41 = vrot.slane %v6920_v63, 4  ;;  %v6827_v24 = vsel %vm1650_vm8, %v15352_v4, %v18422_v47  ;;  %v15523_v9 = vpop.permute.xlu1 %7158  ;;  %v18425_v30 = vld [vmem:[#allocation62_spill] sm:$0xff] }
 0x6be   :  { %v15504_v10 = vadd.f32 %v6972_v48, %v15218_v6  ;;  %v15507_v3 = vadd.f32 %v6975_v35, %v15221_v34  ;;  %v6914_v6 = vmul.f32 %v15412_v11, %v6827_v24  ;;  %v6915_v48 = vmul.f32 %v15422_v42, %v6827_v24  ;;  %v18427_v11 = vld [vmem:[#allocation64_spill] sm:$0xff] }
 0x6bf   :  { %v6916_v34 = vmul.f32 %v15426_v36, %v6827_v24  ;;  %v6917_v39 = vmul.f32 %v6877_v52, %v6827_v24  ;;  %v7174_v31 = vsel %vm1611_vm12, %v18424_v0, %v18423_v14  ;;  %v6829_v50 = vsel %vm1650_vm8, %v15370_v59, %v18425_v30 }
 0x6c0   :  { %v7176_v4 = vsel %vm1611_vm12, %v18426_v55, %v15229_v2  ;;  %v7175_v42 = vsel %vm1611_vm12, %v18427_v11, %v15245_v46  ;;  %v6983_v36 = vrot.slane %v6914_v6, 4  ;;  %v6986_v52 = vrot.slane %v6915_v48, 4 }
 0x6c1   :  { %v6989_v23 = vrot.slane %v6916_v34, 4  ;;  %v6992_v63 = vrot.slane %v6917_v39, 4  ;;  %v15537_v58 = vpop.permute.xlu0 %7156  ;;  %v6922_v35 = vmul.f32 %v6881_v13, %v6829_v50  ;;  %v6923_v20 = vmul.f32 %v6885_v32, %v6829_v50  ;;  %v15545_v6 = vpop.permute.xlu1 %7162  ;;  %v18430_v39 = vld [vmem:[#allocation74_spill] sm:$0xff] }
 0x6c2   :  { %v6924_v47 = vmul.f32 %v6889_v44, %v6829_v50  ;;  %v6925_v24 = vmul.f32 %v6893_v49, %v6829_v50  ;;  %v18428_v59 = vrot.slane %v15435_v61, 4  ;;  %v6987_v2 = vsel %vm4110_vm11, %v6985_v54, %v6986_v52 }
 0x6c3   :  { %v6990_v0 = vsel %vm4110_vm11, %v6988_v29, %v6989_v23  ;;  %v6993_v46 = vsel %vm4110_vm11, %v6991_v40, %v6992_v63  ;;  %v15551_v13 = vadd.f32 %v6987_v2, %v15283_v51  ;;  %v6995_v44 = vrot.slane %v6922_v35, 4  ;;  %v18429_v40 = vld [vmem:[#allocation100_spill] sm:$0xff] }
 0x6c4   :  { %v6984_v14 = vsel %vm4110_vm11, %v18428_v59, %v6983_v36  ;;  %v15554_v32 = vadd.f32 %v6990_v0, %v15286_v16  ;;  %v15557_v61 = vadd.f32 %v6993_v46, %v15289_v26  ;;  %v6998_v54 = vrot.slane %v6923_v20, 4  ;;  %v18431_v16 = vld [vmem:[#allocation29_spill] sm:$0xff]  ;;  %v18432_v26 = vld [vmem:[#allocation102_spill] sm:$0xff]  ;;  %v18449_v0 = vld [vmem:[#allocation103_spill] sm:$0xff] }
 0x6c5   :  { %v15548_v48 = vadd.f32 %v6984_v14, %v15280_v37  ;;  %v7001_v49 = vrot.slane %v6924_v47, 4  ;;  %v7004_v29 = vrot.slane %v6925_v24, 4  ;;  %v15559_v34 = vpop.permute.xlu0 %7160  ;;  %v7178_v37 = vsel %vm1611_vm12, %v18429_v40, %v15259_v56  ;;  %v15577_v52 = vpop.permute.xlu1 %7470  ;;  %v18442_v20 = vld [vmem:[#allocation81_spill] sm:$0xff]  ;;  %v18443_v47 = vld [vmem:[#allocation183_spill] sm:$0xff]  ;;  %v18445_v24 = vld [vmem:[#allocation26_spill] sm:$0xff] }
 0x6c6   :  { %v7177_v51 = vsel %vm1611_vm12, %v18430_v39, %v15277_v19  ;;  %v7180_v30 = vsel %vm1611_vm12, %v18431_v16, %v15291_v28  ;;  %v7179_v50 = vsel %vm1611_vm12, %v18432_v26, %v15313_v1  ;;  %v6996_v55 = vsel %vm4110_vm11, %v6994_v25, %v6995_v44  ;;  %v18435_v28 = vld [vmem:[#allocation186_spill] sm:$0xff]  ;;  %v18437_v1 = vld [vmem:[#allocation76_spill] sm:$0xff]  ;;  %v18439_v25 = vld [vmem:[#allocation67_spill] sm:$0xff] }
 0x6c7   :  { %v6999_v11 = vsel %vm4110_vm11, %v6997_v45, %v6998_v54  ;;  %v7002_v36 = vsel %vm4110_vm11, %v7000_v41, %v7001_v49  ;;  %v7005_v56 = vsel %vm4110_vm11, %v7003_v62, %v7004_v29  ;;  %v15580_v19 = vadd.f32 %v6996_v55, %v15316_v38  ;;  %v18441_v41 = vld [vmem:[#allocation184_spill] sm:$0xff]  ;;  %vm18444_vm11 = vmmov %vm18221_vm0  ;;  %v18447_v14 = vld [vmem:[#allocation178_spill] sm:$0xff] }
 0x6c8   :  { %v15583_v23 = vadd.f32 %v6999_v11, %v15319_v17  ;;  %v15586_v63 = vadd.f32 %v7002_v36, %v18435_v28  ;;  %v15589_v35 = vadd.f32 %v7005_v56, %v18437_v1  ;;  %v7182_v45 = vsel %vm18440_vm1, %v7174_v31, %v18439_v25  ;;  %v18451_v31 = vld [vmem:[#allocation193_spill] sm:$0xff]  ;;  %v18454_v49 = vld [vmem:[#allocation172_spill] sm:$0xff]  ;;  %v18455_v29 = vld [vmem:[#allocation218_spill] sm:$0xff] }
 0x6c9   :  { %18433 = vst [vmem:[#allocation20_spill] sm:$0xff] %v15580_v19  ;;  %v7181_v62 = vsel %vm1611_vm12, %v18442_v20, %v18441_v41  ;;  %v7184_v38 = vsel %vm18444_vm11, %v7176_v4, %v18443_v47  ;;  %v7183_v17 = vsel %vm18446_vm3, %v7175_v42, %v18445_v24  ;;  %v15600_v59 = vpop.permute.xlu0 %7164  ;;  %v7186_v2 = vsel %vm18448_vm9, %v7178_v37, %v18447_v14  ;;  %v18453_v4 = vld [vmem:[#allocation125_spill] sm:$0xff]  ;;  %v18456_v39 = vld [vmem:[#allocation192_spill] sm:$0xff]  ;;  %v15624_v16 = vpop.permute.xlu1 %7474  ;;  %v18459_v55 = vld [vmem:[#allocation182_spill] sm:$0xff] }
 0x6ca   :  { %18434 = vst [vmem:[#allocation139_spill] sm:$0xff] %v15583_v23  ;;  %18436 = vst [vmem:[#allocation94_spill] sm:$0xff] %v15586_v63  ;;  %v15606_v46 = vsel %vm18450_vm2, %v7177_v51, %v18449_v0  ;;  %v15610_v44 = vsel %vm18221_vm0, %v7180_v30, %v18451_v31  ;;  %v15614_v54 = vsel %vm18452_vm7, %v7179_v50, %v15460_v18  ;;  %v18457_v30 = vld [vmem:[#allocation155_spill] sm:$0xff]  ;;  %v18460_v28 = vld [vmem:[#allocation181_spill] sm:$0xff] }
 0x6cb   :  { %18438 = vst [vmem:[#allocation117_spill] sm:$0xff] %v15589_v35  ;;  %v7201_v42 = vrot.slane %v18454_v49, %v18453_v4  ;;  %v7205_v40 = vrot.slane %v18455_v29, %v18453_v4  ;;  %v7190_v37 = vsel %vm1650_vm8, %v7182_v45, %v15479_v57  ;;  %v7209_v51 = vrot.slane %v18456_v39, %v18453_v4  ;;  %v18461_v41 = vld [vmem:[#allocation114_spill] sm:$0xff]  ;;  %v18463_v39 = vld [vmem:[#allocation116_spill] sm:$0xff]  ;;  %vm18484_vm1 = vmmov %vm18221_vm0 }
 0x6cc   :  { %v7213_v26 = vrot.slane %v18457_v30, %v18453_v4  ;;  %v15630_v18 = vsel %vm18458_vm10, %v7181_v62, %v15491_v7  ;;  %v7192_v50 = vsel %vm1650_vm8, %v7184_v38, %v15493_v43  ;;  %v7217_v11 = vrot.slane %v18459_v55, %v18453_v4  ;;  %v18462_v7 = vld [vmem:[#allocation55_spill] sm:$0xff]  ;;  %vm18485_vm11 = vmmov %vm18221_vm0 }
 0x6cd   :  { %v7262_v36 = vmul.f32 %v7201_v42, %v7190_v37  ;;  %v7263_v57 = vmul.f32 %v7205_v40, %v7190_v37  ;;  %v7264_v56 = vmul.f32 %v7209_v51, %v7190_v37  ;;  %v7221_v1 = vrot.slane %v18460_v28, %v18453_v4  ;;  %v15638_v25 = vpop.permute.xlu0 %7472  ;;  %v15648_v14 = vpop.permute.xlu1 %7478  ;;  %vm18491_vm3 = vmmov %vm18221_vm0 }
 0x6ce   :  { %v7265_v45 = vmul.f32 %v7213_v26, %v7190_v37  ;;  %v7225_v20 = vrot.slane %v18461_v41, %v18453_v4  ;;  %v7229_v62 = vrot.slane %v18462_v7, %v18453_v4  ;;  %v15644_v47 = vmul.f32 %v7217_v11, %v7192_v50  ;;  %vm18496_vm9 = vmmov %vm18221_vm0 }
 0x6cf   :  { %v7326_v43 = vrot.slane %v7262_v36, 5  ;;  %v7329_v38 = vrot.slane %v7263_v57, 5  ;;  %v15646_v24 = vmul.f32 %v7221_v1, %v7192_v50  ;;  %v7332_v0 = vrot.slane %v7264_v56, 5  ;;  %vm18520_vm2 = vmmov %vm18221_vm0 }
 0x6d0   :  { %v7335_v31 = vrot.slane %v7265_v45, 5  ;;  %v15650_v28 = vmul.f32 %v7225_v20, %v7192_v50  ;;  %v15652_v55 = vmul.f32 %v7229_v62, %v7192_v50  ;;  %v7338_v37 = vrot.slane %v15644_v47, 5  ;;  %vm18524_vm7 = vmmov %vm18221_vm0 }
 0x6d1   :  { %v7341_v41 = vrot.slane %v15646_v24, 5  ;;  %v7191_v7 = vsel %vm1650_vm8, %v7183_v17, %v15515_v21  ;;  %v7194_v36 = vsel %vm1650_vm8, %v7186_v2, %v15523_v9  ;;  %v15660_v57 = vpop.permute.xlu0 %7476  ;;  %v15665_v50 = vrot.slane %v18463_v39, %v18453_v4  ;;  %v18464_v24 = vld [vmem:[#allocation25_spill] sm:$0xff]  ;;  %v18465_v21 = vld [vmem:[#allocation119_spill] sm:$0xff]  ;;  %v15671_v35 = vpop.permute.xlu1 %7482  ;;  %vm18525_vm10 = vmmov %vm18221_vm0 }
 0x6d2   :  { %v7344_v30 = vrot.slane %v15650_v28, 5  ;;  %v7266_v56 = vmul.f32 %v7201_v42, %v7191_v7  ;;  %v7267_v45 = vmul.f32 %v7205_v40, %v7191_v7  ;;  %v7268_v29 = vmul.f32 %v7209_v51, %v7191_v7  ;;  %v18466_v28 = vld [vmem:[#allocation146_spill] sm:$0xff] }
 0x6d3   :  { %v7269_v47 = vmul.f32 %v7213_v26, %v7191_v7  ;;  %v7237_v49 = vrot.slane %v18464_v24, %v18453_v4  ;;  %v7241_v17 = vrot.slane %v18465_v21, %v18453_v4  ;;  %v7245_v42 = vrot.slane %v18466_v28, %v18453_v4 }
 0x6d4   :  { %v7327_v9 = vrot.slane %v7266_v56, 5  ;;  %v7330_v2 = vrot.slane %v7267_v45, 5  ;;  %v15676_v40 = vmul.f32 %v15665_v50, %v7194_v36  ;;  %v7333_v39 = vrot.slane %v7268_v29, 5 }
 0x6d5   :  { %v7336_v63 = vrot.slane %v7269_v47, 5  ;;  %v15678_v51 = vmul.f32 %v7237_v49, %v7194_v36  ;;  %v15680_v26 = vmul.f32 %v7241_v17, %v7194_v36  ;;  %v15682_v7 = vpop.permute.xlu0 %7480  ;;  %v7347_v21 = vrot.slane %v15652_v55, 5  ;;  %v15697_v19 = vpop.permute.xlu1 %7494 }
 0x6d6   :  { %v7328_v24 = vsel %vm4479_vm5, %v7326_v43, %v7327_v9  ;;  %v7331_v56 = vsel %vm4479_vm5, %v7329_v38, %v7330_v2  ;;  %v15687_v45 = vmul.f32 %v7245_v42, %v7194_v36  ;;  %v7334_v28 = vsel %vm4479_vm5, %v7332_v0, %v7333_v39 }
 0x6d7   :  { %v7337_v23 = vsel %vm4479_vm5, %v7335_v31, %v7336_v63  ;;  %v15692_v29 = vadd.f32 %v7328_v24, %v15455_v5  ;;  %v15695_v47 = vadd.f32 %v7331_v56, %v15458_v27  ;;  %v15700_v55 = vadd.f32 %v7334_v28, %v15463_v8 }
 0x6d8   :  { %v15703_v43 = vadd.f32 %v7337_v23, %v15466_v22  ;;  %v7350_v38 = vrot.slane %v15676_v40, 5  ;;  %v7353_v39 = vrot.slane %v15678_v51, 5  ;;  %v7356_v63 = vrot.slane %v15680_v26, 5 }
 0x6d9   :  { %v7193_v5 = vsel %vm1650_vm8, %v15606_v46, %v15537_v58  ;;  %v7196_v27 = vsel %vm1650_vm8, %v15610_v44, %v15545_v6  ;;  %v7249_v8 = vrot.slane %v18129_v60, %v18453_v4  ;;  %v15716_v0 = vpop.permute.xlu0 %7484  ;;  %v7253_v24 = vrot.slane %v18131_v15, %v18453_v4  ;;  %v18467_v58 = vld [vmem:[#allocation126_spill] sm:$0xff]  ;;  %v15724_v6 = vpop.permute.xlu1 %7498 }
 0x6da   :  { %v7274_v22 = vmul.f32 %v7217_v11, %v7193_v5  ;;  %v7275_v23 = vmul.f32 %v7221_v1, %v7193_v5  ;;  %v7276_v31 = vmul.f32 %v7225_v20, %v7193_v5  ;;  %v7277_v36 = vmul.f32 %v7229_v62, %v7193_v5 }
 0x6db   :  { %v7257_v9 = vrot.slane %v14020_v33, %v18453_v4  ;;  %v7261_v46 = vrot.slane %v18467_v58, %v18453_v4  ;;  %v7286_v2 = vmul.f32 %v7249_v8, %v7196_v27  ;;  %v7359_v11 = vrot.slane %v15687_v45, 5 }
 0x6dc   :  { %v7339_v44 = vrot.slane %v7274_v22, 5  ;;  %v7342_v28 = vrot.slane %v7275_v23, 5  ;;  %v7345_v40 = vrot.slane %v7276_v31, 5  ;;  %v7348_v51 = vrot.slane %v7277_v36, 5 }
 0x6dd   :  { %v7287_v1 = vmul.f32 %v7253_v24, %v7196_v27  ;;  %v7288_v20 = vmul.f32 %v7257_v9, %v7196_v27  ;;  %v7289_v62 = vmul.f32 %v7261_v46, %v7196_v27  ;;  %v15727_v26 = vpop.permute.xlu0 %7496  ;;  %v7503_v31 = vpop.permute.xlu1 %7502 }
 0x6de   :  { %v7340_v56 = vsel %vm4479_vm5, %v7338_v37, %v7339_v44  ;;  %v7343_v5 = vsel %vm4479_vm5, %v7341_v41, %v7342_v28  ;;  %v7346_v4 = vsel %vm4479_vm5, %v7344_v30, %v7345_v40  ;;  %v7349_v58 = vsel %vm4479_vm5, %v7347_v21, %v7348_v51 }
 0x6df   :  { %v15734_v22 = vadd.f32 %v7340_v56, %v15504_v10  ;;  %v15737_v23 = vadd.f32 %v7343_v5, %v15507_v3  ;;  %v15740_v45 = vadd.f32 %v7346_v4, %v15510_v12  ;;  %v15743_v27 = vadd.f32 %v7349_v58, %v15513_v53  ;;  %v18468_v12 = vld [vmem:[#allocation71_spill] sm:$0xff] }
 0x6e0   :  { %v7362_v37 = vrot.slane %v7286_v2, 5  ;;  %v7365_v36 = vrot.slane %v7287_v1, 5  ;;  %v7368_v41 = vrot.slane %v7288_v20, 5  ;;  %v7195_v30 = vsel %vm1650_vm8, %v15614_v54, %v15559_v34  ;;  %v18469_v2 = vld [vmem:[#allocation75_spill] sm:$0xff] }
 0x6e1   :  { %v7282_v10 = vmul.f32 %v15665_v50, %v7195_v30  ;;  %v7283_v21 = vmul.f32 %v7237_v49, %v7195_v30  ;;  %v7284_v44 = vmul.f32 %v7241_v17, %v7195_v30  ;;  %v7285_v3 = vmul.f32 %v7245_v42, %v7195_v30  ;;  %v7501_v28 = vpop.permute.xlu0 %7500  ;;  %v7507_v17 = vpop.permute.xlu1 %7506 }
 0x6e2   :  { %v7371_v40 = vrot.slane %v7289_v62, 5  ;;  %v7542_v53 = vsel %vm1611_vm12, %v18468_v12, %v15577_v52  ;;  %v7197_v58 = vsel %vm1650_vm8, %v15630_v18, %v15600_v59  ;;  %v7544_v51 = vsel %vm1611_vm12, %v18469_v2, %v15624_v16  ;;  %v18474_v2 = vld [vmem:[#allocation20_spill] sm:$0xff] }
 0x6e3   :  { %v7351_v34 = vrot.slane %v7282_v10, 5  ;;  %v7354_v54 = vrot.slane %v7283_v21, 5  ;;  %v7357_v50 = vrot.slane %v7284_v44, 5  ;;  %v7360_v49 = vrot.slane %v7285_v3, 5  ;;  %v18472_v10 = vld [vmem:[#allocation84_spill] sm:$0xff] }
 0x6e4   :  { %v7290_v42 = vmul.f32 %v7249_v8, %v7197_v58  ;;  %v7291_v1 = vmul.f32 %v7253_v24, %v7197_v58  ;;  %v7292_v20 = vmul.f32 %v7257_v9, %v7197_v58  ;;  %v7293_v62 = vmul.f32 %v7261_v46, %v7197_v58 }
 0x6e5   :  { %v7352_v56 = vsel %vm4479_vm5, %v7350_v38, %v7351_v34  ;;  %v7355_v52 = vsel %vm4479_vm5, %v7353_v39, %v7354_v54  ;;  %v7358_v5 = vsel %vm4479_vm5, %v7356_v63, %v7357_v50  ;;  %v7361_v59 = vsel %vm4479_vm5, %v7359_v11, %v7360_v49  ;;  %v7505_v18 = vpop.permute.xlu0 %7504  ;;  %v7519_v63 = vpop.permute.xlu1 %7518  ;;  %v18470_v11 = vld [vmem:[#allocation82_spill] sm:$0xff]  ;;  %v18477_v49 = vld [vmem:[#allocation117_spill] sm:$0xff] }
 0x6e6   :  { %v15763_v16 = vadd.f32 %v7352_v56, %v15548_v48  ;;  %v15766_v4 = vadd.f32 %v7355_v52, %v15551_v13  ;;  %v15769_v8 = vadd.f32 %v7358_v5, %v15554_v32  ;;  %v15772_v24 = vadd.f32 %v7361_v59, %v15557_v61  ;;  %v18471_v48 = vld [vmem:[#allocation106_spill] sm:$0xff]  ;;  %v18473_v61 = vld [vmem:[#allocation80_spill] sm:$0xff] }
 0x6e7   :  { %v7363_v38 = vrot.slane %v7290_v42, 5  ;;  %v7366_v9 = vrot.slane %v7291_v1, 5  ;;  %v7369_v39 = vrot.slane %v7292_v20, 5  ;;  %v7372_v46 = vrot.slane %v7293_v62, 5 }
 0x6e8   :  { %v7543_v30 = vsel %vm1611_vm12, %v18470_v11, %v15638_v25  ;;  %v7546_v13 = vsel %vm1611_vm12, %v18471_v48, %v15648_v14  ;;  %v7545_v32 = vsel %vm1611_vm12, %v18472_v10, %v15660_v57  ;;  %v7548_v21 = vsel %vm1611_vm12, %v18473_v61, %v15671_v35  ;;  %v18475_v14 = vld [vmem:[#allocation139_spill] sm:$0xff]  ;;  %v18476_v57 = vld [vmem:[#allocation94_spill] sm:$0xff] }
 0x6e9   :  { %v7364_v44 = vsel %vm4479_vm5, %v7362_v37, %v7363_v38  ;;  %v7367_v3 = vsel %vm4479_vm5, %v7365_v36, %v7366_v9  ;;  %v7370_v12 = vsel %vm4479_vm5, %v7368_v41, %v7369_v39  ;;  %v7373_v25 = vsel %vm4479_vm5, %v7371_v40, %v7372_v46  ;;  %v7509_v58 = vpop.permute.xlu0 %7508  ;;  %v18478_v37 = vld [vmem:[#allocation157_spill] sm:$0xff]  ;;  %v18480_v40 = vld [vmem:[#allocation72_spill] sm:$0xff]  ;;  %vm18481_vm5 = vmmov %vm18221_vm0  ;;  %v7523_v20 = vpop.permute.xlu1 %7522 }
 0x6ea   :  { %v15791_v34 = vadd.f32 %v7364_v44, %v18474_v2  ;;  %v15794_v54 = vadd.f32 %v7367_v3, %v18475_v14  ;;  %v15797_v50 = vadd.f32 %v7370_v12, %v18476_v57  ;;  %v15800_v35 = vadd.f32 %v7373_v25, %v18477_v49  ;;  %v18492_v39 = vld [vmem:[#allocation182_spill] sm:$0xff]  ;;  %v18495_v3 = vld [vmem:[#allocation55_spill] sm:$0xff] }
 0x6eb   :  { %v7547_v36 = vsel %vm1611_vm12, %v18478_v37, %v15682_v7  ;;  %v7550_v41 = vsel %vm18479_vm13, %v7542_v53, %v15697_v19  ;;  %v7549_v42 = vsel %vm1611_vm12, %v18480_v40, %v15716_v0  ;;  %v7552_v1 = vsel %vm18481_vm5, %v7544_v51, %v15724_v6  ;;  %v18486_v19 = vld [vmem:[#allocation215_spill] sm:$0xff]  ;;  %v18487_v53 = vld [vmem:[#allocation172_spill] sm:$0xff]  ;;  %v18488_v0 = vld [vmem:[#allocation218_spill] sm:$0xff] }
 0x6ec   :  { %v7554_v62 = vsel %vm18482_vm4, %v7546_v13, %v7503_v31  ;;  %v15814_v56 = vsel %vm18483_vm6, %v7545_v32, %v7501_v28  ;;  %v15817_v52 = vsel %vm18484_vm1, %v7548_v21, %v7507_v17  ;;  %v15820_v7 = vsel %vm18485_vm11, %v7547_v36, %v7505_v18  ;;  %v18489_v51 = vld [vmem:[#allocation192_spill] sm:$0xff]  ;;  %v18490_v28 = vld [vmem:[#allocation155_spill] sm:$0xff]  ;;  %v18494_v21 = vld [vmem:[#allocation114_spill] sm:$0xff] }
 0x6ed   :  { %v7569_v5 = vrot.slane %v18487_v53, %v18486_v19  ;;  %v7573_v59 = vrot.slane %v18488_v0, %v18486_v19  ;;  %v7558_v6 = vsel %vm1650_vm8, %v7550_v41, %v7519_v63  ;;  %v7577_v31 = vrot.slane %v18489_v51, %v18486_v19  ;;  %v7521_v38 = vpop.permute.xlu0 %7520  ;;  %v18493_v63 = vld [vmem:[#allocation181_spill] sm:$0xff]  ;;  %v7527_v32 = vpop.permute.xlu1 %7526  ;;  %vm18526_vm13 = vmmov %vm18221_vm0 }
 0x6ee   :  { %v7581_v9 = vrot.slane %v18490_v28, %v18486_v19  ;;  %v15832_v17 = vsel %vm18491_vm3, %v7549_v42, %v7509_v58  ;;  %v7560_v18 = vsel %vm1650_vm8, %v7552_v1, %v7523_v20  ;;  %v7585_v46 = vrot.slane %v18492_v39, %v18486_v19  ;;  %vm18527_vm5 = vmmov %vm18221_vm0 }
 0x6ef   :  { %v7630_v11 = vmul.f32 %v7569_v5, %v7558_v6  ;;  %v7631_v48 = vmul.f32 %v7573_v59, %v7558_v6  ;;  %v7632_v13 = vmul.f32 %v7577_v31, %v7558_v6  ;;  %v7589_v10 = vrot.slane %v18493_v63, %v18486_v19  ;;  %vm18528_vm4 = vmmov %vm18221_vm0 }
 0x6f0   :  { %v7633_v61 = vmul.f32 %v7581_v9, %v7558_v6  ;;  %v7593_v44 = vrot.slane %v18494_v21, %v18486_v19  ;;  %v7597_v12 = vrot.slane %v18495_v3, %v18486_v19  ;;  %v15843_v25 = vmul.f32 %v7585_v46, %v7560_v18 }
 0x6f1   :  { %v7551_v58 = vsel %vm18496_vm9, %v7543_v30, %v15727_v26  ;;  %v15847_v2 = vmul.f32 %v7589_v10, %v7560_v18  ;;  %v7525_v14 = vpop.permute.xlu0 %7524  ;;  %v7694_v57 = vrot.slane %v7630_v11, 6  ;;  %v7697_v49 = vrot.slane %v7631_v48, 6  ;;  %v7531_v20 = vpop.permute.xlu1 %7530  ;;  %v18497_v30 = vld [vmem:[#allocation116_spill] sm:$0xff] }
 0x6f2   :  { %v15849_v37 = vmul.f32 %v7593_v44, %v7560_v18  ;;  %v15851_v36 = vmul.f32 %v7597_v12, %v7560_v18  ;;  %v7700_v41 = vrot.slane %v7632_v13, 6  ;;  %v7703_v40 = vrot.slane %v7633_v61, 6  ;;  %v18498_v18 = vld [vmem:[#allocation25_spill] sm:$0xff]  ;;  %v18499_v13 = vld [vmem:[#allocation119_spill] sm:$0xff] }
 0x6f3   :  { %v7559_v42 = vsel %vm1650_vm8, %v7551_v58, %v7521_v38  ;;  %v7562_v1 = vsel %vm1650_vm8, %v7554_v62, %v7527_v32  ;;  %v7706_v6 = vrot.slane %v15843_v25, 6  ;;  %v15858_v21 = vrot.slane %v18497_v30, %v18486_v19  ;;  %v18500_v32 = vld [vmem:[#allocation146_spill] sm:$0xff] }
 0x6f4   :  { %v7634_v3 = vmul.f32 %v7569_v5, %v7559_v42  ;;  %v7635_v26 = vmul.f32 %v7573_v59, %v7559_v42  ;;  %v7636_v11 = vmul.f32 %v7577_v31, %v7559_v42  ;;  %v7637_v48 = vmul.f32 %v7581_v9, %v7559_v42 }
 0x6f5   :  { %v7605_v63 = vrot.slane %v18498_v18, %v18486_v19  ;;  %v7609_v61 = vrot.slane %v18499_v13, %v18486_v19  ;;  %v7529_v38 = vpop.permute.xlu0 %7528  ;;  %v7613_v25 = vrot.slane %v18500_v32, %v18486_v19  ;;  %v15867_v5 = vmul.f32 %v15858_v21, %v7562_v1  ;;  %v15873_v9 = vpop.permute.xlu1 %7838 }
 0x6f6   :  { %v7695_v58 = vrot.slane %v7634_v3, 6  ;;  %v7698_v62 = vrot.slane %v7635_v26, 6  ;;  %v7701_v59 = vrot.slane %v7636_v11, 6  ;;  %v7704_v30 = vrot.slane %v7637_v48, 6  ;;  %18501 = vst [vmem:[#allocation197_spill] sm:$0xff] %v15873_v9 }
 0x6f7   :  { %v15869_v39 = vmul.f32 %v7605_v63, %v7562_v1  ;;  %v15871_v31 = vmul.f32 %v7609_v61, %v7562_v1  ;;  %v7709_v42 = vrot.slane %v15847_v2, 6  ;;  %v15878_v26 = vmul.f32 %v7613_v25, %v7562_v1 }
 0x6f8   :  { %v7696_v13 = vsel %vm4848_vm14, %v7694_v57, %v7695_v58  ;;  %v7699_v3 = vsel %vm4848_vm14, %v7697_v49, %v7698_v62  ;;  %v7702_v32 = vsel %vm4848_vm14, %v7700_v41, %v7701_v59  ;;  %v7705_v18 = vsel %vm4848_vm14, %v7703_v40, %v7704_v30 }
 0x6f9   :  { %v15883_v11 = vadd.f32 %v7696_v13, %v15692_v29  ;;  %v15886_v48 = vadd.f32 %v7699_v3, %v15695_v47  ;;  %v7533_v28 = vpop.permute.xlu0 %7532  ;;  %v7712_v9 = vrot.slane %v15849_v37, 6  ;;  %v7715_v2 = vrot.slane %v15851_v36, 6  ;;  %v15903_v37 = vpop.permute.xlu1 %7842 }
 0x6fa   :  { %v15891_v57 = vadd.f32 %v7702_v32, %v15700_v55  ;;  %v15894_v49 = vadd.f32 %v7705_v18, %v15703_v43  ;;  %v7718_v41 = vrot.slane %v15867_v5, 6  ;;  %v7561_v29 = vsel %vm1650_vm8, %v15814_v56, %v7525_v14  ;;  %v18502_v56 = vld [vmem:[#allocation126_spill] sm:$0xff] }
 0x6fb   :  { %v7564_v47 = vsel %vm1650_vm8, %v15817_v52, %v7531_v20  ;;  %v7617_v40 = vrot.slane %v18129_v60, %v18486_v19  ;;  %v7642_v36 = vmul.f32 %v7585_v46, %v7561_v29  ;;  %v7643_v1 = vmul.f32 %v7589_v10, %v7561_v29 }
 0x6fc   :  { %v7644_v55 = vmul.f32 %v7593_v44, %v7561_v29  ;;  %v7645_v30 = vmul.f32 %v7597_v12, %v7561_v29  ;;  %v7621_v43 = vrot.slane %v18131_v15, %v18486_v19  ;;  %v7625_v18 = vrot.slane %v14020_v33, %v18486_v19 }
 0x6fd   :  { %v7629_v14 = vrot.slane %v18502_v56, %v18486_v19  ;;  %v7654_v13 = vmul.f32 %v7617_v40, %v7564_v47  ;;  %v15911_v52 = vpop.permute.xlu0 %7840  ;;  %v7707_v20 = vrot.slane %v7642_v36, 6  ;;  %v7710_v58 = vrot.slane %v7643_v1, 6  ;;  %v15914_v5 = vpop.permute.xlu1 %7846 }
 0x6fe   :  { %v7713_v62 = vrot.slane %v7644_v55, 6  ;;  %v7716_v32 = vrot.slane %v7645_v30, 6  ;;  %v7721_v46 = vrot.slane %v15869_v39, 6  ;;  %v7655_v10 = vmul.f32 %v7621_v43, %v7564_v47 }
 0x6ff   :  { %v7656_v44 = vmul.f32 %v7625_v18, %v7564_v47  ;;  %v7657_v12 = vmul.f32 %v7629_v14, %v7564_v47  ;;  %v7708_v59 = vsel %vm4848_vm14, %v7706_v6, %v7707_v20  ;;  %v7711_v3 = vsel %vm4848_vm14, %v7709_v42, %v7710_v58 }
 0x700   :  { %v7714_v19 = vsel %vm4848_vm14, %v7712_v9, %v7713_v62  ;;  %v7717_v29 = vsel %vm4848_vm14, %v7715_v2, %v7716_v32  ;;  %v15921_v36 = vadd.f32 %v7708_v59, %v15734_v22  ;;  %v15924_v1 = vadd.f32 %v7711_v3, %v15737_v23 }
 0x701   :  { %v15927_v39 = vadd.f32 %v7714_v19, %v15740_v45  ;;  %v15930_v47 = vadd.f32 %v7717_v29, %v15743_v27  ;;  %v15932_v55 = vpop.permute.xlu0 %7844  ;;  %v7724_v6 = vrot.slane %v15871_v31, 6  ;;  %v7727_v9 = vrot.slane %v15878_v26, 6  ;;  %v15939_v45 = vpop.permute.xlu1 %7850 }
 0x702   :  { %v7730_v42 = vrot.slane %v7654_v13, 6  ;;  %v7563_v22 = vsel %vm1650_vm8, %v15820_v7, %v7529_v38  ;;  %v7733_v58 = vrot.slane %v7655_v10, 6  ;;  %v7736_v27 = vrot.slane %v7656_v44, 6 }
 0x703   :  { %v7650_v2 = vmul.f32 %v15858_v21, %v7563_v22  ;;  %v7651_v23 = vmul.f32 %v7605_v63, %v7563_v22  ;;  %v7652_v30 = vmul.f32 %v7609_v61, %v7563_v22  ;;  %v7653_v20 = vmul.f32 %v7613_v25, %v7563_v22 }
 0x704   :  { %v7739_v62 = vrot.slane %v7657_v12, 6  ;;  %v7565_v32 = vsel %vm1650_vm8, %v15832_v17, %v7533_v28 }
 0x705   :  { %v7719_v31 = vrot.slane %v7650_v2, 6  ;;  %v7722_v59 = vrot.slane %v7651_v23, 6  ;;  %v7725_v26 = vrot.slane %v7652_v30, 6  ;;  %v7728_v13 = vrot.slane %v7653_v20, 6  ;;  %v15943_v3 = vpop.permute.xlu0 %7848  ;;  %v7863_v12 = vpop.permute.xlu1 %7862  ;;  %v18503_v23 = vld [vmem:[#allocation219_spill] sm:$0xff] }
 0x706   :  { %v7658_v7 = vmul.f32 %v7617_v40, %v7565_v32  ;;  %v7659_v38 = vmul.f32 %v7621_v43, %v7565_v32  ;;  %v7660_v21 = vmul.f32 %v7625_v18, %v7565_v32  ;;  %v7661_v63 = vmul.f32 %v7629_v14, %v7565_v32 }
 0x707   :  { %v7720_v61 = vsel %vm4848_vm14, %v7718_v41, %v7719_v31  ;;  %v7723_v25 = vsel %vm4848_vm14, %v7721_v46, %v7722_v59  ;;  %v7726_v10 = vsel %vm4848_vm14, %v7724_v6, %v7725_v26  ;;  %v7729_v44 = vsel %vm4848_vm14, %v7727_v9, %v7728_v13  ;;  %v18510_v13 = vld [vmem:[#allocation25_spill] sm:$0xff] }
 0x708   :  { %v15950_v28 = vadd.f32 %v7720_v61, %v15763_v16  ;;  %v15953_v17 = vadd.f32 %v7723_v25, %v15766_v4  ;;  %v15956_v40 = vadd.f32 %v7726_v10, %v15769_v8  ;;  %v15959_v43 = vadd.f32 %v7729_v44, %v15772_v24  ;;  %v18512_v61 = vld [vmem:[#allocation146_spill] sm:$0xff] }
 0x709   :  { %v7731_v41 = vrot.slane %v7658_v7, 6  ;;  %v7734_v18 = vrot.slane %v7659_v38, 6  ;;  %v7737_v14 = vrot.slane %v7660_v21, 6  ;;  %v7740_v46 = vrot.slane %v7661_v63, 6  ;;  %v7853_v19 = vpop.permute.xlu0 %7852  ;;  %v7867_v9 = vpop.permute.xlu1 %7866  ;;  %v18511_v38 = vld [vmem:[#allocation119_spill] sm:$0xff] }
 0x70a   :  { %v7937_v30 = vrot.slane %v18487_v53, %v18503_v23  ;;  %v7941_v20 = vrot.slane %v18488_v0, %v18503_v23  ;;  %v18507_v53 = vld [vmem:[#allocation114_spill] sm:$0xff]  ;;  %v18508_v0 = vld [vmem:[#allocation55_spill] sm:$0xff]  ;;  %v16007_v7 = vrot.slane %v18510_v13, %v18503_v23  ;;  %v16011_v21 = vrot.slane %v18511_v38, %v18503_v23 }
 0x70b   :  { %v7732_v29 = vsel %vm4848_vm14, %v7730_v42, %v7731_v41  ;;  %v7735_v6 = vsel %vm4848_vm14, %v7733_v58, %v7734_v18  ;;  %v7738_v16 = vsel %vm4848_vm14, %v7736_v27, %v7737_v14  ;;  %v7741_v4 = vsel %vm4848_vm14, %v7739_v62, %v7740_v46  ;;  %v18504_v58 = vld [vmem:[#allocation155_spill] sm:$0xff]  ;;  %vm18515_vm14 = vmmov %vm18221_vm0 }
 0x70c   :  { %v15966_v8 = vadd.f32 %v7732_v29, %v15791_v34  ;;  %v15969_v24 = vadd.f32 %v7735_v6, %v15794_v54  ;;  %v15972_v22 = vadd.f32 %v7738_v16, %v15797_v50  ;;  %v15975_v2 = vadd.f32 %v7741_v4, %v15800_v35  ;;  %v18505_v50 = vld [vmem:[#allocation182_spill] sm:$0xff]  ;;  %v18506_v35 = vld [vmem:[#allocation181_spill] sm:$0xff]  ;;  %v18514_v6 = vld [vmem:[#allocation11_spill] sm:$0xff] }
 0x70d   :  { %v7865_v42 = vpop.permute.xlu0 %7864  ;;  %v7945_v34 = vrot.slane %v18489_v51, %v18503_v23  ;;  %v7949_v54 = vrot.slane %v18504_v58, %v18503_v23  ;;  %v7871_v27 = vpop.permute.xlu1 %7870  ;;  %v15987_v62 = vrot.slane %v18505_v50, %v18503_v23  ;;  %v15991_v32 = vrot.slane %v18506_v35, %v18503_v23  ;;  %v18509_v51 = vld [vmem:[#allocation116_spill] sm:$0xff]  ;;  %v18513_v29 = vld [vmem:[#allocation197_spill] sm:$0xff]  ;;  %v18517_v35 = vld [vmem:[#allocation86_spill] sm:$0xff] }
 0x70e   :  { %v15995_v31 = vrot.slane %v18507_v53, %v18503_v23  ;;  %v15999_v59 = vrot.slane %v18508_v0, %v18503_v23  ;;  %v16003_v26 = vrot.slane %v18509_v51, %v18503_v23  ;;  %v16015_v25 = vrot.slane %v18512_v61, %v18503_v23  ;;  %v18516_v58 = vld [vmem:[#allocation32_spill] sm:$0xff]  ;;  %v18519_v0 = vld [vmem:[#allocation97_spill] sm:$0xff] }
 0x70f   :  { %v16019_v10 = vrot.slane %v18129_v60, %v18503_v23  ;;  %v16023_v44 = vrot.slane %v18131_v15, %v18503_v23  ;;  %v16027_v41 = vrot.slane %v14020_v33, %v18503_v23  ;;  %v16031_v18 = vrot.slane %v18502_v56, %v18503_v23  ;;  %v18518_v23 = vld [vmem:[#allocation69_spill] sm:$0xff] }
 0x710   :  { %v7910_v16 = vsel %vm1611_vm12, %v18514_v6, %v18513_v29  ;;  %v7912_v33 = vsel %vm1611_vm12, %v18516_v58, %v15903_v37  ;;  %v7911_v56 = vsel %vm1611_vm12, %v18517_v35, %v15911_v52  ;;  %v7914_v53 = vsel %vm1611_vm12, %v18518_v23, %v15914_v5  ;;  %v18521_v6 = vld [vmem:[#allocation37_spill] sm:$0xff]  ;;  %v18522_v52 = vld [vmem:[#allocation110_spill] sm:$0xff] }
 0x711   :  { %v7869_v63 = vpop.permute.xlu0 %7868  ;;  %v7875_v14 = vpop.permute.xlu1 %7874  ;;  %v7918_v60 = vsel %vm18515_vm14, %v7910_v16, %v7863_v12  ;;  %v7913_v12 = vsel %vm1611_vm12, %v18519_v0, %v15932_v55  ;;  %v7920_v13 = vsel %vm18520_vm2, %v7912_v33, %v7867_v9  ;;  %v7916_v16 = vsel %vm1611_vm12, %v18521_v6, %v15939_v45  ;;  %v18523_v5 = vld [vmem:[#allocation101_spill] sm:$0xff] }
 0x712   :  { %v7919_v58 = vsel %vm18221_vm0, %v7911_v56, %v7865_v42  ;;  %v7922_v9 = vsel %vm18524_vm7, %v7914_v53, %v7871_v27  ;;  %v7924_v33 = vsel %vm18526_vm13, %v7916_v16, %v7875_v14 }
 0x715   :  { %v7873_v46 = vpop.permute.xlu0 %7872  ;;  %v7887_v4 = vpop.permute.xlu1 %7886 }
 0x716   :  { %v7926_v15 = vsel %vm1650_vm8, %v7918_v60, %v7887_v4  ;;  %v7915_v60 = vsel %vm1611_vm12, %v18522_v52, %v15943_v3  ;;  %v7917_v4 = vsel %vm1611_vm12, %v18523_v5, %v7853_v19 }
 0x717   :  { %v7998_v51 = vmul.f32 %v7937_v30, %v7926_v15  ;;  %v7999_v38 = vmul.f32 %v7941_v20, %v7926_v15  ;;  %v8000_v61 = vmul.f32 %v7945_v34, %v7926_v15  ;;  %v8001_v29 = vmul.f32 %v7949_v54, %v7926_v15 }
 0x718   :  { %v7921_v15 = vsel %vm18525_vm10, %v7913_v12, %v7869_v63  ;;  %v7923_v45 = vsel %vm18527_vm5, %v7915_v60, %v7873_v46 }
 0x719   :  { %v7877_v50 = vpop.permute.xlu0 %7876  ;;  %v8062_v23 = vrot.slane %v7998_v51, 7  ;;  %v8065_v19 = vrot.slane %v7999_v38, 7  ;;  %v8068_v6 = vrot.slane %v8000_v61, 7 }
 0x71a   :  { %v7891_v37 = vpop.permute.xlu1 %7890  ;;  %v16066_v0 = vsel %vm18528_vm4, %v7917_v4, %v7877_v50 }
 0x71b   :  { %v7928_v55 = vsel %vm1650_vm8, %v7920_v13, %v7891_v37  ;;  %v8071_v13 = vrot.slane %v8001_v29, 7 }
 0x71c   :  { %v8006_v42 = vmul.f32 %v15987_v62, %v7928_v55  ;;  %v8007_v14 = vmul.f32 %v15991_v32, %v7928_v55  ;;  %v8008_v46 = vmul.f32 %v15995_v31, %v7928_v55  ;;  %v8009_v51 = vmul.f32 %v15999_v59, %v7928_v55 }
 0x71d   :  { %v7889_v35 = vpop.permute.xlu0 %7888 }
 0x71e   :  { %v7927_v3 = vsel %vm1650_vm8, %v7919_v58, %v7889_v35  ;;  %v7895_v56 = vpop.permute.xlu1 %7894 }
 0x71f   :  { %v8002_v27 = vmul.f32 %v7937_v30, %v7927_v3  ;;  %v8003_v53 = vmul.f32 %v7941_v20, %v7927_v3  ;;  %v8004_v63 = vmul.f32 %v7945_v34, %v7927_v3  ;;  %v8005_v12 = vmul.f32 %v7949_v54, %v7927_v3 }
 0x720   :  { %v7930_v50 = vsel %vm1650_vm8, %v7922_v9, %v7895_v56  ;;  %v8074_v56 = vrot.slane %v8006_v42, 7 }
 0x721   :  { %v7893_v37 = vpop.permute.xlu0 %7892  ;;  %v8063_v16 = vrot.slane %v8002_v27, 7  ;;  %v8066_v38 = vrot.slane %v8003_v53, 7  ;;  %v8069_v61 = vrot.slane %v8004_v63, 7  ;;  %v8072_v29 = vrot.slane %v8005_v12, 7 }
 0x722   :  { %v16075_v52 = vmul.f32 %v16003_v26, %v7930_v50  ;;  %v16078_v30 = vmul.f32 %v16007_v7, %v7930_v50  ;;  %v16081_v20 = vmul.f32 %v16011_v21, %v7930_v50  ;;  %v16084_v34 = vmul.f32 %v16015_v25, %v7930_v50  ;;  %v7899_v55 = vpop.permute.xlu1 %7898 }
 0x723   :  { %v8064_v54 = vsel %vm5217_vm15, %v8062_v23, %v8063_v16  ;;  %v8067_v60 = vsel %vm5217_vm15, %v8065_v19, %v8066_v38  ;;  %v8070_v5 = vsel %vm5217_vm15, %v8068_v6, %v8069_v61  ;;  %v8073_v4 = vsel %vm5217_vm15, %v8071_v13, %v8072_v29 }
 0x724   :  { %v8126_v58 = vadd.f32 %v8064_v54, %v15883_v11  ;;  %v8127_v9 = vadd.f32 %v8067_v60, %v15886_v48  ;;  %v8128_v35 = vadd.f32 %v8070_v5, %v15891_v57  ;;  %v8129_v3 = vadd.f32 %v8073_v4, %v15894_v49 }
 0x725   :  { %v8077_v27 = vrot.slane %v8007_v14, 7  ;;  %v8080_v53 = vrot.slane %v8008_v46, 7  ;;  %v8083_v63 = vrot.slane %v8009_v51, 7  ;;  %v7897_v23 = vpop.permute.xlu0 %7896  ;;  %v8086_v19 = vrot.slane %v16075_v52, 7 }
 0x726   :  { %8142 = vst [vmem:[#allocation7] sm:$0xff] %v8126_v58  ;;  %8143 = vst [vmem:[#allocation7 + $0x8] sm:$0xff] %v8127_v9  ;;  %v8089_v6 = vrot.slane %v16078_v30, 7  ;;  %v7929_v11 = vsel %vm1650_vm8, %v7921_v15, %v7893_v37  ;;  %v7932_v48 = vsel %vm1650_vm8, %v7924_v33, %v7899_v55  ;;  %v8092_v12 = vrot.slane %v16081_v20, 7 }
 0x727   :  { %8144 = vst [vmem:[#allocation7 + $0x10] sm:$0xff] %v8128_v35  ;;  %8145 = vst [vmem:[#allocation7 + $0x18] sm:$0xff] %v8129_v3  ;;  %v8010_v57 = vmul.f32 %v15987_v62, %v7929_v11  ;;  %v8011_v49 = vmul.f32 %v15991_v32, %v7929_v11  ;;  %v8012_v13 = vmul.f32 %v15995_v31, %v7929_v11  ;;  %v8095_v14 = vrot.slane %v16084_v34, 7 }
 0x728   :  { %v8013_v42 = vmul.f32 %v15999_v59, %v7929_v11  ;;  %v8022_v46 = vmul.f32 %v16019_v10, %v7932_v48  ;;  %v7931_v51 = vsel %vm1650_vm8, %v7923_v45, %v7897_v23  ;;  %v8023_v62 = vmul.f32 %v16023_v44, %v7932_v48 }
 0x729   :  { %v8075_v50 = vrot.slane %v8010_v57, 7  ;;  %v8078_v15 = vrot.slane %v8011_v49, 7  ;;  %v8081_v37 = vrot.slane %v8012_v13, 7  ;;  %v8024_v32 = vmul.f32 %v16027_v41, %v7932_v48  ;;  %v7901_v45 = vpop.permute.xlu0 %7900 }
 0x72a   :  { %v8084_v33 = vrot.slane %v8013_v42, 7  ;;  %v8025_v31 = vmul.f32 %v16031_v18, %v7932_v48  ;;  %v8098_v16 = vrot.slane %v8022_v46, 7  ;;  %v8018_v54 = vmul.f32 %v16003_v26, %v7931_v51 }
 0x72b   :  { %v8076_v59 = vsel %vm5217_vm15, %v8074_v56, %v8075_v50  ;;  %v8079_v38 = vsel %vm5217_vm15, %v8077_v27, %v8078_v15  ;;  %v8082_v61 = vsel %vm5217_vm15, %v8080_v53, %v8081_v37  ;;  %v8019_v60 = vmul.f32 %v16007_v7, %v7931_v51 }
 0x72c   :  { %v8085_v29 = vsel %vm5217_vm15, %v8083_v63, %v8084_v33  ;;  %v8130_v52 = vadd.f32 %v8076_v59, %v15921_v36  ;;  %v8131_v30 = vadd.f32 %v8079_v38, %v15924_v1  ;;  %v8132_v20 = vadd.f32 %v8082_v61, %v15927_v39 }
 0x72d   :  { %v8133_v34 = vadd.f32 %v8085_v29, %v15930_v47  ;;  %v8020_v5 = vmul.f32 %v16011_v21, %v7931_v51  ;;  %v8021_v4 = vmul.f32 %v16015_v25, %v7931_v51  ;;  %v8101_v55 = vrot.slane %v8023_v62, 7 }
 0x72e   :  { %8146 = vst [vmem:[#allocation7 + $0x20] sm:$0xff] %v8130_v52  ;;  %8147 = vst [vmem:[#allocation7 + $0x28] sm:$0xff] %v8131_v30  ;;  %v8104_v36 = vrot.slane %v8024_v32, 7  ;;  %v8107_v58 = vrot.slane %v8025_v31, 7  ;;  %v7933_v1 = vsel %vm1650_vm8, %v16066_v0, %v7901_v45  ;;  %v8087_v39 = vrot.slane %v8018_v54, 7 }
 0x72f   :  { %8148 = vst [vmem:[#allocation7 + $0x30] sm:$0xff] %v8132_v20  ;;  %8149 = vst [vmem:[#allocation7 + $0x38] sm:$0xff] %v8133_v34  ;;  %v8090_v47 = vrot.slane %v8019_v60, 7  ;;  %v8093_v9 = vrot.slane %v8020_v5, 7  ;;  %v8096_v26 = vrot.slane %v8021_v4, 7  ;;  %v8026_v7 = vmul.f32 %v16019_v10, %v7933_v1 }
 0x730   :  { %v8027_v21 = vmul.f32 %v16023_v44, %v7933_v1  ;;  %v8028_v25 = vmul.f32 %v16027_v41, %v7933_v1  ;;  %v8029_v35 = vmul.f32 %v16031_v18, %v7933_v1  ;;  %v8088_v3 = vsel %vm5217_vm15, %v8086_v19, %v8087_v39 }
 0x731   :  { %v8091_v56 = vsel %vm5217_vm15, %v8089_v6, %v8090_v47  ;;  %v8094_v27 = vsel %vm5217_vm15, %v8092_v12, %v8093_v9  ;;  %v8097_v0 = vsel %vm5217_vm15, %v8095_v14, %v8096_v26  ;;  %v8134_v53 = vadd.f32 %v8088_v3, %v15950_v28 }
 0x732   :  { %v8135_v63 = vadd.f32 %v8091_v56, %v15953_v17  ;;  %v8136_v10 = vadd.f32 %v8094_v27, %v15956_v40  ;;  %v8137_v44 = vadd.f32 %v8097_v0, %v15959_v43  ;;  %v8099_v23 = vrot.slane %v8026_v7, 7 }
 0x733   :  { %v8102_v41 = vrot.slane %v8027_v21, 7  ;;  %v8105_v11 = vrot.slane %v8028_v25, 7  ;;  %v8108_v18 = vrot.slane %v8029_v35, 7  ;;  %8150 = vst [vmem:[#allocation7 + $0x40] sm:$0xff] %v8134_v53 }
 0x734   :  { %8151 = vst [vmem:[#allocation7 + $0x48] sm:$0xff] %v8135_v63  ;;  %8152 = vst [vmem:[#allocation7 + $0x50] sm:$0xff] %v8136_v10  ;;  %v8100_v19 = vsel %vm5217_vm15, %v8098_v16, %v8099_v23 }
 0x735   :  { %8153 = vst [vmem:[#allocation7 + $0x58] sm:$0xff] %v8137_v44  ;;  %v8103_v28 = vsel %vm5217_vm15, %v8101_v55, %v8102_v41  ;;  %v8106_v17 = vsel %vm5217_vm15, %v8104_v36, %v8105_v11  ;;  %v8109_v40 = vsel %vm5217_vm15, %v8107_v58, %v8108_v18  ;;  %v8138_v43 = vadd.f32 %v8100_v19, %v15966_v8 }
 0x736   :  { %v8139_v6 = vadd.f32 %v8103_v28, %v15969_v24  ;;  %v8140_v48 = vadd.f32 %v8106_v17, %v15972_v22  ;;  %v8141_v57 = vadd.f32 %v8109_v40, %v15975_v2 }
 0x737   :  { %8154 = vst [vmem:[#allocation7 + $0x60] sm:$0xff] %v8138_v43 }
 0x738   :  { %8155 = vst [vmem:[#allocation7 + $0x68] sm:$0xff] %v8139_v6  ;;  %8156 = vst [vmem:[#allocation7 + $0x70] sm:$0xff] %v8140_v48 }
 0x739   :  { %8157 = vst [vmem:[#allocation7 + $0x78] sm:$0xff] %v8141_v57 }
 0x73a   :  { %8607 = shalt.err (!%p8604_p6)
}
 0x73b   :  { %s8608_s18 = scalar_lea.hbm %s16163_s5, 2048 }
 0x73c   :  { %p8609_p7 = scmp.ne.s32.totalorder %s16163_s5, %s8608_s18  ;;  %p8612_p8 = scmp.lt.u32.totalorder %s8608_s18, %s16163_s5 }
 0x73e   :  { %p8614_p9 = pnand %p8612_p8, %p8609_p7 }
 0x740   :  { %8617 = shalt.err (!%p8614_p9)
}
 0x741   :  { %8169 = dma.vmem_to_hbm [thread:$0]  %s8164_s2, 2048, %s16163_s5, [#allocation4], %s8628_s0, %s8628_s0, %s8629_s17  }
 0x742   :  { %8622 = dma.done.wait [#allocation4], 2048  }
 0x743   :  { %8623 = vsyncadd [#allocation4], 4294965248 }
 0x744   :  { %8173 = vsyncpa [#allocation3], 1 }
 0x745   :  { %8174 = vsyncpa [#allocation6], 1 }
 0x746   :  { %8175 = vsyncpa [#allocation4], 1 }

</bundles_post_ra>
